<compile_context>
chip_gen: v7x
topology: tpu7x:2x2x1
jax: 0.10.0
libtpu: 0.0.40
codegen_flags: <defaults>
</compile_context>

<pallas_src>
import jax
import jax.numpy as jnp
from jax import lax
from jax.experimental import pallas as pl
from jax.experimental.pallas import tpu as pltpu

NEG_SLOPE = 0.2
BN_EPS = 1e-5
VMEM_LIMIT = 32 * 1024 * 1024  # explicit scoped-VMEM limit; safe on v5e/v6e/v7x


def _round_up(x, m):
    return (x + m - 1) // m * m


# ------------------------------ Pallas kernels ------------------------------

def _make_conv_kernel(apply_lrelu):
    """im2col conv tile as one bf16 MXU matmul (bias folded into w via ones column
    in a).  Optional fused LeakyReLU(0.2) epilogue, computed in f32."""
    def kernel(a_ref, w_ref, o_ref):
        z = jnp.dot(a_ref[...], w_ref[...], preferred_element_type=jnp.float32)
        if apply_lrelu:
            z = jnp.where(z >= 0, z, NEG_SLOPE * z)
        o_ref[...] = z.astype(o_ref.dtype)
    return kernel


def _conv_stats_kernel(a_ref, w_ref, z_ref, stats_ref):
    """No-bias conv tile + per-channel sum / sum-of-squares accumulation for the
    two-pass (tile-able) BatchNorm.  stats block is resident across the
    'arbitrary' M axis: init at step 0, accumulate every step."""
    i = pl.program_id(0)
    z = jnp.dot(a_ref[...], w_ref[...], preferred_element_type=jnp.float32)
    z_ref[...] = z

    @pl.when(i == 0)
    def _():
        stats_ref[...] = jnp.zeros_like(stats_ref)

    stats_ref[0:1, :] += jnp.sum(z, axis=0, keepdims=True)
    stats_ref[1:2, :] += jnp.sum(z * z, axis=0, keepdims=True)


def _bn_lrelu_kernel(z_ref, scale_ref, shift_ref, o_ref):
    """Apply precomputed BatchNorm scale/shift + LeakyReLU(0.2), elementwise (f32)."""
    y = z_ref[...] * scale_ref[...] + shift_ref[...]
    o_ref[...] = jnp.where(y >= 0, y, NEG_SLOPE * y).astype(o_ref.dtype)


# ------------------------------ pallas_call wrappers ------------------------------

def _pallas_conv(a, w, *, lrelu, out_dtype, tile_m):
    M, K = a.shape
    _, C = w.shape
    grid_m = M // tile_m
    cost = pl.CostEstimate(flops=2 * M * K * C, transcendentals=0,
                           bytes_accessed=a.size * 2 + w.size * 2 + M * C * 4)
    return pl.pallas_call(
        _make_conv_kernel(lrelu),
        out_shape=jax.ShapeDtypeStruct((M, C), out_dtype),
        grid=(grid_m,),
        in_specs=[pl.BlockSpec((tile_m, K), lambda i: (i, 0)),
                  pl.BlockSpec((K, C), lambda i: (0, 0))],
        out_specs=pl.BlockSpec((tile_m, C), lambda i: (i, 0)),
        compiler_params=pltpu.CompilerParams(
            dimension_semantics=("parallel",), vmem_limit_bytes=VMEM_LIMIT),
        cost_estimate=cost,
    )(a, w)


def _pallas_conv_stats(a, w, *, tile_m):
    M, K = a.shape
    _, C = w.shape
    grid_m = M // tile_m
    cost = pl.CostEstimate(flops=2 * M * K * C + 3 * M * C, transcendentals=0,
                           bytes_accessed=a.size * 2 + w.size * 2 + M * C * 4)
    return pl.pallas_call(
        _conv_stats_kernel,
        out_shape=(jax.ShapeDtypeStruct((M, C), jnp.float32),
                   jax.ShapeDtypeStruct((8, C), jnp.float32)),   # rows 0/1 = sum / sumsq
        grid=(grid_m,),
        in_specs=[pl.BlockSpec((tile_m, K), lambda i: (i, 0)),
                  pl.BlockSpec((K, C), lambda i: (0, 0))],
        out_specs=[pl.BlockSpec((tile_m, C), lambda i: (i, 0)),
                   pl.BlockSpec((8, C), lambda i: (0, 0))],
        compiler_params=pltpu.CompilerParams(
            dimension_semantics=("arbitrary",), vmem_limit_bytes=VMEM_LIMIT),
        cost_estimate=cost,
    )(a, w)


def _pallas_bn_lrelu(z, scale, shift, *, out_dtype, tile_m):
    M, C = z.shape
    grid_m = M // tile_m
    cost = pl.CostEstimate(flops=4 * M * C, transcendentals=0,
                           bytes_accessed=z.size * 4 + M * C * 2)
    return pl.pallas_call(
        _bn_lrelu_kernel,
        out_shape=jax.ShapeDtypeStruct((M, C), out_dtype),
        grid=(grid_m,),
        in_specs=[pl.BlockSpec((tile_m, C), lambda i: (i, 0)),
                  pl.BlockSpec((1, C), lambda i: (0, 0)),
                  pl.BlockSpec((1, C), lambda i: (0, 0))],
        out_specs=pl.BlockSpec((tile_m, C), lambda i: (i, 0)),
        compiler_params=pltpu.CompilerParams(
            dimension_semantics=("parallel",), vmem_limit_bytes=VMEM_LIMIT),
        cost_estimate=cost,
    )(z, scale, shift)


# ------------------------------- JAX glue --------------------------------

def _im2col(x_nhwc, ksize, stride, pad):
    """Zero-pad + k x k patch extraction; patch channel order = (kh, kw, ci)."""
    x = jnp.pad(x_nhwc, ((0, 0), (pad, pad), (pad, pad), (0, 0)))
    N, Hp, Wp, C = x.shape
    Ho = (Hp - ksize) // stride + 1
    Wo = (Wp - ksize) // stride + 1
    cols = []
    for kh in range(ksize):
        for kw in range(ksize):
            cols.append(x[:, kh:kh + stride * (Ho - 1) + 1:stride,
                          kw:kw + stride * (Wo - 1) + 1:stride, :])
    a = jnp.concatenate(cols, axis=-1).reshape(N * Ho * Wo, ksize * ksize * C)
    return a, (N, Ho, Wo)


def _weight_to_matrix(w_oihw):
    """PyTorch (Cout, Cin, kh, kw) -> (kh*kw*Cin, Cout), matching im2col order."""
    Cout, Cin, KH, KW = w_oihw.shape
    return jnp.transpose(w_oihw, (2, 3, 1, 0)).reshape(KH * KW * Cin, Cout)


def _prep_conv_inputs(x_nhwc, w_oihw, bias, stride, tile_m):
    """im2col, fold bias (ones column / bias row), pad K to 128 lanes, pad M to the
    tile size, cast matmul operands to bf16."""
    a, (N, Ho, Wo) = _im2col(x_nhwc, 4, stride, 1)
    M, K = a.shape
    w = _weight_to_matrix(w_oihw).astype(jnp.float32)
    if bias is not None:
        a = jnp.concatenate([a, jnp.ones((M, 1), a.dtype)], axis=1)
        w = jnp.concatenate([w, bias.reshape(1, -1)], axis=0)
        K += 1
    k_pad = _round_up(K, 128)
    tm = min(tile_m, _round_up(M, 16))
    m_pad = _round_up(M, tm)
    a = jnp.pad(a, ((0, m_pad - M), (0, k_pad - K))).astype(jnp.bfloat16)
    w = jnp.pad(w, ((0, k_pad - K), (0, 0))).astype(jnp.bfloat16)
    return a, w, (N, Ho, Wo, M, tm)


def build_forward(input_nc, ndf, n_layers, nz_D, tile_m=512):
    """Returns forward(x, noise, params) for the given (static) architecture."""
    del input_nc, nz_D  # shapes are carried by the arrays themselves

    def forward(x_nchw, noise_nchw, params):
        h = jnp.concatenate([x_nchw, noise_nchw], axis=1)        # torch.cat(dim=1)
        h = jnp.transpose(h, (0, 2, 3, 1))                       # NCHW -> NHWC

        # layer 0: Conv4x4 s2 p1 (+bias) with fused LeakyReLU(0.2)
        a, w, (N, Ho, Wo, M, tm) = _prep_conv_inputs(h, params['w0'], params['b0'], 2, tile_m)
        y = _pallas_conv(a, w, lrelu=True, out_dtype=jnp.bfloat16, tile_m=tm)
        h = y[:M].reshape(N, Ho, Wo, params['w0'].shape[0])

        # middle layers: Conv (no bias) + BatchNorm (batch stats) + LeakyReLU
        for i in range(1, n_layers + 1):
            stride = 2 if i < n_layers else 1
            wi = params[f'w{i}']
            a, w, (N, Ho, Wo, M, tm) = _prep_conv_inputs(h, wi, None, stride, tile_m)
            z, stats = _pallas_conv_stats(a, w, tile_m=tm)       # z: (M_pad, C) f32
            mean = stats[0] / M                                   # padded rows are exactly 0
            var = jnp.maximum(stats[1] / M - mean * mean, 0.0)
            scale = params[f'gamma{i}'] * lax.rsqrt(var + BN_EPS)
            shift = params[f'beta{i}'] - mean * scale
            y = _pallas_bn_lrelu(z, scale.reshape(1, -1), shift.reshape(1, -1),
                                 out_dtype=jnp.bfloat16, tile_m=tm)
            h = y[:M].reshape(N, Ho, Wo, wi.shape[0])

        # final layer: Conv4x4 s1 p1 (+bias), 1 output channel.  Pad Cout to 128 so
        # the matmul / stores are lane-dense, then slice the real channel back out.
        w_out = jnp.pad(params['w_out'], ((0, 127), (0, 0), (0, 0), (0, 0)))
        b_out = jnp.pad(params['b_out'], ((0, 127),))
        a, w, (N, Ho, Wo, M, tm) = _prep_conv_inputs(h, w_out, b_out, 1, tile_m)
        y = _pallas_conv(a, w, lrelu=False, out_dtype=jnp.float32, tile_m=tm)
        out = y[:M, :1].reshape(N, Ho, Wo, 1)
        return jnp.transpose(out, (0, 3, 1, 2))                  # NHWC -> NCHW

    return forward


def init_params(key, input_nc, ndf, n_layers, nz_D):
    """Synthetic parameters matching the module (pix2pix-style N(0, 0.02) conv init,
    BatchNorm gamma=1 / beta=0)."""
    keys = jax.random.split(key, n_layers + 4)
    params = {}
    cin = input_nc + nz_D
    params['w0'] = 0.02 * jax.random.normal(keys[0], (ndf, cin, 4, 4), jnp.float32)
    params['b0'] = 0.02 * jax.random.normal(keys[1], (ndf,), jnp.float32)
    nf = 1
    last_c = ndf
    for i in range(1, n_layers + 1):
        nf_prev, nf = nf, min(2 ** i, 8)
        cout, cin_i = ndf * nf, ndf * nf_prev
        params[f'w{i}'] = 0.02 * jax.random.normal(keys[1 + i], (cout, cin_i, 4, 4), jnp.float32)
        params[f'gamma{i}'] = jnp.ones((cout,), jnp.float32)
        params[f'beta{i}'] = jnp.zeros((cout,), jnp.float32)
        last_c = cout
    params['w_out'] = 0.02 * jax.random.normal(keys[n_layers + 2], (1, last_c, 4, 4), jnp.float32)
    params['b_out'] = 0.02 * jax.random.normal(keys[n_layers + 3], (1,), jnp.float32)
    return params


# ---------------------- pure-JAX reference (for the check) ----------------------

def reference_forward(x, noise, params, n_layers):
    """lax.conv reference: matmul operands quantized to bf16 (f32 accumulation) just
    like the Pallas path; BatchNorm / LeakyReLU in f32, training-mode batch stats."""
    dn = ('NCHW', 'OIHW', 'NCHW')

    def conv(h, w, stride):
        return lax.conv_general_dilated(
            h.astype(jnp.bfloat16), w.astype(jnp.bfloat16), (stride, stride),
            ((1, 1), (1, 1)), dimension_numbers=dn,
            preferred_element_type=jnp.float32)

    h = jnp.concatenate([x, noise], axis=1)
    z = conv(h, params['w0'], 2) + params['b0'][None, :, None, None]
    h = jnp.where(z >= 0, z, NEG_SLOPE * z)
    for i in range(1, n_layers + 1):
        stride = 2 if i < n_layers else 1
        z = conv(h, params[f'w{i}'], stride)
        mean = jnp.mean(z, axis=(0, 2, 3), keepdims=True)
        var = jnp.mean((z - mean) ** 2, axis=(0, 2, 3), keepdims=True)
        zn = (z - mean) * lax.rsqrt(var + BN_EPS)
        zn = zn * params[f'gamma{i}'][None, :, None, None] + params[f'beta{i}'][None, :, None, None]
        h = jnp.where(zn >= 0, zn, NEG_SLOPE * zn)
    return conv(h, params['w_out'], 1) + params['b_out'][None, :, None, None]


# --------------------------------- main ------------------------------------

if __name__ == "__main__":
    INPUT_NC, NDF, N_LAYERS, NZ_D = 3, 8, 3, 4
    N, H, W = 2, 128, 128   # small; large enough spatially to exercise multi-tile grids

    key = jax.random.PRNGKey(0)
    kx, kn, kp = jax.random.split(key, 3)
    x = jax.random.normal(kx, (N, INPUT_NC, H, W), jnp.float32)
    noise = jax.random.normal(kn, (N, NZ_D, H, W), jnp.float32)
    params = init_params(kp, INPUT_NC, NDF, N_LAYERS, NZ_D)

    forward = jax.jit(build_forward(INPUT_NC, NDF, N_LAYERS, NZ_D, tile_m=512))
    out = jax.block_until_ready(forward(x, noise, params))

    Ho = H // 8 - 2  # three stride-2 convs, then two 4x4 stride-1 pad-1 convs
    assert out.shape == (N, 1, Ho, Ho), out.shape

    ref = reference_forward(x, noise, params, N_LAYERS)
    max_err = float(jnp.max(jnp.abs(out - ref)))
    assert max_err < 1e-2, f"mismatch vs reference: {max_err}"

    print("KERNEL_OK")
</pallas_src>

<mosaic_0001>
module attributes {stable_mosaic.version = 11 : i64} {
  func.func @kernel(%arg0: i32, %arg1: memref<512x128xbf16, #tpu.memory_space<vmem>>, %arg2: memref<128x8xbf16, #tpu.memory_space<vmem>>, %arg3: memref<512x8xbf16, #tpu.memory_space<vmem>>) attributes {dimension_semantics = [#tpu.dimension_semantics<parallel>], iteration_bounds = array<i64: 16>, scalar_prefetch = 0 : i64, scratch_operands = 0 : i64, tpu.core_type = #tpu.core_type<tc>, window_params = [{transform_indices = @transform_0, window_bounds = array<i64: 512, 128>}, {pipeline_mode = #tpu.pipeline_mode<synchronous>, transform_indices = @transform_1, window_bounds = array<i64: 128, 8>}, {transform_indices = @transform_2, window_bounds = array<i64: 512, 8>}]} {
    %c0 = arith.constant 0 : index
    %c0_0 = arith.constant 0 : index
    %0 = vector.load %arg1[%c0, %c0_0] : memref<512x128xbf16, #tpu.memory_space<vmem>>, vector<512x128xbf16>
    %c0_1 = arith.constant 0 : index
    %c0_2 = arith.constant 0 : index
    %1 = vector.load %arg2[%c0_1, %c0_2] : memref<128x8xbf16, #tpu.memory_space<vmem>>, vector<128x8xbf16>
    %cst = arith.constant dense<0.000000e+00> : vector<512x8xf32>
    %2 = tpu.matmul %0, %1, %cst {dimension_numbers = #tpu.dot_dimension_numbers<[1], [0], [0], [1], [0, 0, 1, 1], [], []>} : vector<512x128xbf16>, vector<128x8xbf16>, vector<512x8xf32> -> vector<512x8xf32>
    %cst_3 = arith.constant 0.000000e+00 : f32
    %3 = vector.broadcast %cst_3 : f32 to vector<512x8xf32>
    %4 = arith.cmpf oge, %2, %3 : vector<512x8xf32>
    %cst_4 = arith.constant 2.000000e-01 : f32
    %5 = vector.broadcast %cst_4 : f32 to vector<512x8xf32>
    %6 = arith.mulf %5, %2 : vector<512x8xf32>
    %7 = arith.select %4, %2, %6 : vector<512x8xi1>, vector<512x8xf32>
    %8 = arith.truncf %7 : vector<512x8xf32> to vector<512x8xbf16>
    %c0_5 = arith.constant 0 : index
    %c0_6 = arith.constant 0 : index
    %9 = vector.load %arg3[%c0_5, %c0_6] : memref<512x8xbf16, #tpu.memory_space<vmem>>, vector<512x8xbf16>
    tpu.vector_store %arg3[%c0_5, %c0_6], %8 {strides = array<i32>} : memref<512x8xbf16, #tpu.memory_space<vmem>>, vector<512x8xbf16>,
    return
  }
  func.func @transform_0(%arg0: i32) -> (i32, i32) {
    %c0_i32 = arith.constant 0 : i32
    %c0_i32_0 = arith.constant 0 : i32
    return %arg0, %c0_i32 : i32, i32
  }
  func.func @transform_1(%arg0: i32) -> (i32, i32) {
    %c0_i32 = arith.constant 0 : i32
    %c0_i32_0 = arith.constant 0 : i32
    %c0_i32_1 = arith.constant 0 : i32
    return %c0_i32, %c0_i32_0 : i32, i32
  }
  func.func @transform_2(%arg0: i32) -> (i32, i32) {
    %c0_i32 = arith.constant 0 : i32
    %c0_i32_0 = arith.constant 0 : i32
    return %arg0, %c0_i32 : i32, i32
  }
}

module attributes {stable_mosaic.version = 11 : i64} {
  func.func @_bn_lrelu_kernel(%arg0: i32, %arg1: memref<512x16xf32, #tpu.memory_space<vmem>>, %arg2: memref<1x16xf32, #tpu.memory_space<vmem>>, %arg3: memref<1x16xf32, #tpu.memory_space<vmem>>, %arg4: memref<512x16xbf16, #tpu.memory_space<vmem>>) attributes {dimension_semantics = [#tpu.dimension_semantics<parallel>], iteration_bounds = array<i64: 4>, scalar_prefetch = 0 : i64, scratch_operands = 0 : i64, tpu.core_type = #tpu.core_type<tc>, window_params = [{transform_indices = @transform_0, window_bounds = array<i64: 512, 16>}, {pipeline_mode = #tpu.pipeline_mode<synchronous>, transform_indices = @transform_1, window_bounds = array<i64: 1, 16>}, {pipeline_mode = #tpu.pipeline_mode<synchronous>, transform_indices = @transform_2, window_bounds = array<i64: 1, 16>}, {transform_indices = @transform_3, window_bounds = array<i64: 512, 16>}]} {
    %c0 = arith.constant 0 : index
    %c0_0 = arith.constant 0 : index
    %0 = vector.load %arg1[%c0, %c0_0] : memref<512x16xf32, #tpu.memory_space<vmem>>, vector<512x16xf32>
    %c0_1 = arith.constant 0 : index
    %c0_2 = arith.constant 0 : index
    %1 = vector.load %arg2[%c0_1, %c0_2] : memref<1x16xf32, #tpu.memory_space<vmem>>, vector<1x16xf32>
    %2 = vector.broadcast %1 : vector<1x16xf32> to vector<512x16xf32>
    %3 = arith.mulf %0, %2 : vector<512x16xf32>
    %c0_3 = arith.constant 0 : index
    %c0_4 = arith.constant 0 : index
    %4 = vector.load %arg3[%c0_3, %c0_4] : memref<1x16xf32, #tpu.memory_space<vmem>>, vector<1x16xf32>
    %5 = vector.broadcast %4 : vector<1x16xf32> to vector<512x16xf32>
    %6 = arith.addf %3, %5 : vector<512x16xf32>
    %cst = arith.constant 0.000000e+00 : f32
    %7 = vector.broadcast %cst : f32 to vector<512x16xf32>
    %8 = arith.cmpf oge, %6, %7 : vector<512x16xf32>
    %cst_5 = arith.constant 2.000000e-01 : f32
    %9 = vector.broadcast %cst_5 : f32 to vector<512x16xf32>
    %10 = arith.mulf %9, %6 : vector<512x16xf32>
    %11 = arith.select %8, %6, %10 : vector<512x16xi1>, vector<512x16xf32>
    %12 = arith.truncf %11 : vector<512x16xf32> to vector<512x16xbf16>
    %c0_6 = arith.constant 0 : index
    %c0_7 = arith.constant 0 : index
    %13 = vector.load %arg4[%c0_6, %c0_7] : memref<512x16xbf16, #tpu.memory_space<vmem>>, vector<512x16xbf16>
    tpu.vector_store %arg4[%c0_6, %c0_7], %12 {strides = array<i32>} : memref<512x16xbf16, #tpu.memory_space<vmem>>, vector<512x16xbf16>,
    return
  }
  func.func @transform_0(%arg0: i32) -> (i32, i32) {
    %c0_i32 = arith.constant 0 : i32
    %c0_i32_0 = arith.constant 0 : i32
    return %arg0, %c0_i32 : i32, i32
  }
  func.func @transform_1(%arg0: i32) -> (i32, i32) {
    %c0_i32 = arith.constant 0 : i32
    %c0_i32_0 = arith.constant 0 : i32
    %c0_i32_1 = arith.constant 0 : i32
    return %c0_i32, %c0_i32_0 : i32, i32
  }
  func.func @transform_2(%arg0: i32) -> (i32, i32) {
    %c0_i32 = arith.constant 0 : i32
    %c0_i32_0 = arith.constant 0 : i32
    %c0_i32_1 = arith.constant 0 : i32
    return %c0_i32, %c0_i32_0 : i32, i32
  }
  func.func @transform_3(%arg0: i32) -> (i32, i32) {
    %c0_i32 = arith.constant 0 : i32
    %c0_i32_0 = arith.constant 0 : i32
    return %arg0, %c0_i32 : i32, i32
  }
}

module attributes {stable_mosaic.version = 11 : i64} {
  func.func @_conv_stats_kernel(%arg0: i32, %arg1: memref<512x128xbf16, #tpu.memory_space<vmem>>, %arg2: memref<128x16xbf16, #tpu.memory_space<vmem>>, %arg3: memref<512x16xf32, #tpu.memory_space<vmem>>, %arg4: memref<8x16xf32, #tpu.memory_space<vmem>>) attributes {dimension_semantics = [#tpu.dimension_semantics<arbitrary>], iteration_bounds = array<i64: 4>, scalar_prefetch = 0 : i64, scratch_operands = 0 : i64, tpu.core_type = #tpu.core_type<tc>, window_params = [{transform_indices = @transform_0, window_bounds = array<i64: 512, 128>}, {pipeline_mode = #tpu.pipeline_mode<synchronous>, transform_indices = @transform_1, window_bounds = array<i64: 128, 16>}, {transform_indices = @transform_2, window_bounds = array<i64: 512, 16>}, {pipeline_mode = #tpu.pipeline_mode<synchronous>, transform_indices = @transform_3, window_bounds = array<i64: 8, 16>}]} {
    %c0 = arith.constant 0 : index
    %c0_0 = arith.constant 0 : index
    %0 = vector.load %arg1[%c0, %c0_0] : memref<512x128xbf16, #tpu.memory_space<vmem>>, vector<512x128xbf16>
    %c0_1 = arith.constant 0 : index
    %c0_2 = arith.constant 0 : index
    %1 = vector.load %arg2[%c0_1, %c0_2] : memref<128x16xbf16, #tpu.memory_space<vmem>>, vector<128x16xbf16>
    %cst = arith.constant dense<0.000000e+00> : vector<512x16xf32>
    %2 = tpu.matmul %0, %1, %cst {dimension_numbers = #tpu.dot_dimension_numbers<[1], [0], [0], [1], [0, 0, 1, 1], [], []>} : vector<512x128xbf16>, vector<128x16xbf16>, vector<512x16xf32> -> vector<512x16xf32>
    %c0_3 = arith.constant 0 : index
    %c0_4 = arith.constant 0 : index
    %3 = vector.load %arg3[%c0_3, %c0_4] : memref<512x16xf32, #tpu.memory_space<vmem>>, vector<512x16xf32>
    tpu.vector_store %arg3[%c0_3, %c0_4], %2 {strides = array<i32>} : memref<512x16xf32, #tpu.memory_space<vmem>>, vector<512x16xf32>,
    %c0_i32 = arith.constant 0 : i32
    %4 = arith.cmpi eq, %arg0, %c0_i32 : i32
    %5 = arith.extui %4 : i1 to i32
    %c0_i32_5 = arith.constant 0 : i32
    %6 = arith.cmpi ne, %5, %c0_i32_5 : i32
    scf.if %6 {
      %cst_15 = arith.constant 0.000000e+00 : f32
      %18 = vector.broadcast %cst_15 : f32 to vector<8x16xf32>
      %c0_16 = arith.constant 0 : index
      %c0_17 = arith.constant 0 : index
      %19 = vector.load %arg4[%c0_16, %c0_17] : memref<8x16xf32, #tpu.memory_space<vmem>>, vector<8x16xf32>
      tpu.vector_store %arg4[%c0_16, %c0_17], %18 {strides = array<i32>} : memref<8x16xf32, #tpu.memory_space<vmem>>, vector<8x16xf32>,
    } else {
    }
    %c0_6 = arith.constant 0 : index
    %c0_7 = arith.constant 0 : index
    %7 = vector.load %arg4[%c0_6, %c0_7] : memref<8x16xf32, #tpu.memory_space<vmem>>, vector<1x16xf32>
    %cst_8 = arith.constant dense<0.000000e+00> : vector<16xf32>
    %8 = vector.multi_reduction <add>, %2, %cst_8 [0] : vector<512x16xf32> to vector<16xf32>
    %9 = vector.shape_cast %8 : vector<16xf32> to vector<1x16xf32>
    %10 = arith.addf %7, %9 : vector<1x16xf32>
    %c0_9 = arith.constant 0 : index
    %c0_10 = arith.constant 0 : index
    %11 = vector.load %arg4[%c0_9, %c0_10] : memref<8x16xf32, #tpu.memory_space<vmem>>, vector<1x16xf32>
    tpu.vector_store %arg4[%c0_9, %c0_10], %10 {strides = array<i32>} : memref<8x16xf32, #tpu.memory_space<vmem>>, vector<1x16xf32>,
    %c1 = arith.constant 1 : index
    %c0_11 = arith.constant 0 : index
    %12 = vector.load %arg4[%c1, %c0_11] : memref<8x16xf32, #tpu.memory_space<vmem>>, vector<1x16xf32>
    %13 = arith.mulf %2, %2 : vector<512x16xf32>
    %cst_12 = arith.constant dense<0.000000e+00> : vector<16xf32>
    %14 = vector.multi_reduction <add>, %13, %cst_12 [0] : vector<512x16xf32> to vector<16xf32>
    %15 = vector.shape_cast %14 : vector<16xf32> to vector<1x16xf32>
    %16 = arith.addf %12, %15 : vector<1x16xf32>
    %c1_13 = arith.constant 1 : index
    %c0_14 = arith.constant 0 : index
    %17 = vector.load %arg4[%c1_13, %c0_14] : memref<8x16xf32, #tpu.memory_space<vmem>>, vector<1x16xf32>
    tpu.vector_store %arg4[%c1_13, %c0_14], %16 {strides = array<i32>} : memref<8x16xf32, #tpu.memory_space<vmem>>, vector<1x16xf32>,
    return
  }
  func.func @transform_0(%arg0: i32) -> (i32, i32) {
    %c0_i32 = arith.constant 0 : i32
    %c0_i32_0 = arith.constant 0 : i32
    return %arg0, %c0_i32 : i32, i32
  }
  func.func @transform_1(%arg0: i32) -> (i32, i32) {
    %c0_i32 = arith.constant 0 : i32
    %c0_i32_0 = arith.constant 0 : i32
    %c0_i32_1 = arith.constant 0 : i32
    return %c0_i32, %c0_i32_0 : i32, i32
  }
  func.func @transform_2(%arg0: i32) -> (i32, i32) {
    %c0_i32 = arith.constant 0 : i32
    %c0_i32_0 = arith.constant 0 : i32
    return %arg0, %c0_i32 : i32, i32
  }
  func.func @transform_3(%arg0: i32) -> (i32, i32) {
    %c0_i32 = arith.constant 0 : i32
    %c0_i32_0 = arith.constant 0 : i32
    %c0_i32_1 = arith.constant 0 : i32
    return %c0_i32, %c0_i32_0 : i32, i32
  }
}

module attributes {stable_mosaic.version = 11 : i64} {
  func.func @_bn_lrelu_kernel(%arg0: i32, %arg1: memref<512x32xf32, #tpu.memory_space<vmem>>, %arg2: memref<1x32xf32, #tpu.memory_space<vmem>>, %arg3: memref<1x32xf32, #tpu.memory_space<vmem>>, %arg4: memref<512x32xbf16, #tpu.memory_space<vmem>>) attributes {dimension_semantics = [#tpu.dimension_semantics<parallel>], iteration_bounds = array<i64: 1>, scalar_prefetch = 0 : i64, scratch_operands = 0 : i64, tpu.core_type = #tpu.core_type<tc>, window_params = [{transform_indices = @transform_0, window_bounds = array<i64: 512, 32>}, {pipeline_mode = #tpu.pipeline_mode<synchronous>, transform_indices = @transform_1, window_bounds = array<i64: 1, 32>}, {pipeline_mode = #tpu.pipeline_mode<synchronous>, transform_indices = @transform_2, window_bounds = array<i64: 1, 32>}, {transform_indices = @transform_3, window_bounds = array<i64: 512, 32>}]} {
    %c0 = arith.constant 0 : index
    %c0_0 = arith.constant 0 : index
    %0 = vector.load %arg1[%c0, %c0_0] : memref<512x32xf32, #tpu.memory_space<vmem>>, vector<512x32xf32>
    %c0_1 = arith.constant 0 : index
    %c0_2 = arith.constant 0 : index
    %1 = vector.load %arg2[%c0_1, %c0_2] : memref<1x32xf32, #tpu.memory_space<vmem>>, vector<1x32xf32>
    %2 = vector.broadcast %1 : vector<1x32xf32> to vector<512x32xf32>
    %3 = arith.mulf %0, %2 : vector<512x32xf32>
    %c0_3 = arith.constant 0 : index
    %c0_4 = arith.constant 0 : index
    %4 = vector.load %arg3[%c0_3, %c0_4] : memref<1x32xf32, #tpu.memory_space<vmem>>, vector<1x32xf32>
    %5 = vector.broadcast %4 : vector<1x32xf32> to vector<512x32xf32>
    %6 = arith.addf %3, %5 : vector<512x32xf32>
    %cst = arith.constant 0.000000e+00 : f32
    %7 = vector.broadcast %cst : f32 to vector<512x32xf32>
    %8 = arith.cmpf oge, %6, %7 : vector<512x32xf32>
    %cst_5 = arith.constant 2.000000e-01 : f32
    %9 = vector.broadcast %cst_5 : f32 to vector<512x32xf32>
    %10 = arith.mulf %9, %6 : vector<512x32xf32>
    %11 = arith.select %8, %6, %10 : vector<512x32xi1>, vector<512x32xf32>
    %12 = arith.truncf %11 : vector<512x32xf32> to vector<512x32xbf16>
    %c0_6 = arith.constant 0 : index
    %c0_7 = arith.constant 0 : index
    %13 = vector.load %arg4[%c0_6, %c0_7] : memref<512x32xbf16, #tpu.memory_space<vmem>>, vector<512x32xbf16>
    tpu.vector_store %arg4[%c0_6, %c0_7], %12 {strides = array<i32>} : memref<512x32xbf16, #tpu.memory_space<vmem>>, vector<512x32xbf16>,
    return
  }
  func.func @transform_0(%arg0: i32) -> (i32, i32) {
    %c0_i32 = arith.constant 0 : i32
    %c0_i32_0 = arith.constant 0 : i32
    return %arg0, %c0_i32 : i32, i32
  }
  func.func @transform_1(%arg0: i32) -> (i32, i32) {
    %c0_i32 = arith.constant 0 : i32
    %c0_i32_0 = arith.constant 0 : i32
    %c0_i32_1 = arith.constant 0 : i32
    return %c0_i32, %c0_i32_0 : i32, i32
  }
  func.func @transform_2(%arg0: i32) -> (i32, i32) {
    %c0_i32 = arith.constant 0 : i32
    %c0_i32_0 = arith.constant 0 : i32
    %c0_i32_1 = arith.constant 0 : i32
    return %c0_i32, %c0_i32_0 : i32, i32
  }
  func.func @transform_3(%arg0: i32) -> (i32, i32) {
    %c0_i32 = arith.constant 0 : i32
    %c0_i32_0 = arith.constant 0 : i32
    return %arg0, %c0_i32 : i32, i32
  }
}

module attributes {stable_mosaic.version = 11 : i64} {
  func.func @_conv_stats_kernel(%arg0: i32, %arg1: memref<512x256xbf16, #tpu.memory_space<vmem>>, %arg2: memref<256x32xbf16, #tpu.memory_space<vmem>>, %arg3: memref<512x32xf32, #tpu.memory_space<vmem>>, %arg4: memref<8x32xf32, #tpu.memory_space<vmem>>) attributes {dimension_semantics = [#tpu.dimension_semantics<arbitrary>], iteration_bounds = array<i64: 1>, scalar_prefetch = 0 : i64, scratch_operands = 0 : i64, tpu.core_type = #tpu.core_type<tc>, window_params = [{transform_indices = @transform_0, window_bounds = array<i64: 512, 256>}, {pipeline_mode = #tpu.pipeline_mode<synchronous>, transform_indices = @transform_1, window_bounds = array<i64: 256, 32>}, {transform_indices = @transform_2, window_bounds = array<i64: 512, 32>}, {pipeline_mode = #tpu.pipeline_mode<synchronous>, transform_indices = @transform_3, window_bounds = array<i64: 8, 32>}]} {
    %c0 = arith.constant 0 : index
    %c0_0 = arith.constant 0 : index
    %0 = vector.load %arg1[%c0, %c0_0] : memref<512x256xbf16, #tpu.memory_space<vmem>>, vector<512x256xbf16>
    %c0_1 = arith.constant 0 : index
    %c0_2 = arith.constant 0 : index
    %1 = vector.load %arg2[%c0_1, %c0_2] : memref<256x32xbf16, #tpu.memory_space<vmem>>, vector<256x32xbf16>
    %cst = arith.constant dense<0.000000e+00> : vector<512x32xf32>
    %2 = tpu.matmul %0, %1, %cst {dimension_numbers = #tpu.dot_dimension_numbers<[1], [0], [0], [1], [0, 0, 1, 1], [], []>} : vector<512x256xbf16>, vector<256x32xbf16>, vector<512x32xf32> -> vector<512x32xf32>
    %c0_3 = arith.constant 0 : index
    %c0_4 = arith.constant 0 : index
    %3 = vector.load %arg3[%c0_3, %c0_4] : memref<512x32xf32, #tpu.memory_space<vmem>>, vector<512x32xf32>
    tpu.vector_store %arg3[%c0_3, %c0_4], %2 {strides = array<i32>} : memref<512x32xf32, #tpu.memory_space<vmem>>, vector<512x32xf32>,
    %c0_i32 = arith.constant 0 : i32
    %4 = arith.cmpi eq, %arg0, %c0_i32 : i32
    %5 = arith.extui %4 : i1 to i32
    %c0_i32_5 = arith.constant 0 : i32
    %6 = arith.cmpi ne, %5, %c0_i32_5 : i32
    scf.if %6 {
      %cst_15 = arith.constant 0.000000e+00 : f32
      %18 = vector.broadcast %cst_15 : f32 to vector<8x32xf32>
      %c0_16 = arith.constant 0 : index
      %c0_17 = arith.constant 0 : index
      %19 = vector.load %arg4[%c0_16, %c0_17] : memref<8x32xf32, #tpu.memory_space<vmem>>, vector<8x32xf32>
      tpu.vector_store %arg4[%c0_16, %c0_17], %18 {strides = array<i32>} : memref<8x32xf32, #tpu.memory_space<vmem>>, vector<8x32xf32>,
    } else {
    }
    %c0_6 = arith.constant 0 : index
    %c0_7 = arith.constant 0 : index
    %7 = vector.load %arg4[%c0_6, %c0_7] : memref<8x32xf32, #tpu.memory_space<vmem>>, vector<1x32xf32>
    %cst_8 = arith.constant dense<0.000000e+00> : vector<32xf32>
    %8 = vector.multi_reduction <add>, %2, %cst_8 [0] : vector<512x32xf32> to vector<32xf32>
    %9 = vector.shape_cast %8 : vector<32xf32> to vector<1x32xf32>
    %10 = arith.addf %7, %9 : vector<1x32xf32>
    %c0_9 = arith.constant 0 : index
    %c0_10 = arith.constant 0 : index
    %11 = vector.load %arg4[%c0_9, %c0_10] : memref<8x32xf32, #tpu.memory_space<vmem>>, vector<1x32xf32>
    tpu.vector_store %arg4[%c0_9, %c0_10], %10 {strides = array<i32>} : memref<8x32xf32, #tpu.memory_space<vmem>>, vector<1x32xf32>,
    %c1 = arith.constant 1 : index
    %c0_11 = arith.constant 0 : index
    %12 = vector.load %arg4[%c1, %c0_11] : memref<8x32xf32, #tpu.memory_space<vmem>>, vector<1x32xf32>
    %13 = arith.mulf %2, %2 : vector<512x32xf32>
    %cst_12 = arith.constant dense<0.000000e+00> : vector<32xf32>
    %14 = vector.multi_reduction <add>, %13, %cst_12 [0] : vector<512x32xf32> to vector<32xf32>
    %15 = vector.shape_cast %14 : vector<32xf32> to vector<1x32xf32>
    %16 = arith.addf %12, %15 : vector<1x32xf32>
    %c1_13 = arith.constant 1 : index
    %c0_14 = arith.constant 0 : index
    %17 = vector.load %arg4[%c1_13, %c0_14] : memref<8x32xf32, #tpu.memory_space<vmem>>, vector<1x32xf32>
    tpu.vector_store %arg4[%c1_13, %c0_14], %16 {strides = array<i32>} : memref<8x32xf32, #tpu.memory_space<vmem>>, vector<1x32xf32>,
    return
  }
  func.func @transform_0(%arg0: i32) -> (i32, i32) {
    %c0_i32 = arith.constant 0 : i32
    %c0_i32_0 = arith.constant 0 : i32
    return %arg0, %c0_i32 : i32, i32
  }
  func.func @transform_1(%arg0: i32) -> (i32, i32) {
    %c0_i32 = arith.constant 0 : i32
    %c0_i32_0 = arith.constant 0 : i32
    %c0_i32_1 = arith.constant 0 : i32
    return %c0_i32, %c0_i32_0 : i32, i32
  }
  func.func @transform_2(%arg0: i32) -> (i32, i32) {
    %c0_i32 = arith.constant 0 : i32
    %c0_i32_0 = arith.constant 0 : i32
    return %arg0, %c0_i32 : i32, i32
  }
  func.func @transform_3(%arg0: i32) -> (i32, i32) {
    %c0_i32 = arith.constant 0 : i32
    %c0_i32_0 = arith.constant 0 : i32
    %c0_i32_1 = arith.constant 0 : i32
    return %c0_i32, %c0_i32_0 : i32, i32
  }
}

module attributes {stable_mosaic.version = 11 : i64} {
  func.func @_conv_stats_kernel(%arg0: i32, %arg1: memref<464x512xbf16, #tpu.memory_space<vmem>>, %arg2: memref<512x64xbf16, #tpu.memory_space<vmem>>, %arg3: memref<464x64xf32, #tpu.memory_space<vmem>>, %arg4: memref<8x64xf32, #tpu.memory_space<vmem>>) attributes {dimension_semantics = [#tpu.dimension_semantics<arbitrary>], iteration_bounds = array<i64: 1>, scalar_prefetch = 0 : i64, scratch_operands = 0 : i64, tpu.core_type = #tpu.core_type<tc>, window_params = [{transform_indices = @transform_0, window_bounds = array<i64: 464, 512>}, {pipeline_mode = #tpu.pipeline_mode<synchronous>, transform_indices = @transform_1, window_bounds = array<i64: 512, 64>}, {transform_indices = @transform_2, window_bounds = array<i64: 464, 64>}, {pipeline_mode = #tpu.pipeline_mode<synchronous>, transform_indices = @transform_3, window_bounds = array<i64: 8, 64>}]} {
    %c0 = arith.constant 0 : index
    %c0_0 = arith.constant 0 : index
    %0 = vector.load %arg1[%c0, %c0_0] : memref<464x512xbf16, #tpu.memory_space<vmem>>, vector<464x512xbf16>
    %c0_1 = arith.constant 0 : index
    %c0_2 = arith.constant 0 : index
    %1 = vector.load %arg2[%c0_1, %c0_2] : memref<512x64xbf16, #tpu.memory_space<vmem>>, vector<512x64xbf16>
    %cst = arith.constant dense<0.000000e+00> : vector<464x64xf32>
    %2 = tpu.matmul %0, %1, %cst {dimension_numbers = #tpu.dot_dimension_numbers<[1], [0], [0], [1], [0, 0, 1, 1], [], []>} : vector<464x512xbf16>, vector<512x64xbf16>, vector<464x64xf32> -> vector<464x64xf32>
    %c0_3 = arith.constant 0 : index
    %c0_4 = arith.constant 0 : index
    %3 = vector.load %arg3[%c0_3, %c0_4] : memref<464x64xf32, #tpu.memory_space<vmem>>, vector<464x64xf32>
    tpu.vector_store %arg3[%c0_3, %c0_4], %2 {strides = array<i32>} : memref<464x64xf32, #tpu.memory_space<vmem>>, vector<464x64xf32>,
    %c0_i32 = arith.constant 0 : i32
    %4 = arith.cmpi eq, %arg0, %c0_i32 : i32
    %5 = arith.extui %4 : i1 to i32
    %c0_i32_5 = arith.constant 0 : i32
    %6 = arith.cmpi ne, %5, %c0_i32_5 : i32
    scf.if %6 {
      %cst_15 = arith.constant 0.000000e+00 : f32
      %18 = vector.broadcast %cst_15 : f32 to vector<8x64xf32>
      %c0_16 = arith.constant 0 : index
      %c0_17 = arith.constant 0 : index
      %19 = vector.load %arg4[%c0_16, %c0_17] : memref<8x64xf32, #tpu.memory_space<vmem>>, vector<8x64xf32>
      tpu.vector_store %arg4[%c0_16, %c0_17], %18 {strides = array<i32>} : memref<8x64xf32, #tpu.memory_space<vmem>>, vector<8x64xf32>,
    } else {
    }
    %c0_6 = arith.constant 0 : index
    %c0_7 = arith.constant 0 : index
    %7 = vector.load %arg4[%c0_6, %c0_7] : memref<8x64xf32, #tpu.memory_space<vmem>>, vector<1x64xf32>
    %cst_8 = arith.constant dense<0.000000e+00> : vector<64xf32>
    %8 = vector.multi_reduction <add>, %2, %cst_8 [0] : vector<464x64xf32> to vector<64xf32>
    %9 = vector.shape_cast %8 : vector<64xf32> to vector<1x64xf32>
    %10 = arith.addf %7, %9 : vector<1x64xf32>
    %c0_9 = arith.constant 0 : index
    %c0_10 = arith.constant 0 : index
    %11 = vector.load %arg4[%c0_9, %c0_10] : memref<8x64xf32, #tpu.memory_space<vmem>>, vector<1x64xf32>
    tpu.vector_store %arg4[%c0_9, %c0_10], %10 {strides = array<i32>} : memref<8x64xf32, #tpu.memory_space<vmem>>, vector<1x64xf32>,
    %c1 = arith.constant 1 : index
    %c0_11 = arith.constant 0 : index
    %12 = vector.load %arg4[%c1, %c0_11] : memref<8x64xf32, #tpu.memory_space<vmem>>, vector<1x64xf32>
    %13 = arith.mulf %2, %2 : vector<464x64xf32>
    %cst_12 = arith.constant dense<0.000000e+00> : vector<64xf32>
    %14 = vector.multi_reduction <add>, %13, %cst_12 [0] : vector<464x64xf32> to vector<64xf32>
    %15 = vector.shape_cast %14 : vector<64xf32> to vector<1x64xf32>
    %16 = arith.addf %12, %15 : vector<1x64xf32>
    %c1_13 = arith.constant 1 : index
    %c0_14 = arith.constant 0 : index
    %17 = vector.load %arg4[%c1_13, %c0_14] : memref<8x64xf32, #tpu.memory_space<vmem>>, vector<1x64xf32>
    tpu.vector_store %arg4[%c1_13, %c0_14], %16 {strides = array<i32>} : memref<8x64xf32, #tpu.memory_space<vmem>>, vector<1x64xf32>,
    return
  }
  func.func @transform_0(%arg0: i32) -> (i32, i32) {
    %c0_i32 = arith.constant 0 : i32
    %c0_i32_0 = arith.constant 0 : i32
    return %arg0, %c0_i32 : i32, i32
  }
  func.func @transform_1(%arg0: i32) -> (i32, i32) {
    %c0_i32 = arith.constant 0 : i32
    %c0_i32_0 = arith.constant 0 : i32
    %c0_i32_1 = arith.constant 0 : i32
    return %c0_i32, %c0_i32_0 : i32, i32
  }
  func.func @transform_2(%arg0: i32) -> (i32, i32) {
    %c0_i32 = arith.constant 0 : i32
    %c0_i32_0 = arith.constant 0 : i32
    return %arg0, %c0_i32 : i32, i32
  }
  func.func @transform_3(%arg0: i32) -> (i32, i32) {
    %c0_i32 = arith.constant 0 : i32
    %c0_i32_0 = arith.constant 0 : i32
    %c0_i32_1 = arith.constant 0 : i32
    return %c0_i32, %c0_i32_0 : i32, i32
  }
}

module attributes {stable_mosaic.version = 11 : i64} {
  func.func @_bn_lrelu_kernel(%arg0: i32, %arg1: memref<464x64xf32, #tpu.memory_space<vmem>>, %arg2: memref<1x64xf32, #tpu.memory_space<vmem>>, %arg3: memref<1x64xf32, #tpu.memory_space<vmem>>, %arg4: memref<464x64xbf16, #tpu.memory_space<vmem>>) attributes {dimension_semantics = [#tpu.dimension_semantics<parallel>], iteration_bounds = array<i64: 1>, scalar_prefetch = 0 : i64, scratch_operands = 0 : i64, tpu.core_type = #tpu.core_type<tc>, window_params = [{transform_indices = @transform_0, window_bounds = array<i64: 464, 64>}, {pipeline_mode = #tpu.pipeline_mode<synchronous>, transform_indices = @transform_1, window_bounds = array<i64: 1, 64>}, {pipeline_mode = #tpu.pipeline_mode<synchronous>, transform_indices = @transform_2, window_bounds = array<i64: 1, 64>}, {transform_indices = @transform_3, window_bounds = array<i64: 464, 64>}]} {
    %c0 = arith.constant 0 : index
    %c0_0 = arith.constant 0 : index
    %0 = vector.load %arg1[%c0, %c0_0] : memref<464x64xf32, #tpu.memory_space<vmem>>, vector<464x64xf32>
    %c0_1 = arith.constant 0 : index
    %c0_2 = arith.constant 0 : index
    %1 = vector.load %arg2[%c0_1, %c0_2] : memref<1x64xf32, #tpu.memory_space<vmem>>, vector<1x64xf32>
    %2 = vector.broadcast %1 : vector<1x64xf32> to vector<464x64xf32>
    %3 = arith.mulf %0, %2 : vector<464x64xf32>
    %c0_3 = arith.constant 0 : index
    %c0_4 = arith.constant 0 : index
    %4 = vector.load %arg3[%c0_3, %c0_4] : memref<1x64xf32, #tpu.memory_space<vmem>>, vector<1x64xf32>
    %5 = vector.broadcast %4 : vector<1x64xf32> to vector<464x64xf32>
    %6 = arith.addf %3, %5 : vector<464x64xf32>
    %cst = arith.constant 0.000000e+00 : f32
    %7 = vector.broadcast %cst : f32 to vector<464x64xf32>
    %8 = arith.cmpf oge, %6, %7 : vector<464x64xf32>
    %cst_5 = arith.constant 2.000000e-01 : f32
    %9 = vector.broadcast %cst_5 : f32 to vector<464x64xf32>
    %10 = arith.mulf %9, %6 : vector<464x64xf32>
    %11 = arith.select %8, %6, %10 : vector<464x64xi1>, vector<464x64xf32>
    %12 = arith.truncf %11 : vector<464x64xf32> to vector<464x64xbf16>
    %c0_6 = arith.constant 0 : index
    %c0_7 = arith.constant 0 : index
    %13 = vector.load %arg4[%c0_6, %c0_7] : memref<464x64xbf16, #tpu.memory_space<vmem>>, vector<464x64xbf16>
    tpu.vector_store %arg4[%c0_6, %c0_7], %12 {strides = array<i32>} : memref<464x64xbf16, #tpu.memory_space<vmem>>, vector<464x64xbf16>,
    return
  }
  func.func @transform_0(%arg0: i32) -> (i32, i32) {
    %c0_i32 = arith.constant 0 : i32
    %c0_i32_0 = arith.constant 0 : i32
    return %arg0, %c0_i32 : i32, i32
  }
  func.func @transform_1(%arg0: i32) -> (i32, i32) {
    %c0_i32 = arith.constant 0 : i32
    %c0_i32_0 = arith.constant 0 : i32
    %c0_i32_1 = arith.constant 0 : i32
    return %c0_i32, %c0_i32_0 : i32, i32
  }
  func.func @transform_2(%arg0: i32) -> (i32, i32) {
    %c0_i32 = arith.constant 0 : i32
    %c0_i32_0 = arith.constant 0 : i32
    %c0_i32_1 = arith.constant 0 : i32
    return %c0_i32, %c0_i32_0 : i32, i32
  }
  func.func @transform_3(%arg0: i32) -> (i32, i32) {
    %c0_i32 = arith.constant 0 : i32
    %c0_i32_0 = arith.constant 0 : i32
    return %arg0, %c0_i32 : i32, i32
  }
}

module attributes {stable_mosaic.version = 11 : i64} {
  func.func @kernel(%arg0: i32, %arg1: memref<400x1152xbf16, #tpu.memory_space<vmem>>, %arg2: memref<1152x128xbf16, #tpu.memory_space<vmem>>, %arg3: memref<400x128xf32, #tpu.memory_space<vmem>>) attributes {dimension_semantics = [#tpu.dimension_semantics<parallel>], iteration_bounds = array<i64: 1>, scalar_prefetch = 0 : i64, scratch_operands = 0 : i64, tpu.core_type = #tpu.core_type<tc>, window_params = [{transform_indices = @transform_0, window_bounds = array<i64: 400, 1152>}, {pipeline_mode = #tpu.pipeline_mode<synchronous>, transform_indices = @transform_1, window_bounds = array<i64: 1152, 128>}, {transform_indices = @transform_2, window_bounds = array<i64: 400, 128>}]} {
    %c0 = arith.constant 0 : index
    %c0_0 = arith.constant 0 : index
    %0 = vector.load %arg1[%c0, %c0_0] : memref<400x1152xbf16, #tpu.memory_space<vmem>>, vector<400x1152xbf16>
    %c0_1 = arith.constant 0 : index
    %c0_2 = arith.constant 0 : index
    %1 = vector.load %arg2[%c0_1, %c0_2] : memref<1152x128xbf16, #tpu.memory_space<vmem>>, vector<1152x128xbf16>
    %cst = arith.constant dense<0.000000e+00> : vector<400x128xf32>
    %2 = tpu.matmul %0, %1, %cst {dimension_numbers = #tpu.dot_dimension_numbers<[1], [0], [0], [1], [0, 0, 1, 1], [], []>} : vector<400x1152xbf16>, vector<1152x128xbf16>, vector<400x128xf32> -> vector<400x128xf32>
    %c0_3 = arith.constant 0 : index
    %c0_4 = arith.constant 0 : index
    %3 = vector.load %arg3[%c0_3, %c0_4] : memref<400x128xf32, #tpu.memory_space<vmem>>, vector<400x128xf32>
    tpu.vector_store %arg3[%c0_3, %c0_4], %2 {strides = array<i32>} : memref<400x128xf32, #tpu.memory_space<vmem>>, vector<400x128xf32>,
    return
  }
  func.func @transform_0(%arg0: i32) -> (i32, i32) {
    %c0_i32 = arith.constant 0 : i32
    %c0_i32_0 = arith.constant 0 : i32
    return %arg0, %c0_i32 : i32, i32
  }
  func.func @transform_1(%arg0: i32) -> (i32, i32) {
    %c0_i32 = arith.constant 0 : i32
    %c0_i32_0 = arith.constant 0 : i32
    %c0_i32_1 = arith.constant 0 : i32
    return %c0_i32, %c0_i32_0 : i32, i32
  }
  func.func @transform_2(%arg0: i32) -> (i32, i32) {
    %c0_i32 = arith.constant 0 : i32
    %c0_i32_0 = arith.constant 0 : i32
    return %arg0, %c0_i32 : i32, i32
  }
}

</mosaic_0001>

<bundles_post_ra>
// kernel: forward.8
= control target key start
LH: loop header
LB: loop body
LE: loop exit
PB: predicated region body
PF: predicated region fallthrough
CT: control target
= control target key end

     0   :  { %s1712_s9 = smov 0   ;;  %s1925_s0 = inlined_call_operand.vmem [shape: bf16[8192,128], index: 0, kind: input, shape index: {}]   ;;  %s1926_s1 = inlined_call_operand.vmem [shape: bf16[128,8], index: 1, kind: input, shape index: {}]   ;;  %s1927_s2 = inlined_call_operand.vmem [shape: bf16[8192,8], index: 2, kind: output, shape index: {}]  }
   0x1 LB: > { %s1326_s10 = sadd.s32 4294967295, %s1695_s9   ;;  %p1330_p0 = scmp.ge.s32.totalorder %s1695_s9, 1  ;;  %s1695_s9 = sphi %s1712_s9, %s12_s9  }
   0x2   : > { %p113_p1 = scmp.lt.s32.totalorder %s1695_s9, 17 }
   0x4   : > { %p114_p2 = pnand %p1330_p0, %p113_p1 }
   0x5   : > { %v1649_v0 = vld [vmem:[%s1926_s1] sm:$0xff] (!%p114_p2)   ;;  %s1331_s13 = sshll.u32 (!%p114_p2), %s1326_s10, 6  ;;  %v1650_v1 = vld [vmem:[%s1926_s1 + $0x8] sm:$0xff] (!%p114_p2)   ;;  %v1651_v2 = vld [vmem:[%s1926_s1 + $0x10] sm:$0xff] (!%p114_p2)   ;;  %vm1205_vm2 = vcmask (!%p114_p2), 60416  }
   0x6   : > { %117 = sbr.rel (%p114_p2) target bundleno = 322 (0x142), region = 28  ;;  %p136_p3 = scmp.lt.s32.totalorder (!%p114_p2), %s1331_s13, 1023  ;;  %1545 = vmatprep.subr.bf16.mxu0 (!%p114_p2), %v1649_v0  ;;  %1625 = vmatprep.subr.bf16.mxu1 (!%p114_p2), %v1649_v0  ;;  %v1652_v3 = vld [vmem:[%s1926_s1 + $0x18] sm:$0xff] (!%p114_p2)   ;;  %v1653_v6 = vld [vmem:[%s1926_s1 + $0x20] sm:$0xff] (!%p114_p2)   ;;  %v1654_v7 = vld [vmem:[%s1926_s1 + $0x28] sm:$0xff] (!%p114_p2)  }
   0x7   : > { %1546 = vmatpush3.bf16.msra.mxu0 (!%p114_p2), %v1649_v0  ;;  %1633 = vmatpush3.bf16.msra.mxu1 (!%p114_p2), %v1649_v0  ;;  %v1655_v8 = vld [vmem:[%s1926_s1 + $0x30] sm:$0xff] (!%p114_p2)   ;;  %v1656_v9 = vld [vmem:[%s1926_s1 + $0x38] sm:$0xff] (!%p114_p2)  }
   0x8   : > { %1547 = vmatprep.subr.bf16.mxu0 (!%p114_p2), %v1650_v1  ;;  %1626 = vmatprep.subr.bf16.mxu1 (!%p114_p2), %v1650_v1 }
   0xb   : > { %1548 = vmatpush3.bf16.msra.mxu0 (!%p114_p2), %v1650_v1  ;;  %1634 = vmatpush3.bf16.msra.mxu1 (!%p114_p2), %v1650_v1 }
   0xc   : > { %1549 = vmatprep.subr.bf16.mxu0 (!%p114_p2), %v1651_v2  ;;  %1627 = vmatprep.subr.bf16.mxu1 (!%p114_p2), %v1651_v2 }
   0xd   : > { %s1929_s13 = smov (!%p136_p3, %s1331_s13), 1023 }
   0xe   : > { %s1332_s18 = sshll.u32 %s1929_s13, 2 }
   0xf   : > { %s1737_s21 = scalar_lea.vmem %s1925_s0, %s1332_s18  ;;  %1550 = vmatpush3.bf16.msra.mxu0 %v1651_v2  ;;  %1635 = vmatpush3.bf16.msra.mxu1 %v1651_v2  ;;  %s1791_s6 = scalar_lea.vmem %s1927_s2, %s1332_s18 }
  0x10   : > { %v1657_v4 = vld [vmem:[%s1737_s21] sm:$0xff]   ;;  %1551 = vmatprep.subr.bf16.mxu0 %v1652_v3  ;;  %1628 = vmatprep.subr.bf16.mxu1 %v1652_v3  ;;  %v1659_v10 = vld [vmem:[%s1737_s21 + $0x8] sm:$0xff]   ;;  %v1661_v12 = vld [vmem:[%s1737_s21 + $0x10] sm:$0xff]  }
  0x11   : > { %v1658_v5 = vld [vmem:[%s1737_s21 + $0x80] sm:$0xff]   ;;  %1561 = vmatprep.mubr.bf16.mxu0 %v1657_v4  ;;  %v1660_v11 = vld [vmem:[%s1737_s21 + $0x88] sm:$0xff]   ;;  %v1662_v13 = vld [vmem:[%s1737_s21 + $0x90] sm:$0xff]  }
  0x12   : > { %1593 = vmatprep.mubr.bf16.mxu1 %v1658_v5  ;;  %v1663_v14 = vld [vmem:[%s1737_s21 + $0x18] sm:$0xff]   ;;  %v1665_v16 = vld [vmem:[%s1737_s21 + $0x20] sm:$0xff]   ;;  %v1667_v18 = vld [vmem:[%s1737_s21 + $0x28] sm:$0xff]  }
  0x13   : > { %1552 = vmatpush3.bf16.msra.mxu0 %v1652_v3  ;;  %1636 = vmatpush3.bf16.msra.mxu1 %v1652_v3  ;;  %v1664_v15 = vld [vmem:[%s1737_s21 + $0x98] sm:$0xff]   ;;  %v1666_v17 = vld [vmem:[%s1737_s21 + $0xa0] sm:$0xff]   ;;  %v1668_v19 = vld [vmem:[%s1737_s21 + $0xa8] sm:$0xff]  }
  0x14   : > { %1553 = vmatprep.subr.bf16.mxu0 %v1653_v6  ;;  %1629 = vmatprep.subr.bf16.mxu1 %v1653_v6  ;;  %v1669_v20 = vld [vmem:[%s1737_s21 + $0x30] sm:$0xff]   ;;  %v1671_v22 = vld [vmem:[%s1737_s21 + $0x38] sm:$0xff]   ;;  %v1673_v24 = vld [vmem:[%s1737_s21 + $0x40] sm:$0xff]  }
  0x15   : > { %v1670_v21 = vld [vmem:[%s1737_s21 + $0xb0] sm:$0xff]   ;;  %v1672_v23 = vld [vmem:[%s1737_s21 + $0xb8] sm:$0xff]   ;;  %v1674_v25 = vld [vmem:[%s1737_s21 + $0xc0] sm:$0xff]  }
  0x16   : > { %v1675_v26 = vld [vmem:[%s1737_s21 + $0x48] sm:$0xff]   ;;  %v1677_v28 = vld [vmem:[%s1737_s21 + $0x50] sm:$0xff]   ;;  %v1679_v30 = vld [vmem:[%s1737_s21 + $0x58] sm:$0xff]  }
  0x17   : > { %1554 = vmatpush3.bf16.msra.mxu0 %v1653_v6  ;;  %1637 = vmatpush3.bf16.msra.mxu1 %v1653_v6  ;;  %v1676_v27 = vld [vmem:[%s1737_s21 + $0xc8] sm:$0xff]   ;;  %v1678_v29 = vld [vmem:[%s1737_s21 + $0xd0] sm:$0xff]   ;;  %v1680_v31 = vld [vmem:[%s1737_s21 + $0xd8] sm:$0xff]  }
  0x18   : > { %1555 = vmatprep.subr.bf16.mxu0 %v1654_v7  ;;  %1630 = vmatprep.subr.bf16.mxu1 %v1654_v7  ;;  %v1681_v32 = vld [vmem:[%s1737_s21 + $0x60] sm:$0xff]   ;;  %v1683_v34 = vld [vmem:[%s1737_s21 + $0x68] sm:$0xff]   ;;  %v1685_v36 = vld [vmem:[%s1737_s21 + $0x70] sm:$0xff]  }
  0x19   : > { %v1682_v33 = vld [vmem:[%s1737_s21 + $0xe0] sm:$0xff]   ;;  %v1684_v35 = vld [vmem:[%s1737_s21 + $0xe8] sm:$0xff]   ;;  %v1686_v37 = vld [vmem:[%s1737_s21 + $0xf0] sm:$0xff]  }
  0x1a   : > { %v1687_v38 = vld [vmem:[%s1737_s21 + $0x78] sm:$0xff]  }
  0x1b   : > { %1556 = vmatpush3.bf16.msra.mxu0 %v1654_v7  ;;  %1638 = vmatpush3.bf16.msra.mxu1 %v1654_v7  ;;  %v1688_v39 = vld [vmem:[%s1737_s21 + $0xf8] sm:$0xff]  }
  0x1c   : > { %1557 = vmatprep.subr.bf16.mxu0 %v1655_v8  ;;  %1631 = vmatprep.subr.bf16.mxu1 %v1655_v8 }
  0x1f   : > { %1558 = vmatpush3.bf16.msra.mxu0 %v1655_v8  ;;  %1639 = vmatpush3.bf16.msra.mxu1 %v1655_v8 }
  0x20   : > { %1559 = vmatprep.subr.bf16.mxu0 %v1656_v9  ;;  %1632 = vmatprep.subr.bf16.mxu1 %v1656_v9 }
  0x23   : > { %1560 = vmatpush3.bf16.msra.mxu0 %v1656_v9  ;;  %1640 = vmatpush3.bf16.msra.mxu1 %v1656_v9 }
  0x26   : > { %1562 = vmatmul.mubr.bf16.vlgmr.msra.gmra.mrb[0].mxu0 %v1659_v10  ;;  %1594 = vmatmul.mubr.bf16.vlgmr.msra.gmra.mrb[0].mxu1 %v1660_v11 }
  0x27   : > { %1565 = vmatprep.mubr.bf16.mxu0 %v1661_v12  ;;  %1597 = vmatprep.mubr.bf16.mxu1 %v1662_v13 }
  0x2e   : > { %1566 = vmatmul.mubr.bf16.gmra.mrb[4].mxu0 %v1663_v14  ;;  %1598 = vmatmul.mubr.bf16.gmra.mrb[4].mxu1 %v1664_v15 }
  0x2f   : > { %1569 = vmatprep.mubr.bf16.mxu0 %v1665_v16  ;;  %1601 = vmatprep.mubr.bf16.mxu1 %v1666_v17 }
  0x36   : > { %1570 = vmatmul.mubr.bf16.gmra.mrb[8].mxu0 %v1667_v18  ;;  %1602 = vmatmul.mubr.bf16.gmra.mrb[8].mxu1 %v1668_v19 }
  0x37   : > { %1573 = vmatprep.mubr.bf16.mxu0 %v1669_v20  ;;  %1605 = vmatprep.mubr.bf16.mxu1 %v1670_v21 }
  0x3e   : > { %1574 = vmatmul.mubr.bf16.gmra.mrb[12].mxu0 %v1671_v22  ;;  %1606 = vmatmul.mubr.bf16.gmra.mrb[12].mxu1 %v1672_v23 }
  0x3f   : > { %1577 = vmatprep.mubr.bf16.mxu0 %v1673_v24  ;;  %1609 = vmatprep.mubr.bf16.mxu1 %v1674_v25 }
  0x46   : > { %1578 = vmatmul.mubr.bf16.gmra.mrb[16].mxu0 %v1675_v26  ;;  %1610 = vmatmul.mubr.bf16.gmra.mrb[16].mxu1 %v1676_v27 }
  0x47   : > { %1581 = vmatprep.mubr.bf16.mxu0 %v1677_v28  ;;  %1613 = vmatprep.mubr.bf16.mxu1 %v1678_v29 }
  0x4e   : > { %1582 = vmatmul.mubr.bf16.gmra.mrb[20].mxu0 %v1679_v30  ;;  %1614 = vmatmul.mubr.bf16.gmra.mrb[20].mxu1 %v1680_v31 }
  0x4f   : > { %1585 = vmatprep.mubr.bf16.mxu0 %v1681_v32  ;;  %1617 = vmatprep.mubr.bf16.mxu1 %v1682_v33 }
  0x56   : > { %1586 = vmatmul.mubr.bf16.gmra.mrb[24].mxu0 %v1683_v34  ;;  %1618 = vmatmul.mubr.bf16.gmra.mrb[24].mxu1 %v1684_v35 }
  0x57   : > { %1589 = vmatprep.mubr.bf16.mxu0 %v1685_v36  ;;  %1621 = vmatprep.mubr.bf16.mxu1 %v1686_v37 }
  0x5e   : > { %1590 = vmatmul.mubr.bf16.gmra.mrb[28].mxu0 %v1687_v38  ;;  %1622 = vmatmul.mubr.bf16.gmra.mrb[28].mxu1 %v1688_v39 }
  0xf9   : > { %v1563_v40 = vpop.f32.mrb[0].mxu0  ;;  %v1595_v41 = vpop.f32.mrb[0].mxu1 }
  0xfa   : > { %vm759_vm0 = vcmp.ge.f32.partialorder %v1563_v40, 0.0  ;;  %v823_v42 = vmul.f32 0.2, %v1563_v40  ;;  %vm791_vm1 = vcmp.ge.f32.partialorder %v1595_v41, 0.0  ;;  %v855_v43 = vmul.f32 0.2, %v1595_v41 }
  0xfb   : > { %v502_v44 = vpop.f32.mrb[1].mxu0  ;;  %v630_v45 = vpop.f32.mrb[1].mxu1 }
  0xfc   : > { %v887_v46 = vsel %vm759_vm0, %v1563_v40, %v823_v42  ;;  %v919_v47 = vsel %vm791_vm1, %v1595_v41, %v855_v43  ;;  %vm757_vm3 = vcmp.ge.f32.partialorder %v502_v44, 0.0  ;;  %v821_v48 = vmul.f32 0.2, %v502_v44  ;;  %v1564_v49 = vpop.f32.mrb[2].mxu0  ;;  %v1596_v50 = vpop.f32.mrb[2].mxu1 }
  0xfd   : > { %v1443_v51 = vpack.c.bf16 %v887_v46, %v887_v46  ;;  %v1475_v52 = vpack.c.bf16 %v919_v47, %v919_v47  ;;  %vm789_vm4 = vcmp.ge.f32.partialorder %v630_v45, 0.0  ;;  %v853_v53 = vmul.f32 0.2, %v630_v45  ;;  %v505_v54 = vpop.f32.mrb[3].mxu0  ;;  %v633_v55 = vpop.f32.mrb[3].mxu1 }
  0xfe   : > { %v885_v56 = vsel %vm757_vm3, %v502_v44, %v821_v48  ;;  %vm760_vm5 = vcmp.ge.f32.partialorder %v1564_v49, 0.0  ;;  %v824_v57 = vmul.f32 0.2, %v1564_v49  ;;  %vm792_vm6 = vcmp.ge.f32.partialorder %v1596_v50, 0.0 }
  0xff   : > { %1208 = vst.msk [vmem:[%s1791_s6 + $0x8] sm:$0xf] %vm1205_vm2, %v1443_v51  ;;  %1240 = vst.msk [vmem:[%s1791_s6 + $0x88] sm:$0xf] %vm1205_vm2, %v1475_v52  ;;  %v1441_v58 = vpack.c.bf16 %v885_v56, %v885_v56  ;;  %v917_v59 = vsel %vm789_vm4, %v630_v45, %v853_v53  ;;  %v856_v60 = vmul.f32 0.2, %v1596_v50 }
 0x100   : > { %vm758_vm7 = vcmp.ge.f32.partialorder %v505_v54, 0.0  ;;  %v1473_v61 = vpack.c.bf16 %v917_v59, %v917_v59  ;;  %v888_v62 = vsel %vm760_vm5, %v1564_v49, %v824_v57  ;;  %v822_v63 = vmul.f32 0.2, %v505_v54 }
 0x101   : > { %vm790_vm8 = vcmp.ge.f32.partialorder %v633_v55, 0.0  ;;  %1206 = vst.msk [vmem:[%s1791_s6] sm:$0xf] %vm1205_vm2, %v1441_v58  ;;  %v1444_v0 = vpack.c.bf16 %v888_v62, %v888_v62  ;;  %v920_v1 = vsel %vm792_vm6, %v1596_v50, %v856_v60  ;;  %v854_v2 = vmul.f32 0.2, %v633_v55  ;;  %v1567_v3 = vpop.f32.mrb[4].mxu0 }
 0x102   : > { %v1599_v4 = vpop.f32.mrb[4].mxu1  ;;  %1238 = vst.msk [vmem:[%s1791_s6 + $0x80] sm:$0xf] %vm1205_vm2, %v1473_v61  ;;  %v1476_v5 = vpack.c.bf16 %v920_v1, %v920_v1  ;;  %v886_v6 = vsel %vm758_vm7, %v505_v54, %v822_v63  ;;  %vm763_vm9 = vcmp.ge.f32.partialorder %v1567_v3, 0.0  ;;  %v827_v7 = vmul.f32 0.2, %v1567_v3 }
 0x103   : > { %v518_v8 = vpop.f32.mrb[5].mxu0  ;;  %v646_v9 = vpop.f32.mrb[5].mxu1  ;;  %1209 = vst.msk [vmem:[%s1791_s6 + $0xc] sm:$0xf] %vm1205_vm2, %v1444_v0  ;;  %v1442_v10 = vpack.c.bf16 %v886_v6, %v886_v6  ;;  %v918_v11 = vsel %vm790_vm8, %v633_v55, %v854_v2  ;;  %vm795_vm10 = vcmp.ge.f32.partialorder %v1599_v4, 0.0 }
 0x104   : > { %v859_v12 = vmul.f32 0.2, %v1599_v4  ;;  %v1568_v13 = vpop.f32.mrb[6].mxu0  ;;  %v1600_v14 = vpop.f32.mrb[6].mxu1  ;;  %1241 = vst.msk [vmem:[%s1791_s6 + $0x8c] sm:$0xf] %vm1205_vm2, %v1476_v5  ;;  %v1474_v15 = vpack.c.bf16 %v918_v11, %v918_v11  ;;  %v891_v16 = vsel %vm763_vm9, %v1567_v3, %v827_v7 }
 0x105   : > { %vm761_vm11 = vcmp.ge.f32.partialorder %v518_v8, 0.0  ;;  %v825_v17 = vmul.f32 0.2, %v518_v8  ;;  %v521_v18 = vpop.f32.mrb[7].mxu0  ;;  %v649_v19 = vpop.f32.mrb[7].mxu1  ;;  %v1447_v20 = vpack.c.bf16 %v891_v16, %v891_v16  ;;  %vm793_vm12 = vcmp.ge.f32.partialorder %v646_v9, 0.0 }
 0x106   : > { %1207 = vst.msk [vmem:[%s1791_s6 + $0x4] sm:$0xf] %vm1205_vm2, %v1442_v10  ;;  %v923_v21 = vsel %vm795_vm10, %v1599_v4, %v859_v12  ;;  %v857_v22 = vmul.f32 0.2, %v646_v9  ;;  %1239 = vst.msk [vmem:[%s1791_s6 + $0x84] sm:$0xf] %vm1205_vm2, %v1474_v15 }
 0x107   : > { %v1479_v23 = vpack.c.bf16 %v923_v21, %v923_v21  ;;  %v889_v24 = vsel %vm761_vm11, %v518_v8, %v825_v17  ;;  %vm764_vm13 = vcmp.ge.f32.partialorder %v1568_v13, 0.0  ;;  %v828_v25 = vmul.f32 0.2, %v1568_v13  ;;  %1212 = vst.msk [vmem:[%s1791_s6 + $0x18] sm:$0xf] %vm1205_vm2, %v1447_v20 }
 0x108   : > { %v1445_v26 = vpack.c.bf16 %v889_v24, %v889_v24  ;;  %v921_v27 = vsel %vm793_vm12, %v646_v9, %v857_v22  ;;  %vm796_vm14 = vcmp.ge.f32.partialorder %v1600_v14, 0.0  ;;  %v860_v28 = vmul.f32 0.2, %v1600_v14 }
 0x109   : > { %1244 = vst.msk [vmem:[%s1791_s6 + $0x98] sm:$0xf] %vm1205_vm2, %v1479_v23  ;;  %v1477_v29 = vpack.c.bf16 %v921_v27, %v921_v27  ;;  %v892_v30 = vsel %vm764_vm13, %v1568_v13, %v828_v25  ;;  %vm762_vm15 = vcmp.ge.f32.partialorder %v521_v18, 0.0  ;;  %v826_v31 = vmul.f32 0.2, %v521_v18  ;;  %v1571_v35 = vpop.f32.mrb[8].mxu0 }
 0x10a   : > { %1210 = vst.msk [vmem:[%s1791_s6 + $0x10] sm:$0xf] %vm1205_vm2, %v1445_v26  ;;  %v1448_v32 = vpack.c.bf16 %v892_v30, %v892_v30  ;;  %v924_v33 = vsel %vm796_vm14, %v1600_v14, %v860_v28  ;;  %vm794_vm0 = vcmp.ge.f32.partialorder %v649_v19, 0.0  ;;  %v858_v34 = vmul.f32 0.2, %v649_v19  ;;  %v1603_v36 = vpop.f32.mrb[8].mxu1 }
 0x10b   : > { %1242 = vst.msk [vmem:[%s1791_s6 + $0x90] sm:$0xf] %vm1205_vm2, %v1477_v29  ;;  %v1480_v37 = vpack.c.bf16 %v924_v33, %v924_v33  ;;  %v890_v38 = vsel %vm762_vm15, %v521_v18, %v826_v31  ;;  %vm767_vm1 = vcmp.ge.f32.partialorder %v1571_v35, 0.0  ;;  %v831_v39 = vmul.f32 0.2, %v1571_v35  ;;  %v534_v40 = vpop.f32.mrb[9].mxu0 }
 0x10c   : > { %v662_v41 = vpop.f32.mrb[9].mxu1  ;;  %1213 = vst.msk [vmem:[%s1791_s6 + $0x1c] sm:$0xf] %vm1205_vm2, %v1448_v32  ;;  %v1446_v42 = vpack.c.bf16 %v890_v38, %v890_v38  ;;  %v922_v43 = vsel %vm794_vm0, %v649_v19, %v858_v34  ;;  %vm799_vm3 = vcmp.ge.f32.partialorder %v1603_v36, 0.0  ;;  %v863_v44 = vmul.f32 0.2, %v1603_v36 }
 0x10d   : > { %v1572_v45 = vpop.f32.mrb[10].mxu0  ;;  %v1604_v46 = vpop.f32.mrb[10].mxu1  ;;  %1245 = vst.msk [vmem:[%s1791_s6 + $0x9c] sm:$0xf] %vm1205_vm2, %v1480_v37  ;;  %v1478_v47 = vpack.c.bf16 %v922_v43, %v922_v43  ;;  %v895_v48 = vsel %vm767_vm1, %v1571_v35, %v831_v39  ;;  %vm765_vm4 = vcmp.ge.f32.partialorder %v534_v40, 0.0  ;;  %vm797_vm5 = vcmp.ge.f32.partialorder %v662_v41, 0.0 }
 0x10e   : > { %v829_v49 = vmul.f32 0.2, %v534_v40  ;;  %v537_v50 = vpop.f32.mrb[11].mxu0  ;;  %v665_v51 = vpop.f32.mrb[11].mxu1  ;;  %1211 = vst.msk [vmem:[%s1791_s6 + $0x14] sm:$0xf] %vm1205_vm2, %v1446_v42  ;;  %v1451_v52 = vpack.c.bf16 %v895_v48, %v895_v48  ;;  %v927_v53 = vsel %vm799_vm3, %v1603_v36, %v863_v44 }
 0x10f   : > { %v861_v54 = vmul.f32 0.2, %v662_v41  ;;  %1243 = vst.msk [vmem:[%s1791_s6 + $0x94] sm:$0xf] %vm1205_vm2, %v1478_v47  ;;  %v1483_v55 = vpack.c.bf16 %v927_v53, %v927_v53  ;;  %vm768_vm6 = vcmp.ge.f32.partialorder %v1572_v45, 0.0  ;;  %vm800_vm7 = vcmp.ge.f32.partialorder %v1604_v46, 0.0 }
 0x110   : > { %v893_v56 = vsel %vm765_vm4, %v534_v40, %v829_v49  ;;  %v832_v57 = vmul.f32 0.2, %v1572_v45  ;;  %1216 = vst.msk [vmem:[%s1791_s6 + $0x28] sm:$0xf] %vm1205_vm2, %v1451_v52  ;;  %v864_v60 = vmul.f32 0.2, %v1604_v46 }
 0x111   : > { %v1449_v58 = vpack.c.bf16 %v893_v56, %v893_v56  ;;  %v925_v59 = vsel %vm797_vm5, %v662_v41, %v861_v54  ;;  %1248 = vst.msk [vmem:[%s1791_s6 + $0xa8] sm:$0xf] %vm1205_vm2, %v1483_v55  ;;  %vm766_vm8 = vcmp.ge.f32.partialorder %v537_v50, 0.0  ;;  %v830_v63 = vmul.f32 0.2, %v537_v50  ;;  %v1575_v3 = vpop.f32.mrb[12].mxu0 }
 0x112   : > { %v1481_v61 = vpack.c.bf16 %v925_v59, %v925_v59  ;;  %v896_v62 = vsel %vm768_vm6, %v1572_v45, %v832_v57  ;;  %v928_v1 = vsel %vm800_vm7, %v1604_v46, %v864_v60  ;;  %vm798_vm9 = vcmp.ge.f32.partialorder %v665_v51, 0.0  ;;  %v1607_v4 = vpop.f32.mrb[12].mxu1  ;;  %v550_v8 = vpop.f32.mrb[13].mxu0 }
 0x113   : > { %1214 = vst.msk [vmem:[%s1791_s6 + $0x20] sm:$0xf] %vm1205_vm2, %v1449_v58  ;;  %v1452_v0 = vpack.c.bf16 %v896_v62, %v896_v62  ;;  %v862_v2 = vmul.f32 0.2, %v665_v51  ;;  %v1484_v5 = vpack.c.bf16 %v928_v1, %v928_v1  ;;  %v894_v6 = vsel %vm766_vm8, %v537_v50, %v830_v63  ;;  %v678_v9 = vpop.f32.mrb[13].mxu1  ;;  %v1576_v13 = vpop.f32.mrb[14].mxu0 }
 0x114   : > { %1246 = vst.msk [vmem:[%s1791_s6 + $0xa0] sm:$0xf] %vm1205_vm2, %v1481_v61  ;;  %vm771_vm10 = vcmp.ge.f32.partialorder %v1575_v3, 0.0  ;;  %v835_v7 = vmul.f32 0.2, %v1575_v3  ;;  %v1450_v10 = vpack.c.bf16 %v894_v6, %v894_v6  ;;  %vm803_vm11 = vcmp.ge.f32.partialorder %v1607_v4, 0.0 }
 0x115   : > { %1217 = vst.msk [vmem:[%s1791_s6 + $0x2c] sm:$0xf] %vm1205_vm2, %v1452_v0  ;;  %v926_v11 = vsel %vm798_vm9, %v665_v51, %v862_v2  ;;  %v867_v12 = vmul.f32 0.2, %v1607_v4  ;;  %v1608_v14 = vpop.f32.mrb[14].mxu1  ;;  %vm769_vm12 = vcmp.ge.f32.partialorder %v550_v8, 0.0 }
 0x116   : > { %1249 = vst.msk [vmem:[%s1791_s6 + $0xac] sm:$0xf] %vm1205_vm2, %v1484_v5  ;;  %v1482_v15 = vpack.c.bf16 %v926_v11, %v926_v11  ;;  %v899_v16 = vsel %vm771_vm10, %v1575_v3, %v835_v7  ;;  %v833_v17 = vmul.f32 0.2, %v550_v8  ;;  %v553_v18 = vpop.f32.mrb[15].mxu0  ;;  %v681_v19 = vpop.f32.mrb[15].mxu1 }
 0x117   : > { %1215 = vst.msk [vmem:[%s1791_s6 + $0x24] sm:$0xf] %vm1205_vm2, %v1450_v10  ;;  %v1455_v20 = vpack.c.bf16 %v899_v16, %v899_v16  ;;  %v931_v21 = vsel %vm803_vm11, %v1607_v4, %v867_v12  ;;  %vm801_vm13 = vcmp.ge.f32.partialorder %v678_v9, 0.0  ;;  %v865_v22 = vmul.f32 0.2, %v678_v9 }
 0x118   : > { %1247 = vst.msk [vmem:[%s1791_s6 + $0xa4] sm:$0xf] %vm1205_vm2, %v1482_v15  ;;  %v1487_v23 = vpack.c.bf16 %v931_v21, %v931_v21  ;;  %v897_v24 = vsel %vm769_vm12, %v550_v8, %v833_v17  ;;  %vm772_vm14 = vcmp.ge.f32.partialorder %v1576_v13, 0.0  ;;  %v836_v25 = vmul.f32 0.2, %v1576_v13 }
 0x119   : > { %1220 = vst.msk [vmem:[%s1791_s6 + $0x38] sm:$0xf] %vm1205_vm2, %v1455_v20  ;;  %v1453_v26 = vpack.c.bf16 %v897_v24, %v897_v24  ;;  %v929_v27 = vsel %vm801_vm13, %v678_v9, %v865_v22  ;;  %vm804_vm15 = vcmp.ge.f32.partialorder %v1608_v14, 0.0  ;;  %v868_v28 = vmul.f32 0.2, %v1608_v14  ;;  %v1579_v35 = vpop.f32.mrb[16].mxu0 }
 0x11a   : > { %1252 = vst.msk [vmem:[%s1791_s6 + $0xb8] sm:$0xf] %vm1205_vm2, %v1487_v23  ;;  %v1485_v29 = vpack.c.bf16 %v929_v27, %v929_v27  ;;  %v900_v30 = vsel %vm772_vm14, %v1576_v13, %v836_v25  ;;  %vm770_vm0 = vcmp.ge.f32.partialorder %v553_v18, 0.0  ;;  %v834_v31 = vmul.f32 0.2, %v553_v18  ;;  %v1611_v36 = vpop.f32.mrb[16].mxu1 }
 0x11b   : > { %1218 = vst.msk [vmem:[%s1791_s6 + $0x30] sm:$0xf] %vm1205_vm2, %v1453_v26  ;;  %v1456_v32 = vpack.c.bf16 %v900_v30, %v900_v30  ;;  %v932_v33 = vsel %vm804_vm15, %v1608_v14, %v868_v28  ;;  %vm802_vm1 = vcmp.ge.f32.partialorder %v681_v19, 0.0  ;;  %v866_v34 = vmul.f32 0.2, %v681_v19  ;;  %v566_v40 = vpop.f32.mrb[17].mxu0 }
 0x11c   : > { %1250 = vst.msk [vmem:[%s1791_s6 + $0xb0] sm:$0xf] %vm1205_vm2, %v1485_v29  ;;  %v1488_v37 = vpack.c.bf16 %v932_v33, %v932_v33  ;;  %v898_v38 = vsel %vm770_vm0, %v553_v18, %v834_v31  ;;  %vm775_vm3 = vcmp.ge.f32.partialorder %v1579_v35, 0.0  ;;  %v839_v39 = vmul.f32 0.2, %v1579_v35  ;;  %v694_v41 = vpop.f32.mrb[17].mxu1 }
 0x11d   : > { %1221 = vst.msk [vmem:[%s1791_s6 + $0x3c] sm:$0xf] %vm1205_vm2, %v1456_v32  ;;  %v1454_v42 = vpack.c.bf16 %v898_v38, %v898_v38  ;;  %v930_v43 = vsel %vm802_vm1, %v681_v19, %v866_v34  ;;  %vm807_vm4 = vcmp.ge.f32.partialorder %v1611_v36, 0.0  ;;  %v871_v44 = vmul.f32 0.2, %v1611_v36  ;;  %v1580_v45 = vpop.f32.mrb[18].mxu0 }
 0x11e   : > { %v1612_v46 = vpop.f32.mrb[18].mxu1  ;;  %1253 = vst.msk [vmem:[%s1791_s6 + $0xbc] sm:$0xf] %vm1205_vm2, %v1488_v37  ;;  %v1486_v47 = vpack.c.bf16 %v930_v43, %v930_v43  ;;  %v903_v48 = vsel %vm775_vm3, %v1579_v35, %v839_v39  ;;  %vm773_vm5 = vcmp.ge.f32.partialorder %v566_v40, 0.0  ;;  %v837_v49 = vmul.f32 0.2, %v566_v40 }
 0x11f   : > { %v569_v50 = vpop.f32.mrb[19].mxu0  ;;  %v697_v51 = vpop.f32.mrb[19].mxu1  ;;  %1219 = vst.msk [vmem:[%s1791_s6 + $0x34] sm:$0xf] %vm1205_vm2, %v1454_v42  ;;  %v1459_v52 = vpack.c.bf16 %v903_v48, %v903_v48  ;;  %v935_v53 = vsel %vm807_vm4, %v1611_v36, %v871_v44  ;;  %vm805_vm6 = vcmp.ge.f32.partialorder %v694_v41, 0.0  ;;  %vm776_vm7 = vcmp.ge.f32.partialorder %v1580_v45, 0.0 }
 0x120   : > { %v869_v54 = vmul.f32 0.2, %v694_v41  ;;  %1251 = vst.msk [vmem:[%s1791_s6 + $0xb4] sm:$0xf] %vm1205_vm2, %v1486_v47  ;;  %v1491_v55 = vpack.c.bf16 %v935_v53, %v935_v53  ;;  %v901_v56 = vsel %vm773_vm5, %v566_v40, %v837_v49  ;;  %v840_v57 = vmul.f32 0.2, %v1580_v45 }
 0x121   : > { %1224 = vst.msk [vmem:[%s1791_s6 + $0x48] sm:$0xf] %vm1205_vm2, %v1459_v52  ;;  %v1457_v58 = vpack.c.bf16 %v901_v56, %v901_v56  ;;  %vm808_vm8 = vcmp.ge.f32.partialorder %v1612_v46, 0.0  ;;  %v872_v60 = vmul.f32 0.2, %v1612_v46  ;;  %vm774_vm9 = vcmp.ge.f32.partialorder %v569_v50, 0.0 }
 0x122   : > { %v933_v59 = vsel %vm805_vm6, %v694_v41, %v869_v54  ;;  %1256 = vst.msk [vmem:[%s1791_s6 + $0xc8] sm:$0xf] %vm1205_vm2, %v1491_v55  ;;  %v904_v62 = vsel %vm776_vm7, %v1580_v45, %v840_v57  ;;  %v838_v63 = vmul.f32 0.2, %v569_v50  ;;  %vm806_vm10 = vcmp.ge.f32.partialorder %v697_v51, 0.0  ;;  %v1583_v3 = vpop.f32.mrb[20].mxu0 }
 0x123   : > { %v1489_v61 = vpack.c.bf16 %v933_v59, %v933_v59  ;;  %1222 = vst.msk [vmem:[%s1791_s6 + $0x40] sm:$0xf] %vm1205_vm2, %v1457_v58  ;;  %v1460_v0 = vpack.c.bf16 %v904_v62, %v904_v62  ;;  %v936_v1 = vsel %vm808_vm8, %v1612_v46, %v872_v60  ;;  %v870_v2 = vmul.f32 0.2, %v697_v51  ;;  %v1615_v4 = vpop.f32.mrb[20].mxu1  ;;  %v582_v8 = vpop.f32.mrb[21].mxu0 }
 0x124   : > { %v1492_v5 = vpack.c.bf16 %v936_v1, %v936_v1  ;;  %v902_v6 = vsel %vm774_vm9, %v569_v50, %v838_v63  ;;  %vm779_vm11 = vcmp.ge.f32.partialorder %v1583_v3, 0.0  ;;  %v843_v7 = vmul.f32 0.2, %v1583_v3  ;;  %v710_v9 = vpop.f32.mrb[21].mxu1  ;;  %v1584_v13 = vpop.f32.mrb[22].mxu0 }
 0x125   : > { %1254 = vst.msk [vmem:[%s1791_s6 + $0xc0] sm:$0xf] %vm1205_vm2, %v1489_v61  ;;  %1225 = vst.msk [vmem:[%s1791_s6 + $0x4c] sm:$0xf] %vm1205_vm2, %v1460_v0  ;;  %v1458_v10 = vpack.c.bf16 %v902_v6, %v902_v6  ;;  %v934_v11 = vsel %vm806_vm10, %v697_v51, %v870_v2  ;;  %vm811_vm12 = vcmp.ge.f32.partialorder %v1615_v4, 0.0  ;;  %v1616_v14 = vpop.f32.mrb[22].mxu1 }
 0x126   : > { %v875_v12 = vmul.f32 0.2, %v1615_v4  ;;  %1257 = vst.msk [vmem:[%s1791_s6 + $0xcc] sm:$0xf] %vm1205_vm2, %v1492_v5  ;;  %v1490_v15 = vpack.c.bf16 %v934_v11, %v934_v11  ;;  %v907_v16 = vsel %vm779_vm11, %v1583_v3, %v843_v7  ;;  %vm777_vm13 = vcmp.ge.f32.partialorder %v582_v8, 0.0  ;;  %v585_v18 = vpop.f32.mrb[23].mxu0 }
 0x127   : > { %v841_v17 = vmul.f32 0.2, %v582_v8  ;;  %v713_v19 = vpop.f32.mrb[23].mxu1  ;;  %1223 = vst.msk [vmem:[%s1791_s6 + $0x44] sm:$0xf] %vm1205_vm2, %v1458_v10  ;;  %v1463_v20 = vpack.c.bf16 %v907_v16, %v907_v16  ;;  %vm809_vm14 = vcmp.ge.f32.partialorder %v710_v9, 0.0 }
 0x128   : > { %v939_v21 = vsel %vm811_vm12, %v1615_v4, %v875_v12  ;;  %v873_v22 = vmul.f32 0.2, %v710_v9  ;;  %1255 = vst.msk [vmem:[%s1791_s6 + $0xc4] sm:$0xf] %vm1205_vm2, %v1490_v15  ;;  %vm780_vm15 = vcmp.ge.f32.partialorder %v1584_v13, 0.0  ;;  %vm812_vm0 = vcmp.ge.f32.partialorder %v1616_v14, 0.0 }
 0x129   : > { %v1495_v23 = vpack.c.bf16 %v939_v21, %v939_v21  ;;  %v905_v24 = vsel %vm777_vm13, %v582_v8, %v841_v17  ;;  %v844_v25 = vmul.f32 0.2, %v1584_v13  ;;  %1228 = vst.msk [vmem:[%s1791_s6 + $0x58] sm:$0xf] %vm1205_vm2, %v1463_v20  ;;  %v876_v28 = vmul.f32 0.2, %v1616_v14 }
 0x12a   : > { %v1461_v26 = vpack.c.bf16 %v905_v24, %v905_v24  ;;  %v937_v27 = vsel %vm809_vm14, %v710_v9, %v873_v22  ;;  %vm778_vm1 = vcmp.ge.f32.partialorder %v585_v18, 0.0  ;;  %v842_v31 = vmul.f32 0.2, %v585_v18  ;;  %v1587_v35 = vpop.f32.mrb[24].mxu0  ;;  %v1619_v36 = vpop.f32.mrb[24].mxu1 }
 0x12b   : > { %1260 = vst.msk [vmem:[%s1791_s6 + $0xd8] sm:$0xf] %vm1205_vm2, %v1495_v23  ;;  %v1493_v29 = vpack.c.bf16 %v937_v27, %v937_v27  ;;  %v908_v30 = vsel %vm780_vm15, %v1584_v13, %v844_v25  ;;  %v940_v33 = vsel %vm812_vm0, %v1616_v14, %v876_v28  ;;  %vm810_vm3 = vcmp.ge.f32.partialorder %v713_v19, 0.0  ;;  %v598_v40 = vpop.f32.mrb[25].mxu0  ;;  %v726_v41 = vpop.f32.mrb[25].mxu1 }
 0x12c   : > { %1226 = vst.msk [vmem:[%s1791_s6 + $0x50] sm:$0xf] %vm1205_vm2, %v1461_v26  ;;  %v1464_v32 = vpack.c.bf16 %v908_v30, %v908_v30  ;;  %v874_v34 = vmul.f32 0.2, %v713_v19  ;;  %v1496_v37 = vpack.c.bf16 %v940_v33, %v940_v33  ;;  %v906_v38 = vsel %vm778_vm1, %v585_v18, %v842_v31  ;;  %v1588_v45 = vpop.f32.mrb[26].mxu0  ;;  %v1620_v46 = vpop.f32.mrb[26].mxu1 }
 0x12d   : > { %1258 = vst.msk [vmem:[%s1791_s6 + $0xd0] sm:$0xf] %vm1205_vm2, %v1493_v29  ;;  %vm783_vm4 = vcmp.ge.f32.partialorder %v1587_v35, 0.0  ;;  %v847_v39 = vmul.f32 0.2, %v1587_v35  ;;  %v1462_v42 = vpack.c.bf16 %v906_v38, %v906_v38  ;;  %vm815_vm5 = vcmp.ge.f32.partialorder %v1619_v36, 0.0 }
 0x12e   : > { %1229 = vst.msk [vmem:[%s1791_s6 + $0x5c] sm:$0xf] %vm1205_vm2, %v1464_v32  ;;  %v938_v43 = vsel %vm810_vm3, %v713_v19, %v874_v34  ;;  %v879_v44 = vmul.f32 0.2, %v1619_v36  ;;  %1261 = vst.msk [vmem:[%s1791_s6 + $0xdc] sm:$0xf] %vm1205_vm2, %v1496_v37 }
 0x12f   : > { %v1494_v47 = vpack.c.bf16 %v938_v43, %v938_v43  ;;  %v911_v48 = vsel %vm783_vm4, %v1587_v35, %v847_v39  ;;  %vm781_vm6 = vcmp.ge.f32.partialorder %v598_v40, 0.0  ;;  %v845_v49 = vmul.f32 0.2, %v598_v40  ;;  %v601_v50 = vpop.f32.mrb[27].mxu0  ;;  %v729_v51 = vpop.f32.mrb[27].mxu1 }
 0x130   : > { %1227 = vst.msk [vmem:[%s1791_s6 + $0x54] sm:$0xf] %vm1205_vm2, %v1462_v42  ;;  %v1467_v52 = vpack.c.bf16 %v911_v48, %v911_v48  ;;  %v943_v53 = vsel %vm815_vm5, %v1619_v36, %v879_v44  ;;  %vm813_vm7 = vcmp.ge.f32.partialorder %v726_v41, 0.0  ;;  %v877_v54 = vmul.f32 0.2, %v726_v41 }
 0x131   : > { %1259 = vst.msk [vmem:[%s1791_s6 + $0xd4] sm:$0xf] %vm1205_vm2, %v1494_v47  ;;  %v1499_v55 = vpack.c.bf16 %v943_v53, %v943_v53  ;;  %v909_v56 = vsel %vm781_vm6, %v598_v40, %v845_v49  ;;  %vm784_vm8 = vcmp.ge.f32.partialorder %v1588_v45, 0.0  ;;  %v848_v57 = vmul.f32 0.2, %v1588_v45  ;;  %v1591_v3 = vpop.f32.mrb[28].mxu0 }
 0x132   : > { %1232 = vst.msk [vmem:[%s1791_s6 + $0x68] sm:$0xf] %vm1205_vm2, %v1467_v52  ;;  %v1465_v58 = vpack.c.bf16 %v909_v56, %v909_v56  ;;  %v941_v59 = vsel %vm813_vm7, %v726_v41, %v877_v54  ;;  %vm816_vm9 = vcmp.ge.f32.partialorder %v1620_v46, 0.0  ;;  %v880_v60 = vmul.f32 0.2, %v1620_v46  ;;  %v1623_v4 = vpop.f32.mrb[28].mxu1 }
 0x133   : > { %1264 = vst.msk [vmem:[%s1791_s6 + $0xe8] sm:$0xf] %vm1205_vm2, %v1499_v55  ;;  %v1497_v61 = vpack.c.bf16 %v941_v59, %v941_v59  ;;  %v912_v62 = vsel %vm784_vm8, %v1588_v45, %v848_v57  ;;  %vm782_vm10 = vcmp.ge.f32.partialorder %v601_v50, 0.0  ;;  %v846_v63 = vmul.f32 0.2, %v601_v50  ;;  %v614_v8 = vpop.f32.mrb[29].mxu0 }
 0x134   : > { %1230 = vst.msk [vmem:[%s1791_s6 + $0x60] sm:$0xf] %vm1205_vm2, %v1465_v58  ;;  %v1468_v0 = vpack.c.bf16 %v912_v62, %v912_v62  ;;  %v944_v1 = vsel %vm816_vm9, %v1620_v46, %v880_v60  ;;  %vm814_vm11 = vcmp.ge.f32.partialorder %v729_v51, 0.0  ;;  %v878_v2 = vmul.f32 0.2, %v729_v51  ;;  %v742_v9 = vpop.f32.mrb[29].mxu1 }
 0x135   : > { %1262 = vst.msk [vmem:[%s1791_s6 + $0xe0] sm:$0xf] %vm1205_vm2, %v1497_v61  ;;  %v1500_v5 = vpack.c.bf16 %v944_v1, %v944_v1  ;;  %v910_v6 = vsel %vm782_vm10, %v601_v50, %v846_v63  ;;  %vm787_vm12 = vcmp.ge.f32.partialorder %v1591_v3, 0.0  ;;  %v851_v7 = vmul.f32 0.2, %v1591_v3  ;;  %v1592_v13 = vpop.f32.mrb[30].mxu0 }
 0x136   : > { %1233 = vst.msk [vmem:[%s1791_s6 + $0x6c] sm:$0xf] %vm1205_vm2, %v1468_v0  ;;  %v1466_v10 = vpack.c.bf16 %v910_v6, %v910_v6  ;;  %v942_v11 = vsel %vm814_vm11, %v729_v51, %v878_v2  ;;  %vm819_vm13 = vcmp.ge.f32.partialorder %v1623_v4, 0.0  ;;  %v883_v12 = vmul.f32 0.2, %v1623_v4  ;;  %v1624_v14 = vpop.f32.mrb[30].mxu1 }
 0x137   : > { %1265 = vst.msk [vmem:[%s1791_s6 + $0xec] sm:$0xf] %vm1205_vm2, %v1500_v5  ;;  %v1498_v15 = vpack.c.bf16 %v942_v11, %v942_v11  ;;  %v915_v16 = vsel %vm787_vm12, %v1591_v3, %v851_v7  ;;  %vm785_vm14 = vcmp.ge.f32.partialorder %v614_v8, 0.0  ;;  %v849_v17 = vmul.f32 0.2, %v614_v8  ;;  %v617_v18 = vpop.f32.mrb[31].mxu0 }
 0x138   : > { %v745_v19 = vpop.f32.mrb[31].mxu1  ;;  %1231 = vst.msk [vmem:[%s1791_s6 + $0x64] sm:$0xf] %vm1205_vm2, %v1466_v10  ;;  %v1471_v20 = vpack.c.bf16 %v915_v16, %v915_v16  ;;  %v947_v21 = vsel %vm819_vm13, %v1623_v4, %v883_v12  ;;  %vm817_vm15 = vcmp.ge.f32.partialorder %v742_v9, 0.0  ;;  %v881_v22 = vmul.f32 0.2, %v742_v9 }
 0x139   : > { %1263 = vst.msk [vmem:[%s1791_s6 + $0xe4] sm:$0xf] %vm1205_vm2, %v1498_v15  ;;  %v1503_v23 = vpack.c.bf16 %v947_v21, %v947_v21  ;;  %v913_v24 = vsel %vm785_vm14, %v614_v8, %v849_v17  ;;  %vm788_vm0 = vcmp.ge.f32.partialorder %v1592_v13, 0.0  ;;  %v852_v25 = vmul.f32 0.2, %v1592_v13 }
 0x13a   : > { %1236 = vst.msk [vmem:[%s1791_s6 + $0x78] sm:$0xf] %vm1205_vm2, %v1471_v20  ;;  %v1469_v26 = vpack.c.bf16 %v913_v24, %v913_v24  ;;  %v945_v27 = vsel %vm817_vm15, %v742_v9, %v881_v22  ;;  %vm820_vm1 = vcmp.ge.f32.partialorder %v1624_v14, 0.0  ;;  %v884_v28 = vmul.f32 0.2, %v1624_v14 }
 0x13b   : > { %1268 = vst.msk [vmem:[%s1791_s6 + $0xf8] sm:$0xf] %vm1205_vm2, %v1503_v23  ;;  %v1501_v29 = vpack.c.bf16 %v945_v27, %v945_v27  ;;  %v916_v30 = vsel %vm788_vm0, %v1592_v13, %v852_v25  ;;  %vm786_vm3 = vcmp.ge.f32.partialorder %v617_v18, 0.0  ;;  %v850_v31 = vmul.f32 0.2, %v617_v18 }
 0x13c   : > { %1234 = vst.msk [vmem:[%s1791_s6 + $0x70] sm:$0xf] %vm1205_vm2, %v1469_v26  ;;  %v1472_v32 = vpack.c.bf16 %v916_v30, %v916_v30  ;;  %v948_v33 = vsel %vm820_vm1, %v1624_v14, %v884_v28  ;;  %vm818_vm4 = vcmp.ge.f32.partialorder %v745_v19, 0.0  ;;  %v882_v34 = vmul.f32 0.2, %v745_v19 }
 0x13d   : > { %1266 = vst.msk [vmem:[%s1791_s6 + $0xf0] sm:$0xf] %vm1205_vm2, %v1501_v29  ;;  %v1504_v35 = vpack.c.bf16 %v948_v33, %v948_v33  ;;  %v914_v36 = vsel %vm786_vm3, %v617_v18, %v850_v31 }
 0x13e   : > { %1237 = vst.msk [vmem:[%s1791_s6 + $0x7c] sm:$0xf] %vm1205_vm2, %v1472_v32  ;;  %v1470_v37 = vpack.c.bf16 %v914_v36, %v914_v36  ;;  %v946_v38 = vsel %vm818_vm4, %v745_v19, %v882_v34 }
 0x13f   : > { %1269 = vst.msk [vmem:[%s1791_s6 + $0xfc] sm:$0xf] %vm1205_vm2, %v1504_v35  ;;  %v1502_v39 = vpack.c.bf16 %v946_v38, %v946_v38 }
 0x140   : > { %1235 = vst.msk [vmem:[%s1791_s6 + $0x74] sm:$0xf] %vm1205_vm2, %v1470_v37 }
 0x141   : > { %1267 = vst.msk [vmem:[%s1791_s6 + $0xf4] sm:$0xf] %vm1205_vm2, %v1502_v39 }
 0x142 PF: > { %s12_s9 = sadd.s32 1, %s1695_s9  }
 0x143   : > { %p9_p4 = scmp.ge.s32.totalorder %s12_s9, 18  }
 0x145   :  { %11 = sbr.rel (!%p9_p4) target bundleno = 1 (0x1), region = 58 }

// kernel: forward.10
= control target key start
LH: loop header
LB: loop body
LE: loop exit
PB: predicated region body
PF: predicated region fallthrough
CT: control target
= control target key end

     0   :  { %s1126_s12 = smov 0   ;;  %s1481_s0 = inlined_call_operand.vmem [shape: f32[2048,16], index: 0, kind: input, shape index: {}]   ;;  %s1482_s1 = inlined_call_operand.vmem [shape: f32[1,16], index: 1, kind: input, shape index: {}]   ;;  %s1483_s2 = inlined_call_operand.vmem [shape: f32[1,16], index: 2, kind: input, shape index: {}]   ;;  %s1484_s3 = inlined_call_operand.vmem [shape: bf16[2048,16], index: 3, kind: output, shape index: {}]  }
   0x1 LB: > { %s949_s13 = sadd.s32 4294967295, %s1104_s12   ;;  %p953_p0 = scmp.ge.s32.totalorder %s1104_s12, 1  ;;  %s1104_s12 = sphi %s1126_s12, %s13_s12  }
   0x2   : > { %p138_p1 = scmp.lt.s32.totalorder %s1104_s12, 5 }
   0x4   : > { %p139_p2 = pnand %p953_p0, %p138_p1 }
   0x5   : > { %s954_s14 = sshll.u32 (!%p139_p2), %s949_s13, 6  ;;  %v1140_v0 = vld [vmem:[%s1482_s1] ss:$0 sm:$0xff] (!%p139_p2)  ;;  %vm828_vm0 = vcmask (!%p139_p2), 125952  }
   0x6   : > { %142 = sbr.rel (%p139_p2) target bundleno = 120 (0x78), region = 32  ;;  %p163_p3 = scmp.lt.s32.totalorder (!%p139_p2), %s954_s14, 255  ;;  %v1150_v1 = vld [vmem:[%s1483_s2] ss:$0 sm:$0xff] (!%p139_p2) }
   0xd   : > { %s1486_s14 = smov (!%p163_p3, %s954_s14), 255 }
   0xe   : > { %s955_s15 = sshll.u32 %s1486_s14, 3  ;;  %s957_s23 = sshll.u32 %s1486_s14, 2 }
   0xf   : > { %s1145_s20 = scalar_lea.vmem %s1481_s0, %s955_s15  ;;  %s1178_s26 = scalar_lea.vmem %s1484_s3, %s957_s23 }
  0x10   : > { %v174_v2 = vld [vmem:[%s1145_s20] sm:$0xff]  ;;  %v175_v3 = vld [vmem:[%s1145_s20 + $0x8] sm:$0xff]  ;;  %v176_v4 = vld [vmem:[%s1145_s20 + $0x10] sm:$0xff] }
  0x11   : > { %v245_v5 = vmul.f32 %v1140_v0, %v174_v2  ;;  %v246_v6 = vmul.f32 %v1140_v0, %v175_v3  ;;  %v247_v7 = vmul.f32 %v1140_v0, %v176_v4  ;;  %v177_v8 = vld [vmem:[%s1145_s20 + $0x18] sm:$0xff]  ;;  %v178_v9 = vld [vmem:[%s1145_s20 + $0x20] sm:$0xff]  ;;  %v179_v10 = vld [vmem:[%s1145_s20 + $0x28] sm:$0xff] }
  0x12   : > { %v248_v11 = vmul.f32 %v1140_v0, %v177_v8  ;;  %v249_v12 = vmul.f32 %v1140_v0, %v178_v9  ;;  %v250_v13 = vmul.f32 %v1140_v0, %v179_v10  ;;  %v180_v14 = vld [vmem:[%s1145_s20 + $0x30] sm:$0xff]  ;;  %v181_v15 = vld [vmem:[%s1145_s20 + $0x38] sm:$0xff]  ;;  %v182_v31 = vld [vmem:[%s1145_s20 + $0x40] sm:$0xff] }
  0x13   : > { %v316_v16 = vadd.f32 %v1150_v1, %v245_v5  ;;  %v317_v17 = vadd.f32 %v1150_v1, %v246_v6  ;;  %v318_v18 = vadd.f32 %v1150_v1, %v247_v7  ;;  %v251_v19 = vmul.f32 %v1140_v0, %v180_v14  ;;  %v183_v36 = vld [vmem:[%s1145_s20 + $0x48] sm:$0xff]  ;;  %v184_v37 = vld [vmem:[%s1145_s20 + $0x50] sm:$0xff]  ;;  %v185_v38 = vld [vmem:[%s1145_s20 + $0x58] sm:$0xff] }
  0x14   : > { %v319_v20 = vadd.f32 %v1150_v1, %v248_v11  ;;  %v320_v21 = vadd.f32 %v1150_v1, %v249_v12  ;;  %v321_v22 = vadd.f32 %v1150_v1, %v250_v13  ;;  %v252_v23 = vmul.f32 %v1140_v0, %v181_v15  ;;  %v186_v50 = vld [vmem:[%s1145_s20 + $0x60] sm:$0xff]  ;;  %v187_v2 = vld [vmem:[%s1145_s20 + $0x68] sm:$0xff]  ;;  %v188_v5 = vld [vmem:[%s1145_s20 + $0x70] sm:$0xff] }
  0x15   : > { %vm380_vm1 = vcmp.ge.f32.partialorder %v316_v16, 0.0  ;;  %v444_v24 = vmul.f32 0.2, %v316_v16  ;;  %vm381_vm2 = vcmp.ge.f32.partialorder %v317_v17, 0.0  ;;  %v445_v25 = vmul.f32 0.2, %v317_v17 }
  0x16   : > { %vm382_vm3 = vcmp.ge.f32.partialorder %v318_v18, 0.0  ;;  %v446_v26 = vmul.f32 0.2, %v318_v18  ;;  %vm383_vm4 = vcmp.ge.f32.partialorder %v319_v20, 0.0  ;;  %v447_v27 = vmul.f32 0.2, %v319_v20 }
  0x17   : > { %v508_v28 = vsel %vm380_vm1, %v316_v16, %v444_v24  ;;  %v509_v29 = vsel %vm381_vm2, %v317_v17, %v445_v25  ;;  %vm384_vm5 = vcmp.ge.f32.partialorder %v320_v21, 0.0  ;;  %v448_v30 = vmul.f32 0.2, %v320_v21  ;;  %v189_v13 = vld [vmem:[%s1145_s20 + $0x78] sm:$0xff]  ;;  %v190_v14 = vld [vmem:[%s1145_s20 + $0x80] sm:$0xff] }
  0x18   : > { %v1026_v32 = vpack.c.bf16 %v508_v28, %v508_v28  ;;  %v1027_v33 = vpack.c.bf16 %v509_v29, %v509_v29  ;;  %v510_v34 = vsel %vm382_vm3, %v318_v18, %v446_v26  ;;  %v511_v35 = vsel %vm383_vm4, %v319_v20, %v447_v27  ;;  %v192_v20 = vld [vmem:[%s1145_s20 + $0x90] sm:$0xff] }
  0x19   : > { %v1028_v39 = vpack.c.bf16 %v510_v34, %v510_v34  ;;  %v1029_v40 = vpack.c.bf16 %v511_v35, %v511_v35  ;;  %v512_v41 = vsel %vm384_vm5, %v320_v21, %v448_v30  ;;  %vm385_vm6 = vcmp.ge.f32.partialorder %v321_v22, 0.0  ;;  %v193_v21 = vld [vmem:[%s1145_s20 + $0x98] sm:$0xff] }
  0x1a   : > { %829 = vst.msk [vmem:[%s1178_s26] sm:$0xf] %vm828_vm0, %v1026_v32  ;;  %830 = vst.msk [vmem:[%s1178_s26 + $0x4] sm:$0xf] %vm828_vm0, %v1027_v33  ;;  %v1030_v42 = vpack.c.bf16 %v512_v41, %v512_v41  ;;  %v449_v43 = vmul.f32 0.2, %v321_v22  ;;  %v322_v44 = vadd.f32 %v1150_v1, %v251_v19  ;;  %v323_v45 = vadd.f32 %v1150_v1, %v252_v23 }
  0x1b   : > { %831 = vst.msk [vmem:[%s1178_s26 + $0x8] sm:$0xf] %vm828_vm0, %v1028_v39  ;;  %832 = vst.msk [vmem:[%s1178_s26 + $0xc] sm:$0xf] %vm828_vm0, %v1029_v40  ;;  %v253_v46 = vmul.f32 %v1140_v0, %v182_v31  ;;  %v254_v47 = vmul.f32 %v1140_v0, %v183_v36  ;;  %v255_v48 = vmul.f32 %v1140_v0, %v184_v37  ;;  %v191_v19 = vld [vmem:[%s1145_s20 + $0x88] sm:$0xff]  ;;  %v194_v33 = vld [vmem:[%s1145_s20 + $0xa0] sm:$0xff] }
  0x1c   : > { %v256_v49 = vmul.f32 %v1140_v0, %v185_v38  ;;  %833 = vst.msk [vmem:[%s1178_s26 + $0x10] sm:$0xf] %vm828_vm0, %v1030_v42  ;;  %v513_v51 = vsel %vm385_vm6, %v321_v22, %v449_v43  ;;  %vm386_vm7 = vcmp.ge.f32.partialorder %v322_v44, 0.0  ;;  %v450_v52 = vmul.f32 0.2, %v322_v44 }
  0x1d   : > { %vm387_vm8 = vcmp.ge.f32.partialorder %v323_v45, 0.0  ;;  %v1031_v53 = vpack.c.bf16 %v513_v51, %v513_v51  ;;  %v451_v54 = vmul.f32 0.2, %v323_v45  ;;  %v324_v55 = vadd.f32 %v1150_v1, %v253_v46 }
  0x1e   : > { %v325_v56 = vadd.f32 %v1150_v1, %v254_v47  ;;  %v514_v57 = vsel %vm386_vm7, %v322_v44, %v450_v52  ;;  %v326_v58 = vadd.f32 %v1150_v1, %v255_v48  ;;  %v327_v59 = vadd.f32 %v1150_v1, %v256_v49  ;;  %v195_v52 = vld [vmem:[%s1145_s20 + $0xa8] sm:$0xff] }
  0x1f   : > { %v257_v60 = vmul.f32 %v1140_v0, %v186_v50  ;;  %834 = vst.msk [vmem:[%s1178_s26 + $0x14] sm:$0xf] %vm828_vm0, %v1031_v53  ;;  %v1032_v61 = vpack.c.bf16 %v514_v57, %v514_v57  ;;  %v515_v62 = vsel %vm387_vm8, %v323_v45, %v451_v54  ;;  %vm388_vm9 = vcmp.ge.f32.partialorder %v324_v55, 0.0 }
  0x20   : > { %v452_v63 = vmul.f32 0.2, %v324_v55  ;;  %v1033_v3 = vpack.c.bf16 %v515_v62, %v515_v62  ;;  %vm389_vm10 = vcmp.ge.f32.partialorder %v325_v56, 0.0  ;;  %v453_v4 = vmul.f32 0.2, %v325_v56  ;;  %v198_v62 = vld [vmem:[%s1145_s20 + $0xc0] sm:$0xff] }
  0x21   : > { %vm390_vm11 = vcmp.ge.f32.partialorder %v326_v58, 0.0  ;;  %835 = vst.msk [vmem:[%s1178_s26 + $0x18] sm:$0xf] %vm828_vm0, %v1032_v61  ;;  %v454_v7 = vmul.f32 0.2, %v326_v58  ;;  %vm391_vm12 = vcmp.ge.f32.partialorder %v327_v59, 0.0  ;;  %v328_v11 = vadd.f32 %v1150_v1, %v257_v60 }
  0x22   : > { %v516_v6 = vsel %vm388_vm9, %v324_v55, %v452_v63  ;;  %v455_v8 = vmul.f32 0.2, %v327_v59  ;;  %836 = vst.msk [vmem:[%s1178_s26 + $0x1c] sm:$0xf] %vm828_vm0, %v1033_v3  ;;  %v517_v10 = vsel %vm389_vm10, %v325_v56, %v453_v4  ;;  %v258_v12 = vmul.f32 %v1140_v0, %v187_v2  ;;  %v196_v56 = vld [vmem:[%s1145_s20 + $0xb0] sm:$0xff]  ;;  %v197_v61 = vld [vmem:[%s1145_s20 + $0xb8] sm:$0xff] }
  0x23   : > { %v1034_v9 = vpack.c.bf16 %v516_v6, %v516_v6  ;;  %v1035_v15 = vpack.c.bf16 %v517_v10, %v517_v10  ;;  %v518_v16 = vsel %vm390_vm11, %v326_v58, %v454_v7  ;;  %v259_v18 = vmul.f32 %v1140_v0, %v188_v5  ;;  %v199_v63 = vld [vmem:[%s1145_s20 + $0xc8] sm:$0xff]  ;;  %v200_v6 = vld [vmem:[%s1145_s20 + $0xd0] sm:$0xff]  ;;  %v201_v7 = vld [vmem:[%s1145_s20 + $0xd8] sm:$0xff] }
  0x24   : > { %v519_v17 = vsel %vm391_vm12, %v327_v59, %v455_v8  ;;  %v1036_v22 = vpack.c.bf16 %v518_v16, %v518_v16  ;;  %vm392_vm13 = vcmp.ge.f32.partialorder %v328_v11, 0.0  ;;  %v456_v24 = vmul.f32 0.2, %v328_v11 }
  0x25   : > { %837 = vst.msk [vmem:[%s1178_s26 + $0x20] sm:$0xf] %vm828_vm0, %v1034_v9  ;;  %v1037_v23 = vpack.c.bf16 %v519_v17, %v519_v17  ;;  %838 = vst.msk [vmem:[%s1178_s26 + $0x24] sm:$0xf] %vm828_vm0, %v1035_v15  ;;  %v329_v25 = vadd.f32 %v1150_v1, %v258_v12  ;;  %v330_v26 = vadd.f32 %v1150_v1, %v259_v18 }
  0x26   : > { %v260_v27 = vmul.f32 %v1140_v0, %v189_v13  ;;  %v261_v28 = vmul.f32 %v1140_v0, %v190_v14  ;;  %839 = vst.msk [vmem:[%s1178_s26 + $0x28] sm:$0xf] %vm828_vm0, %v1036_v22  ;;  %v520_v29 = vsel %vm392_vm13, %v328_v11, %v456_v24  ;;  %v262_v30 = vmul.f32 %v1140_v0, %v191_v19 }
  0x27   : > { %840 = vst.msk [vmem:[%s1178_s26 + $0x2c] sm:$0xf] %vm828_vm0, %v1037_v23  ;;  %v263_v31 = vmul.f32 %v1140_v0, %v192_v20  ;;  %v264_v32 = vmul.f32 %v1140_v0, %v193_v21  ;;  %v1038_v34 = vpack.c.bf16 %v520_v29, %v520_v29  ;;  %vm393_vm14 = vcmp.ge.f32.partialorder %v329_v25, 0.0 }
  0x28   : > { %v457_v35 = vmul.f32 0.2, %v329_v25  ;;  %vm394_vm15 = vcmp.ge.f32.partialorder %v330_v26, 0.0  ;;  %v458_v36 = vmul.f32 0.2, %v330_v26  ;;  %v331_v37 = vadd.f32 %v1150_v1, %v260_v27 }
  0x29   : > { %v332_v38 = vadd.f32 %v1150_v1, %v261_v28  ;;  %v333_v39 = vadd.f32 %v1150_v1, %v262_v30  ;;  %841 = vst.msk [vmem:[%s1178_s26 + $0x30] sm:$0xf] %vm828_vm0, %v1038_v34  ;;  %v334_v41 = vadd.f32 %v1150_v1, %v263_v31  ;;  %v335_v42 = vadd.f32 %v1150_v1, %v264_v32  ;;  %v202_v31 = vld [vmem:[%s1145_s20 + $0xe0] sm:$0xff] }
  0x2a   : > { %v521_v40 = vsel %vm393_vm14, %v329_v25, %v457_v35  ;;  %v265_v43 = vmul.f32 %v1140_v0, %v194_v33  ;;  %v522_v45 = vsel %vm394_vm15, %v330_v26, %v458_v36  ;;  %vm395_vm1 = vcmp.ge.f32.partialorder %v331_v37, 0.0  ;;  %v203_v35 = vld [vmem:[%s1145_s20 + $0xe8] sm:$0xff]  ;;  %v204_v36 = vld [vmem:[%s1145_s20 + $0xf0] sm:$0xff] }
  0x2b   : > { %v1039_v44 = vpack.c.bf16 %v521_v40, %v521_v40  ;;  %v459_v46 = vmul.f32 0.2, %v331_v37  ;;  %v1040_v47 = vpack.c.bf16 %v522_v45, %v522_v45  ;;  %vm396_vm2 = vcmp.ge.f32.partialorder %v332_v38, 0.0  ;;  %v206_v45 = vld [vmem:[%s1145_s20 + $0x100] sm:$0xff] }
  0x2c   : > { %v460_v48 = vmul.f32 0.2, %v332_v38  ;;  %vm397_vm3 = vcmp.ge.f32.partialorder %v333_v39, 0.0  ;;  %v461_v50 = vmul.f32 0.2, %v333_v39  ;;  %vm398_vm4 = vcmp.ge.f32.partialorder %v334_v41, 0.0 }
  0x2d   : > { %842 = vst.msk [vmem:[%s1178_s26 + $0x34] sm:$0xf] %vm828_vm0, %v1039_v44  ;;  %v523_v49 = vsel %vm395_vm1, %v331_v37, %v459_v46  ;;  %v462_v51 = vmul.f32 0.2, %v334_v41  ;;  %843 = vst.msk [vmem:[%s1178_s26 + $0x38] sm:$0xf] %vm828_vm0, %v1040_v47  ;;  %v336_v60 = vadd.f32 %v1150_v1, %v265_v43  ;;  %v266_v5 = vmul.f32 %v1140_v0, %v195_v52 }
  0x2e   : > { %v1041_v53 = vpack.c.bf16 %v523_v49, %v523_v49  ;;  %v524_v54 = vsel %vm396_vm2, %v332_v38, %v460_v48  ;;  %vm399_vm5 = vcmp.ge.f32.partialorder %v335_v42, 0.0  ;;  %v463_v55 = vmul.f32 0.2, %v335_v42  ;;  %v205_v44 = vld [vmem:[%s1145_s20 + $0xf8] sm:$0xff] }
  0x2f   : > { %v1042_v57 = vpack.c.bf16 %v524_v54, %v524_v54  ;;  %v525_v58 = vsel %vm397_vm3, %v333_v39, %v461_v50  ;;  %v526_v59 = vsel %vm398_vm4, %v334_v41, %v462_v51  ;;  %vm400_vm6 = vcmp.ge.f32.partialorder %v336_v60, 0.0  ;;  %v207_v50 = vld [vmem:[%s1145_s20 + $0x108] sm:$0xff] }
  0x30   : > { %844 = vst.msk [vmem:[%s1178_s26 + $0x3c] sm:$0xf] %vm828_vm0, %v1041_v53  ;;  %v1043_v2 = vpack.c.bf16 %v525_v58, %v525_v58  ;;  %v1044_v3 = vpack.c.bf16 %v526_v59, %v526_v59  ;;  %v527_v4 = vsel %vm399_vm5, %v335_v42, %v463_v55  ;;  %v464_v9 = vmul.f32 0.2, %v336_v60 }
  0x31   : > { %845 = vst.msk [vmem:[%s1178_s26 + $0x40] sm:$0xf] %vm828_vm0, %v1042_v57  ;;  %v1045_v8 = vpack.c.bf16 %v527_v4, %v527_v4  ;;  %v267_v10 = vmul.f32 %v1140_v0, %v196_v56  ;;  %v337_v11 = vadd.f32 %v1150_v1, %v266_v5  ;;  %v268_v12 = vmul.f32 %v1140_v0, %v197_v61  ;;  %v208_v61 = vld [vmem:[%s1145_s20 + $0x110] sm:$0xff] }
  0x32   : > { %846 = vst.msk [vmem:[%s1178_s26 + $0x44] sm:$0xf] %vm828_vm0, %v1043_v2  ;;  %847 = vst.msk [vmem:[%s1178_s26 + $0x48] sm:$0xf] %vm828_vm0, %v1044_v3  ;;  %v269_v13 = vmul.f32 %v1140_v0, %v198_v62  ;;  %v270_v14 = vmul.f32 %v1140_v0, %v199_v63  ;;  %v528_v15 = vsel %vm400_vm6, %v336_v60, %v464_v9 }
  0x33   : > { %848 = vst.msk [vmem:[%s1178_s26 + $0x4c] sm:$0xf] %vm828_vm0, %v1045_v8  ;;  %v338_v16 = vadd.f32 %v1150_v1, %v267_v10  ;;  %v271_v17 = vmul.f32 %v1140_v0, %v200_v6  ;;  %v272_v18 = vmul.f32 %v1140_v0, %v201_v7  ;;  %v1046_v19 = vpack.c.bf16 %v528_v15, %v528_v15  ;;  %v209_v10 = vld [vmem:[%s1145_s20 + $0x118] sm:$0xff]  ;;  %v211_v15 = vld [vmem:[%s1145_s20 + $0x128] sm:$0xff] }
  0x34   : > { %vm401_vm7 = vcmp.ge.f32.partialorder %v337_v11, 0.0  ;;  %v465_v20 = vmul.f32 0.2, %v337_v11  ;;  %v339_v21 = vadd.f32 %v1150_v1, %v268_v12  ;;  %v340_v23 = vadd.f32 %v1150_v1, %v269_v13 }
  0x35   : > { %vm402_vm8 = vcmp.ge.f32.partialorder %v338_v16, 0.0  ;;  %v466_v22 = vmul.f32 0.2, %v338_v16  ;;  %v341_v24 = vadd.f32 %v1150_v1, %v270_v14  ;;  %849 = vst.msk [vmem:[%s1178_s26 + $0x50] sm:$0xf] %vm828_vm0, %v1046_v19  ;;  %v342_v27 = vadd.f32 %v1150_v1, %v271_v17  ;;  %v210_v14 = vld [vmem:[%s1145_s20 + $0x120] sm:$0xff] }
  0x36   : > { %v529_v25 = vsel %vm401_vm7, %v337_v11, %v465_v20  ;;  %vm403_vm9 = vcmp.ge.f32.partialorder %v339_v21, 0.0  ;;  %v467_v26 = vmul.f32 0.2, %v339_v21  ;;  %vm404_vm10 = vcmp.ge.f32.partialorder %v340_v23, 0.0 }
  0x37   : > { %v1047_v28 = vpack.c.bf16 %v529_v25, %v529_v25  ;;  %v530_v29 = vsel %vm402_vm8, %v338_v16, %v466_v22  ;;  %v468_v30 = vmul.f32 0.2, %v340_v23  ;;  %vm405_vm11 = vcmp.ge.f32.partialorder %v341_v24, 0.0 }
  0x38   : > { %v1048_v32 = vpack.c.bf16 %v530_v29, %v530_v29  ;;  %v531_v33 = vsel %vm403_vm9, %v339_v21, %v467_v26  ;;  %v469_v34 = vmul.f32 0.2, %v341_v24  ;;  %vm406_vm12 = vcmp.ge.f32.partialorder %v342_v27, 0.0  ;;  %v212_v26 = vld [vmem:[%s1145_s20 + $0x130] sm:$0xff] }
  0x39   : > { %850 = vst.msk [vmem:[%s1178_s26 + $0x54] sm:$0xf] %vm828_vm0, %v1047_v28  ;;  %v1049_v37 = vpack.c.bf16 %v531_v33, %v531_v33  ;;  %v532_v38 = vsel %vm404_vm10, %v340_v23, %v468_v30  ;;  %v470_v39 = vmul.f32 0.2, %v342_v27  ;;  %v343_v42 = vadd.f32 %v1150_v1, %v272_v18  ;;  %v214_v28 = vld [vmem:[%s1145_s20 + $0x140] sm:$0xff] }
  0x3a   : > { %851 = vst.msk [vmem:[%s1178_s26 + $0x58] sm:$0xf] %vm828_vm0, %v1048_v32  ;;  %v1050_v40 = vpack.c.bf16 %v532_v38, %v532_v38  ;;  %v533_v41 = vsel %vm405_vm11, %v341_v24, %v469_v34  ;;  %v273_v43 = vmul.f32 %v1140_v0, %v202_v31  ;;  %v274_v48 = vmul.f32 %v1140_v0, %v203_v35 }
  0x3b   : > { %852 = vst.msk [vmem:[%s1178_s26 + $0x5c] sm:$0xf] %vm828_vm0, %v1049_v37  ;;  %v1051_v46 = vpack.c.bf16 %v533_v41, %v533_v41  ;;  %v534_v47 = vsel %vm406_vm12, %v342_v27, %v470_v39  ;;  %v275_v49 = vmul.f32 %v1140_v0, %v204_v36  ;;  %vm407_vm13 = vcmp.ge.f32.partialorder %v343_v42, 0.0  ;;  %v213_v27 = vld [vmem:[%s1145_s20 + $0x138] sm:$0xff] }
  0x3c   : > { %853 = vst.msk [vmem:[%s1178_s26 + $0x60] sm:$0xf] %vm828_vm0, %v1050_v40  ;;  %v1052_v51 = vpack.c.bf16 %v534_v47, %v534_v47  ;;  %v471_v52 = vmul.f32 0.2, %v343_v42  ;;  %v344_v53 = vadd.f32 %v1150_v1, %v273_v43  ;;  %v345_v54 = vadd.f32 %v1150_v1, %v274_v48  ;;  %v215_v40 = vld [vmem:[%s1145_s20 + $0x148] sm:$0xff] }
  0x3d   : > { %854 = vst.msk [vmem:[%s1178_s26 + $0x64] sm:$0xf] %vm828_vm0, %v1051_v46  ;;  %v346_v55 = vadd.f32 %v1150_v1, %v275_v49  ;;  %v276_v56 = vmul.f32 %v1140_v0, %v205_v44  ;;  %v277_v57 = vmul.f32 %v1140_v0, %v206_v45  ;;  %v278_v60 = vmul.f32 %v1140_v0, %v207_v50 }
  0x3e   : > { %855 = vst.msk [vmem:[%s1178_s26 + $0x68] sm:$0xf] %vm828_vm0, %v1052_v51  ;;  %v535_v58 = vsel %vm407_vm13, %v343_v42, %v471_v52  ;;  %vm408_vm14 = vcmp.ge.f32.partialorder %v344_v53, 0.0  ;;  %v472_v59 = vmul.f32 0.2, %v344_v53  ;;  %vm409_vm15 = vcmp.ge.f32.partialorder %v345_v54, 0.0 }
  0x3f   : > { %v1053_v62 = vpack.c.bf16 %v535_v58, %v535_v58  ;;  %v473_v63 = vmul.f32 0.2, %v345_v54  ;;  %vm410_vm1 = vcmp.ge.f32.partialorder %v346_v55, 0.0  ;;  %v474_v3 = vmul.f32 0.2, %v346_v55 }
  0x40   : > { %v536_v2 = vsel %vm408_vm14, %v344_v53, %v472_v59  ;;  %v347_v4 = vadd.f32 %v1150_v1, %v276_v56  ;;  %v348_v5 = vadd.f32 %v1150_v1, %v277_v57  ;;  %v349_v8 = vadd.f32 %v1150_v1, %v278_v60  ;;  %v216_v53 = vld [vmem:[%s1145_s20 + $0x150] sm:$0xff] }
  0x41   : > { %856 = vst.msk [vmem:[%s1178_s26 + $0x6c] sm:$0xf] %vm828_vm0, %v1053_v62  ;;  %v1054_v6 = vpack.c.bf16 %v536_v2, %v536_v2  ;;  %v537_v7 = vsel %vm409_vm15, %v345_v54, %v473_v63  ;;  %v279_v9 = vmul.f32 %v1140_v0, %v208_v61  ;;  %v538_v12 = vsel %vm410_vm1, %v346_v55, %v474_v3  ;;  %v217_v54 = vld [vmem:[%s1145_s20 + $0x158] sm:$0xff]  ;;  %v218_v55 = vld [vmem:[%s1145_s20 + $0x160] sm:$0xff] }
  0x42   : > { %v1055_v11 = vpack.c.bf16 %v537_v7, %v537_v7  ;;  %vm411_vm2 = vcmp.ge.f32.partialorder %v347_v4, 0.0  ;;  %v475_v13 = vmul.f32 0.2, %v347_v4  ;;  %v1056_v16 = vpack.c.bf16 %v538_v12, %v538_v12 }
  0x43   : > { %857 = vst.msk [vmem:[%s1178_s26 + $0x70] sm:$0xf] %vm828_vm0, %v1054_v6  ;;  %vm412_vm3 = vcmp.ge.f32.partialorder %v348_v5, 0.0  ;;  %v476_v17 = vmul.f32 0.2, %v348_v5  ;;  %vm413_vm4 = vcmp.ge.f32.partialorder %v349_v8, 0.0  ;;  %v350_v20 = vadd.f32 %v1150_v1, %v279_v9 }
  0x44   : > { %858 = vst.msk [vmem:[%s1178_s26 + $0x74] sm:$0xf] %vm828_vm0, %v1055_v11  ;;  %v539_v18 = vsel %vm411_vm2, %v347_v4, %v475_v13  ;;  %v477_v19 = vmul.f32 0.2, %v349_v8  ;;  %v280_v21 = vmul.f32 %v1140_v0, %v209_v10  ;;  %859 = vst.msk [vmem:[%s1178_s26 + $0x78] sm:$0xf] %vm828_vm0, %v1056_v16  ;;  %v281_v24 = vmul.f32 %v1140_v0, %v210_v14 }
  0x45   : > { %v1057_v22 = vpack.c.bf16 %v539_v18, %v539_v18  ;;  %v540_v23 = vsel %vm412_vm3, %v348_v5, %v476_v17  ;;  %v282_v25 = vmul.f32 %v1140_v0, %v211_v15  ;;  %vm414_vm5 = vcmp.ge.f32.partialorder %v350_v20, 0.0  ;;  %v219_v4 = vld [vmem:[%s1145_s20 + $0x168] sm:$0xff]  ;;  %v220_v5 = vld [vmem:[%s1145_s20 + $0x170] sm:$0xff]  ;;  %v221_v9 = vld [vmem:[%s1145_s20 + $0x178] sm:$0xff] }
  0x46   : > { %v1058_v29 = vpack.c.bf16 %v540_v23, %v540_v23  ;;  %v541_v30 = vsel %vm413_vm4, %v349_v8, %v477_v19  ;;  %v478_v31 = vmul.f32 0.2, %v350_v20  ;;  %v351_v33 = vadd.f32 %v1150_v1, %v280_v21  ;;  %v222_v21 = vld [vmem:[%s1145_s20 + $0x180] sm:$0xff] }
  0x47   : > { %860 = vst.msk [vmem:[%s1178_s26 + $0x7c] sm:$0xf] %vm828_vm0, %v1057_v22  ;;  %v1059_v32 = vpack.c.bf16 %v541_v30, %v541_v30  ;;  %v352_v34 = vadd.f32 %v1150_v1, %v281_v24  ;;  %v353_v35 = vadd.f32 %v1150_v1, %v282_v25  ;;  %v283_v37 = vmul.f32 %v1140_v0, %v212_v26 }
  0x48   : > { %861 = vst.msk [vmem:[%s1178_s26 + $0x80] sm:$0xf] %vm828_vm0, %v1058_v29  ;;  %v542_v36 = vsel %vm414_vm5, %v350_v20, %v478_v31  ;;  %v284_v38 = vmul.f32 %v1140_v0, %v213_v27  ;;  %v285_v39 = vmul.f32 %v1140_v0, %v214_v28  ;;  %vm415_vm6 = vcmp.ge.f32.partialorder %v351_v33, 0.0 }
  0x49   : > { %862 = vst.msk [vmem:[%s1178_s26 + $0x84] sm:$0xf] %vm828_vm0, %v1059_v32  ;;  %v1060_v41 = vpack.c.bf16 %v542_v36, %v542_v36  ;;  %v479_v42 = vmul.f32 0.2, %v351_v33  ;;  %vm416_vm7 = vcmp.ge.f32.partialorder %v352_v34, 0.0  ;;  %vm417_vm8 = vcmp.ge.f32.partialorder %v353_v35, 0.0 }
  0x4a   : > { %v480_v43 = vmul.f32 0.2, %v352_v34  ;;  %v481_v44 = vmul.f32 0.2, %v353_v35  ;;  %v354_v45 = vadd.f32 %v1150_v1, %v283_v37  ;;  %v355_v47 = vadd.f32 %v1150_v1, %v284_v38  ;;  %v223_v32 = vld [vmem:[%s1145_s20 + $0x188] sm:$0xff]  ;;  %v224_v36 = vld [vmem:[%s1145_s20 + $0x190] sm:$0xff] }
  0x4b   : > { %863 = vst.msk [vmem:[%s1178_s26 + $0x88] sm:$0xf] %vm828_vm0, %v1060_v41  ;;  %v543_v46 = vsel %vm415_vm6, %v351_v33, %v479_v42  ;;  %v356_v48 = vadd.f32 %v1150_v1, %v285_v39  ;;  %v286_v49 = vmul.f32 %v1140_v0, %v215_v40  ;;  %v287_v63 = vmul.f32 %v1140_v0, %v216_v53  ;;  %v225_v37 = vld [vmem:[%s1145_s20 + $0x198] sm:$0xff] }
  0x4c   : > { %v1061_v50 = vpack.c.bf16 %v543_v46, %v543_v46  ;;  %v544_v51 = vsel %vm416_vm7, %v352_v34, %v480_v43  ;;  %v545_v52 = vsel %vm417_vm8, %v353_v35, %v481_v44  ;;  %vm418_vm9 = vcmp.ge.f32.partialorder %v354_v45, 0.0 }
  0x4d   : > { %v1062_v56 = vpack.c.bf16 %v544_v51, %v544_v51  ;;  %v1063_v57 = vpack.c.bf16 %v545_v52, %v545_v52  ;;  %v482_v58 = vmul.f32 0.2, %v354_v45  ;;  %vm419_vm10 = vcmp.ge.f32.partialorder %v355_v47, 0.0 }
  0x4e   : > { %864 = vst.msk [vmem:[%s1178_s26 + $0x8c] sm:$0xf] %vm828_vm0, %v1061_v50  ;;  %v483_v59 = vmul.f32 0.2, %v355_v47  ;;  %vm420_vm11 = vcmp.ge.f32.partialorder %v356_v48, 0.0  ;;  %v357_v61 = vadd.f32 %v1150_v1, %v286_v49  ;;  %v288_v2 = vmul.f32 %v1140_v0, %v217_v54  ;;  %v227_v49 = vld [vmem:[%s1145_s20 + $0x1a8] sm:$0xff] }
  0x4f   : > { %v484_v60 = vmul.f32 0.2, %v356_v48  ;;  %865 = vst.msk [vmem:[%s1178_s26 + $0x90] sm:$0xf] %vm828_vm0, %v1062_v56  ;;  %866 = vst.msk [vmem:[%s1178_s26 + $0x94] sm:$0xf] %vm828_vm0, %v1063_v57  ;;  %v546_v62 = vsel %vm418_vm9, %v354_v45, %v482_v58  ;;  %v289_v3 = vmul.f32 %v1140_v0, %v218_v55  ;;  %v358_v13 = vadd.f32 %v1150_v1, %v287_v63 }
  0x50   : > { %v1064_v6 = vpack.c.bf16 %v546_v62, %v546_v62  ;;  %v547_v7 = vsel %vm419_vm10, %v355_v47, %v483_v59  ;;  %vm421_vm12 = vcmp.ge.f32.partialorder %v357_v61, 0.0  ;;  %v485_v12 = vmul.f32 0.2, %v357_v61  ;;  %v228_v50 = vld [vmem:[%s1145_s20 + $0x1b0] sm:$0xff]  ;;  %v229_v62 = vld [vmem:[%s1145_s20 + $0x1b8] sm:$0xff] }
  0x51   : > { %v548_v8 = vsel %vm420_vm11, %v356_v48, %v484_v60  ;;  %v1065_v10 = vpack.c.bf16 %v547_v7, %v547_v7  ;;  %v359_v14 = vadd.f32 %v1150_v1, %v288_v2  ;;  %v360_v15 = vadd.f32 %v1150_v1, %v289_v3  ;;  %v226_v48 = vld [vmem:[%s1145_s20 + $0x1a0] sm:$0xff] }
  0x52   : > { %v1066_v11 = vpack.c.bf16 %v548_v8, %v548_v8  ;;  %867 = vst.msk [vmem:[%s1178_s26 + $0x98] sm:$0xf] %vm828_vm0, %v1064_v6  ;;  %v290_v16 = vmul.f32 %v1140_v0, %v219_v4  ;;  %v291_v17 = vmul.f32 %v1140_v0, %v220_v5  ;;  %v549_v18 = vsel %vm421_vm12, %v357_v61, %v485_v12 }
  0x53   : > { %868 = vst.msk [vmem:[%s1178_s26 + $0x9c] sm:$0xf] %vm828_vm0, %v1065_v10  ;;  %vm422_vm13 = vcmp.ge.f32.partialorder %v358_v13, 0.0  ;;  %v486_v19 = vmul.f32 0.2, %v358_v13  ;;  %v292_v20 = vmul.f32 %v1140_v0, %v221_v9  ;;  %v1067_v22 = vpack.c.bf16 %v549_v18, %v549_v18 }
  0x54   : > { %869 = vst.msk [vmem:[%s1178_s26 + $0xa0] sm:$0xf] %vm828_vm0, %v1066_v11  ;;  %vm423_vm14 = vcmp.ge.f32.partialorder %v359_v14, 0.0  ;;  %v487_v23 = vmul.f32 0.2, %v359_v14  ;;  %vm424_vm15 = vcmp.ge.f32.partialorder %v360_v15, 0.0  ;;  %v361_v26 = vadd.f32 %v1150_v1, %v290_v16 }
  0x55   : > { %v550_v24 = vsel %vm422_vm13, %v358_v13, %v486_v19  ;;  %v488_v25 = vmul.f32 0.2, %v360_v15  ;;  %v362_v27 = vadd.f32 %v1150_v1, %v291_v17  ;;  %870 = vst.msk [vmem:[%s1178_s26 + $0xa4] sm:$0xf] %vm828_vm0, %v1067_v22  ;;  %v363_v30 = vadd.f32 %v1150_v1, %v292_v20  ;;  %v230_v13 = vld [vmem:[%s1145_s20 + $0x1c0] sm:$0xff] }
  0x56   : > { %v1068_v28 = vpack.c.bf16 %v550_v24, %v550_v24  ;;  %v551_v29 = vsel %vm423_vm14, %v359_v14, %v487_v23  ;;  %v293_v31 = vmul.f32 %v1140_v0, %v222_v21  ;;  %vm425_vm1 = vcmp.ge.f32.partialorder %v361_v26, 0.0  ;;  %v231_v14 = vld [vmem:[%s1145_s20 + $0x1c8] sm:$0xff] }
  0x57   : > { %v1069_v33 = vpack.c.bf16 %v551_v29, %v551_v29  ;;  %v552_v34 = vsel %vm424_vm15, %v360_v15, %v488_v25  ;;  %v489_v35 = vmul.f32 0.2, %v361_v26  ;;  %vm426_vm2 = vcmp.ge.f32.partialorder %v362_v27, 0.0  ;;  %v232_v15 = vld [vmem:[%s1145_s20 + $0x1d0] sm:$0xff] }
  0x58   : > { %871 = vst.msk [vmem:[%s1178_s26 + $0xa8] sm:$0xf] %vm828_vm0, %v1068_v28  ;;  %v1070_v38 = vpack.c.bf16 %v552_v34, %v552_v34  ;;  %v490_v39 = vmul.f32 0.2, %v362_v27  ;;  %vm427_vm3 = vcmp.ge.f32.partialorder %v363_v30, 0.0  ;;  %v364_v42 = vadd.f32 %v1150_v1, %v293_v31  ;;  %v235_v31 = vld [vmem:[%s1145_s20 + $0x1e8] sm:$0xff] }
  0x59   : > { %872 = vst.msk [vmem:[%s1178_s26 + $0xac] sm:$0xf] %vm828_vm0, %v1069_v33  ;;  %v553_v40 = vsel %vm425_vm1, %v361_v26, %v489_v35  ;;  %v491_v41 = vmul.f32 0.2, %v363_v30  ;;  %v294_v43 = vmul.f32 %v1140_v0, %v223_v32  ;;  %v295_v46 = vmul.f32 %v1140_v0, %v224_v36  ;;  %v233_v26 = vld [vmem:[%s1145_s20 + $0x1d8] sm:$0xff] }
  0x5a   : > { %873 = vst.msk [vmem:[%s1178_s26 + $0xb0] sm:$0xf] %vm828_vm0, %v1070_v38  ;;  %v1071_v44 = vpack.c.bf16 %v553_v40, %v553_v40  ;;  %v554_v45 = vsel %vm426_vm2, %v362_v27, %v490_v39  ;;  %v296_v47 = vmul.f32 %v1140_v0, %v225_v37  ;;  %vm428_vm4 = vcmp.ge.f32.partialorder %v364_v42, 0.0  ;;  %v234_v27 = vld [vmem:[%s1145_s20 + $0x1e0] sm:$0xff] }
  0x5b   : > { %v1072_v51 = vpack.c.bf16 %v554_v45, %v554_v45  ;;  %v555_v52 = vsel %vm427_vm3, %v363_v30, %v491_v41  ;;  %v492_v53 = vmul.f32 0.2, %v364_v42  ;;  %v365_v55 = vadd.f32 %v1150_v1, %v294_v43  ;;  %v236_v43 = vld [vmem:[%s1145_s20 + $0x1f0] sm:$0xff] }
  0x5c   : > { %874 = vst.msk [vmem:[%s1178_s26 + $0xb4] sm:$0xf] %vm828_vm0, %v1071_v44  ;;  %v1073_v54 = vpack.c.bf16 %v555_v52, %v555_v52  ;;  %v366_v56 = vadd.f32 %v1150_v1, %v295_v46  ;;  %v367_v57 = vadd.f32 %v1150_v1, %v296_v47  ;;  %v297_v59 = vmul.f32 %v1140_v0, %v226_v48 }
  0x5d   : > { %875 = vst.msk [vmem:[%s1178_s26 + $0xb8] sm:$0xf] %vm828_vm0, %v1072_v51  ;;  %v556_v58 = vsel %vm428_vm4, %v364_v42, %v492_v53  ;;  %v298_v60 = vmul.f32 %v1140_v0, %v227_v49  ;;  %v299_v61 = vmul.f32 %v1140_v0, %v228_v50  ;;  %vm429_vm5 = vcmp.ge.f32.partialorder %v365_v55, 0.0 }
  0x5e   : > { %876 = vst.msk [vmem:[%s1178_s26 + $0xbc] sm:$0xf] %vm828_vm0, %v1073_v54  ;;  %v1074_v63 = vpack.c.bf16 %v556_v58, %v556_v58  ;;  %v493_v2 = vmul.f32 0.2, %v365_v55  ;;  %vm430_vm6 = vcmp.ge.f32.partialorder %v366_v56, 0.0  ;;  %vm431_vm7 = vcmp.ge.f32.partialorder %v367_v57, 0.0 }
  0x5f   : > { %v494_v3 = vmul.f32 0.2, %v366_v56  ;;  %v495_v4 = vmul.f32 0.2, %v367_v57  ;;  %v368_v5 = vadd.f32 %v1150_v1, %v297_v59  ;;  %v369_v7 = vadd.f32 %v1150_v1, %v298_v60  ;;  %v237_v54 = vld [vmem:[%s1145_s20 + $0x1f8] sm:$0xff] }
  0x60   : > { %877 = vst.msk [vmem:[%s1178_s26 + $0xc0] sm:$0xf] %vm828_vm0, %v1074_v63  ;;  %v557_v6 = vsel %vm429_vm5, %v365_v55, %v493_v2  ;;  %v370_v8 = vadd.f32 %v1150_v1, %v299_v61  ;;  %v300_v9 = vmul.f32 %v1140_v0, %v229_v62  ;;  %v301_v23 = vmul.f32 %v1140_v0, %v230_v13 }
  0x61   : > { %v1075_v10 = vpack.c.bf16 %v557_v6, %v557_v6  ;;  %v558_v11 = vsel %vm430_vm6, %v366_v56, %v494_v3  ;;  %v559_v12 = vsel %vm431_vm7, %v367_v57, %v495_v4  ;;  %vm432_vm8 = vcmp.ge.f32.partialorder %v368_v5, 0.0 }
  0x62   : > { %v1076_v16 = vpack.c.bf16 %v558_v11, %v558_v11  ;;  %v1077_v17 = vpack.c.bf16 %v559_v12, %v559_v12  ;;  %v496_v18 = vmul.f32 0.2, %v368_v5  ;;  %vm433_vm9 = vcmp.ge.f32.partialorder %v369_v7, 0.0 }
  0x63   : > { %878 = vst.msk [vmem:[%s1178_s26 + $0xc4] sm:$0xf] %vm828_vm0, %v1075_v10  ;;  %v497_v19 = vmul.f32 0.2, %v369_v7  ;;  %vm434_vm10 = vcmp.ge.f32.partialorder %v370_v8, 0.0  ;;  %v371_v21 = vadd.f32 %v1150_v1, %v300_v9  ;;  %v302_v24 = vmul.f32 %v1140_v0, %v231_v14 }
  0x64   : > { %v498_v20 = vmul.f32 0.2, %v370_v8  ;;  %879 = vst.msk [vmem:[%s1178_s26 + $0xc8] sm:$0xf] %vm828_vm0, %v1076_v16  ;;  %880 = vst.msk [vmem:[%s1178_s26 + $0xcc] sm:$0xf] %vm828_vm0, %v1077_v17  ;;  %v560_v22 = vsel %vm432_vm8, %v368_v5, %v496_v18  ;;  %v303_v25 = vmul.f32 %v1140_v0, %v232_v15  ;;  %v372_v35 = vadd.f32 %v1150_v1, %v301_v23 }
  0x65   : > { %v1078_v28 = vpack.c.bf16 %v560_v22, %v560_v22  ;;  %v561_v29 = vsel %vm433_vm9, %v369_v7, %v497_v19  ;;  %vm435_vm11 = vcmp.ge.f32.partialorder %v371_v21, 0.0  ;;  %v499_v34 = vmul.f32 0.2, %v371_v21 }
  0x66   : > { %v562_v30 = vsel %vm434_vm10, %v370_v8, %v498_v20  ;;  %v1079_v32 = vpack.c.bf16 %v561_v29, %v561_v29  ;;  %v373_v36 = vadd.f32 %v1150_v1, %v302_v24  ;;  %v374_v37 = vadd.f32 %v1150_v1, %v303_v25 }
  0x67   : > { %v1080_v33 = vpack.c.bf16 %v562_v30, %v562_v30  ;;  %881 = vst.msk [vmem:[%s1178_s26 + $0xd0] sm:$0xf] %vm828_vm0, %v1078_v28  ;;  %v304_v38 = vmul.f32 %v1140_v0, %v233_v26  ;;  %v305_v39 = vmul.f32 %v1140_v0, %v234_v27  ;;  %v563_v40 = vsel %vm435_vm11, %v371_v21, %v499_v34 }
  0x68   : > { %882 = vst.msk [vmem:[%s1178_s26 + $0xd4] sm:$0xf] %vm828_vm0, %v1079_v32  ;;  %vm436_vm12 = vcmp.ge.f32.partialorder %v372_v35, 0.0  ;;  %v500_v41 = vmul.f32 0.2, %v372_v35  ;;  %v306_v42 = vmul.f32 %v1140_v0, %v235_v31  ;;  %v1081_v44 = vpack.c.bf16 %v563_v40, %v563_v40 }
  0x69   : > { %883 = vst.msk [vmem:[%s1178_s26 + $0xd8] sm:$0xf] %vm828_vm0, %v1080_v33  ;;  %vm437_vm13 = vcmp.ge.f32.partialorder %v373_v36, 0.0  ;;  %v501_v45 = vmul.f32 0.2, %v373_v36  ;;  %vm438_vm14 = vcmp.ge.f32.partialorder %v374_v37, 0.0  ;;  %v375_v48 = vadd.f32 %v1150_v1, %v304_v38 }
  0x6a   : > { %v564_v46 = vsel %vm436_vm12, %v372_v35, %v500_v41  ;;  %v502_v47 = vmul.f32 0.2, %v374_v37  ;;  %v376_v49 = vadd.f32 %v1150_v1, %v305_v39  ;;  %884 = vst.msk [vmem:[%s1178_s26 + $0xdc] sm:$0xf] %vm828_vm0, %v1081_v44  ;;  %v377_v52 = vadd.f32 %v1150_v1, %v306_v42 }
  0x6b   : > { %v1082_v50 = vpack.c.bf16 %v564_v46, %v564_v46  ;;  %v565_v51 = vsel %vm437_vm13, %v373_v36, %v501_v45  ;;  %v307_v53 = vmul.f32 %v1140_v0, %v236_v43  ;;  %vm439_vm15 = vcmp.ge.f32.partialorder %v375_v48, 0.0 }
  0x6c   : > { %v1083_v55 = vpack.c.bf16 %v565_v51, %v565_v51  ;;  %v566_v56 = vsel %vm438_vm14, %v374_v37, %v502_v47  ;;  %v503_v57 = vmul.f32 0.2, %v375_v48  ;;  %vm440_vm1 = vcmp.ge.f32.partialorder %v376_v49, 0.0 }
  0x6d   : > { %885 = vst.msk [vmem:[%s1178_s26 + $0xe0] sm:$0xf] %vm828_vm0, %v1082_v50  ;;  %v1084_v58 = vpack.c.bf16 %v566_v56, %v566_v56  ;;  %v504_v59 = vmul.f32 0.2, %v376_v49  ;;  %vm441_vm2 = vcmp.ge.f32.partialorder %v377_v52, 0.0  ;;  %v378_v62 = vadd.f32 %v1150_v1, %v307_v53 }
  0x6e   : > { %886 = vst.msk [vmem:[%s1178_s26 + $0xe4] sm:$0xf] %vm828_vm0, %v1083_v55  ;;  %v567_v60 = vsel %vm439_vm15, %v375_v48, %v503_v57  ;;  %v505_v61 = vmul.f32 0.2, %v377_v52  ;;  %v308_v63 = vmul.f32 %v1140_v0, %v237_v54 }
  0x6f   : > { %887 = vst.msk [vmem:[%s1178_s26 + $0xe8] sm:$0xf] %vm828_vm0, %v1084_v58  ;;  %v1085_v2 = vpack.c.bf16 %v567_v60, %v567_v60  ;;  %v568_v3 = vsel %vm440_vm1, %v376_v49, %v504_v59  ;;  %vm442_vm3 = vcmp.ge.f32.partialorder %v378_v62, 0.0  ;;  %v506_v6 = vmul.f32 0.2, %v378_v62 }
  0x70   : > { %v1086_v4 = vpack.c.bf16 %v568_v3, %v568_v3  ;;  %v569_v5 = vsel %vm441_vm2, %v377_v52, %v505_v61  ;;  %v379_v8 = vadd.f32 %v1150_v1, %v308_v63 }
  0x71   : > { %888 = vst.msk [vmem:[%s1178_s26 + $0xec] sm:$0xf] %vm828_vm0, %v1085_v2  ;;  %v1087_v7 = vpack.c.bf16 %v569_v5, %v569_v5  ;;  %v570_v9 = vsel %vm442_vm3, %v378_v62, %v506_v6 }
  0x72   : > { %889 = vst.msk [vmem:[%s1178_s26 + $0xf0] sm:$0xf] %vm828_vm0, %v1086_v4  ;;  %v1088_v0 = vpack.c.bf16 %v570_v9, %v570_v9  ;;  %vm443_vm4 = vcmp.ge.f32.partialorder %v379_v8, 0.0  ;;  %v507_v10 = vmul.f32 0.2, %v379_v8 }
  0x73   : > { %890 = vst.msk [vmem:[%s1178_s26 + $0xf4] sm:$0xf] %vm828_vm0, %v1087_v7 }
  0x74   : > { %891 = vst.msk [vmem:[%s1178_s26 + $0xf8] sm:$0xf] %vm828_vm0, %v1088_v0  ;;  %v571_v11 = vsel %vm443_vm4, %v379_v8, %v507_v10 }
  0x75   : > { %v1089_v12 = vpack.c.bf16 %v571_v11, %v571_v11 }
  0x77   : > { %892 = vst.msk [vmem:[%s1178_s26 + $0xfc] sm:$0xf] %vm828_vm0, %v1089_v12 }
  0x78 PF: > { %s13_s12 = sadd.s32 1, %s1104_s12  }
  0x79   : > { %p10_p4 = scmp.ge.s32.totalorder %s13_s12, 6  }
  0x7b   :  { %12 = sbr.rel (!%p10_p4) target bundleno = 1 (0x1), region = 62 }

// kernel: forward.9
= control target key start
LH: loop header
LB: loop body
LE: loop exit
PB: predicated region body
PF: predicated region fallthrough
CT: control target
= control target key end

     0   :  { %s1517_s12 = smov 0   ;;  %s2260_s0 = inlined_call_operand.vmem [shape: bf16[2048,128], index: 0, kind: input, shape index: {}]   ;;  %s2261_s1 = inlined_call_operand.vmem [shape: bf16[128,16], index: 1, kind: input, shape index: {}]   ;;  %s2262_s2 = inlined_call_operand.vmem [shape: f32[2048,16], index: 2, kind: output, shape index: {0}]   ;;  %s2263_s3 = inlined_call_operand.vmem [shape: f32[8,16], index: 3, kind: output, shape index: {1}]  }
   0x1 LB: > { %s1251_s13 = sadd.s32 4294967295, %s1494_s12   ;;  %p1255_p0 = scmp.ge.s32.totalorder %s1494_s12, 1  ;;  %s1494_s12 = sphi %s1517_s12, %s14_s12  }
   0x2   : > { %p136_p1 = scmp.lt.s32.totalorder %s1494_s12, 5 }
   0x4   : > { %p137_p2 = pnand %p1255_p0, %p136_p1 }
   0x6   : > { %140 = sbr.rel (%p137_p2) target bundleno = 497 (0x1f1), region = 28 }
   0xd   : > { %v1448_v0 = vld [vmem:[%s2261_s1] sm:$0xff]   ;;  %s1256_s16 = sshll.u32 %s1251_s13, 6  ;;  %v1449_v1 = vld [vmem:[%s2261_s1 + $0x8] sm:$0xff]   ;;  %v1450_v2 = vld [vmem:[%s2261_s1 + $0x10] sm:$0xff]   ;;  %vm782_vm0 = vcmask 130048   ;;  %p1300_p4 = scmp.ne.s32.totalorder %s1251_s13, 0 }
   0xe   : > { %p161_p3 = scmp.lt.s32.totalorder %s1256_s16, 255  ;;  %1343 = vmatprep.subr.bf16.mxu0 %v1448_v0  ;;  %1423 = vmatprep.subr.bf16.mxu1 %v1448_v0  ;;  %v1451_v3 = vld [vmem:[%s2261_s1 + $0x18] sm:$0xff]   ;;  %v1452_v6 = vld [vmem:[%s2261_s1 + $0x20] sm:$0xff]   ;;  %v1453_v7 = vld [vmem:[%s2261_s1 + $0x28] sm:$0xff]  }
   0xf   : > { %1344 = vmatpush3.bf16.msra.mxu0 %v1448_v0  ;;  %1431 = vmatpush3.bf16.msra.mxu1 %v1448_v0  ;;  %v1454_v8 = vld [vmem:[%s2261_s1 + $0x30] sm:$0xff]   ;;  %v1455_v9 = vld [vmem:[%s2261_s1 + $0x38] sm:$0xff]  }
  0x10   : > { %s2317_s16 = smov (!%p161_p3, %s1256_s16), 255  ;;  %1345 = vmatprep.subr.bf16.mxu0 %v1449_v1  ;;  %1424 = vmatprep.subr.bf16.mxu1 %v1449_v1 }
  0x11   : > { %s1257_s21 = sshll.u32 %s2317_s16, 2  ;;  %s1259_s8 = sshll.u32 %s2317_s16, 3 }
  0x12   : > { %s1542_s24 = scalar_lea.vmem %s2260_s0, %s1257_s21  ;;  %s1595_s11 = scalar_lea.vmem %s2262_s2, %s1259_s8 }
  0x13   : > { %1346 = vmatpush3.bf16.msra.mxu0 %v1449_v1  ;;  %1432 = vmatpush3.bf16.msra.mxu1 %v1449_v1  ;;  %v1456_v4 = vld [vmem:[%s1542_s24] sm:$0xff]   ;;  %v1458_v10 = vld [vmem:[%s1542_s24 + $0x8] sm:$0xff]   ;;  %v1460_v12 = vld [vmem:[%s1542_s24 + $0x10] sm:$0xff]  }
  0x14   : > { %1347 = vmatprep.subr.bf16.mxu0 %v1450_v2  ;;  %1425 = vmatprep.subr.bf16.mxu1 %v1450_v2  ;;  %v1457_v5 = vld [vmem:[%s1542_s24 + $0x80] sm:$0xff]   ;;  %v1459_v11 = vld [vmem:[%s1542_s24 + $0x88] sm:$0xff]   ;;  %v1461_v13 = vld [vmem:[%s1542_s24 + $0x90] sm:$0xff]  }
  0x15   : > { %1359 = vmatprep.mubr.bf16.mxu0 %v1456_v4  ;;  %1391 = vmatprep.mubr.bf16.mxu1 %v1457_v5  ;;  %v1462_v14 = vld [vmem:[%s1542_s24 + $0x18] sm:$0xff]   ;;  %v1464_v16 = vld [vmem:[%s1542_s24 + $0x20] sm:$0xff]   ;;  %v1466_v18 = vld [vmem:[%s1542_s24 + $0x28] sm:$0xff]  }
  0x16   : > { %v1463_v15 = vld [vmem:[%s1542_s24 + $0x98] sm:$0xff]   ;;  %v1465_v17 = vld [vmem:[%s1542_s24 + $0xa0] sm:$0xff]   ;;  %v1467_v19 = vld [vmem:[%s1542_s24 + $0xa8] sm:$0xff]  }
  0x17   : > { %1348 = vmatpush3.bf16.msra.mxu0 %v1450_v2  ;;  %1433 = vmatpush3.bf16.msra.mxu1 %v1450_v2  ;;  %v1468_v20 = vld [vmem:[%s1542_s24 + $0x30] sm:$0xff]   ;;  %v1470_v22 = vld [vmem:[%s1542_s24 + $0x38] sm:$0xff]   ;;  %v1472_v24 = vld [vmem:[%s1542_s24 + $0x40] sm:$0xff]  }
  0x18   : > { %1349 = vmatprep.subr.bf16.mxu0 %v1451_v3  ;;  %1426 = vmatprep.subr.bf16.mxu1 %v1451_v3  ;;  %v1469_v21 = vld [vmem:[%s1542_s24 + $0xb0] sm:$0xff]   ;;  %v1471_v23 = vld [vmem:[%s1542_s24 + $0xb8] sm:$0xff]   ;;  %v1473_v25 = vld [vmem:[%s1542_s24 + $0xc0] sm:$0xff]  }
  0x19   : > { %v1474_v26 = vld [vmem:[%s1542_s24 + $0x48] sm:$0xff]   ;;  %v1476_v28 = vld [vmem:[%s1542_s24 + $0x50] sm:$0xff]   ;;  %v1478_v30 = vld [vmem:[%s1542_s24 + $0x58] sm:$0xff]  }
  0x1a   : > { %v1475_v27 = vld [vmem:[%s1542_s24 + $0xc8] sm:$0xff]   ;;  %v1477_v29 = vld [vmem:[%s1542_s24 + $0xd0] sm:$0xff]   ;;  %v1479_v31 = vld [vmem:[%s1542_s24 + $0xd8] sm:$0xff]  }
  0x1b   : > { %1350 = vmatpush3.bf16.msra.mxu0 %v1451_v3  ;;  %1434 = vmatpush3.bf16.msra.mxu1 %v1451_v3  ;;  %v1480_v32 = vld [vmem:[%s1542_s24 + $0x60] sm:$0xff]   ;;  %v1482_v34 = vld [vmem:[%s1542_s24 + $0x68] sm:$0xff]   ;;  %v1484_v36 = vld [vmem:[%s1542_s24 + $0x70] sm:$0xff]  }
  0x1c   : > { %1351 = vmatprep.subr.bf16.mxu0 %v1452_v6  ;;  %1427 = vmatprep.subr.bf16.mxu1 %v1452_v6  ;;  %v1481_v33 = vld [vmem:[%s1542_s24 + $0xe0] sm:$0xff]   ;;  %v1483_v35 = vld [vmem:[%s1542_s24 + $0xe8] sm:$0xff]   ;;  %v1485_v37 = vld [vmem:[%s1542_s24 + $0xf0] sm:$0xff]  }
  0x1d   : > { %v1486_v38 = vld [vmem:[%s1542_s24 + $0x78] sm:$0xff]  }
  0x1e   : > { %v1487_v39 = vld [vmem:[%s1542_s24 + $0xf8] sm:$0xff]  }
  0x1f   : > { %1352 = vmatpush3.bf16.msra.mxu0 %v1452_v6  ;;  %1435 = vmatpush3.bf16.msra.mxu1 %v1452_v6 }
  0x20   : > { %1353 = vmatprep.subr.bf16.mxu0 %v1453_v7  ;;  %1428 = vmatprep.subr.bf16.mxu1 %v1453_v7 }
  0x23   : > { %1354 = vmatpush3.bf16.msra.mxu0 %v1453_v7  ;;  %1436 = vmatpush3.bf16.msra.mxu1 %v1453_v7 }
  0x24   : > { %1355 = vmatprep.subr.bf16.mxu0 %v1454_v8  ;;  %1429 = vmatprep.subr.bf16.mxu1 %v1454_v8 }
  0x27   : > { %1356 = vmatpush3.bf16.msra.mxu0 %v1454_v8  ;;  %1437 = vmatpush3.bf16.msra.mxu1 %v1454_v8 }
  0x28   : > { %1357 = vmatprep.subr.bf16.mxu0 %v1455_v9  ;;  %1430 = vmatprep.subr.bf16.mxu1 %v1455_v9 }
  0x2b   : > { %1358 = vmatpush3.bf16.msra.mxu0 %v1455_v9  ;;  %1438 = vmatpush3.bf16.msra.mxu1 %v1455_v9 }
  0x2e   : > { %1360 = vmatmul.mubr.bf16.vlgmr.msra.gmra.mrb[0].mxu0 %v1458_v10  ;;  %1392 = vmatmul.mubr.bf16.vlgmr.msra.gmra.mrb[0].mxu1 %v1459_v11 }
  0x2f   : > { %1363 = vmatprep.mubr.bf16.mxu0 %v1460_v12  ;;  %1395 = vmatprep.mubr.bf16.mxu1 %v1461_v13 }
  0x36   : > { %1364 = vmatmul.mubr.bf16.gmra.mrb[4].mxu0 %v1462_v14  ;;  %1396 = vmatmul.mubr.bf16.gmra.mrb[4].mxu1 %v1463_v15 }
  0x37   : > { %1367 = vmatprep.mubr.bf16.mxu0 %v1464_v16  ;;  %1399 = vmatprep.mubr.bf16.mxu1 %v1465_v17 }
  0x3e   : > { %1368 = vmatmul.mubr.bf16.gmra.mrb[8].mxu0 %v1466_v18  ;;  %1400 = vmatmul.mubr.bf16.gmra.mrb[8].mxu1 %v1467_v19 }
  0x3f   : > { %1371 = vmatprep.mubr.bf16.mxu0 %v1468_v20  ;;  %1403 = vmatprep.mubr.bf16.mxu1 %v1469_v21 }
  0x46   : > { %1372 = vmatmul.mubr.bf16.gmra.mrb[12].mxu0 %v1470_v22  ;;  %1404 = vmatmul.mubr.bf16.gmra.mrb[12].mxu1 %v1471_v23 }
  0x47   : > { %1375 = vmatprep.mubr.bf16.mxu0 %v1472_v24  ;;  %1407 = vmatprep.mubr.bf16.mxu1 %v1473_v25 }
  0x4e   : > { %1376 = vmatmul.mubr.bf16.gmra.mrb[16].mxu0 %v1474_v26  ;;  %1408 = vmatmul.mubr.bf16.gmra.mrb[16].mxu1 %v1475_v27 }
  0x4f   : > { %1379 = vmatprep.mubr.bf16.mxu0 %v1476_v28  ;;  %1411 = vmatprep.mubr.bf16.mxu1 %v1477_v29 }
  0x56   : > { %1380 = vmatmul.mubr.bf16.gmra.mrb[20].mxu0 %v1478_v30  ;;  %1412 = vmatmul.mubr.bf16.gmra.mrb[20].mxu1 %v1479_v31 }
  0x57   : > { %1383 = vmatprep.mubr.bf16.mxu0 %v1480_v32  ;;  %1415 = vmatprep.mubr.bf16.mxu1 %v1481_v33 }
  0x5e   : > { %1384 = vmatmul.mubr.bf16.gmra.mrb[24].mxu0 %v1482_v34  ;;  %1416 = vmatmul.mubr.bf16.gmra.mrb[24].mxu1 %v1483_v35 }
  0x5f   : > { %1387 = vmatprep.mubr.bf16.mxu0 %v1484_v36  ;;  %1419 = vmatprep.mubr.bf16.mxu1 %v1485_v37 }
  0x66   : > { %1388 = vmatmul.mubr.bf16.gmra.mrb[28].mxu0 %v1486_v38  ;;  %1420 = vmatmul.mubr.bf16.gmra.mrb[28].mxu1 %v1487_v39 }
 0x101   : > { %v1597_v40 = vpop.f32.mrb[0].mxu0  ;;  %v1599_v41 = vpop.f32.mrb[0].mxu1 }
 0x102   : > { %785 = vst.msk [vmem:[%s1595_s11 + $0x10] sm:$0xff] %vm782_vm0, %v1597_v40  ;;  %817 = vst.msk [vmem:[%s1595_s11 + $0x110] sm:$0xff] %vm782_vm0, %v1599_v41  ;;  %v1607_v42 = vpop.f32.mrb[1].mxu0  ;;  %v1609_v43 = vpop.f32.mrb[1].mxu1 }
 0x103   : > { %783 = vst.msk [vmem:[%s1595_s11] sm:$0xff] %vm782_vm0, %v1607_v42  ;;  %815 = vst.msk [vmem:[%s1595_s11 + $0x100] sm:$0xff] %vm782_vm0, %v1609_v43  ;;  %v1617_v44 = vpop.f32.mrb[2].mxu0  ;;  %v1619_v45 = vpop.f32.mrb[2].mxu1 }
 0x104   : > { %786 = vst.msk [vmem:[%s1595_s11 + $0x18] sm:$0xff] %vm782_vm0, %v1617_v44  ;;  %818 = vst.msk [vmem:[%s1595_s11 + $0x118] sm:$0xff] %vm782_vm0, %v1619_v45  ;;  %v1627_v46 = vpop.f32.mrb[3].mxu0  ;;  %v1629_v47 = vpop.f32.mrb[3].mxu1 }
 0x105   : > { %784 = vst.msk [vmem:[%s1595_s11 + $0x8] sm:$0xff] %vm782_vm0, %v1627_v46  ;;  %816 = vst.msk [vmem:[%s1595_s11 + $0x108] sm:$0xff] %vm782_vm0, %v1629_v47 }
 0x109   : > { %v1637_v48 = vpop.f32.mrb[4].mxu0  ;;  %v1639_v49 = vpop.f32.mrb[4].mxu1 }
 0x10a   : > { %789 = vst.msk [vmem:[%s1595_s11 + $0x30] sm:$0xff] %vm782_vm0, %v1637_v48  ;;  %821 = vst.msk [vmem:[%s1595_s11 + $0x130] sm:$0xff] %vm782_vm0, %v1639_v49  ;;  %v1647_v50 = vpop.f32.mrb[5].mxu0  ;;  %v1649_v51 = vpop.f32.mrb[5].mxu1 }
 0x10b   : > { %787 = vst.msk [vmem:[%s1595_s11 + $0x20] sm:$0xff] %vm782_vm0, %v1647_v50  ;;  %819 = vst.msk [vmem:[%s1595_s11 + $0x120] sm:$0xff] %vm782_vm0, %v1649_v51  ;;  %v1657_v52 = vpop.f32.mrb[6].mxu0  ;;  %v1659_v53 = vpop.f32.mrb[6].mxu1 }
 0x10c   : > { %790 = vst.msk [vmem:[%s1595_s11 + $0x38] sm:$0xff] %vm782_vm0, %v1657_v52  ;;  %822 = vst.msk [vmem:[%s1595_s11 + $0x138] sm:$0xff] %vm782_vm0, %v1659_v53  ;;  %v1667_v54 = vpop.f32.mrb[7].mxu0  ;;  %v1669_v55 = vpop.f32.mrb[7].mxu1 }
 0x10d   : > { %788 = vst.msk [vmem:[%s1595_s11 + $0x28] sm:$0xff] %vm782_vm0, %v1667_v54  ;;  %820 = vst.msk [vmem:[%s1595_s11 + $0x128] sm:$0xff] %vm782_vm0, %v1669_v55 }
 0x111   : > { %v1677_v56 = vpop.f32.mrb[8].mxu0  ;;  %v1679_v57 = vpop.f32.mrb[8].mxu1 }
 0x112   : > { %793 = vst.msk [vmem:[%s1595_s11 + $0x50] sm:$0xff] %vm782_vm0, %v1677_v56  ;;  %825 = vst.msk [vmem:[%s1595_s11 + $0x150] sm:$0xff] %vm782_vm0, %v1679_v57  ;;  %v1687_v58 = vpop.f32.mrb[9].mxu0  ;;  %v1689_v59 = vpop.f32.mrb[9].mxu1 }
 0x113   : > { %791 = vst.msk [vmem:[%s1595_s11 + $0x40] sm:$0xff] %vm782_vm0, %v1687_v58  ;;  %823 = vst.msk [vmem:[%s1595_s11 + $0x140] sm:$0xff] %vm782_vm0, %v1689_v59  ;;  %v1697_v60 = vpop.f32.mrb[10].mxu0  ;;  %v1699_v61 = vpop.f32.mrb[10].mxu1 }
 0x114   : > { %794 = vst.msk [vmem:[%s1595_s11 + $0x58] sm:$0xff] %vm782_vm0, %v1697_v60  ;;  %826 = vst.msk [vmem:[%s1595_s11 + $0x158] sm:$0xff] %vm782_vm0, %v1699_v61  ;;  %v1707_v62 = vpop.f32.mrb[11].mxu0  ;;  %v1709_v63 = vpop.f32.mrb[11].mxu1 }
 0x115   : > { %792 = vst.msk [vmem:[%s1595_s11 + $0x48] sm:$0xff] %vm782_vm0, %v1707_v62  ;;  %824 = vst.msk [vmem:[%s1595_s11 + $0x148] sm:$0xff] %vm782_vm0, %v1709_v63 }
 0x119   : > { %v1717_v0 = vpop.f32.mrb[12].mxu0  ;;  %v1719_v1 = vpop.f32.mrb[12].mxu1 }
 0x11a   : > { %797 = vst.msk [vmem:[%s1595_s11 + $0x70] sm:$0xff] %vm782_vm0, %v1717_v0  ;;  %829 = vst.msk [vmem:[%s1595_s11 + $0x170] sm:$0xff] %vm782_vm0, %v1719_v1  ;;  %v1727_v2 = vpop.f32.mrb[13].mxu0  ;;  %v1729_v3 = vpop.f32.mrb[13].mxu1 }
 0x11b   : > { %795 = vst.msk [vmem:[%s1595_s11 + $0x60] sm:$0xff] %vm782_vm0, %v1727_v2  ;;  %827 = vst.msk [vmem:[%s1595_s11 + $0x160] sm:$0xff] %vm782_vm0, %v1729_v3  ;;  %v1737_v4 = vpop.f32.mrb[14].mxu0  ;;  %v1739_v5 = vpop.f32.mrb[14].mxu1 }
 0x11c   : > { %798 = vst.msk [vmem:[%s1595_s11 + $0x78] sm:$0xff] %vm782_vm0, %v1737_v4  ;;  %830 = vst.msk [vmem:[%s1595_s11 + $0x178] sm:$0xff] %vm782_vm0, %v1739_v5  ;;  %v1747_v6 = vpop.f32.mrb[15].mxu0  ;;  %v1749_v7 = vpop.f32.mrb[15].mxu1 }
 0x11d   : > { %796 = vst.msk [vmem:[%s1595_s11 + $0x68] sm:$0xff] %vm782_vm0, %v1747_v6  ;;  %828 = vst.msk [vmem:[%s1595_s11 + $0x168] sm:$0xff] %vm782_vm0, %v1749_v7 }
 0x121   : > { %v1757_v8 = vpop.f32.mrb[16].mxu0  ;;  %v1759_v9 = vpop.f32.mrb[16].mxu1 }
 0x122   : > { %801 = vst.msk [vmem:[%s1595_s11 + $0x90] sm:$0xff] %vm782_vm0, %v1757_v8  ;;  %833 = vst.msk [vmem:[%s1595_s11 + $0x190] sm:$0xff] %vm782_vm0, %v1759_v9  ;;  %v1767_v10 = vpop.f32.mrb[17].mxu0  ;;  %v1769_v11 = vpop.f32.mrb[17].mxu1 }
 0x123   : > { %799 = vst.msk [vmem:[%s1595_s11 + $0x80] sm:$0xff] %vm782_vm0, %v1767_v10  ;;  %831 = vst.msk [vmem:[%s1595_s11 + $0x180] sm:$0xff] %vm782_vm0, %v1769_v11  ;;  %v1777_v12 = vpop.f32.mrb[18].mxu0  ;;  %v1779_v13 = vpop.f32.mrb[18].mxu1 }
 0x124   : > { %2290 = vst [vmem:[#allocation2_spill] sm:$0xff] %v1779_v13  ;;  %802 = vst.msk [vmem:[%s1595_s11 + $0x98] sm:$0xff] %vm782_vm0, %v1777_v12  ;;  %v1787_v14 = vpop.f32.mrb[19].mxu0  ;;  %v1789_v15 = vpop.f32.mrb[19].mxu1 }
 0x125   : > { %834 = vst.msk [vmem:[%s1595_s11 + $0x198] sm:$0xff] %vm782_vm0, %v1779_v13  ;;  %800 = vst.msk [vmem:[%s1595_s11 + $0x88] sm:$0xff] %vm782_vm0, %v1787_v14 }
 0x126   : > { %832 = vst.msk [vmem:[%s1595_s11 + $0x188] sm:$0xff] %vm782_vm0, %v1789_v15 }
 0x129   : > { %v1797_v16 = vpop.f32.mrb[20].mxu0  ;;  %v1799_v17 = vpop.f32.mrb[20].mxu1 }
 0x12a   : > { %2291 = vst [vmem:[#allocation3_spill] sm:$0xff] %v1799_v17  ;;  %805 = vst.msk [vmem:[%s1595_s11 + $0xb0] sm:$0xff] %vm782_vm0, %v1797_v16  ;;  %v1807_v18 = vpop.f32.mrb[21].mxu0  ;;  %v1809_v19 = vpop.f32.mrb[21].mxu1 }
 0x12b   : > { %837 = vst.msk [vmem:[%s1595_s11 + $0x1b0] sm:$0xff] %vm782_vm0, %v1799_v17  ;;  %2292 = vst [vmem:[#allocation4_spill] sm:$0xff] %v1809_v19  ;;  %v1817_v20 = vpop.f32.mrb[22].mxu0  ;;  %v1819_v21 = vpop.f32.mrb[22].mxu1 }
 0x12c   : > { %803 = vst.msk [vmem:[%s1595_s11 + $0xa0] sm:$0xff] %vm782_vm0, %v1807_v18  ;;  %835 = vst.msk [vmem:[%s1595_s11 + $0x1a0] sm:$0xff] %vm782_vm0, %v1809_v19  ;;  %v1827_v22 = vpop.f32.mrb[23].mxu0  ;;  %v1829_v23 = vpop.f32.mrb[23].mxu1 }
 0x12d   : > { %2293 = vst [vmem:[#allocation5_spill] sm:$0xff] %v1819_v21  ;;  %806 = vst.msk [vmem:[%s1595_s11 + $0xb8] sm:$0xff] %vm782_vm0, %v1817_v20 }
 0x12e   : > { %838 = vst.msk [vmem:[%s1595_s11 + $0x1b8] sm:$0xff] %vm782_vm0, %v1819_v21  ;;  %2294 = vst [vmem:[#allocation6_spill] sm:$0xff] %v1829_v23 }
 0x12f   : > { %804 = vst.msk [vmem:[%s1595_s11 + $0xa8] sm:$0xff] %vm782_vm0, %v1827_v22  ;;  %836 = vst.msk [vmem:[%s1595_s11 + $0x1a8] sm:$0xff] %vm782_vm0, %v1829_v23 }
 0x131   : > { %v1837_v24 = vpop.f32.mrb[24].mxu0  ;;  %v1839_v25 = vpop.f32.mrb[24].mxu1 }
 0x132   : > { %2295 = vst [vmem:[#allocation7_spill] sm:$0xff] %v1839_v25  ;;  %809 = vst.msk [vmem:[%s1595_s11 + $0xd0] sm:$0xff] %vm782_vm0, %v1837_v24  ;;  %v1847_v26 = vpop.f32.mrb[25].mxu0  ;;  %v1849_v27 = vpop.f32.mrb[25].mxu1 }
 0x133   : > { %841 = vst.msk [vmem:[%s1595_s11 + $0x1d0] sm:$0xff] %vm782_vm0, %v1839_v25  ;;  %2296 = vst [vmem:[#allocation8_spill] sm:$0xff] %v1849_v27  ;;  %v1857_v28 = vpop.f32.mrb[26].mxu0  ;;  %v1859_v29 = vpop.f32.mrb[26].mxu1 }
 0x134   : > { %807 = vst.msk [vmem:[%s1595_s11 + $0xc0] sm:$0xff] %vm782_vm0, %v1847_v26  ;;  %839 = vst.msk [vmem:[%s1595_s11 + $0x1c0] sm:$0xff] %vm782_vm0, %v1849_v27  ;;  %v1867_v30 = vpop.f32.mrb[27].mxu0  ;;  %v1869_v31 = vpop.f32.mrb[27].mxu1 }
 0x135   : > { %2297 = vst [vmem:[#allocation9_spill] sm:$0xff] %v1859_v29  ;;  %810 = vst.msk [vmem:[%s1595_s11 + $0xd8] sm:$0xff] %vm782_vm0, %v1857_v28 }
 0x136   : > { %842 = vst.msk [vmem:[%s1595_s11 + $0x1d8] sm:$0xff] %vm782_vm0, %v1859_v29  ;;  %2298 = vst [vmem:[#allocation10_spill] sm:$0xff] %v1869_v31 }
 0x137   : > { %808 = vst.msk [vmem:[%s1595_s11 + $0xc8] sm:$0xff] %vm782_vm0, %v1867_v30  ;;  %840 = vst.msk [vmem:[%s1595_s11 + $0x1c8] sm:$0xff] %vm782_vm0, %v1869_v31 }
 0x139   : > { %v1877_v32 = vpop.f32.mrb[28].mxu0  ;;  %v1879_v33 = vpop.f32.mrb[28].mxu1  ;;  %850 = sbr.rel (%p1300_p4) target bundleno = 321 (0x141), region = 32 }
 0x13a   : > { %2299 = vst [vmem:[#allocation11_spill] sm:$0xff] %v1879_v33  ;;  %813 = vst.msk [vmem:[%s1595_s11 + $0xf0] sm:$0xff] %vm782_vm0, %v1877_v32  ;;  %v1887_v34 = vpop.f32.mrb[29].mxu0  ;;  %v1889_v35 = vpop.f32.mrb[29].mxu1 }
 0x13b   : > { %845 = vst.msk [vmem:[%s1595_s11 + $0x1f0] sm:$0xff] %vm782_vm0, %v1879_v33  ;;  %2300 = vst [vmem:[#allocation12_spill] sm:$0xff] %v1889_v35  ;;  %v1897_v36 = vpop.f32.mrb[30].mxu0  ;;  %v1899_v37 = vpop.f32.mrb[30].mxu1  ;;  %v1496_v33 = vmov (!%p1300_p4), 0.0  }
 0x13c   : > { %811 = vst.msk [vmem:[%s1595_s11 + $0xe0] sm:$0xff] %vm782_vm0, %v1887_v34  ;;  %843 = vst.msk [vmem:[%s1595_s11 + $0x1e0] sm:$0xff] %vm782_vm0, %v1889_v35  ;;  %v1907_v38 = vpop.f32.mrb[31].mxu0  ;;  %v1909_v39 = vpop.f32.mrb[31].mxu1 }
 0x13d   : > { %2301 = vst [vmem:[#allocation13_spill] sm:$0xff] %v1899_v37  ;;  %814 = vst.msk [vmem:[%s1595_s11 + $0xf8] sm:$0xff] %vm782_vm0, %v1897_v36 }
 0x13e   : > { %846 = vst.msk [vmem:[%s1595_s11 + $0x1f8] sm:$0xff] %vm782_vm0, %v1899_v37  ;;  %2302 = vst [vmem:[#allocation14_spill] sm:$0xff] %v1909_v39 }
 0x13f   : > { %812 = vst.msk [vmem:[%s1595_s11 + $0xe8] sm:$0xff] %vm782_vm0, %v1907_v38  ;;  %844 = vst.msk [vmem:[%s1595_s11 + $0x1e8] sm:$0xff] %vm782_vm0, %v1909_v39 }
 0x140   : > { %851 = vst.msk [vmem:[%s2263_s3] sm:$0xff] %vm782_vm0, %v1496_v33 }
 0x141 PF: > { %v853_v37 = vsel %vm782_vm0, %v1607_v42, 0.0  ;;  %v854_v35 = vsel %vm782_vm0, %v1627_v46, 0.0  ;;  %v856_v39 = vsel %vm782_vm0, %v1597_v40, 0.0  ;;  %v858_v25 = vsel %vm782_vm0, %v1617_v44, 0.0 }
 0x142   : > { %v855_v29 = vadd.f32 %v854_v35, %v853_v37  ;;  %v860_v27 = vsel %vm782_vm0, %v1647_v50, 0.0  ;;  %v862_v33 = vsel %vm782_vm0, %v1667_v54, 0.0  ;;  %v864_v23 = vsel %vm782_vm0, %v1637_v48, 0.0 }
 0x143   : > { %v866_v13 = vsel %vm782_vm0, %v1657_v52, 0.0  ;;  %v868_v37 = vsel %vm782_vm0, %v1687_v58, 0.0  ;;  %vm987_vm1 = vcmask 122880  }
 0x144   : > { %v857_v31 = vadd.f32 %v856_v39, %v855_v29  ;;  %v870_v39 = vsel %vm782_vm0, %v1707_v62, 0.0 }
 0x146   : > { %v859_v21 = vadd.f32 %v858_v25, %v857_v31  ;;  %v872_v31 = vsel %vm782_vm0, %v1677_v56, 0.0 }
 0x148   : > { %v861_v17 = vadd.f32 %v860_v27, %v859_v21  ;;  %v874_v27 = vsel %vm782_vm0, %v1697_v60, 0.0 }
 0x14a   : > { %v863_v19 = vadd.f32 %v862_v33, %v861_v17  ;;  %v876_v33 = vsel %vm782_vm0, %v1727_v2, 0.0 }
 0x14c   : > { %v865_v35 = vadd.f32 %v864_v23, %v863_v19  ;;  %v878_v23 = vsel %vm782_vm0, %v1747_v6, 0.0 }
 0x14e   : > { %v867_v29 = vadd.f32 %v866_v13, %v865_v35  ;;  %v880_v35 = vsel %vm782_vm0, %v1717_v0, 0.0 }
 0x150   : > { %v869_v25 = vadd.f32 %v868_v37, %v867_v29  ;;  %v882_v29 = vsel %vm782_vm0, %v1737_v4, 0.0 }
 0x152   : > { %v871_v21 = vadd.f32 %v870_v39, %v869_v25  ;;  %v884_v25 = vsel %vm782_vm0, %v1767_v10, 0.0 }
 0x154   : > { %v873_v17 = vadd.f32 %v872_v31, %v871_v21  ;;  %v886_v21 = vsel %vm782_vm0, %v1787_v14, 0.0 }
 0x156   : > { %v875_v19 = vadd.f32 %v874_v27, %v873_v17  ;;  %v888_v17 = vsel %vm782_vm0, %v1757_v8, 0.0 }
 0x158   : > { %v877_v13 = vadd.f32 %v876_v33, %v875_v19  ;;  %v990_v33 = vmul.f32 %v1607_v42, %v1607_v42 }
 0x15a   : > { %v879_v37 = vadd.f32 %v878_v23, %v877_v13  ;;  %v991_v23 = vmul.f32 %v1627_v46, %v1627_v46  ;;  %v992_v13 = vmul.f32 %v1597_v40, %v1597_v40 }
 0x15c   : > { %v881_v39 = vadd.f32 %v880_v35, %v879_v37  ;;  %v890_v35 = vsel %vm782_vm0, %v1777_v12, 0.0  ;;  %v1055_v46 = vsel %vm782_vm0, %v991_v23, 0.0  ;;  %v1057_v40 = vsel %vm782_vm0, %v992_v13, 0.0 }
 0x15d   : > { %v898_v13 = vsel %vm782_vm0, %v1817_v20, 0.0 }
 0x15e   : > { %v883_v31 = vadd.f32 %v882_v29, %v881_v39  ;;  %v993_v29 = vmul.f32 %v1617_v44, %v1617_v44  ;;  %v892_v39 = vsel %vm782_vm0, %v1807_v18, 0.0  ;;  %v995_v44 = vmul.f32 %v1667_v54, %v1667_v54 }
 0x15f   : > { %v997_v54 = vmul.f32 %v1657_v52, %v1657_v52  ;;  %v999_v52 = vmul.f32 %v1707_v62, %v1707_v62  ;;  %v1001_v62 = vmul.f32 %v1697_v60, %v1697_v60  ;;  %v1003_v60 = vmul.f32 %v1747_v6, %v1747_v6 }
 0x160   : > { %v885_v27 = vadd.f32 %v884_v25, %v883_v31  ;;  %v1054_v25 = vsel %vm782_vm0, %v990_v33, 0.0  ;;  %v994_v31 = vmul.f32 %v1647_v50, %v1647_v50  ;;  %v896_v33 = vsel %vm782_vm0, %v1797_v16, 0.0 }
 0x161   : > { %v996_v50 = vmul.f32 %v1637_v48, %v1637_v48  ;;  %v998_v48 = vmul.f32 %v1687_v58, %v1687_v58  ;;  %v1000_v58 = vmul.f32 %v1677_v56, %v1677_v56  ;;  %v1002_v56 = vmul.f32 %v1727_v2, %v1727_v2 }
 0x162   : > { %v887_v19 = vadd.f32 %v886_v21, %v885_v27  ;;  %v894_v21 = vsel %vm782_vm0, %v1827_v22, 0.0  ;;  %v1056_v27 = vadd.f32 %v1055_v46, %v1054_v25  ;;  %v1061_v23 = vsel %vm782_vm0, %v994_v31, 0.0 }
 0x163   : > { %v1065_v31 = vsel %vm782_vm0, %v996_v50, 0.0  ;;  %v906_v50 = vsel %vm782_vm0, %v1857_v28, 0.0  ;;  %v1004_v2 = vmul.f32 %v1717_v0, %v1717_v0  ;;  %v1005_v6 = vmul.f32 %v1737_v4, %v1737_v4 }
 0x164   : > { %v889_v37 = vadd.f32 %v888_v17, %v887_v19  ;;  %v1059_v19 = vsel %vm782_vm0, %v993_v29, 0.0  ;;  %v1063_v29 = vsel %vm782_vm0, %v995_v44, 0.0  ;;  %v1067_v44 = vsel %vm782_vm0, %v997_v54, 0.0 }
 0x165   : > { %v1006_v0 = vmul.f32 %v1767_v10, %v1767_v10  ;;  %v1007_v4 = vmul.f32 %v1787_v14, %v1787_v14  ;;  %v1008_v10 = vmul.f32 %v1757_v8, %v1757_v8  ;;  %v1009_v14 = vmul.f32 %v1777_v12, %v1777_v12 }
 0x166   : > { %v891_v42 = vadd.f32 %v890_v35, %v889_v37  ;;  %v1058_v35 = vadd.f32 %v1057_v40, %v1056_v27  ;;  %v1010_v8 = vmul.f32 %v1807_v18, %v1807_v18  ;;  %v1011_v12 = vmul.f32 %v1827_v22, %v1827_v22 }
 0x167   : > { %v1012_v18 = vmul.f32 %v1797_v16, %v1797_v16  ;;  %v1013_v22 = vmul.f32 %v1817_v20, %v1817_v20  ;;  %v1014_v16 = vmul.f32 %v1847_v26, %v1847_v26  ;;  %v1015_v20 = vmul.f32 %v1867_v30, %v1867_v30 }
 0x168   : > { %v893_v17 = vadd.f32 %v892_v39, %v891_v42  ;;  %v1060_v25 = vadd.f32 %v1059_v19, %v1058_v35  ;;  %v900_v42 = vsel %vm782_vm0, %v1847_v26, 0.0  ;;  %v904_v19 = vsel %vm782_vm0, %v1837_v24, 0.0 }
 0x169   : > { %v1016_v26 = vmul.f32 %v1837_v24, %v1837_v24  ;;  %v1018_v24 = vmul.f32 %v1887_v34, %v1887_v34 }
 0x16a   : > { %v895_v37 = vadd.f32 %v894_v21, %v893_v17  ;;  %v1062_v46 = vadd.f32 %v1061_v23, %v1060_v25  ;;  %v902_v21 = vsel %vm782_vm0, %v1867_v30, 0.0  ;;  %v1071_v25 = vsel %vm782_vm0, %v999_v52, 0.0 }
 0x16b   : > { %v1077_v52 = vsel %vm782_vm0, %v1002_v56, 0.0  ;;  %v1017_v30 = vmul.f32 %v1857_v28, %v1857_v28  ;;  %v1019_v28 = vmul.f32 %v1907_v38, %v1907_v38 }
 0x16c   : > { %v897_v39 = vadd.f32 %v896_v33, %v895_v37  ;;  %v1064_v27 = vadd.f32 %v1063_v29, %v1062_v46  ;;  %v1069_v37 = vsel %vm782_vm0, %v998_v48, 0.0  ;;  %v910_v46 = vsel %vm782_vm0, %v1907_v38, 0.0 }
 0x16d   : > { %v1021_v38 = vmul.f32 %v1897_v36, %v1897_v36 }
 0x16e   : > { %v899_v40 = vadd.f32 %v898_v13, %v897_v39  ;;  %v1066_v33 = vadd.f32 %v1065_v31, %v1064_v27  ;;  %v908_v39 = vsel %vm782_vm0, %v1887_v34, 0.0  ;;  %v1075_v31 = vsel %vm782_vm0, %v1001_v62, 0.0 }
 0x16f   : > { %v1020_v34 = vmul.f32 %v1877_v32, %v1877_v32 }
 0x170   : > { %v901_v17 = vadd.f32 %v900_v42, %v899_v40  ;;  %v1068_v23 = vadd.f32 %v1067_v44, %v1066_v33  ;;  %v1073_v42 = vsel %vm782_vm0, %v1000_v58, 0.0  ;;  %v914_v44 = vsel %vm782_vm0, %v1897_v36, 0.0 }
 0x171   : > { %v916_v58 = vsel %vm782_vm0, %v1609_v43, 0.0  ;;  %v1023_v36 = vmul.f32 %v1629_v47, %v1629_v47 }
 0x172   : > { %v903_v35 = vadd.f32 %v902_v21, %v901_v17  ;;  %v1070_v54 = vadd.f32 %v1069_v37, %v1068_v23  ;;  %v912_v21 = vsel %vm782_vm0, %v1877_v32, 0.0  ;;  %v1081_v23 = vsel %vm782_vm0, %v1004_v2, 0.0 }
 0x173   : > { %v926_v2 = vsel %vm782_vm0, %v1669_v55, 0.0  ;;  %v1022_v32 = vmul.f32 %v1609_v43, %v1609_v43  ;;  %v1024_v43 = vmul.f32 %v1599_v41, %v1599_v41 }
 0x174   : > { %v905_v13 = vadd.f32 %v904_v19, %v903_v35  ;;  %v1072_v40 = vadd.f32 %v1071_v25, %v1070_v54  ;;  %v1079_v35 = vsel %vm782_vm0, %v1003_v60, 0.0  ;;  %v920_v54 = vsel %vm782_vm0, %v1599_v41, 0.0 }
 0x175   : > { %v1087_v60 = vsel %vm782_vm0, %v1007_v4, 0.0  ;;  %v1097_v4 = vsel %vm782_vm0, %v1012_v18, 0.0  ;;  %v946_v18 = vsel %vm782_vm0, %v1739_v5, 0.0  ;;  %v1026_v41 = vmul.f32 %v1649_v51, %v1649_v51 }
 0x176   : > { %v907_v29 = vadd.f32 %v906_v50, %v905_v13  ;;  %v1074_v27 = vadd.f32 %v1073_v42, %v1072_v40  ;;  %v918_v13 = vsel %vm782_vm0, %v1629_v47, 0.0  ;;  %v1085_v42 = vsel %vm782_vm0, %v1006_v0, 0.0 }
 0x177   : > { %v1025_v47 = vmul.f32 %v1619_v45, %v1619_v45 }
 0x178   : > { %v909_v48 = vadd.f32 %v908_v39, %v907_v29  ;;  %v1076_v19 = vadd.f32 %v1075_v31, %v1074_v27  ;;  %v1083_v39 = vsel %vm782_vm0, %v1005_v6, 0.0  ;;  %v924_v31 = vsel %vm782_vm0, %v1649_v51, 0.0 }
 0x179   : > { %v1028_v51 = vmul.f32 %v1639_v49, %v1639_v49 }
 0x17a   : > { %v911_v17 = vadd.f32 %v910_v46, %v909_v48  ;;  %v1078_v37 = vadd.f32 %v1077_v52, %v1076_v19  ;;  %v922_v46 = vsel %vm782_vm0, %v1619_v45, 0.0  ;;  %v1091_v19 = vsel %vm782_vm0, %v1009_v14, 0.0 }
 0x17b   : > { %v1027_v45 = vmul.f32 %v1669_v55, %v1669_v55  ;;  %v1029_v55 = vmul.f32 %v1659_v53, %v1659_v53 }
 0x17c   : > { %v913_v33 = vadd.f32 %v912_v21, %v911_v17  ;;  %v1080_v62 = vadd.f32 %v1079_v35, %v1078_v37  ;;  %v1089_v17 = vsel %vm782_vm0, %v1008_v10, 0.0  ;;  %v930_v37 = vsel %vm782_vm0, %v1659_v53, 0.0 }
 0x17d   : > { %v936_v10 = vsel %vm782_vm0, %v1679_v57, 0.0  ;;  %v1031_v53 = vmul.f32 %v1709_v63, %v1709_v63 }
 0x17e   : > { %v915_v50 = vadd.f32 %v914_v44, %v913_v33  ;;  %v1082_v29 = vadd.f32 %v1081_v23, %v1080_v62  ;;  %v928_v33 = vsel %vm782_vm0, %v1639_v49, 0.0  ;;  %v1095_v23 = vsel %vm782_vm0, %v1011_v12, 0.0 }
 0x17f   : > { %v1107_v12 = vsel %vm782_vm0, %v1017_v30, 0.0  ;;  %v1121_v30 = vsel %vm782_vm0, %v1024_v43, 0.0  ;;  %v1030_v49 = vmul.f32 %v1689_v59, %v1689_v59  ;;  %v1135_v43 = vsel %vm782_vm0, %v1031_v53, 0.0 }
 0x180   : > { %v917_v25 = vadd.f32 %v916_v58, %v915_v50  ;;  %v1084_v40 = vadd.f32 %v1083_v39, %v1082_v29  ;;  %v1093_v58 = vsel %vm782_vm0, %v1010_v8, 0.0  ;;  %v934_v39 = vsel %vm782_vm0, %v1709_v63, 0.0 }
 0x181   : > { %v1033_v63 = vmul.f32 %v1699_v61, %v1699_v61 }
 0x182   : > { %v919_v56 = vadd.f32 %v918_v13, %v917_v25  ;;  %v1086_v21 = vadd.f32 %v1085_v42, %v1084_v40  ;;  %v932_v13 = vsel %vm782_vm0, %v1689_v59, 0.0  ;;  %v1101_v40 = vsel %vm782_vm0, %v1014_v16, 0.0 }
 0x183   : > { %v1032_v59 = vmul.f32 %v1679_v57, %v1679_v57  ;;  %v1034_v57 = vmul.f32 %v1729_v3, %v1729_v3 }
 0x184   : > { %v921_v48 = vadd.f32 %v920_v54, %v919_v56  ;;  %v1088_v52 = vadd.f32 %v1087_v60, %v1086_v21  ;;  %v1099_v56 = vsel %vm782_vm0, %v1013_v22, 0.0  ;;  %v940_v21 = vsel %vm782_vm0, %v1729_v3, 0.0 }
 0x185   : > { %v1036_v3 = vmul.f32 %v1719_v1, %v1719_v1 }
 0x186   : > { %v923_v27 = vadd.f32 %v922_v46, %v921_v48  ;;  %v1090_v6 = vadd.f32 %v1089_v17, %v1088_v52  ;;  %v938_v48 = vsel %vm782_vm0, %v1699_v61, 0.0  ;;  %v1105_v17 = vsel %vm782_vm0, %v1016_v26, 0.0 }
 0x187   : > { %v1119_v26 = vsel %vm782_vm0, %v1023_v36, 0.0  ;;  %v1133_v36 = vsel %vm782_vm0, %v1030_v49, 0.0  ;;  %v1035_v61 = vmul.f32 %v1749_v7, %v1749_v7 }
 0x188   : > { %v925_v44 = vadd.f32 %v924_v31, %v923_v27  ;;  %v1092_v50 = vadd.f32 %v1091_v19, %v1090_v6  ;;  %v1103_v31 = vsel %vm782_vm0, %v1015_v20, 0.0  ;;  %v944_v19 = vsel %vm782_vm0, %v1719_v1, 0.0 }
 0x189   : > { %v1117_v20 = vsel %vm782_vm0, %v1022_v32, 0.0  ;;  %v1131_v32 = vsel %vm782_vm0, %v1029_v55, 0.0 }
 0x18a   : > { %v927_v35 = vadd.f32 %v926_v2, %v925_v44  ;;  %v1094_v62 = vadd.f32 %v1093_v58, %v1092_v50  ;;  %v942_v2 = vsel %vm782_vm0, %v1749_v7, 0.0  ;;  %v1111_v50 = vsel %vm782_vm0, %v1019_v28, 0.0 }
 0x18b   : > { %v1125_v28 = vsel %vm782_vm0, %v1026_v41, 0.0  ;;  %v1139_v41 = vsel %vm782_vm0, %v1033_v63, 0.0  ;;  %v1037_v7 = vmul.f32 %v1739_v5, %v1739_v5  ;;  %v1040_v5 = vmul.f32 %v1759_v9, %v1759_v9 }
 0x18c   : > { %v929_v0 = vadd.f32 %v928_v33, %v927_v35  ;;  %v1096_v54 = vadd.f32 %v1095_v23, %v1094_v62  ;;  %v1109_v35 = vsel %vm782_vm0, %v1018_v24, 0.0  ;;  %v950_v62 = vsel %vm782_vm0, %v1789_v15, 0.0 }
 0x18d   : > { %v1123_v24 = vsel %vm782_vm0, %v1025_v47, 0.0  ;;  %v1137_v47 = vsel %vm782_vm0, %v1032_v59, 0.0 }
 0x18e   : > { %v931_v25 = vadd.f32 %v930_v37, %v929_v0  ;;  %v1098_v42 = vadd.f32 %v1097_v4, %v1096_v54  ;;  %v948_v0 = vsel %vm782_vm0, %v1769_v11, 0.0  ;;  %v1115_v4 = vsel %vm782_vm0, %v1021_v38, 0.0 }
 0x18f   : > { %v1129_v38 = vsel %vm782_vm0, %v1028_v51, 0.0  ;;  %v1143_v51 = vsel %vm782_vm0, %v1035_v61, 0.0 }
 0x190   : > { %v933_v29 = vadd.f32 %v932_v13, %v931_v25  ;;  %v1100_v14 = vadd.f32 %v1099_v56, %v1098_v42  ;;  %v1113_v13 = vsel %vm782_vm0, %v1020_v34, 0.0  ;;  %v2303_v56 = vld [vmem:[#allocation2_spill] sm:$0xff]  ;;  %v1127_v34 = vsel %vm782_vm0, %v1027_v45, 0.0 }
 0x191   : > { %v1141_v45 = vsel %vm782_vm0, %v1034_v57, 0.0 }
 0x192   : > { %v935_v46 = vadd.f32 %v934_v39, %v933_v29  ;;  %v1102_v27 = vadd.f32 %v1101_v40, %v1100_v14  ;;  %v952_v39 = vsel %vm782_vm0, %v1759_v9, 0.0  ;;  %v2304_v40 = vld [vmem:[#allocation4_spill] sm:$0xff] }
 0x194   : > { %v937_v60 = vadd.f32 %v936_v10, %v935_v46  ;;  %v1104_v52 = vadd.f32 %v1103_v31, %v1102_v27  ;;  %v954_v10 = vsel %vm782_vm0, %v2303_v56, 0.0  ;;  %v2305_v31 = vld [vmem:[#allocation6_spill] sm:$0xff] }
 0x195   : > { %v1043_v9 = vmul.f32 %v2305_v31, %v2305_v31 }
 0x196   : > { %v939_v8 = vadd.f32 %v938_v48, %v937_v60  ;;  %v1106_v33 = vadd.f32 %v1105_v17, %v1104_v52  ;;  %v956_v48 = vsel %vm782_vm0, %v2304_v40, 0.0  ;;  %v2306_v17 = vld [vmem:[#allocation3_spill] sm:$0xff] }
 0x198   : > { %v941_v44 = vadd.f32 %v940_v21, %v939_v8  ;;  %v1108_v58 = vadd.f32 %v1107_v12, %v1106_v33  ;;  %v958_v21 = vsel %vm782_vm0, %v2305_v31, 0.0  ;;  %v2307_v12 = vld [vmem:[#allocation5_spill] sm:$0xff]  ;;  %v1159_v31 = vsel %vm782_vm0, %v1043_v9, 0.0 }
 0x199   : > { %v1045_v63 = vmul.f32 %v2307_v12, %v2307_v12 }
 0x19a   : > { %v943_v6 = vadd.f32 %v942_v2, %v941_v44  ;;  %v1110_v22 = vadd.f32 %v1109_v35, %v1108_v58  ;;  %v960_v2 = vsel %vm782_vm0, %v2306_v17, 0.0  ;;  %v2308_v35 = vld [vmem:[#allocation8_spill] sm:$0xff] }
 0x19b   : > { %v1163_v57 = vsel %vm782_vm0, %v1045_v63, 0.0 }
 0x19c   : > { %v945_v37 = vadd.f32 %v944_v19, %v943_v6  ;;  %v1112_v25 = vadd.f32 %v1111_v50, %v1110_v22  ;;  %v962_v19 = vsel %vm782_vm0, %v2307_v12, 0.0  ;;  %v2309_v50 = vld [vmem:[#allocation10_spill] sm:$0xff] }
 0x19e   : > { %v947_v23 = vadd.f32 %v946_v18, %v945_v37  ;;  %v1114_v54 = vadd.f32 %v1113_v13, %v1112_v25  ;;  %v964_v18 = vsel %vm782_vm0, %v2308_v35, 0.0  ;;  %v2310_v13 = vld [vmem:[#allocation7_spill] sm:$0xff] }
 0x1a0   : > { %v949_v16 = vadd.f32 %v948_v0, %v947_v23  ;;  %v1116_v42 = vadd.f32 %v1115_v4, %v1114_v54  ;;  %v966_v0 = vsel %vm782_vm0, %v2309_v50, 0.0  ;;  %v2311_v4 = vld [vmem:[#allocation9_spill] sm:$0xff] }
 0x1a2   : > { %v951_v29 = vadd.f32 %v950_v62, %v949_v16  ;;  %v1118_v14 = vadd.f32 %v1117_v20, %v1116_v42  ;;  %v968_v62 = vsel %vm782_vm0, %v2310_v13, 0.0  ;;  %v2312_v20 = vld [vmem:[#allocation12_spill] sm:$0xff] }
 0x1a4   : > { %v953_v46 = vadd.f32 %v952_v39, %v951_v29  ;;  %v1120_v27 = vadd.f32 %v1119_v26, %v1118_v14  ;;  %v970_v39 = vsel %vm782_vm0, %v2311_v4, 0.0  ;;  %v2313_v26 = vld [vmem:[#allocation14_spill] sm:$0xff] }
 0x1a6   : > { %v955_v60 = vadd.f32 %v954_v10, %v953_v46  ;;  %v1122_v52 = vadd.f32 %v1121_v30, %v1120_v27  ;;  %v972_v10 = vsel %vm782_vm0, %v2312_v20, 0.0  ;;  %v2314_v30 = vld [vmem:[#allocation11_spill] sm:$0xff] }
 0x1a8   : > { %v957_v8 = vadd.f32 %v956_v48, %v955_v60  ;;  %v1124_v33 = vadd.f32 %v1123_v24, %v1122_v52  ;;  %v974_v48 = vsel %vm782_vm0, %v2313_v26, 0.0  ;;  %v2315_v24 = vld [vmem:[#allocation13_spill] sm:$0xff] }
 0x1aa   : > { %v959_v44 = vadd.f32 %v958_v21, %v957_v8  ;;  %v1126_v58 = vadd.f32 %v1125_v28, %v1124_v33  ;;  %v976_v21 = vsel %vm782_vm0, %v2314_v30, 0.0  ;;  %v1038_v33 = vmul.f32 %v1769_v11, %v1769_v11 }
 0x1ab   : > { %v1041_v11 = vmul.f32 %v2303_v56, %v2303_v56  ;;  %v852_v56 = vld [vmem:[%s2263_s3] sm:$0x1] }
 0x1ac   : > { %v961_v6 = vadd.f32 %v960_v2, %v959_v44  ;;  %v1128_v22 = vadd.f32 %v1127_v34, %v1126_v58  ;;  %v978_v2 = vsel %vm782_vm0, %v2315_v24, 0.0  ;;  %v1039_v34 = vmul.f32 %v1789_v15, %v1789_v15 }
 0x1ad   : > { %v1149_v49 = vsel %vm782_vm0, %v1038_v33, 0.0  ;;  %v1042_v15 = vmul.f32 %v2304_v40, %v2304_v40 }
 0x1ae   : > { %v963_v37 = vadd.f32 %v962_v19, %v961_v6  ;;  %v1130_v25 = vadd.f32 %v1129_v38, %v1128_v22  ;;  %v1145_v6 = vsel %vm782_vm0, %v1036_v3, 0.0  ;;  %v1151_v22 = vsel %vm782_vm0, %v1039_v34, 0.0 }
 0x1af   : > { %v1157_v40 = vsel %vm782_vm0, %v1042_v15, 0.0  ;;  %v1052_v3 = vmul.f32 %v2314_v30, %v2314_v30 }
 0x1b0   : > { %v965_v23 = vadd.f32 %v964_v18, %v963_v37  ;;  %v1132_v54 = vadd.f32 %v1131_v32, %v1130_v25  ;;  %v1147_v18 = vsel %vm782_vm0, %v1037_v7, 0.0  ;;  %v1153_v32 = vsel %vm782_vm0, %v1040_v5, 0.0 }
 0x1b2   : > { %v967_v16 = vadd.f32 %v966_v0, %v965_v23  ;;  %v1134_v42 = vadd.f32 %v1133_v36, %v1132_v54 }
 0x1b4   : > { %v969_v29 = vadd.f32 %v968_v62, %v967_v16  ;;  %v1136_v14 = vadd.f32 %v1135_v43, %v1134_v42  ;;  %v1155_v16 = vsel %vm782_vm0, %v1041_v11, 0.0 }
 0x1b6   : > { %v971_v46 = vadd.f32 %v970_v39, %v969_v29  ;;  %v1138_v27 = vadd.f32 %v1137_v47, %v1136_v14  ;;  %v1044_v39 = vmul.f32 %v2306_v17, %v2306_v17  ;;  %v1048_v47 = vmul.f32 %v2310_v13, %v2310_v13 }
 0x1b8   : > { %v973_v60 = vadd.f32 %v972_v10, %v971_v46  ;;  %v1140_v52 = vadd.f32 %v1139_v41, %v1138_v27  ;;  %v1046_v10 = vmul.f32 %v2308_v35, %v2308_v35  ;;  %v1161_v17 = vsel %vm782_vm0, %v1044_v39, 0.0 }
 0x1b9   : > { %v1047_v46 = vmul.f32 %v2309_v50, %v2309_v50  ;;  %v1050_v41 = vmul.f32 %v2312_v20, %v2312_v20  ;;  %v1169_v50 = vsel %vm782_vm0, %v1048_v47, 0.0  ;;  %v1051_v27 = vmul.f32 %v2313_v26, %v2313_v26 }
 0x1ba   : > { %v975_v8 = vadd.f32 %v974_v48, %v973_v60  ;;  %v1142_v28 = vadd.f32 %v1141_v45, %v1140_v52  ;;  %v1165_v48 = vsel %vm782_vm0, %v1046_v10, 0.0  ;;  %v1049_v60 = vmul.f32 %v2311_v4, %v2311_v4 }
 0x1bb   : > { %v1167_v35 = vsel %vm782_vm0, %v1047_v46, 0.0  ;;  %v1173_v4 = vsel %vm782_vm0, %v1050_v41, 0.0  ;;  %v1175_v20 = vsel %vm782_vm0, %v1051_v27, 0.0 }
 0x1bc   : > { %v977_v44 = vadd.f32 %v976_v21, %v975_v8  ;;  %v1144_v1 = vadd.f32 %v1143_v51, %v1142_v28  ;;  %v1171_v13 = vsel %vm782_vm0, %v1049_v60, 0.0 }
 0x1be   : > { %v979_v19 = vadd.f32 %v978_v2, %v977_v44  ;;  %v1146_v58 = vadd.f32 %v1145_v6, %v1144_v1  ;;  %v1053_v2 = vmul.f32 %v2315_v24, %v2315_v24  ;;  %v1177_v44 = vsel %vm782_vm0, %v1052_v3, 0.0 }
 0x1c0   : > { %v980_v55 = vrot.slane %v979_v19, 4  ;;  %v1148_v38 = vadd.f32 %v1147_v18, %v1146_v58  ;;  %v1179_v26 = vsel %vm782_vm0, %v1053_v2, 0.0 }
 0x1c2   : > { %v981_v37 = vadd.f32 %v980_v55, %v979_v19  ;;  %v1150_v23 = vadd.f32 %v1149_v49, %v1148_v38  ;;  %v989_v55 = vld [vmem:[%s2263_s3 + $0x1] sm:$0x1] }
 0x1c4   : > { %v982_v0 = vrot.slane %v981_v37, 2  ;;  %v1152_v62 = vadd.f32 %v1151_v22, %v1150_v23 }
 0x1c6   : > { %v983_v53 = vadd.f32 %v982_v0, %v981_v37  ;;  %v1154_v59 = vadd.f32 %v1153_v32, %v1152_v62 }
 0x1c8   : > { %v984_v25 = vrot.slane %v983_v53, 1  ;;  %v1156_v54 = vadd.f32 %v1155_v16, %v1154_v59 }
 0x1ca   : > { %v985_v36 = vadd.f32 %v984_v25, %v983_v53  ;;  %v1158_v43 = vadd.f32 %v1157_v40, %v1156_v54 }
 0x1cc   : > { %v986_v29 = vadd.f32 %v985_v36, %v852_v56  ;;  %v1160_v42 = vadd.f32 %v1159_v31, %v1158_v43 }
 0x1ce   : > { %988 = vst.msk [vmem:[%s2263_s3] sm:$0x1] %vm987_vm1, %v986_v29  ;;  %v1162_v12 = vadd.f32 %v1161_v17, %v1160_v42 }
 0x1d0   : > { %v1164_v14 = vadd.f32 %v1163_v57, %v1162_v12 }
 0x1d2   : > { %v1166_v61 = vadd.f32 %v1165_v48, %v1164_v14 }
 0x1d4   : > { %v1168_v21 = vadd.f32 %v1167_v35, %v1166_v61 }
 0x1d6   : > { %v1170_v8 = vadd.f32 %v1169_v50, %v1168_v21 }
 0x1d8   : > { %v1172_v45 = vadd.f32 %v1171_v13, %v1170_v8 }
 0x1da   : > { %v1174_v52 = vadd.f32 %v1173_v4, %v1172_v45 }
 0x1dc   : > { %v1176_v7 = vadd.f32 %v1175_v20, %v1174_v52 }
 0x1de   : > { %v1178_v51 = vadd.f32 %v1177_v44, %v1176_v7 }
 0x1e0   : > { %v1180_v28 = vadd.f32 %v1179_v26, %v1178_v51 }
 0x1e2   : > { %v1181_v19 = vrot.slane %v1180_v28, 4 }
 0x1e4   : > { %v1182_v33 = vadd.f32 %v1181_v19, %v1180_v28 }
 0x1e6   : > { %v1183_v6 = vrot.slane %v1182_v33, 2 }
 0x1e8   : > { %v1184_v30 = vadd.f32 %v1183_v6, %v1182_v33 }
 0x1ea   : > { %v1185_v1 = vrot.slane %v1184_v30, 1 }
 0x1ec   : > { %v1186_v24 = vadd.f32 %v1185_v1, %v1184_v30 }
 0x1ee   : > { %v1187_v34 = vadd.f32 %v1186_v24, %v989_v55 }
 0x1f0   : > { %1188 = vst.msk [vmem:[%s2263_s3 + $0x1] sm:$0x1] %vm987_vm1, %v1187_v34 }
 0x1f1 PF: > { %s14_s12 = sadd.s32 1, %s1494_s12  }
 0x1f2   : > { %p11_p5 = scmp.ge.s32.totalorder %s14_s12, 6  }
 0x1f4   :  { %13 = sbr.rel (!%p11_p5) target bundleno = 1 (0x1), region = 70 }

// kernel: forward.12
= control target key start
LH: loop header
LB: loop body
LE: loop exit
PB: predicated region body
PF: predicated region fallthrough
CT: control target
= control target key end

     0   :  { %vm668_vm0 = vcmask 257024   ;;  %s1473_s0 = inlined_call_operand.vmem [shape: f32[512,32], index: 0, kind: input, shape index: {}]   ;;  %s1474_s1 = inlined_call_operand.vmem [shape: f32[1,32], index: 1, kind: input, shape index: {}]   ;;  %s1475_s2 = inlined_call_operand.vmem [shape: f32[1,32], index: 2, kind: input, shape index: {}]   ;;  %s1476_s3 = inlined_call_operand.vmem [shape: bf16[512,32], index: 3, kind: output, shape index: {}]  }
   0x1   :  { %v14_v0 = vld [vmem:[%s1473_s0] sm:$0xff]  ;;  %v15_v4 = vld [vmem:[%s1473_s0 + $0x8] sm:$0xff]  ;;  %v16_v5 = vld [vmem:[%s1473_s0 + $0x10] sm:$0xff] }
   0x2   :  { %v893_v1 = vld [vmem:[%s1474_s1] ss:$0 sm:$0xff]  ;;  %v17_v6 = vld [vmem:[%s1473_s0 + $0x18] sm:$0xff]  ;;  %v19_v11 = vld [vmem:[%s1473_s0 + $0x28] sm:$0xff] }
   0x3   :  { %v898_v2 = vld [vmem:[%s1475_s2] ss:$0 sm:$0xff]  ;;  %v85_v3 = vmul.f32 %v893_v1, %v14_v0  ;;  %v86_v7 = vmul.f32 %v893_v1, %v15_v4  ;;  %v87_v8 = vmul.f32 %v893_v1, %v16_v5  ;;  %v88_v9 = vmul.f32 %v893_v1, %v17_v6  ;;  %v20_v12 = vld [vmem:[%s1473_s0 + $0x30] sm:$0xff]  ;;  %v21_v17 = vld [vmem:[%s1473_s0 + $0x38] sm:$0xff] }
   0x4   :  { %v18_v10 = vld [vmem:[%s1473_s0 + $0x20] sm:$0xff]  ;;  %v90_v15 = vmul.f32 %v893_v1, %v19_v11  ;;  %v91_v16 = vmul.f32 %v893_v1, %v20_v12  ;;  %v92_v21 = vmul.f32 %v893_v1, %v21_v17  ;;  %v23_v34 = vld [vmem:[%s1473_s0 + $0x48] sm:$0xff]  ;;  %v24_v38 = vld [vmem:[%s1473_s0 + $0x50] sm:$0xff] }
   0x5   :  { %v156_v13 = vadd.f32 %v898_v2, %v85_v3  ;;  %v89_v14 = vmul.f32 %v893_v1, %v18_v10  ;;  %v157_v18 = vadd.f32 %v898_v2, %v86_v7  ;;  %v158_v19 = vadd.f32 %v898_v2, %v87_v8  ;;  %v22_v33 = vld [vmem:[%s1473_s0 + $0x40] sm:$0xff]  ;;  %v25_v47 = vld [vmem:[%s1473_s0 + $0x58] sm:$0xff]  ;;  %v27_v62 = vld [vmem:[%s1473_s0 + $0x68] sm:$0xff] }
   0x6   :  { %v159_v20 = vadd.f32 %v898_v2, %v88_v9  ;;  %v161_v24 = vadd.f32 %v898_v2, %v90_v15  ;;  %v162_v42 = vadd.f32 %v898_v2, %v91_v16  ;;  %v163_v44 = vadd.f32 %v898_v2, %v92_v21  ;;  %v26_v58 = vld [vmem:[%s1473_s0 + $0x60] sm:$0xff]  ;;  %v28_v63 = vld [vmem:[%s1473_s0 + $0x70] sm:$0xff]  ;;  %v29_v12 = vld [vmem:[%s1473_s0 + $0x78] sm:$0xff] }
   0x7   :  { %vm220_vm1 = vcmp.ge.f32.partialorder %v156_v13, 0.0  ;;  %v284_v22 = vmul.f32 0.2, %v156_v13  ;;  %v160_v23 = vadd.f32 %v898_v2, %v89_v14  ;;  %vm221_vm2 = vcmp.ge.f32.partialorder %v157_v18, 0.0  ;;  %v31_v14 = vld [vmem:[%s1473_s0 + $0x88] sm:$0xff] }
   0x8   :  { %v285_v25 = vmul.f32 0.2, %v157_v18  ;;  %vm222_vm3 = vcmp.ge.f32.partialorder %v158_v19, 0.0  ;;  %v286_v26 = vmul.f32 0.2, %v158_v19  ;;  %vm223_vm4 = vcmp.ge.f32.partialorder %v159_v20, 0.0 }
   0x9   :  { %v348_v27 = vsel %vm220_vm1, %v156_v13, %v284_v22  ;;  %v287_v28 = vmul.f32 0.2, %v159_v20  ;;  %vm224_vm5 = vcmp.ge.f32.partialorder %v160_v23, 0.0  ;;  %v288_v32 = vmul.f32 0.2, %v160_v23  ;;  %v30_v13 = vld [vmem:[%s1473_s0 + $0x80] sm:$0xff] }
   0xa   :  { %v803_v29 = vpack.c.bf16 %v348_v27, %v348_v27  ;;  %v349_v30 = vsel %vm221_vm2, %v157_v18, %v285_v25  ;;  %v350_v31 = vsel %vm222_vm3, %v158_v19, %v286_v26  ;;  %vm225_vm6 = vcmp.ge.f32.partialorder %v161_v24, 0.0  ;;  %v32_v26 = vld [vmem:[%s1473_s0 + $0x90] sm:$0xff] }
   0xb   :  { %v804_v35 = vpack.c.bf16 %v349_v30, %v349_v30  ;;  %v805_v36 = vpack.c.bf16 %v350_v31, %v350_v31  ;;  %v351_v37 = vsel %vm223_vm4, %v159_v20, %v287_v28  ;;  %v352_v40 = vsel %vm224_vm5, %v160_v23, %v288_v32 }
   0xc   :  { %669 = vst.msk [vmem:[%s1476_s3] sm:$0xf] %vm668_vm0, %v803_v29  ;;  %v806_v39 = vpack.c.bf16 %v351_v37, %v351_v37  ;;  %v289_v41 = vmul.f32 0.2, %v161_v24  ;;  %v807_v43 = vpack.c.bf16 %v352_v40, %v352_v40  ;;  %v93_v45 = vmul.f32 %v893_v1, %v22_v33  ;;  %v34_v40 = vld [vmem:[%s1473_s0 + $0xa0] sm:$0xff] }
   0xd   :  { %670 = vst.msk [vmem:[%s1476_s3 + $0x4] sm:$0xf] %vm668_vm0, %v804_v35  ;;  %671 = vst.msk [vmem:[%s1476_s3 + $0x8] sm:$0xf] %vm668_vm0, %v805_v36  ;;  %v94_v46 = vmul.f32 %v893_v1, %v23_v34  ;;  %vm226_vm7 = vcmp.ge.f32.partialorder %v162_v42, 0.0  ;;  %v95_v50 = vmul.f32 %v893_v1, %v24_v38  ;;  %vm227_vm8 = vcmp.ge.f32.partialorder %v163_v44, 0.0 }
   0xe   :  { %672 = vst.msk [vmem:[%s1476_s3 + $0xc] sm:$0xf] %vm668_vm0, %v806_v39  ;;  %v353_v48 = vsel %vm225_vm6, %v161_v24, %v289_v41  ;;  %v290_v49 = vmul.f32 0.2, %v162_v42  ;;  %673 = vst.msk [vmem:[%s1476_s3 + $0x10] sm:$0xf] %vm668_vm0, %v807_v43  ;;  %v164_v53 = vadd.f32 %v898_v2, %v93_v45  ;;  %v96_v57 = vmul.f32 %v893_v1, %v25_v47 }
   0xf   :  { %v808_v51 = vpack.c.bf16 %v353_v48, %v353_v48  ;;  %v291_v52 = vmul.f32 0.2, %v163_v44  ;;  %v165_v55 = vadd.f32 %v898_v2, %v94_v46  ;;  %v166_v56 = vadd.f32 %v898_v2, %v95_v50  ;;  %v33_v39 = vld [vmem:[%s1473_s0 + $0x98] sm:$0xff]  ;;  %v35_v41 = vld [vmem:[%s1473_s0 + $0xa8] sm:$0xff] }
  0x10   :  { %v354_v54 = vsel %vm226_vm7, %v162_v42, %v290_v49  ;;  %vm228_vm9 = vcmp.ge.f32.partialorder %v164_v53, 0.0  ;;  %v292_v61 = vmul.f32 0.2, %v164_v53  ;;  %v167_v6 = vadd.f32 %v898_v2, %v96_v57  ;;  %v38_v57 = vld [vmem:[%s1473_s0 + $0xc0] sm:$0xff] }
  0x11   :  { %674 = vst.msk [vmem:[%s1476_s3 + $0x14] sm:$0xf] %vm668_vm0, %v808_v51  ;;  %v809_v59 = vpack.c.bf16 %v354_v54, %v354_v54  ;;  %v355_v60 = vsel %vm227_vm8, %v163_v44, %v291_v52  ;;  %vm229_vm10 = vcmp.ge.f32.partialorder %v165_v55, 0.0  ;;  %v293_v3 = vmul.f32 0.2, %v165_v55  ;;  %v36_v52 = vld [vmem:[%s1473_s0 + $0xb0] sm:$0xff] }
  0x12   :  { %v810_v0 = vpack.c.bf16 %v355_v60, %v355_v60  ;;  %vm230_vm11 = vcmp.ge.f32.partialorder %v166_v56, 0.0  ;;  %v356_v4 = vsel %vm228_vm9, %v164_v53, %v292_v61  ;;  %v294_v5 = vmul.f32 0.2, %v166_v56  ;;  %v37_v53 = vld [vmem:[%s1473_s0 + $0xb8] sm:$0xff] }
  0x13   :  { %675 = vst.msk [vmem:[%s1476_s3 + $0x18] sm:$0xf] %vm668_vm0, %v809_v59  ;;  %v97_v7 = vmul.f32 %v893_v1, %v26_v58  ;;  %v811_v8 = vpack.c.bf16 %v356_v4, %v356_v4  ;;  %v357_v9 = vsel %vm229_vm10, %v165_v55, %v293_v3  ;;  %v98_v10 = vmul.f32 %v893_v1, %v27_v62 }
  0x14   :  { %676 = vst.msk [vmem:[%s1476_s3 + $0x1c] sm:$0xf] %vm668_vm0, %v810_v0  ;;  %v99_v11 = vmul.f32 %v893_v1, %v28_v63  ;;  %v812_v15 = vpack.c.bf16 %v357_v9, %v357_v9  ;;  %v358_v16 = vsel %vm230_vm11, %v166_v56, %v294_v5  ;;  %vm231_vm12 = vcmp.ge.f32.partialorder %v167_v6, 0.0 }
  0x15   :  { %v295_v17 = vmul.f32 0.2, %v167_v6  ;;  %677 = vst.msk [vmem:[%s1476_s3 + $0x20] sm:$0xf] %vm668_vm0, %v811_v8  ;;  %v813_v18 = vpack.c.bf16 %v358_v16, %v358_v16  ;;  %v168_v19 = vadd.f32 %v898_v2, %v97_v7  ;;  %v169_v20 = vadd.f32 %v898_v2, %v98_v10  ;;  %v39_v7 = vld [vmem:[%s1473_s0 + $0xc8] sm:$0xff] }
  0x16   :  { %v170_v21 = vadd.f32 %v898_v2, %v99_v11  ;;  %678 = vst.msk [vmem:[%s1476_s3 + $0x24] sm:$0xf] %vm668_vm0, %v812_v15  ;;  %v100_v23 = vmul.f32 %v893_v1, %v29_v12  ;;  %v101_v24 = vmul.f32 %v893_v1, %v30_v13  ;;  %v102_v25 = vmul.f32 %v893_v1, %v31_v14 }
  0x17   :  { %v359_v22 = vsel %vm231_vm12, %v167_v6, %v295_v17  ;;  %679 = vst.msk [vmem:[%s1476_s3 + $0x28] sm:$0xf] %vm668_vm0, %v813_v18  ;;  %vm232_vm13 = vcmp.ge.f32.partialorder %v168_v19, 0.0  ;;  %v296_v28 = vmul.f32 0.2, %v168_v19  ;;  %vm233_vm14 = vcmp.ge.f32.partialorder %v169_v20, 0.0 }
  0x18   :  { %v814_v27 = vpack.c.bf16 %v359_v22, %v359_v22  ;;  %v297_v29 = vmul.f32 0.2, %v169_v20  ;;  %vm234_vm15 = vcmp.ge.f32.partialorder %v170_v21, 0.0  ;;  %v298_v30 = vmul.f32 0.2, %v170_v21  ;;  %v40_v18 = vld [vmem:[%s1473_s0 + $0xd0] sm:$0xff] }
  0x19   :  { %v171_v31 = vadd.f32 %v898_v2, %v100_v23  ;;  %v360_v32 = vsel %vm232_vm13, %v168_v19, %v296_v28  ;;  %v172_v33 = vadd.f32 %v898_v2, %v101_v24  ;;  %v173_v34 = vadd.f32 %v898_v2, %v102_v25  ;;  %v41_v22 = vld [vmem:[%s1473_s0 + $0xd8] sm:$0xff]  ;;  %v42_v23 = vld [vmem:[%s1473_s0 + $0xe0] sm:$0xff] }
  0x1a   :  { %680 = vst.msk [vmem:[%s1476_s3 + $0x2c] sm:$0xf] %vm668_vm0, %v814_v27  ;;  %v103_v35 = vmul.f32 %v893_v1, %v32_v26  ;;  %v815_v36 = vpack.c.bf16 %v360_v32, %v360_v32  ;;  %v361_v37 = vsel %vm233_vm14, %v169_v20, %v297_v29  ;;  %v362_v38 = vsel %vm234_vm15, %v170_v21, %v298_v30 }
  0x1b   :  { %vm235_vm1 = vcmp.ge.f32.partialorder %v171_v31, 0.0  ;;  %v816_v42 = vpack.c.bf16 %v361_v37, %v361_v37  ;;  %v817_v43 = vpack.c.bf16 %v362_v38, %v362_v38  ;;  %v299_v44 = vmul.f32 0.2, %v171_v31 }
  0x1c   :  { %vm236_vm2 = vcmp.ge.f32.partialorder %v172_v33, 0.0  ;;  %681 = vst.msk [vmem:[%s1476_s3 + $0x30] sm:$0xf] %vm668_vm0, %v815_v36  ;;  %v300_v45 = vmul.f32 0.2, %v172_v33  ;;  %vm237_vm3 = vcmp.ge.f32.partialorder %v173_v34, 0.0  ;;  %v174_v47 = vadd.f32 %v898_v2, %v103_v35 }
  0x1d   :  { %v301_v46 = vmul.f32 0.2, %v173_v34  ;;  %682 = vst.msk [vmem:[%s1476_s3 + $0x34] sm:$0xf] %vm668_vm0, %v816_v42  ;;  %683 = vst.msk [vmem:[%s1476_s3 + $0x38] sm:$0xf] %vm668_vm0, %v817_v43  ;;  %v363_v48 = vsel %vm235_vm1, %v171_v31, %v299_v44  ;;  %v104_v49 = vmul.f32 %v893_v1, %v33_v39  ;;  %v105_v50 = vmul.f32 %v893_v1, %v34_v40 }
  0x1e   :  { %v106_v51 = vmul.f32 %v893_v1, %v35_v41  ;;  %v818_v54 = vpack.c.bf16 %v363_v48, %v363_v48  ;;  %v364_v55 = vsel %vm236_vm2, %v172_v33, %v300_v45  ;;  %vm238_vm4 = vcmp.ge.f32.partialorder %v174_v47, 0.0  ;;  %v44_v35 = vld [vmem:[%s1473_s0 + $0xf0] sm:$0xff]  ;;  %v45_v36 = vld [vmem:[%s1473_s0 + $0xf8] sm:$0xff]  ;;  %v46_v48 = vld [vmem:[%s1473_s0 + $0x100] sm:$0xff] }
  0x1f   :  { %v365_v56 = vsel %vm237_vm3, %v173_v34, %v301_v46  ;;  %v819_v58 = vpack.c.bf16 %v364_v55, %v364_v55  ;;  %v302_v60 = vmul.f32 0.2, %v174_v47  ;;  %v175_v61 = vadd.f32 %v898_v2, %v104_v49  ;;  %v43_v34 = vld [vmem:[%s1473_s0 + $0xe8] sm:$0xff] }
  0x20   :  { %v820_v59 = vpack.c.bf16 %v365_v56, %v365_v56  ;;  %684 = vst.msk [vmem:[%s1476_s3 + $0x3c] sm:$0xf] %vm668_vm0, %v818_v54  ;;  %v176_v62 = vadd.f32 %v898_v2, %v105_v50  ;;  %v177_v63 = vadd.f32 %v898_v2, %v106_v51  ;;  %v107_v0 = vmul.f32 %v893_v1, %v36_v52 }
  0x21   :  { %v108_v3 = vmul.f32 %v893_v1, %v37_v53  ;;  %685 = vst.msk [vmem:[%s1476_s3 + $0x40] sm:$0xf] %vm668_vm0, %v819_v58  ;;  %v366_v4 = vsel %vm238_vm4, %v174_v47, %v302_v60  ;;  %vm239_vm5 = vcmp.ge.f32.partialorder %v175_v61, 0.0  ;;  %v303_v5 = vmul.f32 0.2, %v175_v61 }
  0x22   :  { %686 = vst.msk [vmem:[%s1476_s3 + $0x44] sm:$0xf] %vm668_vm0, %v820_v59  ;;  %v109_v6 = vmul.f32 %v893_v1, %v38_v57  ;;  %v821_v8 = vpack.c.bf16 %v366_v4, %v366_v4  ;;  %vm240_vm6 = vcmp.ge.f32.partialorder %v176_v62, 0.0  ;;  %v304_v9 = vmul.f32 0.2, %v176_v62 }
  0x23   :  { %vm241_vm7 = vcmp.ge.f32.partialorder %v177_v63, 0.0  ;;  %v367_v10 = vsel %vm239_vm5, %v175_v61, %v303_v5  ;;  %v305_v11 = vmul.f32 0.2, %v177_v63  ;;  %v178_v12 = vadd.f32 %v898_v2, %v107_v0  ;;  %v47_v61 = vld [vmem:[%s1473_s0 + $0x108] sm:$0xff] }
  0x24   :  { %v179_v13 = vadd.f32 %v898_v2, %v108_v3  ;;  %687 = vst.msk [vmem:[%s1476_s3 + $0x48] sm:$0xf] %vm668_vm0, %v821_v8  ;;  %v822_v14 = vpack.c.bf16 %v367_v10, %v367_v10  ;;  %v368_v15 = vsel %vm240_vm6, %v176_v62, %v304_v9  ;;  %v180_v16 = vadd.f32 %v898_v2, %v109_v6  ;;  %v48_v62 = vld [vmem:[%s1473_s0 + $0x110] sm:$0xff] }
  0x25   :  { %v110_v17 = vmul.f32 %v893_v1, %v39_v7  ;;  %v823_v19 = vpack.c.bf16 %v368_v15, %v368_v15  ;;  %v369_v20 = vsel %vm241_vm7, %v177_v63, %v305_v11  ;;  %vm242_vm8 = vcmp.ge.f32.partialorder %v178_v12, 0.0  ;;  %v49_v63 = vld [vmem:[%s1473_s0 + $0x118] sm:$0xff] }
  0x26   :  { %v306_v21 = vmul.f32 0.2, %v178_v12  ;;  %688 = vst.msk [vmem:[%s1476_s3 + $0x4c] sm:$0xf] %vm668_vm0, %v822_v14  ;;  %v824_v24 = vpack.c.bf16 %v369_v20, %v369_v20  ;;  %vm243_vm9 = vcmp.ge.f32.partialorder %v179_v13, 0.0  ;;  %vm244_vm10 = vcmp.ge.f32.partialorder %v180_v16, 0.0 }
  0x27   :  { %v307_v25 = vmul.f32 0.2, %v179_v13  ;;  %689 = vst.msk [vmem:[%s1476_s3 + $0x50] sm:$0xf] %vm668_vm0, %v823_v19  ;;  %v308_v27 = vmul.f32 0.2, %v180_v16  ;;  %v181_v28 = vadd.f32 %v898_v2, %v110_v17  ;;  %v111_v29 = vmul.f32 %v893_v1, %v40_v18 }
  0x28   :  { %v370_v26 = vsel %vm242_vm8, %v178_v12, %v306_v21  ;;  %690 = vst.msk [vmem:[%s1476_s3 + $0x54] sm:$0xf] %vm668_vm0, %v824_v24  ;;  %v112_v32 = vmul.f32 %v893_v1, %v41_v22  ;;  %v113_v33 = vmul.f32 %v893_v1, %v42_v23  ;;  %v114_v45 = vmul.f32 %v893_v1, %v43_v34  ;;  %v50_v12 = vld [vmem:[%s1473_s0 + $0x120] sm:$0xff]  ;;  %v52_v17 = vld [vmem:[%s1473_s0 + $0x130] sm:$0xff] }
  0x29   :  { %v825_v30 = vpack.c.bf16 %v370_v26, %v370_v26  ;;  %v371_v31 = vsel %vm243_vm9, %v179_v13, %v307_v25  ;;  %v372_v38 = vsel %vm244_vm10, %v180_v16, %v308_v27  ;;  %vm245_vm11 = vcmp.ge.f32.partialorder %v181_v28, 0.0  ;;  %v51_v13 = vld [vmem:[%s1473_s0 + $0x128] sm:$0xff] }
  0x2a   :  { %v826_v37 = vpack.c.bf16 %v371_v31, %v371_v31  ;;  %v309_v39 = vmul.f32 0.2, %v181_v28  ;;  %v827_v40 = vpack.c.bf16 %v372_v38, %v372_v38  ;;  %v182_v41 = vadd.f32 %v898_v2, %v111_v29  ;;  %v53_v29 = vld [vmem:[%s1473_s0 + $0x138] sm:$0xff] }
  0x2b   :  { %691 = vst.msk [vmem:[%s1476_s3 + $0x58] sm:$0xf] %vm668_vm0, %v825_v30  ;;  %v183_v42 = vadd.f32 %v898_v2, %v112_v32  ;;  %v184_v43 = vadd.f32 %v898_v2, %v113_v33  ;;  %v115_v46 = vmul.f32 %v893_v1, %v44_v35  ;;  %v116_v47 = vmul.f32 %v893_v1, %v45_v36 }
  0x2c   :  { %692 = vst.msk [vmem:[%s1476_s3 + $0x5c] sm:$0xf] %vm668_vm0, %v826_v37  ;;  %v373_v44 = vsel %vm245_vm11, %v181_v28, %v309_v39  ;;  %693 = vst.msk [vmem:[%s1476_s3 + $0x60] sm:$0xf] %vm668_vm0, %v827_v40  ;;  %vm246_vm12 = vcmp.ge.f32.partialorder %v182_v41, 0.0  ;;  %v185_v53 = vadd.f32 %v898_v2, %v114_v45  ;;  %v117_v57 = vmul.f32 %v893_v1, %v46_v48  ;;  %v54_v40 = vld [vmem:[%s1473_s0 + $0x140] sm:$0xff] }
  0x2d   :  { %v828_v49 = vpack.c.bf16 %v373_v44, %v373_v44  ;;  %v310_v50 = vmul.f32 0.2, %v182_v41  ;;  %vm247_vm13 = vcmp.ge.f32.partialorder %v183_v42, 0.0  ;;  %v311_v51 = vmul.f32 0.2, %v183_v42  ;;  %v55_v44 = vld [vmem:[%s1473_s0 + $0x148] sm:$0xff] }
  0x2e   :  { %vm248_vm14 = vcmp.ge.f32.partialorder %v184_v43, 0.0  ;;  %v312_v52 = vmul.f32 0.2, %v184_v43  ;;  %v186_v55 = vadd.f32 %v898_v2, %v115_v46  ;;  %v187_v56 = vadd.f32 %v898_v2, %v116_v47  ;;  %v56_v45 = vld [vmem:[%s1473_s0 + $0x150] sm:$0xff] }
  0x2f   :  { %694 = vst.msk [vmem:[%s1476_s3 + $0x64] sm:$0xf] %vm668_vm0, %v828_v49  ;;  %v374_v54 = vsel %vm246_vm12, %v182_v41, %v310_v50  ;;  %v375_v59 = vsel %vm247_vm13, %v183_v42, %v311_v51  ;;  %vm249_vm15 = vcmp.ge.f32.partialorder %v185_v53, 0.0  ;;  %v313_v4 = vmul.f32 0.2, %v185_v53 }
  0x30   :  { %v829_v58 = vpack.c.bf16 %v374_v54, %v374_v54  ;;  %v376_v60 = vsel %vm248_vm14, %v184_v43, %v312_v52  ;;  %v830_v0 = vpack.c.bf16 %v375_v59, %v375_v59  ;;  %vm250_vm1 = vcmp.ge.f32.partialorder %v186_v55, 0.0 }
  0x31   :  { %v831_v3 = vpack.c.bf16 %v376_v60, %v376_v60  ;;  %v314_v5 = vmul.f32 0.2, %v186_v55  ;;  %vm251_vm2 = vcmp.ge.f32.partialorder %v187_v56, 0.0  ;;  %v315_v6 = vmul.f32 0.2, %v187_v56 }
  0x32   :  { %695 = vst.msk [vmem:[%s1476_s3 + $0x68] sm:$0xf] %vm668_vm0, %v829_v58  ;;  %v188_v7 = vadd.f32 %v898_v2, %v117_v57  ;;  %696 = vst.msk [vmem:[%s1476_s3 + $0x6c] sm:$0xf] %vm668_vm0, %v830_v0  ;;  %v377_v8 = vsel %vm249_vm15, %v185_v53, %v313_v4  ;;  %v118_v9 = vmul.f32 %v893_v1, %v47_v61  ;;  %v58_v57 = vld [vmem:[%s1473_s0 + $0x160] sm:$0xff]  ;;  %v59_v58 = vld [vmem:[%s1473_s0 + $0x168] sm:$0xff] }
  0x33   :  { %697 = vst.msk [vmem:[%s1476_s3 + $0x70] sm:$0xf] %vm668_vm0, %v831_v3  ;;  %v119_v10 = vmul.f32 %v893_v1, %v48_v62  ;;  %v120_v11 = vmul.f32 %v893_v1, %v49_v63  ;;  %v832_v14 = vpack.c.bf16 %v377_v8, %v377_v8  ;;  %v378_v15 = vsel %vm250_vm1, %v186_v55, %v314_v5  ;;  %v60_v8 = vld [vmem:[%s1473_s0 + $0x170] sm:$0xff] }
  0x34   :  { %v379_v16 = vsel %vm251_vm2, %v187_v56, %v315_v6  ;;  %vm252_vm3 = vcmp.ge.f32.partialorder %v188_v7, 0.0  ;;  %v833_v18 = vpack.c.bf16 %v378_v15, %v378_v15  ;;  %v316_v20 = vmul.f32 0.2, %v188_v7  ;;  %v57_v56 = vld [vmem:[%s1473_s0 + $0x158] sm:$0xff] }
  0x35   :  { %v834_v19 = vpack.c.bf16 %v379_v16, %v379_v16  ;;  %v189_v21 = vadd.f32 %v898_v2, %v118_v9  ;;  %698 = vst.msk [vmem:[%s1476_s3 + $0x74] sm:$0xf] %vm668_vm0, %v832_v14  ;;  %v190_v22 = vadd.f32 %v898_v2, %v119_v10  ;;  %v191_v23 = vadd.f32 %v898_v2, %v120_v11 }
  0x36   :  { %v121_v24 = vmul.f32 %v893_v1, %v50_v12  ;;  %v122_v25 = vmul.f32 %v893_v1, %v51_v13  ;;  %699 = vst.msk [vmem:[%s1476_s3 + $0x78] sm:$0xf] %vm668_vm0, %v833_v18  ;;  %v380_v26 = vsel %vm252_vm3, %v188_v7, %v316_v20  ;;  %v123_v28 = vmul.f32 %v893_v1, %v52_v17 }
  0x37   :  { %700 = vst.msk [vmem:[%s1476_s3 + $0x7c] sm:$0xf] %vm668_vm0, %v834_v19  ;;  %vm253_vm4 = vcmp.ge.f32.partialorder %v189_v21, 0.0  ;;  %v317_v27 = vmul.f32 0.2, %v189_v21  ;;  %v835_v30 = vpack.c.bf16 %v380_v26, %v380_v26  ;;  %vm254_vm5 = vcmp.ge.f32.partialorder %v190_v22, 0.0 }
  0x38   :  { %v318_v31 = vmul.f32 0.2, %v190_v22  ;;  %vm255_vm6 = vcmp.ge.f32.partialorder %v191_v23, 0.0  ;;  %v319_v33 = vmul.f32 0.2, %v191_v23  ;;  %v192_v34 = vadd.f32 %v898_v2, %v121_v24 }
  0x39   :  { %v381_v32 = vsel %vm253_vm4, %v189_v21, %v317_v27  ;;  %v193_v35 = vadd.f32 %v898_v2, %v122_v25  ;;  %701 = vst.msk [vmem:[%s1476_s3 + $0x80] sm:$0xf] %vm668_vm0, %v835_v30  ;;  %v194_v38 = vadd.f32 %v898_v2, %v123_v28  ;;  %v124_v39 = vmul.f32 %v893_v1, %v53_v29  ;;  %v61_v21 = vld [vmem:[%s1473_s0 + $0x178] sm:$0xff] }
  0x3a   :  { %v836_v36 = vpack.c.bf16 %v381_v32, %v381_v32  ;;  %v382_v37 = vsel %vm254_vm5, %v190_v22, %v318_v31  ;;  %v383_v42 = vsel %vm255_vm6, %v191_v23, %v319_v33  ;;  %vm256_vm7 = vcmp.ge.f32.partialorder %v192_v34, 0.0  ;;  %v62_v22 = vld [vmem:[%s1473_s0 + $0x180] sm:$0xff]  ;;  %v63_v23 = vld [vmem:[%s1473_s0 + $0x188] sm:$0xff] }
  0x3b   :  { %v837_v41 = vpack.c.bf16 %v382_v37, %v382_v37  ;;  %v320_v43 = vmul.f32 0.2, %v192_v34  ;;  %v838_v46 = vpack.c.bf16 %v383_v42, %v383_v42  ;;  %vm257_vm8 = vcmp.ge.f32.partialorder %v193_v35, 0.0 }
  0x3c   :  { %702 = vst.msk [vmem:[%s1476_s3 + $0x84] sm:$0xf] %vm668_vm0, %v836_v36  ;;  %v321_v47 = vmul.f32 0.2, %v193_v35  ;;  %vm258_vm9 = vcmp.ge.f32.partialorder %v194_v38, 0.0  ;;  %v195_v50 = vadd.f32 %v898_v2, %v124_v39  ;;  %v125_v51 = vmul.f32 %v893_v1, %v54_v40  ;;  %v66_v39 = vld [vmem:[%s1473_s0 + $0x1a0] sm:$0xff] }
  0x3d   :  { %703 = vst.msk [vmem:[%s1476_s3 + $0x88] sm:$0xf] %vm668_vm0, %v837_v41  ;;  %v384_v48 = vsel %vm256_vm7, %v192_v34, %v320_v43  ;;  %v322_v49 = vmul.f32 0.2, %v194_v38  ;;  %704 = vst.msk [vmem:[%s1476_s3 + $0x8c] sm:$0xf] %vm668_vm0, %v838_v46  ;;  %v126_v54 = vmul.f32 %v893_v1, %v55_v44  ;;  %v127_v55 = vmul.f32 %v893_v1, %v56_v45 }
  0x3e   :  { %v839_v52 = vpack.c.bf16 %v384_v48, %v384_v48  ;;  %v385_v53 = vsel %vm257_vm8, %v193_v35, %v321_v47  ;;  %vm259_vm10 = vcmp.ge.f32.partialorder %v195_v50, 0.0  ;;  %v323_v61 = vmul.f32 0.2, %v195_v50  ;;  %v64_v34 = vld [vmem:[%s1473_s0 + $0x190] sm:$0xff]  ;;  %v65_v35 = vld [vmem:[%s1473_s0 + $0x198] sm:$0xff] }
  0x3f   :  { %v840_v59 = vpack.c.bf16 %v385_v53, %v385_v53  ;;  %v386_v60 = vsel %vm258_vm9, %v194_v38, %v322_v49  ;;  %v196_v63 = vadd.f32 %v898_v2, %v125_v51  ;;  %v197_v0 = vadd.f32 %v898_v2, %v126_v54  ;;  %v67_v51 = vld [vmem:[%s1473_s0 + $0x1a8] sm:$0xff] }
  0x40   :  { %705 = vst.msk [vmem:[%s1476_s3 + $0x90] sm:$0xf] %vm668_vm0, %v839_v52  ;;  %v841_v62 = vpack.c.bf16 %v386_v60, %v386_v60  ;;  %v198_v3 = vadd.f32 %v898_v2, %v127_v55  ;;  %v387_v4 = vsel %vm259_vm10, %v195_v50, %v323_v61  ;;  %v128_v5 = vmul.f32 %v893_v1, %v57_v56 }
  0x41   :  { %706 = vst.msk [vmem:[%s1476_s3 + $0x94] sm:$0xf] %vm668_vm0, %v840_v59  ;;  %v129_v6 = vmul.f32 %v893_v1, %v58_v57  ;;  %v130_v7 = vmul.f32 %v893_v1, %v59_v58  ;;  %v842_v9 = vpack.c.bf16 %v387_v4, %v387_v4  ;;  %vm260_vm11 = vcmp.ge.f32.partialorder %v196_v63, 0.0  ;;  %v69_v4 = vld [vmem:[%s1473_s0 + $0x1b8] sm:$0xff] }
  0x42   :  { %707 = vst.msk [vmem:[%s1476_s3 + $0x98] sm:$0xf] %vm668_vm0, %v841_v62  ;;  %v324_v10 = vmul.f32 0.2, %v196_v63  ;;  %vm261_vm12 = vcmp.ge.f32.partialorder %v197_v0, 0.0  ;;  %vm262_vm13 = vcmp.ge.f32.partialorder %v198_v3, 0.0  ;;  %v199_v13 = vadd.f32 %v898_v2, %v128_v5 }
  0x43   :  { %v325_v11 = vmul.f32 0.2, %v197_v0  ;;  %v326_v12 = vmul.f32 0.2, %v198_v3  ;;  %708 = vst.msk [vmem:[%s1476_s3 + $0x9c] sm:$0xf] %vm668_vm0, %v842_v9  ;;  %v200_v15 = vadd.f32 %v898_v2, %v129_v6  ;;  %v201_v16 = vadd.f32 %v898_v2, %v130_v7 }
  0x44   :  { %v388_v14 = vsel %vm260_vm11, %v196_v63, %v324_v10  ;;  %v131_v17 = vmul.f32 %v893_v1, %v60_v8  ;;  %vm263_vm14 = vcmp.ge.f32.partialorder %v199_v13, 0.0  ;;  %v327_v26 = vmul.f32 0.2, %v199_v13  ;;  %v68_v62 = vld [vmem:[%s1473_s0 + $0x1b0] sm:$0xff]  ;;  %v70_v5 = vld [vmem:[%s1473_s0 + $0x1c0] sm:$0xff] }
  0x45   :  { %v843_v18 = vpack.c.bf16 %v388_v14, %v388_v14  ;;  %v389_v19 = vsel %vm261_vm12, %v197_v0, %v325_v11  ;;  %v390_v20 = vsel %vm262_vm13, %v198_v3, %v326_v12  ;;  %vm264_vm15 = vcmp.ge.f32.partialorder %v200_v15, 0.0 }
  0x46   :  { %v844_v24 = vpack.c.bf16 %v389_v19, %v389_v19  ;;  %v845_v25 = vpack.c.bf16 %v390_v20, %v390_v20  ;;  %v328_v27 = vmul.f32 0.2, %v200_v15  ;;  %vm265_vm1 = vcmp.ge.f32.partialorder %v201_v16, 0.0 }
  0x47   :  { %709 = vst.msk [vmem:[%s1476_s3 + $0xa0] sm:$0xf] %vm668_vm0, %v843_v18  ;;  %v329_v28 = vmul.f32 0.2, %v201_v16  ;;  %v202_v29 = vadd.f32 %v898_v2, %v131_v17  ;;  %v391_v30 = vsel %vm263_vm14, %v199_v13, %v327_v26  ;;  %v132_v31 = vmul.f32 %v893_v1, %v61_v21  ;;  %v72_v17 = vld [vmem:[%s1473_s0 + $0x1d0] sm:$0xff]  ;;  %v73_v18 = vld [vmem:[%s1473_s0 + $0x1d8] sm:$0xff] }
  0x48   :  { %710 = vst.msk [vmem:[%s1476_s3 + $0xa4] sm:$0xf] %vm668_vm0, %v844_v24  ;;  %711 = vst.msk [vmem:[%s1476_s3 + $0xa8] sm:$0xf] %vm668_vm0, %v845_v25  ;;  %v133_v32 = vmul.f32 %v893_v1, %v62_v22  ;;  %v134_v33 = vmul.f32 %v893_v1, %v63_v23  ;;  %v846_v36 = vpack.c.bf16 %v391_v30, %v391_v30  ;;  %v74_v30 = vld [vmem:[%s1473_s0 + $0x1e0] sm:$0xff] }
  0x49   :  { %v392_v37 = vsel %vm264_vm15, %v200_v15, %v328_v27  ;;  %v393_v38 = vsel %vm265_vm1, %v201_v16, %v329_v28  ;;  %vm266_vm2 = vcmp.ge.f32.partialorder %v202_v29, 0.0  ;;  %v330_v42 = vmul.f32 0.2, %v202_v29  ;;  %v71_v16 = vld [vmem:[%s1473_s0 + $0x1c8] sm:$0xff] }
  0x4a   :  { %v847_v40 = vpack.c.bf16 %v392_v37, %v392_v37  ;;  %v848_v41 = vpack.c.bf16 %v393_v38, %v393_v38  ;;  %v203_v43 = vadd.f32 %v898_v2, %v132_v31  ;;  %712 = vst.msk [vmem:[%s1476_s3 + $0xac] sm:$0xf] %vm668_vm0, %v846_v36  ;;  %v204_v44 = vadd.f32 %v898_v2, %v133_v32 }
  0x4b   :  { %v205_v45 = vadd.f32 %v898_v2, %v134_v33  ;;  %v135_v46 = vmul.f32 %v893_v1, %v64_v34  ;;  %v136_v47 = vmul.f32 %v893_v1, %v65_v35  ;;  %v394_v48 = vsel %vm266_vm2, %v202_v29, %v330_v42 }
  0x4c   :  { %713 = vst.msk [vmem:[%s1476_s3 + $0xb0] sm:$0xf] %vm668_vm0, %v847_v40  ;;  %714 = vst.msk [vmem:[%s1476_s3 + $0xb4] sm:$0xf] %vm668_vm0, %v848_v41  ;;  %vm267_vm3 = vcmp.ge.f32.partialorder %v203_v43, 0.0  ;;  %v137_v50 = vmul.f32 %v893_v1, %v66_v39  ;;  %v849_v52 = vpack.c.bf16 %v394_v48, %v394_v48  ;;  %vm268_vm4 = vcmp.ge.f32.partialorder %v204_v44, 0.0 }
  0x4d   :  { %v331_v49 = vmul.f32 0.2, %v203_v43  ;;  %v332_v53 = vmul.f32 0.2, %v204_v44  ;;  %vm269_vm5 = vcmp.ge.f32.partialorder %v205_v45, 0.0  ;;  %v206_v56 = vadd.f32 %v898_v2, %v135_v46 }
  0x4e   :  { %v333_v55 = vmul.f32 0.2, %v205_v45  ;;  %v207_v57 = vadd.f32 %v898_v2, %v136_v47  ;;  %715 = vst.msk [vmem:[%s1476_s3 + $0xb8] sm:$0xf] %vm668_vm0, %v849_v52  ;;  %v208_v60 = vadd.f32 %v898_v2, %v137_v50  ;;  %v138_v61 = vmul.f32 %v893_v1, %v67_v51 }
  0x4f   :  { %v395_v54 = vsel %vm267_vm3, %v203_v43, %v331_v49  ;;  %v396_v59 = vsel %vm268_vm4, %v204_v44, %v332_v53  ;;  %vm270_vm6 = vcmp.ge.f32.partialorder %v206_v56, 0.0  ;;  %v334_v3 = vmul.f32 0.2, %v206_v56  ;;  %v75_v43 = vld [vmem:[%s1473_s0 + $0x1e8] sm:$0xff]  ;;  %v76_v44 = vld [vmem:[%s1473_s0 + $0x1f0] sm:$0xff] }
  0x50   :  { %v850_v58 = vpack.c.bf16 %v395_v54, %v395_v54  ;;  %v851_v63 = vpack.c.bf16 %v396_v59, %v396_v59  ;;  %v397_v0 = vsel %vm269_vm5, %v205_v45, %v333_v55  ;;  %vm271_vm7 = vcmp.ge.f32.partialorder %v207_v57, 0.0  ;;  %v77_v45 = vld [vmem:[%s1473_s0 + $0x1f8] sm:$0xff] }
  0x51   :  { %v852_v6 = vpack.c.bf16 %v397_v0, %v397_v0  ;;  %v335_v7 = vmul.f32 0.2, %v207_v57  ;;  %vm272_vm8 = vcmp.ge.f32.partialorder %v208_v60, 0.0  ;;  %v398_v8 = vsel %vm270_vm6, %v206_v56, %v334_v3 }
  0x52   :  { %716 = vst.msk [vmem:[%s1476_s3 + $0xbc] sm:$0xf] %vm668_vm0, %v850_v58  ;;  %717 = vst.msk [vmem:[%s1476_s3 + $0xc0] sm:$0xf] %vm668_vm0, %v851_v63  ;;  %v336_v9 = vmul.f32 0.2, %v208_v60  ;;  %v209_v10 = vadd.f32 %v898_v2, %v138_v61  ;;  %v139_v11 = vmul.f32 %v893_v1, %v68_v62  ;;  %v853_v12 = vpack.c.bf16 %v398_v8, %v398_v8 }
  0x53   :  { %718 = vst.msk [vmem:[%s1476_s3 + $0xc4] sm:$0xf] %vm668_vm0, %v852_v6  ;;  %v399_v13 = vsel %vm271_vm7, %v207_v57, %v335_v7  ;;  %v140_v14 = vmul.f32 %v893_v1, %v69_v4  ;;  %v141_v15 = vmul.f32 %v893_v1, %v70_v5  ;;  %v142_v27 = vmul.f32 %v893_v1, %v71_v16 }
  0x54   :  { %v854_v19 = vpack.c.bf16 %v399_v13, %v399_v13  ;;  %v400_v20 = vsel %vm272_vm8, %v208_v60, %v336_v9  ;;  %vm273_vm9 = vcmp.ge.f32.partialorder %v209_v10, 0.0  ;;  %v337_v21 = vmul.f32 0.2, %v209_v10  ;;  %719 = vst.msk [vmem:[%s1476_s3 + $0xc8] sm:$0xf] %vm668_vm0, %v853_v12 }
  0x55   :  { %v855_v22 = vpack.c.bf16 %v400_v20, %v400_v20  ;;  %v210_v23 = vadd.f32 %v898_v2, %v139_v11  ;;  %v211_v24 = vadd.f32 %v898_v2, %v140_v14  ;;  %v212_v25 = vadd.f32 %v898_v2, %v141_v15 }
  0x56   :  { %720 = vst.msk [vmem:[%s1476_s3 + $0xcc] sm:$0xf] %vm668_vm0, %v854_v19  ;;  %v401_v26 = vsel %vm273_vm9, %v209_v10, %v337_v21  ;;  %v143_v28 = vmul.f32 %v893_v1, %v72_v17  ;;  %v144_v29 = vmul.f32 %v893_v1, %v73_v18  ;;  %v213_v35 = vadd.f32 %v898_v2, %v142_v27 }
  0x57   :  { %721 = vst.msk [vmem:[%s1476_s3 + $0xd0] sm:$0xf] %vm668_vm0, %v855_v22  ;;  %v856_v31 = vpack.c.bf16 %v401_v26, %v401_v26  ;;  %vm274_vm10 = vcmp.ge.f32.partialorder %v210_v23, 0.0  ;;  %v338_v32 = vmul.f32 0.2, %v210_v23  ;;  %vm275_vm11 = vcmp.ge.f32.partialorder %v211_v24, 0.0 }
  0x58   :  { %v339_v33 = vmul.f32 0.2, %v211_v24  ;;  %vm276_vm12 = vcmp.ge.f32.partialorder %v212_v25, 0.0  ;;  %v340_v34 = vmul.f32 0.2, %v212_v25  ;;  %v214_v37 = vadd.f32 %v898_v2, %v143_v28 }
  0x59   :  { %722 = vst.msk [vmem:[%s1476_s3 + $0xd4] sm:$0xf] %vm668_vm0, %v856_v31  ;;  %v402_v36 = vsel %vm274_vm10, %v210_v23, %v338_v32  ;;  %v215_v38 = vadd.f32 %v898_v2, %v144_v29  ;;  %v145_v39 = vmul.f32 %v893_v1, %v74_v30  ;;  %vm277_vm13 = vcmp.ge.f32.partialorder %v213_v35, 0.0 }
  0x5a   :  { %v857_v40 = vpack.c.bf16 %v402_v36, %v402_v36  ;;  %v403_v41 = vsel %vm275_vm11, %v211_v24, %v339_v33  ;;  %v404_v42 = vsel %vm276_vm12, %v212_v25, %v340_v34  ;;  %v341_v48 = vmul.f32 0.2, %v213_v35 }
  0x5b   :  { %v858_v46 = vpack.c.bf16 %v403_v41, %v403_v41  ;;  %v859_v47 = vpack.c.bf16 %v404_v42, %v404_v42  ;;  %vm278_vm14 = vcmp.ge.f32.partialorder %v214_v37, 0.0  ;;  %v342_v49 = vmul.f32 0.2, %v214_v37 }
  0x5c   :  { %723 = vst.msk [vmem:[%s1476_s3 + $0xd8] sm:$0xf] %vm668_vm0, %v857_v40  ;;  %vm279_vm15 = vcmp.ge.f32.partialorder %v215_v38, 0.0  ;;  %v343_v50 = vmul.f32 0.2, %v215_v38  ;;  %v216_v51 = vadd.f32 %v898_v2, %v145_v39  ;;  %v405_v52 = vsel %vm277_vm13, %v213_v35, %v341_v48 }
  0x5d   :  { %724 = vst.msk [vmem:[%s1476_s3 + $0xdc] sm:$0xf] %vm668_vm0, %v858_v46  ;;  %725 = vst.msk [vmem:[%s1476_s3 + $0xe0] sm:$0xf] %vm668_vm0, %v859_v47  ;;  %v146_v53 = vmul.f32 %v893_v1, %v75_v43  ;;  %v147_v54 = vmul.f32 %v893_v1, %v76_v44  ;;  %v148_v55 = vmul.f32 %v893_v1, %v77_v45 }
  0x5e   :  { %v860_v56 = vpack.c.bf16 %v405_v52, %v405_v52  ;;  %v406_v57 = vsel %vm278_vm14, %v214_v37, %v342_v49  ;;  %v407_v58 = vsel %vm279_vm15, %v215_v38, %v343_v50  ;;  %vm280_vm1 = vcmp.ge.f32.partialorder %v216_v51, 0.0 }
  0x5f   :  { %v861_v59 = vpack.c.bf16 %v406_v57, %v406_v57  ;;  %v862_v60 = vpack.c.bf16 %v407_v58, %v407_v58  ;;  %v344_v61 = vmul.f32 0.2, %v216_v51  ;;  %v217_v62 = vadd.f32 %v898_v2, %v146_v53 }
  0x60   :  { %726 = vst.msk [vmem:[%s1476_s3 + $0xe4] sm:$0xf] %vm668_vm0, %v860_v56  ;;  %v218_v63 = vadd.f32 %v898_v2, %v147_v54  ;;  %v219_v0 = vadd.f32 %v898_v2, %v148_v55 }
  0x61   :  { %727 = vst.msk [vmem:[%s1476_s3 + $0xe8] sm:$0xf] %vm668_vm0, %v861_v59  ;;  %728 = vst.msk [vmem:[%s1476_s3 + $0xec] sm:$0xf] %vm668_vm0, %v862_v60  ;;  %v408_v1 = vsel %vm280_vm1, %v216_v51, %v344_v61  ;;  %vm281_vm2 = vcmp.ge.f32.partialorder %v217_v62, 0.0 }
  0x62   :  { %v345_v3 = vmul.f32 0.2, %v217_v62  ;;  %v863_v4 = vpack.c.bf16 %v408_v1, %v408_v1  ;;  %vm282_vm3 = vcmp.ge.f32.partialorder %v218_v63, 0.0  ;;  %v346_v5 = vmul.f32 0.2, %v218_v63 }
  0x63   :  { %vm283_vm4 = vcmp.ge.f32.partialorder %v219_v0, 0.0  ;;  %v347_v7 = vmul.f32 0.2, %v219_v0 }
  0x64   :  { %v409_v6 = vsel %vm281_vm2, %v217_v62, %v345_v3  ;;  %729 = vst.msk [vmem:[%s1476_s3 + $0xf0] sm:$0xf] %vm668_vm0, %v863_v4  ;;  %v410_v8 = vsel %vm282_vm3, %v218_v63, %v346_v5 }
  0x65   :  { %v864_v2 = vpack.c.bf16 %v409_v6, %v409_v6  ;;  %v865_v9 = vpack.c.bf16 %v410_v8, %v410_v8  ;;  %v411_v10 = vsel %vm283_vm4, %v219_v0, %v347_v7 }
  0x66   :  { %v866_v11 = vpack.c.bf16 %v411_v10, %v411_v10 }
  0x67   :  { %730 = vst.msk [vmem:[%s1476_s3 + $0xf4] sm:$0xf] %vm668_vm0, %v864_v2  ;;  %731 = vst.msk [vmem:[%s1476_s3 + $0xf8] sm:$0xf] %vm668_vm0, %v865_v9 }
  0x68   :  { %732 = vst.msk [vmem:[%s1476_s3 + $0xfc] sm:$0xf] %vm668_vm0, %v866_v11 }

// kernel: forward.11
= control target key start
LH: loop header
LB: loop body
LE: loop exit
PB: predicated region body
PF: predicated region fallthrough
CT: control target
= control target key end

     0   :  { %v1456_v0 = vmov 0   ;;  %vm815_vm0 = vcmask 261120   ;;  %vm1020_vm1 = vcmask 253952   ;;  %s2342_s1 = inlined_call_operand.vmem [shape: bf16[256,32], index: 1, kind: input, shape index: {}]   ;;  %s2343_s0 = inlined_call_operand.vmem [shape: bf16[512,256], index: 0, kind: input, shape index: {}]   ;;  %s2344_s2 = inlined_call_operand.vmem [shape: f32[512,32], index: 2, kind: output, shape index: {0}]   ;;  %s2345_s3 = inlined_call_operand.vmem [shape: f32[8,32], index: 3, kind: output, shape index: {1}]  }
   0x1   :  { %526 = vmatprep.subr.bf16.mxu0 %v1456_v0  ;;  %v1344_v1 = vld [vmem:[%s2342_s1] sm:$0xff]   ;;  %1310 = vmatprep.subr.bf16.mxu1 %v1456_v0  ;;  %v1345_v2 = vld [vmem:[%s2342_s1 + $0x8] sm:$0xff]   ;;  %v1346_v3 = vld [vmem:[%s2342_s1 + $0x10] sm:$0xff]  }
   0x2   :  { %527 = vmatpush1.bf16.msra.mxu0 %v1344_v1  ;;  %1326 = vmatpush1.bf16.msra.mxu1 %v1344_v1  ;;  %v1347_v4 = vld [vmem:[%s2342_s1 + $0x18] sm:$0xff]   ;;  %v1348_v5 = vld [vmem:[%s2342_s1 + $0x20] sm:$0xff]   ;;  %v1349_v7 = vld [vmem:[%s2342_s1 + $0x28] sm:$0xff]  }
   0x3   :  { %528 = vmatprep.subr.bf16.mxu0 %v1456_v0  ;;  %1311 = vmatprep.subr.bf16.mxu1 %v1456_v0  ;;  %v1362_v6 = vld [vmem:[%s2343_s0 + $0x4] ss:$8 sps:$4 sm:$0xff]   ;;  %v1350_v8 = vld [vmem:[%s2342_s1 + $0x30] sm:$0xff]   ;;  %v1351_v9 = vld [vmem:[%s2342_s1 + $0x38] sm:$0xff]  }
   0x4   :  { %558 = vmatprep.mubr.bf16.mxu0 %v1362_v6  ;;  %v1386_v10 = vld [vmem:[%s2343_s0 + $0x104] ss:$8 sps:$4 sm:$0xff]   ;;  %v1354_v13 = vld [vmem:[%s2342_s1 + $0x50] sm:$0xff]   ;;  %v1355_v14 = vld [vmem:[%s2342_s1 + $0x58] sm:$0xff]  }
   0x5   :  { %686 = vmatprep.mubr.bf16.mxu1 %v1386_v10  ;;  %v1352_v11 = vld [vmem:[%s2342_s1 + $0x40] sm:$0xff]   ;;  %v1353_v12 = vld [vmem:[%s2342_s1 + $0x48] sm:$0xff]   ;;  %v1358_v17 = vld [vmem:[%s2342_s1 + $0x70] sm:$0xff]  }
   0x6   :  { %529 = vmatpush1.bf16.msra.mxu0 %v1345_v2  ;;  %1327 = vmatpush1.bf16.msra.mxu1 %v1345_v2  ;;  %v1356_v15 = vld [vmem:[%s2342_s1 + $0x60] sm:$0xff]   ;;  %v1357_v16 = vld [vmem:[%s2342_s1 + $0x68] sm:$0xff]   ;;  %v1359_v18 = vld [vmem:[%s2342_s1 + $0x78] sm:$0xff]  }
   0x7   :  { %530 = vmatprep.subr.bf16.mxu0 %v1456_v0  ;;  %1312 = vmatprep.subr.bf16.mxu1 %v1456_v0  ;;  %v1360_v19 = vld [vmem:[%s2343_s0] ss:$8 sps:$4 sm:$0xff]   ;;  %v1363_v21 = vld [vmem:[%s2343_s0 + $0x14] ss:$8 sps:$4 sm:$0xff]   ;;  %v1365_v23 = vld [vmem:[%s2343_s0 + $0x10] ss:$8 sps:$4 sm:$0xff]  }
   0x8   :  { %v1384_v20 = vld [vmem:[%s2343_s0 + $0x100] ss:$8 sps:$4 sm:$0xff]   ;;  %v1390_v22 = vld [vmem:[%s2343_s0 + $0x114] ss:$8 sps:$4 sm:$0xff]   ;;  %v1392_v24 = vld [vmem:[%s2343_s0 + $0x110] ss:$8 sps:$4 sm:$0xff]  }
   0x9   :  { %v1366_v25 = vld [vmem:[%s2343_s0 + $0x24] ss:$8 sps:$4 sm:$0xff]   ;;  %v1368_v27 = vld [vmem:[%s2343_s0 + $0x20] ss:$8 sps:$4 sm:$0xff]   ;;  %v1369_v29 = vld [vmem:[%s2343_s0 + $0x34] ss:$8 sps:$4 sm:$0xff]  }
   0xa   :  { %531 = vmatpush1.bf16.msra.mxu0 %v1346_v3  ;;  %1328 = vmatpush1.bf16.msra.mxu1 %v1346_v3  ;;  %v1396_v26 = vld [vmem:[%s2343_s0 + $0x124] ss:$8 sps:$4 sm:$0xff]   ;;  %v1398_v28 = vld [vmem:[%s2343_s0 + $0x120] ss:$8 sps:$4 sm:$0xff]   ;;  %v1402_v30 = vld [vmem:[%s2343_s0 + $0x134] ss:$8 sps:$4 sm:$0xff]  }
   0xb   :  { %532 = vmatprep.subr.bf16.mxu0 %v1456_v0  ;;  %1313 = vmatprep.subr.bf16.mxu1 %v1456_v0  ;;  %v1371_v31 = vld [vmem:[%s2343_s0 + $0x30] ss:$8 sps:$4 sm:$0xff]   ;;  %v1372_v33 = vld [vmem:[%s2343_s0 + $0x44] ss:$8 sps:$4 sm:$0xff]   ;;  %v1374_v35 = vld [vmem:[%s2343_s0 + $0x40] ss:$8 sps:$4 sm:$0xff]  }
   0xc   :  { %v1404_v32 = vld [vmem:[%s2343_s0 + $0x130] ss:$8 sps:$4 sm:$0xff]   ;;  %v1408_v34 = vld [vmem:[%s2343_s0 + $0x144] ss:$8 sps:$4 sm:$0xff]   ;;  %v1410_v36 = vld [vmem:[%s2343_s0 + $0x140] ss:$8 sps:$4 sm:$0xff]  }
   0xd   :  { %v1375_v37 = vld [vmem:[%s2343_s0 + $0x54] ss:$8 sps:$4 sm:$0xff]   ;;  %v1377_v39 = vld [vmem:[%s2343_s0 + $0x50] ss:$8 sps:$4 sm:$0xff]   ;;  %v1378_v41 = vld [vmem:[%s2343_s0 + $0x64] ss:$8 sps:$4 sm:$0xff]  }
   0xe   :  { %533 = vmatpush1.bf16.msra.mxu0 %v1347_v4  ;;  %1329 = vmatpush1.bf16.msra.mxu1 %v1347_v4  ;;  %v1414_v38 = vld [vmem:[%s2343_s0 + $0x154] ss:$8 sps:$4 sm:$0xff]   ;;  %v1416_v40 = vld [vmem:[%s2343_s0 + $0x150] ss:$8 sps:$4 sm:$0xff]   ;;  %v1420_v42 = vld [vmem:[%s2343_s0 + $0x164] ss:$8 sps:$4 sm:$0xff]  }
   0xf   :  { %534 = vmatprep.subr.bf16.mxu0 %v1456_v0  ;;  %1314 = vmatprep.subr.bf16.mxu1 %v1456_v0  ;;  %v1380_v43 = vld [vmem:[%s2343_s0 + $0x60] ss:$8 sps:$4 sm:$0xff]   ;;  %v1381_v45 = vld [vmem:[%s2343_s0 + $0x74] ss:$8 sps:$4 sm:$0xff]   ;;  %v1383_v47 = vld [vmem:[%s2343_s0 + $0x70] ss:$8 sps:$4 sm:$0xff]  }
  0x10   :  { %v1422_v44 = vld [vmem:[%s2343_s0 + $0x160] ss:$8 sps:$4 sm:$0xff]   ;;  %v1426_v46 = vld [vmem:[%s2343_s0 + $0x174] ss:$8 sps:$4 sm:$0xff]   ;;  %v1428_v48 = vld [vmem:[%s2343_s0 + $0x170] ss:$8 sps:$4 sm:$0xff]  }
  0x11   :  { %v1387_v49 = vld [vmem:[%s2343_s0 + $0x84] ss:$8 sps:$4 sm:$0xff]   ;;  %v1389_v51 = vld [vmem:[%s2343_s0 + $0x80] ss:$8 sps:$4 sm:$0xff]   ;;  %v1393_v53 = vld [vmem:[%s2343_s0 + $0x94] ss:$8 sps:$4 sm:$0xff]  }
  0x12   :  { %535 = vmatpush1.bf16.msra.mxu0 %v1348_v5  ;;  %1330 = vmatpush1.bf16.msra.mxu1 %v1348_v5  ;;  %v1432_v50 = vld [vmem:[%s2343_s0 + $0x184] ss:$8 sps:$4 sm:$0xff]   ;;  %v1434_v52 = vld [vmem:[%s2343_s0 + $0x180] ss:$8 sps:$4 sm:$0xff]   ;;  %v1435_v54 = vld [vmem:[%s2343_s0 + $0x194] ss:$8 sps:$4 sm:$0xff]  }
  0x13   :  { %536 = vmatprep.subr.bf16.mxu0 %v1456_v0  ;;  %1315 = vmatprep.subr.bf16.mxu1 %v1456_v0  ;;  %v1395_v55 = vld [vmem:[%s2343_s0 + $0x90] ss:$8 sps:$4 sm:$0xff]   ;;  %v1399_v57 = vld [vmem:[%s2343_s0 + $0xa4] ss:$8 sps:$4 sm:$0xff]   ;;  %v1401_v59 = vld [vmem:[%s2343_s0 + $0xa0] ss:$8 sps:$4 sm:$0xff]  }
  0x14   :  { %v1437_v56 = vld [vmem:[%s2343_s0 + $0x190] ss:$8 sps:$4 sm:$0xff]   ;;  %v1438_v58 = vld [vmem:[%s2343_s0 + $0x1a4] ss:$8 sps:$4 sm:$0xff]   ;;  %v1440_v60 = vld [vmem:[%s2343_s0 + $0x1a0] ss:$8 sps:$4 sm:$0xff]  }
  0x15   :  { %v1405_v61 = vld [vmem:[%s2343_s0 + $0xb4] ss:$8 sps:$4 sm:$0xff]   ;;  %v1407_v63 = vld [vmem:[%s2343_s0 + $0xb0] ss:$8 sps:$4 sm:$0xff]   ;;  %v1411_v1 = vld [vmem:[%s2343_s0 + $0xc4] ss:$8 sps:$4 sm:$0xff]  }
  0x16   :  { %537 = vmatpush1.bf16.msra.mxu0 %v1349_v7  ;;  %1331 = vmatpush1.bf16.msra.mxu1 %v1349_v7  ;;  %v1441_v62 = vld [vmem:[%s2343_s0 + $0x1b4] ss:$8 sps:$4 sm:$0xff]   ;;  %v1444_v2 = vld [vmem:[%s2343_s0 + $0x1c4] ss:$8 sps:$4 sm:$0xff]   ;;  %v1413_v3 = vld [vmem:[%s2343_s0 + $0xc0] ss:$8 sps:$4 sm:$0xff]  }
  0x17   :  { %538 = vmatprep.subr.bf16.mxu0 %v1456_v0  ;;  %1316 = vmatprep.subr.bf16.mxu1 %v1456_v0  ;;  %v1446_v4 = vld [vmem:[%s2343_s0 + $0x1c0] ss:$8 sps:$4 sm:$0xff]   ;;  %v1417_v5 = vld [vmem:[%s2343_s0 + $0xd4] ss:$8 sps:$4 sm:$0xff]   ;;  %v1419_v7 = vld [vmem:[%s2343_s0 + $0xd0] ss:$8 sps:$4 sm:$0xff]  }
  0x18   :  { %v1447_v6 = vld [vmem:[%s2343_s0 + $0x1d4] ss:$8 sps:$4 sm:$0xff]   ;;  %v1450_v10 = vld [vmem:[%s2343_s0 + $0x1e4] ss:$8 sps:$4 sm:$0xff]  }
  0x1a   :  { %539 = vmatpush1.bf16.msra.mxu0 %v1350_v8  ;;  %1332 = vmatpush1.bf16.msra.mxu1 %v1350_v8  ;;  %v1449_v8 = vld [vmem:[%s2343_s0 + $0x1d0] ss:$8 sps:$4 sm:$0xff]  }
  0x1b   :  { %540 = vmatprep.subr.bf16.mxu0 %v1456_v0  ;;  %1317 = vmatprep.subr.bf16.mxu1 %v1456_v0 }
  0x1e   :  { %541 = vmatpush1.bf16.msra.mxu0 %v1351_v9  ;;  %1333 = vmatpush1.bf16.msra.mxu1 %v1351_v9  ;;  %v1423_v9 = vld [vmem:[%s2343_s0 + $0xe4] ss:$8 sps:$4 sm:$0xff]  }
  0x1f   :  { %542 = vmatprep.subr.bf16.mxu0 %v1456_v0  ;;  %1318 = vmatprep.subr.bf16.mxu1 %v1456_v0 }
  0x22   :  { %543 = vmatpush1.bf16.msra.mxu0 %v1352_v11  ;;  %1334 = vmatpush1.bf16.msra.mxu1 %v1352_v11  ;;  %v1425_v11 = vld [vmem:[%s2343_s0 + $0xe0] ss:$8 sps:$4 sm:$0xff]  }
  0x23   :  { %544 = vmatprep.subr.bf16.mxu0 %v1456_v0  ;;  %1319 = vmatprep.subr.bf16.mxu1 %v1456_v0 }
  0x26   :  { %545 = vmatpush1.bf16.msra.mxu0 %v1353_v12  ;;  %1335 = vmatpush1.bf16.msra.mxu1 %v1353_v12  ;;  %v1452_v12 = vld [vmem:[%s2343_s0 + $0x1e0] ss:$8 sps:$4 sm:$0xff]  }
  0x27   :  { %546 = vmatprep.subr.bf16.mxu0 %v1456_v0  ;;  %1320 = vmatprep.subr.bf16.mxu1 %v1456_v0 }
  0x2a   :  { %547 = vmatpush1.bf16.msra.mxu0 %v1354_v13  ;;  %1336 = vmatpush1.bf16.msra.mxu1 %v1354_v13  ;;  %v1429_v13 = vld [vmem:[%s2343_s0 + $0xf4] ss:$8 sps:$4 sm:$0xff]  }
  0x2b   :  { %548 = vmatprep.subr.bf16.mxu0 %v1456_v0  ;;  %1321 = vmatprep.subr.bf16.mxu1 %v1456_v0 }
  0x2e   :  { %549 = vmatpush1.bf16.msra.mxu0 %v1355_v14  ;;  %1337 = vmatpush1.bf16.msra.mxu1 %v1355_v14  ;;  %v1453_v14 = vld [vmem:[%s2343_s0 + $0x1f4] ss:$8 sps:$4 sm:$0xff]  }
  0x2f   :  { %550 = vmatprep.subr.bf16.mxu0 %v1456_v0  ;;  %1322 = vmatprep.subr.bf16.mxu1 %v1456_v0 }
  0x32   :  { %551 = vmatpush1.bf16.msra.mxu0 %v1356_v15  ;;  %1338 = vmatpush1.bf16.msra.mxu1 %v1356_v15  ;;  %v1431_v15 = vld [vmem:[%s2343_s0 + $0xf0] ss:$8 sps:$4 sm:$0xff]  }
  0x33   :  { %552 = vmatprep.subr.bf16.mxu0 %v1456_v0  ;;  %1323 = vmatprep.subr.bf16.mxu1 %v1456_v0 }
  0x36   :  { %553 = vmatpush1.bf16.msra.mxu0 %v1357_v16  ;;  %1339 = vmatpush1.bf16.msra.mxu1 %v1357_v16  ;;  %v1455_v16 = vld [vmem:[%s2343_s0 + $0x1f0] ss:$8 sps:$4 sm:$0xff]  }
  0x37   :  { %554 = vmatprep.subr.bf16.mxu0 %v1456_v0  ;;  %1324 = vmatprep.subr.bf16.mxu1 %v1456_v0 }
  0x3a   :  { %555 = vmatpush1.bf16.msra.mxu0 %v1358_v17  ;;  %1340 = vmatpush1.bf16.msra.mxu1 %v1358_v17 }
  0x3b   :  { %556 = vmatprep.subr.bf16.mxu0 %v1456_v0  ;;  %1325 = vmatprep.subr.bf16.mxu1 %v1456_v0  ;;  %v1443_v0 = vld [vmem:[%s2343_s0 + $0x1b0] ss:$8 sps:$4 sm:$0xff]  }
  0x3e   :  { %557 = vmatpush1.bf16.msra.mxu0 %v1359_v18  ;;  %1341 = vmatpush1.bf16.msra.mxu1 %v1359_v18 }
  0x41   :  { %559 = vmatmul.mubr.bf16.vlgmr.msra.gmra.mrb[0].mxu0 %v1360_v19  ;;  %687 = vmatmul.mubr.bf16.vlgmr.msra.gmra.mrb[0].mxu1 %v1384_v20 }
  0x42   :  { %566 = vmatprep.mubr.bf16.mxu0 %v1363_v21  ;;  %694 = vmatprep.mubr.bf16.mxu1 %v1390_v22 }
  0x49   :  { %567 = vmatmul.mubr.bf16.gmra.mrb[4].mxu0 %v1365_v23  ;;  %695 = vmatmul.mubr.bf16.gmra.mrb[4].mxu1 %v1392_v24 }
  0x4a   :  { %574 = vmatprep.mubr.bf16.mxu0 %v1366_v25  ;;  %702 = vmatprep.mubr.bf16.mxu1 %v1396_v26 }
  0x51   :  { %575 = vmatmul.mubr.bf16.gmra.mrb[8].mxu0 %v1368_v27  ;;  %703 = vmatmul.mubr.bf16.gmra.mrb[8].mxu1 %v1398_v28 }
  0x52   :  { %582 = vmatprep.mubr.bf16.mxu0 %v1369_v29  ;;  %710 = vmatprep.mubr.bf16.mxu1 %v1402_v30 }
  0x59   :  { %583 = vmatmul.mubr.bf16.gmra.mrb[12].mxu0 %v1371_v31  ;;  %711 = vmatmul.mubr.bf16.gmra.mrb[12].mxu1 %v1404_v32 }
  0x5a   :  { %590 = vmatprep.mubr.bf16.mxu0 %v1372_v33  ;;  %718 = vmatprep.mubr.bf16.mxu1 %v1408_v34 }
  0x61   :  { %591 = vmatmul.mubr.bf16.gmra.mrb[16].mxu0 %v1374_v35  ;;  %719 = vmatmul.mubr.bf16.gmra.mrb[16].mxu1 %v1410_v36 }
  0x62   :  { %598 = vmatprep.mubr.bf16.mxu0 %v1375_v37  ;;  %726 = vmatprep.mubr.bf16.mxu1 %v1414_v38 }
  0x69   :  { %599 = vmatmul.mubr.bf16.gmra.mrb[20].mxu0 %v1377_v39  ;;  %727 = vmatmul.mubr.bf16.gmra.mrb[20].mxu1 %v1416_v40 }
  0x6a   :  { %606 = vmatprep.mubr.bf16.mxu0 %v1378_v41  ;;  %734 = vmatprep.mubr.bf16.mxu1 %v1420_v42 }
  0x71   :  { %607 = vmatmul.mubr.bf16.gmra.mrb[24].mxu0 %v1380_v43  ;;  %735 = vmatmul.mubr.bf16.gmra.mrb[24].mxu1 %v1422_v44 }
  0x72   :  { %614 = vmatprep.mubr.bf16.mxu0 %v1381_v45  ;;  %742 = vmatprep.mubr.bf16.mxu1 %v1426_v46 }
  0x79   :  { %615 = vmatmul.mubr.bf16.gmra.mrb[28].mxu0 %v1383_v47  ;;  %743 = vmatmul.mubr.bf16.gmra.mrb[28].mxu1 %v1428_v48 }
  0x7a   :  { %622 = vmatprep.mubr.bf16.mxu0 %v1387_v49  ;;  %750 = vmatprep.mubr.bf16.mxu1 %v1432_v50 }
  0x81   :  { %623 = vmatmul.mubr.bf16.gmra.mrb[32].mxu0 %v1389_v51  ;;  %751 = vmatmul.mubr.bf16.gmra.mrb[32].mxu1 %v1434_v52 }
  0x82   :  { %630 = vmatprep.mubr.bf16.mxu0 %v1393_v53  ;;  %758 = vmatprep.mubr.bf16.mxu1 %v1435_v54 }
  0x89   :  { %631 = vmatmul.mubr.bf16.gmra.mrb[36].mxu0 %v1395_v55  ;;  %759 = vmatmul.mubr.bf16.gmra.mrb[36].mxu1 %v1437_v56 }
  0x8a   :  { %638 = vmatprep.mubr.bf16.mxu0 %v1399_v57  ;;  %766 = vmatprep.mubr.bf16.mxu1 %v1438_v58 }
  0x91   :  { %639 = vmatmul.mubr.bf16.gmra.mrb[40].mxu0 %v1401_v59  ;;  %767 = vmatmul.mubr.bf16.gmra.mrb[40].mxu1 %v1440_v60 }
  0x92   :  { %646 = vmatprep.mubr.bf16.mxu0 %v1405_v61  ;;  %774 = vmatprep.mubr.bf16.mxu1 %v1441_v62 }
  0x99   :  { %647 = vmatmul.mubr.bf16.gmra.mrb[44].mxu0 %v1407_v63  ;;  %775 = vmatmul.mubr.bf16.gmra.mrb[44].mxu1 %v1443_v0 }
  0x9a   :  { %654 = vmatprep.mubr.bf16.mxu0 %v1411_v1  ;;  %782 = vmatprep.mubr.bf16.mxu1 %v1444_v2 }
  0xa1   :  { %655 = vmatmul.mubr.bf16.gmra.mrb[48].mxu0 %v1413_v3  ;;  %783 = vmatmul.mubr.bf16.gmra.mrb[48].mxu1 %v1446_v4 }
  0xa2   :  { %662 = vmatprep.mubr.bf16.mxu0 %v1417_v5  ;;  %790 = vmatprep.mubr.bf16.mxu1 %v1447_v6 }
  0xa9   :  { %663 = vmatmul.mubr.bf16.gmra.mrb[52].mxu0 %v1419_v7  ;;  %791 = vmatmul.mubr.bf16.gmra.mrb[52].mxu1 %v1449_v8 }
  0xaa   :  { %670 = vmatprep.mubr.bf16.mxu0 %v1423_v9  ;;  %798 = vmatprep.mubr.bf16.mxu1 %v1450_v10 }
  0xb1   :  { %671 = vmatmul.mubr.bf16.gmra.mrb[56].mxu0 %v1425_v11  ;;  %799 = vmatmul.mubr.bf16.gmra.mrb[56].mxu1 %v1452_v12 }
  0xb2   :  { %678 = vmatprep.mubr.bf16.mxu0 %v1429_v13  ;;  %806 = vmatprep.mubr.bf16.mxu1 %v1453_v14 }
  0xb9   :  { %679 = vmatmul.mubr.bf16.gmra.mrb[60].mxu0 %v1431_v15  ;;  %807 = vmatmul.mubr.bf16.gmra.mrb[60].mxu1 %v1455_v16 }
 0x114   :  { %v560_v17 = vpop.f32.mrb[0].mxu0  ;;  %v1750_v18 = vpop.f32.mrb[0].mxu1 }
 0x115   :  { %816 = vst.msk [vmem:[%s2344_s2] sm:$0xff] %vm815_vm0, %v560_v17  ;;  %v1023_v19 = vmul.f32 %v560_v17, %v560_v17  ;;  %v562_v20 = vpop.f32.mrb[1].mxu0  ;;  %848 = vst.msk [vmem:[%s2344_s2 + $0x100] sm:$0xff] %vm815_vm0, %v1750_v18  ;;  %v690_v21 = vpop.f32.mrb[1].mxu1  ;;  %v886_v24 = vsel %vm815_vm0, %v560_v17, 0.0 }
 0x116   :  { %v563_v22 = vpop.f32.mrb[2].mxu0  ;;  %v1761_v23 = vpop.f32.mrb[2].mxu1 }
 0x117   :  { %817 = vst.msk [vmem:[%s2344_s2 + $0x8] sm:$0xff] %vm815_vm0, %v563_v22  ;;  %v887_v25 = vsel %vm815_vm0, %v563_v22, 0.0  ;;  %v1024_v26 = vmul.f32 %v563_v22, %v563_v22  ;;  %v565_v27 = vpop.f32.mrb[3].mxu0  ;;  %849 = vst.msk [vmem:[%s2344_s2 + $0x108] sm:$0xff] %vm815_vm0, %v1761_v23  ;;  %v693_v28 = vpop.f32.mrb[3].mxu1  ;;  %v1087_v30 = vsel %vm815_vm0, %v1023_v19, 0.0 }
 0x118   :  { %v888_v29 = vadd.f32 %v887_v25, %v886_v24 }
 0x119   :  { %v1088_v31 = vsel %vm815_vm0, %v1024_v26, 0.0 }
 0x11a   :  { %v1089_v32 = vadd.f32 %v1088_v31, %v1087_v30 }
 0x11c   :  { %v568_v33 = vpop.f32.mrb[4].mxu0  ;;  %v1776_v34 = vpop.f32.mrb[4].mxu1 }
 0x11d   :  { %818 = vst.msk [vmem:[%s2344_s2 + $0x10] sm:$0xff] %vm815_vm0, %v568_v33  ;;  %v889_v35 = vsel %vm815_vm0, %v568_v33, 0.0  ;;  %v1025_v36 = vmul.f32 %v568_v33, %v568_v33  ;;  %v570_v37 = vpop.f32.mrb[5].mxu0  ;;  %850 = vst.msk [vmem:[%s2344_s2 + $0x110] sm:$0xff] %vm815_vm0, %v1776_v34  ;;  %v698_v38 = vpop.f32.mrb[5].mxu1 }
 0x11e   :  { %v890_v39 = vadd.f32 %v889_v35, %v888_v29  ;;  %v571_v40 = vpop.f32.mrb[6].mxu0  ;;  %v1788_v41 = vpop.f32.mrb[6].mxu1 }
 0x11f   :  { %v1090_v42 = vsel %vm815_vm0, %v1025_v36, 0.0  ;;  %819 = vst.msk [vmem:[%s2344_s2 + $0x18] sm:$0xff] %vm815_vm0, %v571_v40  ;;  %v891_v43 = vsel %vm815_vm0, %v571_v40, 0.0  ;;  %v1026_v44 = vmul.f32 %v571_v40, %v571_v40  ;;  %v573_v45 = vpop.f32.mrb[7].mxu0  ;;  %851 = vst.msk [vmem:[%s2344_s2 + $0x118] sm:$0xff] %vm815_vm0, %v1788_v41  ;;  %v701_v46 = vpop.f32.mrb[7].mxu1 }
 0x120   :  { %v1091_v47 = vadd.f32 %v1090_v42, %v1089_v32  ;;  %v892_v48 = vadd.f32 %v891_v43, %v890_v39 }
 0x121   :  { %v1092_v49 = vsel %vm815_vm0, %v1026_v44, 0.0 }
 0x122   :  { %v1093_v50 = vadd.f32 %v1092_v49, %v1091_v47 }
 0x124   :  { %v576_v51 = vpop.f32.mrb[8].mxu0  ;;  %v1802_v52 = vpop.f32.mrb[8].mxu1 }
 0x125   :  { %820 = vst.msk [vmem:[%s2344_s2 + $0x20] sm:$0xff] %vm815_vm0, %v576_v51  ;;  %v893_v53 = vsel %vm815_vm0, %v576_v51, 0.0  ;;  %v1027_v54 = vmul.f32 %v576_v51, %v576_v51  ;;  %v578_v55 = vpop.f32.mrb[9].mxu0  ;;  %852 = vst.msk [vmem:[%s2344_s2 + $0x120] sm:$0xff] %vm815_vm0, %v1802_v52  ;;  %v706_v56 = vpop.f32.mrb[9].mxu1 }
 0x126   :  { %v894_v57 = vadd.f32 %v893_v53, %v892_v48  ;;  %v579_v58 = vpop.f32.mrb[10].mxu0  ;;  %v1814_v59 = vpop.f32.mrb[10].mxu1 }
 0x127   :  { %v1094_v60 = vsel %vm815_vm0, %v1027_v54, 0.0  ;;  %821 = vst.msk [vmem:[%s2344_s2 + $0x28] sm:$0xff] %vm815_vm0, %v579_v58  ;;  %v895_v61 = vsel %vm815_vm0, %v579_v58, 0.0  ;;  %v1028_v62 = vmul.f32 %v579_v58, %v579_v58  ;;  %v581_v63 = vpop.f32.mrb[11].mxu0  ;;  %853 = vst.msk [vmem:[%s2344_s2 + $0x128] sm:$0xff] %vm815_vm0, %v1814_v59  ;;  %v709_v0 = vpop.f32.mrb[11].mxu1 }
 0x128   :  { %v1095_v1 = vadd.f32 %v1094_v60, %v1093_v50  ;;  %v896_v2 = vadd.f32 %v895_v61, %v894_v57 }
 0x129   :  { %v1096_v3 = vsel %vm815_vm0, %v1028_v62, 0.0 }
 0x12a   :  { %v1097_v4 = vadd.f32 %v1096_v3, %v1095_v1 }
 0x12c   :  { %v584_v5 = vpop.f32.mrb[12].mxu0  ;;  %v1828_v6 = vpop.f32.mrb[12].mxu1 }
 0x12d   :  { %822 = vst.msk [vmem:[%s2344_s2 + $0x30] sm:$0xff] %vm815_vm0, %v584_v5  ;;  %v897_v7 = vsel %vm815_vm0, %v584_v5, 0.0  ;;  %v1029_v8 = vmul.f32 %v584_v5, %v584_v5  ;;  %v586_v9 = vpop.f32.mrb[13].mxu0  ;;  %854 = vst.msk [vmem:[%s2344_s2 + $0x130] sm:$0xff] %vm815_vm0, %v1828_v6  ;;  %v714_v10 = vpop.f32.mrb[13].mxu1 }
 0x12e   :  { %v898_v11 = vadd.f32 %v897_v7, %v896_v2  ;;  %v587_v12 = vpop.f32.mrb[14].mxu0  ;;  %v1840_v13 = vpop.f32.mrb[14].mxu1 }
 0x12f   :  { %v1098_v14 = vsel %vm815_vm0, %v1029_v8, 0.0  ;;  %823 = vst.msk [vmem:[%s2344_s2 + $0x38] sm:$0xff] %vm815_vm0, %v587_v12  ;;  %v899_v15 = vsel %vm815_vm0, %v587_v12, 0.0  ;;  %v1030_v16 = vmul.f32 %v587_v12, %v587_v12  ;;  %v589_v17 = vpop.f32.mrb[15].mxu0  ;;  %855 = vst.msk [vmem:[%s2344_s2 + $0x138] sm:$0xff] %vm815_vm0, %v1840_v13  ;;  %v717_v19 = vpop.f32.mrb[15].mxu1 }
 0x130   :  { %v1099_v20 = vadd.f32 %v1098_v14, %v1097_v4  ;;  %v900_v21 = vadd.f32 %v899_v15, %v898_v11 }
 0x131   :  { %v1100_v22 = vsel %vm815_vm0, %v1030_v16, 0.0 }
 0x132   :  { %v1101_v24 = vadd.f32 %v1100_v22, %v1099_v20 }
 0x134   :  { %v592_v25 = vpop.f32.mrb[16].mxu0  ;;  %v1854_v26 = vpop.f32.mrb[16].mxu1 }
 0x135   :  { %824 = vst.msk [vmem:[%s2344_s2 + $0x40] sm:$0xff] %vm815_vm0, %v592_v25  ;;  %v901_v27 = vsel %vm815_vm0, %v592_v25, 0.0  ;;  %v1031_v28 = vmul.f32 %v592_v25, %v592_v25  ;;  %v594_v29 = vpop.f32.mrb[17].mxu0  ;;  %856 = vst.msk [vmem:[%s2344_s2 + $0x140] sm:$0xff] %vm815_vm0, %v1854_v26  ;;  %v722_v30 = vpop.f32.mrb[17].mxu1 }
 0x136   :  { %v902_v31 = vadd.f32 %v901_v27, %v900_v21  ;;  %v595_v32 = vpop.f32.mrb[18].mxu0  ;;  %v1866_v33 = vpop.f32.mrb[18].mxu1 }
 0x137   :  { %v1102_v35 = vsel %vm815_vm0, %v1031_v28, 0.0  ;;  %825 = vst.msk [vmem:[%s2344_s2 + $0x48] sm:$0xff] %vm815_vm0, %v595_v32  ;;  %v903_v36 = vsel %vm815_vm0, %v595_v32, 0.0  ;;  %v1032_v37 = vmul.f32 %v595_v32, %v595_v32  ;;  %v597_v38 = vpop.f32.mrb[19].mxu0  ;;  %857 = vst.msk [vmem:[%s2344_s2 + $0x148] sm:$0xff] %vm815_vm0, %v1866_v33  ;;  %v725_v39 = vpop.f32.mrb[19].mxu1 }
 0x138   :  { %v1103_v40 = vadd.f32 %v1102_v35, %v1101_v24  ;;  %v904_v42 = vadd.f32 %v903_v36, %v902_v31 }
 0x139   :  { %v1104_v43 = vsel %vm815_vm0, %v1032_v37, 0.0 }
 0x13a   :  { %v1105_v44 = vadd.f32 %v1104_v43, %v1103_v40 }
 0x13c   :  { %v600_v45 = vpop.f32.mrb[20].mxu0  ;;  %v1880_v46 = vpop.f32.mrb[20].mxu1 }
 0x13d   :  { %826 = vst.msk [vmem:[%s2344_s2 + $0x50] sm:$0xff] %vm815_vm0, %v600_v45  ;;  %v905_v47 = vsel %vm815_vm0, %v600_v45, 0.0  ;;  %v1033_v48 = vmul.f32 %v600_v45, %v600_v45  ;;  %v602_v49 = vpop.f32.mrb[21].mxu0  ;;  %858 = vst.msk [vmem:[%s2344_s2 + $0x150] sm:$0xff] %vm815_vm0, %v1880_v46  ;;  %v730_v50 = vpop.f32.mrb[21].mxu1  ;;  %v1457_v45 = vmov 0.0  }
 0x13e   :  { %v906_v51 = vadd.f32 %v905_v47, %v904_v42  ;;  %v603_v53 = vpop.f32.mrb[22].mxu0  ;;  %v1892_v54 = vpop.f32.mrb[22].mxu1  ;;  %884 = vst.msk [vmem:[%s2345_s3] sm:$0xff] %vm815_vm0, %v1457_v45 }
 0x13f   :  { %v1106_v55 = vsel %vm815_vm0, %v1033_v48, 0.0  ;;  %827 = vst.msk [vmem:[%s2344_s2 + $0x58] sm:$0xff] %vm815_vm0, %v603_v53  ;;  %v907_v56 = vsel %vm815_vm0, %v603_v53, 0.0  ;;  %v1034_v57 = vmul.f32 %v603_v53, %v603_v53  ;;  %v605_v58 = vpop.f32.mrb[23].mxu0  ;;  %859 = vst.msk [vmem:[%s2344_s2 + $0x158] sm:$0xff] %vm815_vm0, %v1892_v54  ;;  %v733_v60 = vpop.f32.mrb[23].mxu1 }
 0x140   :  { %v1107_v61 = vadd.f32 %v1106_v55, %v1105_v44  ;;  %v908_v62 = vadd.f32 %v907_v56, %v906_v51 }
 0x141   :  { %v1108_v63 = vsel %vm815_vm0, %v1034_v57, 0.0 }
 0x142   :  { %v1109_v0 = vadd.f32 %v1108_v63, %v1107_v61 }
 0x144   :  { %v608_v1 = vpop.f32.mrb[24].mxu0  ;;  %v1906_v2 = vpop.f32.mrb[24].mxu1 }
 0x145   :  { %828 = vst.msk [vmem:[%s2344_s2 + $0x60] sm:$0xff] %vm815_vm0, %v608_v1  ;;  %v909_v3 = vsel %vm815_vm0, %v608_v1, 0.0  ;;  %v1035_v4 = vmul.f32 %v608_v1, %v608_v1  ;;  %v610_v5 = vpop.f32.mrb[25].mxu0  ;;  %860 = vst.msk [vmem:[%s2344_s2 + $0x160] sm:$0xff] %vm815_vm0, %v1906_v2  ;;  %v738_v7 = vpop.f32.mrb[25].mxu1 }
 0x146   :  { %v910_v8 = vadd.f32 %v909_v3, %v908_v62  ;;  %v611_v9 = vpop.f32.mrb[26].mxu0  ;;  %v1918_v10 = vpop.f32.mrb[26].mxu1 }
 0x147   :  { %v1110_v11 = vsel %vm815_vm0, %v1035_v4, 0.0  ;;  %829 = vst.msk [vmem:[%s2344_s2 + $0x68] sm:$0xff] %vm815_vm0, %v611_v9  ;;  %v911_v12 = vsel %vm815_vm0, %v611_v9, 0.0  ;;  %v1036_v14 = vmul.f32 %v611_v9, %v611_v9  ;;  %v613_v15 = vpop.f32.mrb[27].mxu0  ;;  %861 = vst.msk [vmem:[%s2344_s2 + $0x168] sm:$0xff] %vm815_vm0, %v1918_v10  ;;  %v741_v16 = vpop.f32.mrb[27].mxu1 }
 0x148   :  { %v1111_v17 = vadd.f32 %v1110_v11, %v1109_v0  ;;  %v912_v19 = vadd.f32 %v911_v12, %v910_v8 }
 0x149   :  { %v1112_v20 = vsel %vm815_vm0, %v1036_v14, 0.0 }
 0x14a   :  { %v1113_v21 = vadd.f32 %v1112_v20, %v1111_v17 }
 0x14c   :  { %v616_v22 = vpop.f32.mrb[28].mxu0  ;;  %v1932_v24 = vpop.f32.mrb[28].mxu1 }
 0x14d   :  { %830 = vst.msk [vmem:[%s2344_s2 + $0x70] sm:$0xff] %vm815_vm0, %v616_v22  ;;  %v913_v25 = vsel %vm815_vm0, %v616_v22, 0.0  ;;  %v1037_v27 = vmul.f32 %v616_v22, %v616_v22  ;;  %v618_v28 = vpop.f32.mrb[29].mxu0  ;;  %862 = vst.msk [vmem:[%s2344_s2 + $0x170] sm:$0xff] %vm815_vm0, %v1932_v24  ;;  %v746_v29 = vpop.f32.mrb[29].mxu1 }
 0x14e   :  { %v914_v30 = vadd.f32 %v913_v25, %v912_v19  ;;  %v619_v31 = vpop.f32.mrb[30].mxu0  ;;  %v1944_v32 = vpop.f32.mrb[30].mxu1 }
 0x14f   :  { %v1114_v35 = vsel %vm815_vm0, %v1037_v27, 0.0  ;;  %831 = vst.msk [vmem:[%s2344_s2 + $0x78] sm:$0xff] %vm815_vm0, %v619_v31  ;;  %v915_v36 = vsel %vm815_vm0, %v619_v31, 0.0  ;;  %v1038_v37 = vmul.f32 %v619_v31, %v619_v31  ;;  %v621_v38 = vpop.f32.mrb[31].mxu0  ;;  %863 = vst.msk [vmem:[%s2344_s2 + $0x178] sm:$0xff] %vm815_vm0, %v1944_v32  ;;  %v749_v39 = vpop.f32.mrb[31].mxu1 }
 0x150   :  { %v1115_v40 = vadd.f32 %v1114_v35, %v1113_v21  ;;  %v916_v42 = vadd.f32 %v915_v36, %v914_v30 }
 0x151   :  { %v1116_v43 = vsel %vm815_vm0, %v1038_v37, 0.0 }
 0x152   :  { %v1117_v44 = vadd.f32 %v1116_v43, %v1115_v40 }
 0x154   :  { %v624_v47 = vpop.f32.mrb[32].mxu0  ;;  %v1962_v48 = vpop.f32.mrb[32].mxu1 }
 0x155   :  { %832 = vst.msk [vmem:[%s2344_s2 + $0x80] sm:$0xff] %vm815_vm0, %v624_v47  ;;  %v917_v49 = vsel %vm815_vm0, %v624_v47, 0.0  ;;  %v1039_v50 = vmul.f32 %v624_v47, %v624_v47  ;;  %v626_v51 = vpop.f32.mrb[33].mxu0  ;;  %864 = vst.msk [vmem:[%s2344_s2 + $0x180] sm:$0xff] %vm815_vm0, %v1962_v48  ;;  %v754_v53 = vpop.f32.mrb[33].mxu1 }
 0x156   :  { %v918_v55 = vadd.f32 %v917_v49, %v916_v42  ;;  %v627_v56 = vpop.f32.mrb[34].mxu0  ;;  %v1974_v57 = vpop.f32.mrb[34].mxu1 }
 0x157   :  { %v1118_v58 = vsel %vm815_vm0, %v1039_v50, 0.0  ;;  %833 = vst.msk [vmem:[%s2344_s2 + $0x88] sm:$0xff] %vm815_vm0, %v627_v56  ;;  %v919_v60 = vsel %vm815_vm0, %v627_v56, 0.0  ;;  %v1040_v61 = vmul.f32 %v627_v56, %v627_v56  ;;  %v629_v62 = vpop.f32.mrb[35].mxu0  ;;  %865 = vst.msk [vmem:[%s2344_s2 + $0x188] sm:$0xff] %vm815_vm0, %v1974_v57  ;;  %v757_v63 = vpop.f32.mrb[35].mxu1 }
 0x158   :  { %v1119_v0 = vadd.f32 %v1118_v58, %v1117_v44  ;;  %v920_v1 = vadd.f32 %v919_v60, %v918_v55 }
 0x159   :  { %v1120_v3 = vsel %vm815_vm0, %v1040_v61, 0.0 }
 0x15a   :  { %v1121_v4 = vadd.f32 %v1120_v3, %v1119_v0 }
 0x15c   :  { %v632_v5 = vpop.f32.mrb[36].mxu0  ;;  %v1988_v7 = vpop.f32.mrb[36].mxu1 }
 0x15d   :  { %834 = vst.msk [vmem:[%s2344_s2 + $0x90] sm:$0xff] %vm815_vm0, %v632_v5  ;;  %v921_v8 = vsel %vm815_vm0, %v632_v5, 0.0  ;;  %v1041_v9 = vmul.f32 %v632_v5, %v632_v5  ;;  %v634_v11 = vpop.f32.mrb[37].mxu0  ;;  %866 = vst.msk [vmem:[%s2344_s2 + $0x190] sm:$0xff] %vm815_vm0, %v1988_v7  ;;  %v762_v12 = vpop.f32.mrb[37].mxu1 }
 0x15e   :  { %v922_v14 = vadd.f32 %v921_v8, %v920_v1  ;;  %v635_v15 = vpop.f32.mrb[38].mxu0  ;;  %v2000_v16 = vpop.f32.mrb[38].mxu1 }
 0x15f   :  { %v1122_v17 = vsel %vm815_vm0, %v1041_v9, 0.0  ;;  %835 = vst.msk [vmem:[%s2344_s2 + $0x98] sm:$0xff] %vm815_vm0, %v635_v15  ;;  %v923_v19 = vsel %vm815_vm0, %v635_v15, 0.0  ;;  %v1042_v20 = vmul.f32 %v635_v15, %v635_v15  ;;  %v637_v21 = vpop.f32.mrb[39].mxu0  ;;  %867 = vst.msk [vmem:[%s2344_s2 + $0x198] sm:$0xff] %vm815_vm0, %v2000_v16  ;;  %v765_v22 = vpop.f32.mrb[39].mxu1 }
 0x160   :  { %v1123_v25 = vadd.f32 %v1122_v17, %v1121_v4  ;;  %v924_v27 = vadd.f32 %v923_v19, %v922_v14 }
 0x161   :  { %v1124_v28 = vsel %vm815_vm0, %v1042_v20, 0.0 }
 0x162   :  { %v1125_v29 = vadd.f32 %v1124_v28, %v1123_v25 }
 0x164   :  { %v640_v30 = vpop.f32.mrb[40].mxu0  ;;  %v2014_v31 = vpop.f32.mrb[40].mxu1 }
 0x165   :  { %836 = vst.msk [vmem:[%s2344_s2 + $0xa0] sm:$0xff] %vm815_vm0, %v640_v30  ;;  %v925_v35 = vsel %vm815_vm0, %v640_v30, 0.0  ;;  %v1043_v36 = vmul.f32 %v640_v30, %v640_v30  ;;  %v642_v37 = vpop.f32.mrb[41].mxu0  ;;  %868 = vst.msk [vmem:[%s2344_s2 + $0x1a0] sm:$0xff] %vm815_vm0, %v2014_v31  ;;  %v770_v38 = vpop.f32.mrb[41].mxu1 }
 0x166   :  { %v926_v39 = vadd.f32 %v925_v35, %v924_v27  ;;  %v643_v40 = vpop.f32.mrb[42].mxu0  ;;  %v2026_v42 = vpop.f32.mrb[42].mxu1 }
 0x167   :  { %v1126_v43 = vsel %vm815_vm0, %v1043_v36, 0.0  ;;  %837 = vst.msk [vmem:[%s2344_s2 + $0xa8] sm:$0xff] %vm815_vm0, %v643_v40  ;;  %v927_v44 = vsel %vm815_vm0, %v643_v40, 0.0  ;;  %v1044_v45 = vmul.f32 %v643_v40, %v643_v40  ;;  %v645_v47 = vpop.f32.mrb[43].mxu0  ;;  %869 = vst.msk [vmem:[%s2344_s2 + $0x1a8] sm:$0xff] %vm815_vm0, %v2026_v42  ;;  %v773_v49 = vpop.f32.mrb[43].mxu1 }
 0x168   :  { %v1127_v50 = vadd.f32 %v1126_v43, %v1125_v29  ;;  %v928_v51 = vadd.f32 %v927_v44, %v926_v39 }
 0x169   :  { %v1128_v53 = vsel %vm815_vm0, %v1044_v45, 0.0 }
 0x16a   :  { %v1129_v55 = vadd.f32 %v1128_v53, %v1127_v50 }
 0x16c   :  { %v648_v56 = vpop.f32.mrb[44].mxu0  ;;  %v2040_v58 = vpop.f32.mrb[44].mxu1 }
 0x16d   :  { %838 = vst.msk [vmem:[%s2344_s2 + $0xb0] sm:$0xff] %vm815_vm0, %v648_v56  ;;  %v929_v60 = vsel %vm815_vm0, %v648_v56, 0.0  ;;  %v1045_v61 = vmul.f32 %v648_v56, %v648_v56  ;;  %v650_v62 = vpop.f32.mrb[45].mxu0  ;;  %870 = vst.msk [vmem:[%s2344_s2 + $0x1b0] sm:$0xff] %vm815_vm0, %v2040_v58  ;;  %v778_v63 = vpop.f32.mrb[45].mxu1 }
 0x16e   :  { %v930_v0 = vadd.f32 %v929_v60, %v928_v51  ;;  %v651_v1 = vpop.f32.mrb[46].mxu0  ;;  %v2052_v3 = vpop.f32.mrb[46].mxu1 }
 0x16f   :  { %v1130_v4 = vsel %vm815_vm0, %v1045_v61, 0.0  ;;  %839 = vst.msk [vmem:[%s2344_s2 + $0xb8] sm:$0xff] %vm815_vm0, %v651_v1  ;;  %v931_v5 = vsel %vm815_vm0, %v651_v1, 0.0  ;;  %v1046_v8 = vmul.f32 %v651_v1, %v651_v1  ;;  %v653_v9 = vpop.f32.mrb[47].mxu0  ;;  %871 = vst.msk [vmem:[%s2344_s2 + $0x1b8] sm:$0xff] %vm815_vm0, %v2052_v3  ;;  %v781_v11 = vpop.f32.mrb[47].mxu1 }
 0x170   :  { %v1131_v12 = vadd.f32 %v1130_v4, %v1129_v55  ;;  %v932_v14 = vadd.f32 %v931_v5, %v930_v0 }
 0x171   :  { %v1132_v15 = vsel %vm815_vm0, %v1046_v8, 0.0 }
 0x172   :  { %v1133_v17 = vadd.f32 %v1132_v15, %v1131_v12 }
 0x174   :  { %v656_v19 = vpop.f32.mrb[48].mxu0  ;;  %v2066_v20 = vpop.f32.mrb[48].mxu1 }
 0x175   :  { %840 = vst.msk [vmem:[%s2344_s2 + $0xc0] sm:$0xff] %vm815_vm0, %v656_v19  ;;  %v933_v21 = vsel %vm815_vm0, %v656_v19, 0.0  ;;  %v1047_v22 = vmul.f32 %v656_v19, %v656_v19  ;;  %v658_v25 = vpop.f32.mrb[49].mxu0  ;;  %872 = vst.msk [vmem:[%s2344_s2 + $0x1c0] sm:$0xff] %vm815_vm0, %v2066_v20  ;;  %v786_v27 = vpop.f32.mrb[49].mxu1 }
 0x176   :  { %v934_v28 = vadd.f32 %v933_v21, %v932_v14  ;;  %v659_v29 = vpop.f32.mrb[50].mxu0  ;;  %v2078_v30 = vpop.f32.mrb[50].mxu1 }
 0x177   :  { %v1134_v35 = vsel %vm815_vm0, %v1047_v22, 0.0  ;;  %841 = vst.msk [vmem:[%s2344_s2 + $0xc8] sm:$0xff] %vm815_vm0, %v659_v29  ;;  %v935_v36 = vsel %vm815_vm0, %v659_v29, 0.0  ;;  %v1048_v37 = vmul.f32 %v659_v29, %v659_v29  ;;  %v661_v38 = vpop.f32.mrb[51].mxu0  ;;  %873 = vst.msk [vmem:[%s2344_s2 + $0x1c8] sm:$0xff] %vm815_vm0, %v2078_v30  ;;  %v789_v39 = vpop.f32.mrb[51].mxu1 }
 0x178   :  { %v1135_v40 = vadd.f32 %v1134_v35, %v1133_v17  ;;  %v936_v43 = vadd.f32 %v935_v36, %v934_v28 }
 0x179   :  { %v1136_v44 = vsel %vm815_vm0, %v1048_v37, 0.0 }
 0x17a   :  { %v1137_v45 = vadd.f32 %v1136_v44, %v1135_v40 }
 0x17c   :  { %v664_v47 = vpop.f32.mrb[52].mxu0  ;;  %v2092_v49 = vpop.f32.mrb[52].mxu1 }
 0x17d   :  { %842 = vst.msk [vmem:[%s2344_s2 + $0xd0] sm:$0xff] %vm815_vm0, %v664_v47  ;;  %v937_v50 = vsel %vm815_vm0, %v664_v47, 0.0  ;;  %v1049_v51 = vmul.f32 %v664_v47, %v664_v47  ;;  %v666_v53 = vpop.f32.mrb[53].mxu0  ;;  %874 = vst.msk [vmem:[%s2344_s2 + $0x1d0] sm:$0xff] %vm815_vm0, %v2092_v49  ;;  %v794_v55 = vpop.f32.mrb[53].mxu1 }
 0x17e   :  { %v938_v56 = vadd.f32 %v937_v50, %v936_v43  ;;  %v667_v60 = vpop.f32.mrb[54].mxu0  ;;  %v2104_v61 = vpop.f32.mrb[54].mxu1 }
 0x17f   :  { %v1138_v62 = vsel %vm815_vm0, %v1049_v51, 0.0  ;;  %843 = vst.msk [vmem:[%s2344_s2 + $0xd8] sm:$0xff] %vm815_vm0, %v667_v60  ;;  %v939_v63 = vsel %vm815_vm0, %v667_v60, 0.0  ;;  %v1050_v0 = vmul.f32 %v667_v60, %v667_v60  ;;  %v669_v1 = vpop.f32.mrb[55].mxu0  ;;  %875 = vst.msk [vmem:[%s2344_s2 + $0x1d8] sm:$0xff] %vm815_vm0, %v2104_v61  ;;  %v797_v4 = vpop.f32.mrb[55].mxu1 }
 0x180   :  { %v1139_v5 = vadd.f32 %v1138_v62, %v1137_v45  ;;  %v940_v8 = vadd.f32 %v939_v63, %v938_v56  ;;  %v1055_v62 = vmul.f32 %v1750_v18, %v1750_v18 }
 0x181   :  { %v1140_v9 = vsel %vm815_vm0, %v1050_v0, 0.0 }
 0x182   :  { %v1141_v11 = vadd.f32 %v1140_v9, %v1139_v5 }
 0x184   :  { %v672_v12 = vpop.f32.mrb[56].mxu0  ;;  %v2118_v14 = vpop.f32.mrb[56].mxu1 }
 0x185   :  { %844 = vst.msk [vmem:[%s2344_s2 + $0xe0] sm:$0xff] %vm815_vm0, %v672_v12  ;;  %v941_v15 = vsel %vm815_vm0, %v672_v12, 0.0  ;;  %v1051_v17 = vmul.f32 %v672_v12, %v672_v12  ;;  %v674_v19 = vpop.f32.mrb[57].mxu0  ;;  %876 = vst.msk [vmem:[%s2344_s2 + $0x1e0] sm:$0xff] %vm815_vm0, %v2118_v14  ;;  %v802_v21 = vpop.f32.mrb[57].mxu1  ;;  %v1056_v12 = vmul.f32 %v1761_v23, %v1761_v23 }
 0x186   :  { %v942_v22 = vadd.f32 %v941_v15, %v940_v8  ;;  %v675_v25 = vpop.f32.mrb[58].mxu0  ;;  %v2130_v27 = vpop.f32.mrb[58].mxu1  ;;  %v1150_v21 = vsel %vm815_vm0, %v1055_v62, 0.0 }
 0x187   :  { %v1142_v28 = vsel %vm815_vm0, %v1051_v17, 0.0  ;;  %845 = vst.msk [vmem:[%s2344_s2 + $0xe8] sm:$0xff] %vm815_vm0, %v675_v25  ;;  %v943_v29 = vsel %vm815_vm0, %v675_v25, 0.0  ;;  %v1052_v35 = vmul.f32 %v675_v25, %v675_v25  ;;  %v677_v36 = vpop.f32.mrb[59].mxu0  ;;  %877 = vst.msk [vmem:[%s2344_s2 + $0x1e8] sm:$0xff] %vm815_vm0, %v2130_v27  ;;  %v805_v37 = vpop.f32.mrb[59].mxu1  ;;  %v1057_v25 = vmul.f32 %v1776_v34, %v1776_v34 }
 0x188   :  { %v1143_v38 = vadd.f32 %v1142_v28, %v1141_v11  ;;  %v944_v39 = vadd.f32 %v943_v29, %v942_v22  ;;  %v949_v11 = vsel %vm815_vm0, %v1750_v18, 0.0  ;;  %v951_v22 = vsel %vm815_vm0, %v1761_v23, 0.0 }
 0x189   :  { %v1144_v40 = vsel %vm815_vm0, %v1052_v35, 0.0  ;;  %v1152_v35 = vsel %vm815_vm0, %v1056_v12, 0.0  ;;  %v953_v18 = vsel %vm815_vm0, %v1776_v34, 0.0  ;;  %v1058_v36 = vmul.f32 %v1788_v41, %v1788_v41 }
 0x18a   :  { %v1145_v43 = vadd.f32 %v1144_v40, %v1143_v38  ;;  %v955_v23 = vsel %vm815_vm0, %v1788_v41, 0.0  ;;  %v1059_v40 = vmul.f32 %v1802_v52, %v1802_v52  ;;  %v957_v34 = vsel %vm815_vm0, %v1802_v52, 0.0 }
 0x18b   :  { %v959_v41 = vsel %vm815_vm0, %v1814_v59, 0.0  ;;  %v961_v52 = vsel %vm815_vm0, %v1828_v6, 0.0 }
 0x18c   :  { %v680_v44 = vpop.f32.mrb[60].mxu0  ;;  %v2144_v45 = vpop.f32.mrb[60].mxu1 }
 0x18d   :  { %846 = vst.msk [vmem:[%s2344_s2 + $0xf0] sm:$0xff] %vm815_vm0, %v680_v44  ;;  %v945_v47 = vsel %vm815_vm0, %v680_v44, 0.0  ;;  %v1053_v50 = vmul.f32 %v680_v44, %v680_v44  ;;  %v682_v51 = vpop.f32.mrb[61].mxu0  ;;  %878 = vst.msk [vmem:[%s2344_s2 + $0x1f0] sm:$0xff] %vm815_vm0, %v2144_v45  ;;  %v810_v53 = vpop.f32.mrb[61].mxu1 }
 0x18e   :  { %v946_v55 = vadd.f32 %v945_v47, %v944_v39  ;;  %v683_v56 = vpop.f32.mrb[62].mxu0  ;;  %v2156_v60 = vpop.f32.mrb[62].mxu1  ;;  %v1154_v39 = vsel %vm815_vm0, %v1057_v25, 0.0  ;;  %v1156_v47 = vsel %vm815_vm0, %v1058_v36, 0.0  ;;  %v1065_v25 = vmul.f32 %v1880_v46, %v1880_v46 }
 0x18f   :  { %v1146_v63 = vsel %vm815_vm0, %v1053_v50, 0.0  ;;  %847 = vst.msk [vmem:[%s2344_s2 + $0xf8] sm:$0xff] %vm815_vm0, %v683_v56  ;;  %v947_v0 = vsel %vm815_vm0, %v683_v56, 0.0  ;;  %v1054_v1 = vmul.f32 %v683_v56, %v683_v56  ;;  %v685_v4 = vpop.f32.mrb[63].mxu0  ;;  %879 = vst.msk [vmem:[%s2344_s2 + $0x1f8] sm:$0xff] %vm815_vm0, %v2156_v60  ;;  %v813_v5 = vpop.f32.mrb[63].mxu1  ;;  %v1060_v50 = vmul.f32 %v1814_v59, %v1814_v59 }
 0x190   :  { %v1147_v8 = vadd.f32 %v1146_v63, %v1145_v43  ;;  %v948_v9 = vadd.f32 %v947_v0, %v946_v55  ;;  %v1158_v55 = vsel %vm815_vm0, %v1059_v40, 0.0  ;;  %v1061_v56 = vmul.f32 %v1828_v6, %v1828_v6 }
 0x191   :  { %v1148_v15 = vsel %vm815_vm0, %v1054_v1, 0.0  ;;  %v1160_v0 = vsel %vm815_vm0, %v1060_v50, 0.0  ;;  %v1062_v1 = vmul.f32 %v1840_v13, %v1840_v13  ;;  %v963_v59 = vsel %vm815_vm0, %v1840_v13, 0.0 }
 0x192   :  { %v950_v17 = vadd.f32 %v949_v11, %v948_v9  ;;  %v1149_v19 = vadd.f32 %v1148_v15, %v1147_v8  ;;  %v1162_v8 = vsel %vm815_vm0, %v1061_v56, 0.0  ;;  %v1063_v9 = vmul.f32 %v1854_v26, %v1854_v26 }
 0x193   :  { %v1164_v15 = vsel %vm815_vm0, %v1062_v1, 0.0  ;;  %v965_v6 = vsel %vm815_vm0, %v1854_v26, 0.0  ;;  %v967_v13 = vsel %vm815_vm0, %v1866_v33, 0.0  ;;  %v969_v26 = vsel %vm815_vm0, %v1880_v46, 0.0 }
 0x194   :  { %v952_v28 = vadd.f32 %v951_v22, %v950_v17  ;;  %v1151_v29 = vadd.f32 %v1150_v21, %v1149_v19  ;;  %v1064_v17 = vmul.f32 %v1866_v33, %v1866_v33  ;;  %v1166_v22 = vsel %vm815_vm0, %v1063_v9, 0.0 }
 0x195   :  { %v971_v33 = vsel %vm815_vm0, %v1892_v54, 0.0  ;;  %v973_v46 = vsel %vm815_vm0, %v1906_v2, 0.0  ;;  %v1070_v56 = vmul.f32 %v1944_v32, %v1944_v32 }
 0x196   :  { %v954_v37 = vadd.f32 %v953_v18, %v952_v28  ;;  %v1153_v38 = vadd.f32 %v1152_v35, %v1151_v29  ;;  %v1168_v35 = vsel %vm815_vm0, %v1064_v17, 0.0  ;;  %v1066_v18 = vmul.f32 %v1892_v54, %v1892_v54 }
 0x197   :  { %v975_v54 = vsel %vm815_vm0, %v1918_v10, 0.0 }
 0x198   :  { %v956_v43 = vadd.f32 %v955_v23, %v954_v37  ;;  %v1155_v44 = vadd.f32 %v1154_v39, %v1153_v38  ;;  %v1170_v38 = vsel %vm815_vm0, %v1065_v25, 0.0  ;;  %v1067_v39 = vmul.f32 %v1906_v2, %v1906_v2 }
 0x199   :  { %v977_v2 = vsel %vm815_vm0, %v1932_v24, 0.0  ;;  %v1075_v25 = vmul.f32 %v2014_v31, %v2014_v31 }
 0x19a   :  { %v958_v51 = vadd.f32 %v957_v34, %v956_v43  ;;  %v1157_v53 = vadd.f32 %v1156_v47, %v1155_v44  ;;  %v1172_v43 = vsel %vm815_vm0, %v1066_v18, 0.0  ;;  %v1068_v44 = vmul.f32 %v1918_v10, %v1918_v10 }
 0x19b   :  { %v1174_v50 = vsel %vm815_vm0, %v1067_v39, 0.0  ;;  %v979_v10 = vsel %vm815_vm0, %v1944_v32, 0.0  ;;  %v983_v32 = vsel %vm815_vm0, %v1974_v57, 0.0 }
 0x19c   :  { %v960_v62 = vadd.f32 %v959_v41, %v958_v51  ;;  %v1159_v63 = vadd.f32 %v1158_v55, %v1157_v53  ;;  %v1069_v51 = vmul.f32 %v1932_v24, %v1932_v24  ;;  %v1176_v41 = vsel %vm815_vm0, %v1068_v44, 0.0 }
 0x19d   :  { %v981_v24 = vsel %vm815_vm0, %v1962_v48, 0.0 }
 0x19e   :  { %v962_v4 = vadd.f32 %v961_v52, %v960_v62  ;;  %v1161_v5 = vadd.f32 %v1160_v0, %v1159_v63  ;;  %v1178_v0 = vsel %vm815_vm0, %v1069_v51, 0.0  ;;  %v1071_v52 = vmul.f32 %v1962_v48, %v1962_v48 }
 0x19f   :  { %v985_v48 = vsel %vm815_vm0, %v1988_v7, 0.0  ;;  %v1080_v51 = vmul.f32 %v2078_v30, %v2078_v30 }
 0x1a0   :  { %v964_v11 = vadd.f32 %v963_v59, %v962_v4  ;;  %v1163_v12 = vadd.f32 %v1162_v8, %v1161_v5  ;;  %v1180_v5 = vsel %vm815_vm0, %v1070_v56, 0.0  ;;  %v1072_v8 = vmul.f32 %v1974_v57, %v1974_v57 }
 0x1a1   :  { %v987_v57 = vsel %vm815_vm0, %v2000_v16, 0.0 }
 0x1a2   :  { %v1165_v19 = vadd.f32 %v1164_v15, %v1163_v12  ;;  %v966_v21 = vadd.f32 %v965_v6, %v964_v11  ;;  %v1182_v11 = vsel %vm815_vm0, %v1071_v52, 0.0  ;;  %v1073_v12 = vmul.f32 %v1988_v7, %v1988_v7 }
 0x1a3   :  { %v1184_v17 = vsel %vm815_vm0, %v1072_v8, 0.0  ;;  %v989_v7 = vsel %vm815_vm0, %v2014_v31, 0.0  ;;  %v993_v31 = vsel %vm815_vm0, %v2040_v58, 0.0 }
 0x1a4   :  { %v968_v28 = vadd.f32 %v967_v13, %v966_v21  ;;  %v1167_v29 = vadd.f32 %v1166_v22, %v1165_v19  ;;  %v1074_v19 = vmul.f32 %v2000_v16, %v2000_v16  ;;  %v1186_v13 = vsel %vm815_vm0, %v1073_v12, 0.0 }
 0x1a5   :  { %v991_v16 = vsel %vm815_vm0, %v2026_v42, 0.0  ;;  %v1007_v12 = vsel %vm815_vm0, %v2130_v27, 0.0 }
 0x1a6   :  { %v970_v36 = vadd.f32 %v969_v26, %v968_v28  ;;  %v1169_v37 = vadd.f32 %v1168_v35, %v1167_v29  ;;  %v1188_v35 = vsel %vm815_vm0, %v1074_v19, 0.0  ;;  %v1076_v26 = vmul.f32 %v2026_v42, %v2026_v42 }
 0x1a7   :  { %v995_v42 = vsel %vm815_vm0, %v2052_v3, 0.0  ;;  %v1086_v19 = vmul.f32 %v2156_v60, %v2156_v60 }
 0x1a8   :  { %v972_v23 = vadd.f32 %v971_v33, %v970_v36  ;;  %v1171_v40 = vadd.f32 %v1170_v38, %v1169_v37  ;;  %v1190_v37 = vsel %vm815_vm0, %v1075_v25, 0.0  ;;  %v1077_v38 = vmul.f32 %v2040_v58, %v2040_v58 }
 0x1a9   :  { %v997_v58 = vsel %vm815_vm0, %v2066_v20, 0.0 }
 0x1aa   :  { %v974_v47 = vadd.f32 %v973_v46, %v972_v23  ;;  %v1173_v34 = vadd.f32 %v1172_v43, %v1171_v40  ;;  %v1192_v23 = vsel %vm815_vm0, %v1076_v26, 0.0  ;;  %v1078_v40 = vmul.f32 %v2052_v3, %v2052_v3 }
 0x1ab   :  { %v1194_v44 = vsel %vm815_vm0, %v1077_v38, 0.0  ;;  %v999_v3 = vsel %vm815_vm0, %v2078_v30, 0.0  ;;  %v1003_v30 = vsel %vm815_vm0, %v2104_v61, 0.0  ;;  %v885_v38 = vld [vmem:[%s2345_s3] sm:$0x1] }
 0x1ac   :  { %v976_v53 = vadd.f32 %v975_v54, %v974_v47  ;;  %v1175_v55 = vadd.f32 %v1174_v50, %v1173_v34  ;;  %v1079_v47 = vmul.f32 %v2066_v20, %v2066_v20  ;;  %v1196_v54 = vsel %vm815_vm0, %v1078_v40, 0.0 }
 0x1ad   :  { %v1001_v20 = vsel %vm815_vm0, %v2092_v49, 0.0 }
 0x1ae   :  { %v978_v62 = vadd.f32 %v977_v2, %v976_v53  ;;  %v1177_v63 = vadd.f32 %v1176_v41, %v1175_v55  ;;  %v1198_v41 = vsel %vm815_vm0, %v1079_v47, 0.0  ;;  %v1081_v2 = vmul.f32 %v2092_v49, %v2092_v49 }
 0x1af   :  { %v1005_v49 = vsel %vm815_vm0, %v2118_v14, 0.0 }
 0x1b0   :  { %v980_v1 = vadd.f32 %v979_v10, %v978_v62  ;;  %v1179_v4 = vadd.f32 %v1178_v0, %v1177_v63  ;;  %v1200_v63 = vsel %vm815_vm0, %v1080_v51, 0.0  ;;  %v1082_v0 = vmul.f32 %v2104_v61, %v2104_v61 }
 0x1b2   :  { %v982_v59 = vadd.f32 %v981_v24, %v980_v1  ;;  %v1181_v9 = vadd.f32 %v1180_v5, %v1179_v4  ;;  %v1202_v1 = vsel %vm815_vm0, %v1081_v2, 0.0  ;;  %v1083_v4 = vmul.f32 %v2118_v14, %v2118_v14 }
 0x1b3   :  { %v1204_v8 = vsel %vm815_vm0, %v1082_v0, 0.0 }
 0x1b4   :  { %v1183_v15 = vadd.f32 %v1182_v11, %v1181_v9  ;;  %v984_v6 = vadd.f32 %v983_v32, %v982_v59  ;;  %v1084_v59 = vmul.f32 %v2130_v27, %v2130_v27  ;;  %v1085_v9 = vmul.f32 %v2144_v45, %v2144_v45 }
 0x1b5   :  { %v1206_v61 = vsel %vm815_vm0, %v1083_v4, 0.0  ;;  %v1212_v27 = vsel %vm815_vm0, %v1086_v19, 0.0 }
 0x1b6   :  { %v1185_v21 = vadd.f32 %v1184_v17, %v1183_v15  ;;  %v986_v22 = vadd.f32 %v985_v48, %v984_v6  ;;  %v1009_v15 = vsel %vm815_vm0, %v2144_v45, 0.0  ;;  %v1208_v14 = vsel %vm815_vm0, %v1084_v59, 0.0 }
 0x1b7   :  { %v1210_v48 = vsel %vm815_vm0, %v1085_v9, 0.0 }
 0x1b8   :  { %v1187_v28 = vadd.f32 %v1186_v13, %v1185_v21  ;;  %v988_v29 = vadd.f32 %v987_v57, %v986_v22  ;;  %v1011_v13 = vsel %vm815_vm0, %v2156_v60, 0.0 }
 0x1ba   :  { %v1189_v18 = vadd.f32 %v1188_v35, %v1187_v28  ;;  %v990_v36 = vadd.f32 %v989_v7, %v988_v29 }
 0x1bc   :  { %v1191_v33 = vadd.f32 %v1190_v37, %v1189_v18  ;;  %v992_v39 = vadd.f32 %v991_v16, %v990_v36 }
 0x1be   :  { %v1193_v43 = vadd.f32 %v1192_v23, %v1191_v33  ;;  %v994_v46 = vadd.f32 %v993_v31, %v992_v39  ;;  %v1022_v39 = vld [vmem:[%s2345_s3 + $0x1] sm:$0x1] }
 0x1c0   :  { %v1195_v34 = vadd.f32 %v1194_v44, %v1193_v43  ;;  %v996_v50 = vadd.f32 %v995_v42, %v994_v46 }
 0x1c2   :  { %v1197_v53 = vadd.f32 %v1196_v54, %v1195_v34  ;;  %v998_v55 = vadd.f32 %v997_v58, %v996_v50 }
 0x1c4   :  { %v1199_v56 = vadd.f32 %v1198_v41, %v1197_v53  ;;  %v1000_v62 = vadd.f32 %v999_v3, %v998_v55 }
 0x1c6   :  { %v1201_v10 = vadd.f32 %v1200_v63, %v1199_v56  ;;  %v1002_v52 = vadd.f32 %v1001_v20, %v1000_v62 }
 0x1c8   :  { %v1203_v5 = vadd.f32 %v1202_v1, %v1201_v10  ;;  %v1004_v24 = vadd.f32 %v1003_v30, %v1002_v52 }
 0x1ca   :  { %v1205_v11 = vadd.f32 %v1204_v8, %v1203_v5  ;;  %v1006_v32 = vadd.f32 %v1005_v49, %v1004_v24 }
 0x1cc   :  { %v1207_v6 = vadd.f32 %v1206_v61, %v1205_v11  ;;  %v1008_v17 = vadd.f32 %v1007_v12, %v1006_v32 }
 0x1ce   :  { %v1209_v21 = vadd.f32 %v1208_v14, %v1207_v6  ;;  %v1010_v22 = vadd.f32 %v1009_v15, %v1008_v17 }
 0x1d0   :  { %v1211_v57 = vadd.f32 %v1210_v48, %v1209_v21  ;;  %v1012_v25 = vadd.f32 %v1011_v13, %v1010_v22 }
 0x1d2   :  { %v1013_v28 = vrot.slane %v1012_v25, 4  ;;  %v1213_v45 = vadd.f32 %v1212_v27, %v1211_v57 }
 0x1d4   :  { %v1014_v29 = vadd.f32 %v1013_v28, %v1012_v25  ;;  %v1214_v35 = vrot.slane %v1213_v45, 4 }
 0x1d6   :  { %v1015_v7 = vrot.slane %v1014_v29, 2  ;;  %v1215_v26 = vadd.f32 %v1214_v35, %v1213_v45 }
 0x1d8   :  { %v1016_v18 = vadd.f32 %v1015_v7, %v1014_v29  ;;  %v1216_v36 = vrot.slane %v1215_v26, 2 }
 0x1da   :  { %v1017_v37 = vrot.slane %v1016_v18, 1  ;;  %v1217_v16 = vadd.f32 %v1216_v36, %v1215_v26 }
 0x1dc   :  { %v1018_v33 = vadd.f32 %v1017_v37, %v1016_v18  ;;  %v1218_v60 = vrot.slane %v1217_v16, 1 }
 0x1de   :  { %v1019_v23 = vadd.f32 %v1018_v33, %v885_v38  ;;  %v1219_v31 = vadd.f32 %v1218_v60, %v1217_v16 }
 0x1e0   :  { %1021 = vst.msk [vmem:[%s2345_s3] sm:$0x1] %vm1020_vm1, %v1019_v23  ;;  %v1220_v40 = vadd.f32 %v1219_v31, %v1022_v39 }
 0x1e2   :  { %1221 = vst.msk [vmem:[%s2345_s3 + $0x1] sm:$0x1] %vm1020_vm1, %v1220_v40 }

// kernel: forward.14
= control target key start
LH: loop header
LB: loop body
LE: loop exit
PB: predicated region body
PF: predicated region fallthrough
CT: control target
= control target key end

     0   :  { %vm608_vm0 = vcmask 519168   ;;  %s1341_s0 = inlined_call_operand.vmem [shape: f32[464,64], index: 0, kind: input, shape index: {}]   ;;  %s1342_s1 = inlined_call_operand.vmem [shape: f32[1,64], index: 1, kind: input, shape index: {}]   ;;  %s1343_s2 = inlined_call_operand.vmem [shape: f32[1,64], index: 2, kind: input, shape index: {}]   ;;  %s1344_s3 = inlined_call_operand.vmem [shape: bf16[464,64], index: 3, kind: output, shape index: {}]  }
   0x1   :  { %v14_v0 = vld [vmem:[%s1341_s0] sm:$0xff]  ;;  %v15_v4 = vld [vmem:[%s1341_s0 + $0x8] sm:$0xff]  ;;  %v16_v5 = vld [vmem:[%s1341_s0 + $0x10] sm:$0xff] }
   0x2   :  { %v815_v1 = vld [vmem:[%s1342_s1] ss:$0 sm:$0xff]  ;;  %v17_v6 = vld [vmem:[%s1341_s0 + $0x18] sm:$0xff]  ;;  %v19_v11 = vld [vmem:[%s1341_s0 + $0x28] sm:$0xff] }
   0x3   :  { %v820_v2 = vld [vmem:[%s1343_s2] ss:$0 sm:$0xff]  ;;  %v79_v3 = vmul.f32 %v815_v1, %v14_v0  ;;  %v80_v7 = vmul.f32 %v815_v1, %v15_v4  ;;  %v81_v8 = vmul.f32 %v815_v1, %v16_v5  ;;  %v82_v9 = vmul.f32 %v815_v1, %v17_v6  ;;  %v20_v12 = vld [vmem:[%s1341_s0 + $0x30] sm:$0xff]  ;;  %v21_v17 = vld [vmem:[%s1341_s0 + $0x38] sm:$0xff] }
   0x4   :  { %v18_v10 = vld [vmem:[%s1341_s0 + $0x20] sm:$0xff]  ;;  %v84_v15 = vmul.f32 %v815_v1, %v19_v11  ;;  %v85_v16 = vmul.f32 %v815_v1, %v20_v12  ;;  %v86_v21 = vmul.f32 %v815_v1, %v21_v17  ;;  %v23_v34 = vld [vmem:[%s1341_s0 + $0x48] sm:$0xff]  ;;  %v24_v38 = vld [vmem:[%s1341_s0 + $0x50] sm:$0xff] }
   0x5   :  { %v144_v13 = vadd.f32 %v820_v2, %v79_v3  ;;  %v83_v14 = vmul.f32 %v815_v1, %v18_v10  ;;  %v145_v18 = vadd.f32 %v820_v2, %v80_v7  ;;  %v146_v19 = vadd.f32 %v820_v2, %v81_v8  ;;  %v22_v33 = vld [vmem:[%s1341_s0 + $0x40] sm:$0xff]  ;;  %v25_v47 = vld [vmem:[%s1341_s0 + $0x58] sm:$0xff]  ;;  %v27_v62 = vld [vmem:[%s1341_s0 + $0x68] sm:$0xff] }
   0x6   :  { %v147_v20 = vadd.f32 %v820_v2, %v82_v9  ;;  %v149_v24 = vadd.f32 %v820_v2, %v84_v15  ;;  %v150_v42 = vadd.f32 %v820_v2, %v85_v16  ;;  %v151_v44 = vadd.f32 %v820_v2, %v86_v21  ;;  %v26_v58 = vld [vmem:[%s1341_s0 + $0x60] sm:$0xff]  ;;  %v28_v63 = vld [vmem:[%s1341_s0 + $0x70] sm:$0xff]  ;;  %v29_v12 = vld [vmem:[%s1341_s0 + $0x78] sm:$0xff] }
   0x7   :  { %vm202_vm1 = vcmp.ge.f32.partialorder %v144_v13, 0.0  ;;  %v260_v22 = vmul.f32 0.2, %v144_v13  ;;  %v148_v23 = vadd.f32 %v820_v2, %v83_v14  ;;  %vm203_vm2 = vcmp.ge.f32.partialorder %v145_v18, 0.0  ;;  %v31_v14 = vld [vmem:[%s1341_s0 + $0x88] sm:$0xff] }
   0x8   :  { %v261_v25 = vmul.f32 0.2, %v145_v18  ;;  %vm204_vm3 = vcmp.ge.f32.partialorder %v146_v19, 0.0  ;;  %v262_v26 = vmul.f32 0.2, %v146_v19  ;;  %vm205_vm4 = vcmp.ge.f32.partialorder %v147_v20, 0.0 }
   0x9   :  { %v318_v27 = vsel %vm202_vm1, %v144_v13, %v260_v22  ;;  %v263_v28 = vmul.f32 0.2, %v147_v20  ;;  %vm206_vm5 = vcmp.ge.f32.partialorder %v148_v23, 0.0  ;;  %v264_v32 = vmul.f32 0.2, %v148_v23  ;;  %v30_v13 = vld [vmem:[%s1341_s0 + $0x80] sm:$0xff] }
   0xa   :  { %v731_v29 = vpack.c.bf16 %v318_v27, %v318_v27  ;;  %v319_v30 = vsel %vm203_vm2, %v145_v18, %v261_v25  ;;  %v320_v31 = vsel %vm204_vm3, %v146_v19, %v262_v26  ;;  %vm207_vm6 = vcmp.ge.f32.partialorder %v149_v24, 0.0  ;;  %v32_v26 = vld [vmem:[%s1341_s0 + $0x90] sm:$0xff] }
   0xb   :  { %v732_v35 = vpack.c.bf16 %v319_v30, %v319_v30  ;;  %v733_v36 = vpack.c.bf16 %v320_v31, %v320_v31  ;;  %v321_v37 = vsel %vm205_vm4, %v147_v20, %v263_v28  ;;  %v322_v40 = vsel %vm206_vm5, %v148_v23, %v264_v32 }
   0xc   :  { %609 = vst.msk [vmem:[%s1344_s3] sm:$0xf] %vm608_vm0, %v731_v29  ;;  %v734_v39 = vpack.c.bf16 %v321_v37, %v321_v37  ;;  %v265_v41 = vmul.f32 0.2, %v149_v24  ;;  %v735_v43 = vpack.c.bf16 %v322_v40, %v322_v40  ;;  %v87_v45 = vmul.f32 %v815_v1, %v22_v33  ;;  %v34_v40 = vld [vmem:[%s1341_s0 + $0xa0] sm:$0xff] }
   0xd   :  { %610 = vst.msk [vmem:[%s1344_s3 + $0x4] sm:$0xf] %vm608_vm0, %v732_v35  ;;  %611 = vst.msk [vmem:[%s1344_s3 + $0x8] sm:$0xf] %vm608_vm0, %v733_v36  ;;  %v88_v46 = vmul.f32 %v815_v1, %v23_v34  ;;  %vm208_vm7 = vcmp.ge.f32.partialorder %v150_v42, 0.0  ;;  %v89_v50 = vmul.f32 %v815_v1, %v24_v38  ;;  %vm209_vm8 = vcmp.ge.f32.partialorder %v151_v44, 0.0 }
   0xe   :  { %612 = vst.msk [vmem:[%s1344_s3 + $0xc] sm:$0xf] %vm608_vm0, %v734_v39  ;;  %v323_v48 = vsel %vm207_vm6, %v149_v24, %v265_v41  ;;  %v266_v49 = vmul.f32 0.2, %v150_v42  ;;  %613 = vst.msk [vmem:[%s1344_s3 + $0x10] sm:$0xf] %vm608_vm0, %v735_v43  ;;  %v152_v53 = vadd.f32 %v820_v2, %v87_v45  ;;  %v90_v57 = vmul.f32 %v815_v1, %v25_v47 }
   0xf   :  { %v736_v51 = vpack.c.bf16 %v323_v48, %v323_v48  ;;  %v267_v52 = vmul.f32 0.2, %v151_v44  ;;  %v153_v55 = vadd.f32 %v820_v2, %v88_v46  ;;  %v154_v56 = vadd.f32 %v820_v2, %v89_v50  ;;  %v33_v39 = vld [vmem:[%s1341_s0 + $0x98] sm:$0xff]  ;;  %v35_v41 = vld [vmem:[%s1341_s0 + $0xa8] sm:$0xff] }
  0x10   :  { %v324_v54 = vsel %vm208_vm7, %v150_v42, %v266_v49  ;;  %vm210_vm9 = vcmp.ge.f32.partialorder %v152_v53, 0.0  ;;  %v268_v61 = vmul.f32 0.2, %v152_v53  ;;  %v155_v6 = vadd.f32 %v820_v2, %v90_v57  ;;  %v38_v57 = vld [vmem:[%s1341_s0 + $0xc0] sm:$0xff] }
  0x11   :  { %614 = vst.msk [vmem:[%s1344_s3 + $0x14] sm:$0xf] %vm608_vm0, %v736_v51  ;;  %v737_v59 = vpack.c.bf16 %v324_v54, %v324_v54  ;;  %v325_v60 = vsel %vm209_vm8, %v151_v44, %v267_v52  ;;  %vm211_vm10 = vcmp.ge.f32.partialorder %v153_v55, 0.0  ;;  %v269_v3 = vmul.f32 0.2, %v153_v55  ;;  %v36_v52 = vld [vmem:[%s1341_s0 + $0xb0] sm:$0xff] }
  0x12   :  { %v738_v0 = vpack.c.bf16 %v325_v60, %v325_v60  ;;  %vm212_vm11 = vcmp.ge.f32.partialorder %v154_v56, 0.0  ;;  %v326_v4 = vsel %vm210_vm9, %v152_v53, %v268_v61  ;;  %v270_v5 = vmul.f32 0.2, %v154_v56  ;;  %v37_v53 = vld [vmem:[%s1341_s0 + $0xb8] sm:$0xff] }
  0x13   :  { %615 = vst.msk [vmem:[%s1344_s3 + $0x18] sm:$0xf] %vm608_vm0, %v737_v59  ;;  %v91_v7 = vmul.f32 %v815_v1, %v26_v58  ;;  %v739_v8 = vpack.c.bf16 %v326_v4, %v326_v4  ;;  %v327_v9 = vsel %vm211_vm10, %v153_v55, %v269_v3  ;;  %v92_v10 = vmul.f32 %v815_v1, %v27_v62 }
  0x14   :  { %616 = vst.msk [vmem:[%s1344_s3 + $0x1c] sm:$0xf] %vm608_vm0, %v738_v0  ;;  %v93_v11 = vmul.f32 %v815_v1, %v28_v63  ;;  %v740_v15 = vpack.c.bf16 %v327_v9, %v327_v9  ;;  %v328_v16 = vsel %vm212_vm11, %v154_v56, %v270_v5  ;;  %vm213_vm12 = vcmp.ge.f32.partialorder %v155_v6, 0.0 }
  0x15   :  { %v271_v17 = vmul.f32 0.2, %v155_v6  ;;  %617 = vst.msk [vmem:[%s1344_s3 + $0x20] sm:$0xf] %vm608_vm0, %v739_v8  ;;  %v741_v18 = vpack.c.bf16 %v328_v16, %v328_v16  ;;  %v156_v19 = vadd.f32 %v820_v2, %v91_v7  ;;  %v157_v20 = vadd.f32 %v820_v2, %v92_v10  ;;  %v39_v7 = vld [vmem:[%s1341_s0 + $0xc8] sm:$0xff] }
  0x16   :  { %v158_v21 = vadd.f32 %v820_v2, %v93_v11  ;;  %618 = vst.msk [vmem:[%s1344_s3 + $0x24] sm:$0xf] %vm608_vm0, %v740_v15  ;;  %v94_v23 = vmul.f32 %v815_v1, %v29_v12  ;;  %v95_v24 = vmul.f32 %v815_v1, %v30_v13  ;;  %v96_v25 = vmul.f32 %v815_v1, %v31_v14 }
  0x17   :  { %v329_v22 = vsel %vm213_vm12, %v155_v6, %v271_v17  ;;  %619 = vst.msk [vmem:[%s1344_s3 + $0x28] sm:$0xf] %vm608_vm0, %v741_v18  ;;  %vm214_vm13 = vcmp.ge.f32.partialorder %v156_v19, 0.0  ;;  %v272_v28 = vmul.f32 0.2, %v156_v19  ;;  %vm215_vm14 = vcmp.ge.f32.partialorder %v157_v20, 0.0 }
  0x18   :  { %v742_v27 = vpack.c.bf16 %v329_v22, %v329_v22  ;;  %v273_v29 = vmul.f32 0.2, %v157_v20  ;;  %vm216_vm15 = vcmp.ge.f32.partialorder %v158_v21, 0.0  ;;  %v274_v30 = vmul.f32 0.2, %v158_v21  ;;  %v40_v18 = vld [vmem:[%s1341_s0 + $0xd0] sm:$0xff] }
  0x19   :  { %v159_v31 = vadd.f32 %v820_v2, %v94_v23  ;;  %v330_v32 = vsel %vm214_vm13, %v156_v19, %v272_v28  ;;  %v160_v33 = vadd.f32 %v820_v2, %v95_v24  ;;  %v161_v34 = vadd.f32 %v820_v2, %v96_v25  ;;  %v41_v22 = vld [vmem:[%s1341_s0 + $0xd8] sm:$0xff]  ;;  %v42_v23 = vld [vmem:[%s1341_s0 + $0xe0] sm:$0xff] }
  0x1a   :  { %620 = vst.msk [vmem:[%s1344_s3 + $0x2c] sm:$0xf] %vm608_vm0, %v742_v27  ;;  %v97_v35 = vmul.f32 %v815_v1, %v32_v26  ;;  %v743_v36 = vpack.c.bf16 %v330_v32, %v330_v32  ;;  %v331_v37 = vsel %vm215_vm14, %v157_v20, %v273_v29  ;;  %v332_v38 = vsel %vm216_vm15, %v158_v21, %v274_v30 }
  0x1b   :  { %vm217_vm1 = vcmp.ge.f32.partialorder %v159_v31, 0.0  ;;  %v744_v42 = vpack.c.bf16 %v331_v37, %v331_v37  ;;  %v745_v43 = vpack.c.bf16 %v332_v38, %v332_v38  ;;  %v275_v44 = vmul.f32 0.2, %v159_v31 }
  0x1c   :  { %vm218_vm2 = vcmp.ge.f32.partialorder %v160_v33, 0.0  ;;  %621 = vst.msk [vmem:[%s1344_s3 + $0x30] sm:$0xf] %vm608_vm0, %v743_v36  ;;  %v276_v45 = vmul.f32 0.2, %v160_v33  ;;  %vm219_vm3 = vcmp.ge.f32.partialorder %v161_v34, 0.0  ;;  %v162_v47 = vadd.f32 %v820_v2, %v97_v35 }
  0x1d   :  { %v277_v46 = vmul.f32 0.2, %v161_v34  ;;  %622 = vst.msk [vmem:[%s1344_s3 + $0x34] sm:$0xf] %vm608_vm0, %v744_v42  ;;  %623 = vst.msk [vmem:[%s1344_s3 + $0x38] sm:$0xf] %vm608_vm0, %v745_v43  ;;  %v333_v48 = vsel %vm217_vm1, %v159_v31, %v275_v44  ;;  %v98_v49 = vmul.f32 %v815_v1, %v33_v39  ;;  %v99_v50 = vmul.f32 %v815_v1, %v34_v40 }
  0x1e   :  { %v100_v51 = vmul.f32 %v815_v1, %v35_v41  ;;  %v746_v54 = vpack.c.bf16 %v333_v48, %v333_v48  ;;  %v334_v55 = vsel %vm218_vm2, %v160_v33, %v276_v45  ;;  %vm220_vm4 = vcmp.ge.f32.partialorder %v162_v47, 0.0  ;;  %v44_v35 = vld [vmem:[%s1341_s0 + $0xf0] sm:$0xff]  ;;  %v45_v36 = vld [vmem:[%s1341_s0 + $0xf8] sm:$0xff]  ;;  %v46_v48 = vld [vmem:[%s1341_s0 + $0x100] sm:$0xff] }
  0x1f   :  { %v335_v56 = vsel %vm219_vm3, %v161_v34, %v277_v46  ;;  %v747_v58 = vpack.c.bf16 %v334_v55, %v334_v55  ;;  %v278_v60 = vmul.f32 0.2, %v162_v47  ;;  %v163_v61 = vadd.f32 %v820_v2, %v98_v49  ;;  %v43_v34 = vld [vmem:[%s1341_s0 + $0xe8] sm:$0xff] }
  0x20   :  { %v748_v59 = vpack.c.bf16 %v335_v56, %v335_v56  ;;  %624 = vst.msk [vmem:[%s1344_s3 + $0x3c] sm:$0xf] %vm608_vm0, %v746_v54  ;;  %v164_v62 = vadd.f32 %v820_v2, %v99_v50  ;;  %v165_v63 = vadd.f32 %v820_v2, %v100_v51  ;;  %v101_v0 = vmul.f32 %v815_v1, %v36_v52 }
  0x21   :  { %v102_v3 = vmul.f32 %v815_v1, %v37_v53  ;;  %625 = vst.msk [vmem:[%s1344_s3 + $0x40] sm:$0xf] %vm608_vm0, %v747_v58  ;;  %v336_v4 = vsel %vm220_vm4, %v162_v47, %v278_v60  ;;  %vm221_vm5 = vcmp.ge.f32.partialorder %v163_v61, 0.0  ;;  %v279_v5 = vmul.f32 0.2, %v163_v61 }
  0x22   :  { %626 = vst.msk [vmem:[%s1344_s3 + $0x44] sm:$0xf] %vm608_vm0, %v748_v59  ;;  %v103_v6 = vmul.f32 %v815_v1, %v38_v57  ;;  %v749_v8 = vpack.c.bf16 %v336_v4, %v336_v4  ;;  %vm222_vm6 = vcmp.ge.f32.partialorder %v164_v62, 0.0  ;;  %v280_v9 = vmul.f32 0.2, %v164_v62 }
  0x23   :  { %vm223_vm7 = vcmp.ge.f32.partialorder %v165_v63, 0.0  ;;  %v337_v10 = vsel %vm221_vm5, %v163_v61, %v279_v5  ;;  %v281_v11 = vmul.f32 0.2, %v165_v63  ;;  %v166_v12 = vadd.f32 %v820_v2, %v101_v0  ;;  %v47_v61 = vld [vmem:[%s1341_s0 + $0x108] sm:$0xff] }
  0x24   :  { %v167_v13 = vadd.f32 %v820_v2, %v102_v3  ;;  %627 = vst.msk [vmem:[%s1344_s3 + $0x48] sm:$0xf] %vm608_vm0, %v749_v8  ;;  %v750_v14 = vpack.c.bf16 %v337_v10, %v337_v10  ;;  %v338_v15 = vsel %vm222_vm6, %v164_v62, %v280_v9  ;;  %v168_v16 = vadd.f32 %v820_v2, %v103_v6  ;;  %v48_v62 = vld [vmem:[%s1341_s0 + $0x110] sm:$0xff] }
  0x25   :  { %v104_v17 = vmul.f32 %v815_v1, %v39_v7  ;;  %v751_v19 = vpack.c.bf16 %v338_v15, %v338_v15  ;;  %v339_v20 = vsel %vm223_vm7, %v165_v63, %v281_v11  ;;  %vm224_vm8 = vcmp.ge.f32.partialorder %v166_v12, 0.0  ;;  %v49_v63 = vld [vmem:[%s1341_s0 + $0x118] sm:$0xff] }
  0x26   :  { %v282_v21 = vmul.f32 0.2, %v166_v12  ;;  %628 = vst.msk [vmem:[%s1344_s3 + $0x4c] sm:$0xf] %vm608_vm0, %v750_v14  ;;  %v752_v24 = vpack.c.bf16 %v339_v20, %v339_v20  ;;  %vm225_vm9 = vcmp.ge.f32.partialorder %v167_v13, 0.0  ;;  %vm226_vm10 = vcmp.ge.f32.partialorder %v168_v16, 0.0 }
  0x27   :  { %v283_v25 = vmul.f32 0.2, %v167_v13  ;;  %629 = vst.msk [vmem:[%s1344_s3 + $0x50] sm:$0xf] %vm608_vm0, %v751_v19  ;;  %v284_v27 = vmul.f32 0.2, %v168_v16  ;;  %v169_v28 = vadd.f32 %v820_v2, %v104_v17  ;;  %v105_v29 = vmul.f32 %v815_v1, %v40_v18 }
  0x28   :  { %v340_v26 = vsel %vm224_vm8, %v166_v12, %v282_v21  ;;  %630 = vst.msk [vmem:[%s1344_s3 + $0x54] sm:$0xf] %vm608_vm0, %v752_v24  ;;  %v106_v32 = vmul.f32 %v815_v1, %v41_v22  ;;  %v107_v33 = vmul.f32 %v815_v1, %v42_v23  ;;  %v108_v45 = vmul.f32 %v815_v1, %v43_v34  ;;  %v50_v12 = vld [vmem:[%s1341_s0 + $0x120] sm:$0xff]  ;;  %v52_v17 = vld [vmem:[%s1341_s0 + $0x130] sm:$0xff] }
  0x29   :  { %v753_v30 = vpack.c.bf16 %v340_v26, %v340_v26  ;;  %v341_v31 = vsel %vm225_vm9, %v167_v13, %v283_v25  ;;  %v342_v38 = vsel %vm226_vm10, %v168_v16, %v284_v27  ;;  %vm227_vm11 = vcmp.ge.f32.partialorder %v169_v28, 0.0  ;;  %v51_v13 = vld [vmem:[%s1341_s0 + $0x128] sm:$0xff] }
  0x2a   :  { %v754_v37 = vpack.c.bf16 %v341_v31, %v341_v31  ;;  %v285_v39 = vmul.f32 0.2, %v169_v28  ;;  %v755_v40 = vpack.c.bf16 %v342_v38, %v342_v38  ;;  %v170_v41 = vadd.f32 %v820_v2, %v105_v29  ;;  %v53_v29 = vld [vmem:[%s1341_s0 + $0x138] sm:$0xff] }
  0x2b   :  { %631 = vst.msk [vmem:[%s1344_s3 + $0x58] sm:$0xf] %vm608_vm0, %v753_v30  ;;  %v171_v42 = vadd.f32 %v820_v2, %v106_v32  ;;  %v172_v43 = vadd.f32 %v820_v2, %v107_v33  ;;  %v109_v46 = vmul.f32 %v815_v1, %v44_v35  ;;  %v110_v47 = vmul.f32 %v815_v1, %v45_v36 }
  0x2c   :  { %632 = vst.msk [vmem:[%s1344_s3 + $0x5c] sm:$0xf] %vm608_vm0, %v754_v37  ;;  %v343_v44 = vsel %vm227_vm11, %v169_v28, %v285_v39  ;;  %633 = vst.msk [vmem:[%s1344_s3 + $0x60] sm:$0xf] %vm608_vm0, %v755_v40  ;;  %vm228_vm12 = vcmp.ge.f32.partialorder %v170_v41, 0.0  ;;  %v173_v53 = vadd.f32 %v820_v2, %v108_v45  ;;  %v111_v57 = vmul.f32 %v815_v1, %v46_v48  ;;  %v54_v40 = vld [vmem:[%s1341_s0 + $0x140] sm:$0xff] }
  0x2d   :  { %v756_v49 = vpack.c.bf16 %v343_v44, %v343_v44  ;;  %v286_v50 = vmul.f32 0.2, %v170_v41  ;;  %vm229_vm13 = vcmp.ge.f32.partialorder %v171_v42, 0.0  ;;  %v287_v51 = vmul.f32 0.2, %v171_v42  ;;  %v55_v44 = vld [vmem:[%s1341_s0 + $0x148] sm:$0xff] }
  0x2e   :  { %vm230_vm14 = vcmp.ge.f32.partialorder %v172_v43, 0.0  ;;  %v288_v52 = vmul.f32 0.2, %v172_v43  ;;  %v174_v55 = vadd.f32 %v820_v2, %v109_v46  ;;  %v175_v56 = vadd.f32 %v820_v2, %v110_v47  ;;  %v56_v45 = vld [vmem:[%s1341_s0 + $0x150] sm:$0xff] }
  0x2f   :  { %634 = vst.msk [vmem:[%s1344_s3 + $0x64] sm:$0xf] %vm608_vm0, %v756_v49  ;;  %v344_v54 = vsel %vm228_vm12, %v170_v41, %v286_v50  ;;  %v345_v59 = vsel %vm229_vm13, %v171_v42, %v287_v51  ;;  %vm231_vm15 = vcmp.ge.f32.partialorder %v173_v53, 0.0  ;;  %v289_v4 = vmul.f32 0.2, %v173_v53 }
  0x30   :  { %v757_v58 = vpack.c.bf16 %v344_v54, %v344_v54  ;;  %v346_v60 = vsel %vm230_vm14, %v172_v43, %v288_v52  ;;  %v758_v0 = vpack.c.bf16 %v345_v59, %v345_v59  ;;  %vm232_vm1 = vcmp.ge.f32.partialorder %v174_v55, 0.0 }
  0x31   :  { %v759_v3 = vpack.c.bf16 %v346_v60, %v346_v60  ;;  %v290_v5 = vmul.f32 0.2, %v174_v55  ;;  %vm233_vm2 = vcmp.ge.f32.partialorder %v175_v56, 0.0  ;;  %v291_v6 = vmul.f32 0.2, %v175_v56 }
  0x32   :  { %635 = vst.msk [vmem:[%s1344_s3 + $0x68] sm:$0xf] %vm608_vm0, %v757_v58  ;;  %v176_v7 = vadd.f32 %v820_v2, %v111_v57  ;;  %636 = vst.msk [vmem:[%s1344_s3 + $0x6c] sm:$0xf] %vm608_vm0, %v758_v0  ;;  %v347_v8 = vsel %vm231_vm15, %v173_v53, %v289_v4  ;;  %v112_v9 = vmul.f32 %v815_v1, %v47_v61  ;;  %v58_v57 = vld [vmem:[%s1341_s0 + $0x160] sm:$0xff]  ;;  %v59_v58 = vld [vmem:[%s1341_s0 + $0x168] sm:$0xff] }
  0x33   :  { %637 = vst.msk [vmem:[%s1344_s3 + $0x70] sm:$0xf] %vm608_vm0, %v759_v3  ;;  %v113_v10 = vmul.f32 %v815_v1, %v48_v62  ;;  %v114_v11 = vmul.f32 %v815_v1, %v49_v63  ;;  %v760_v14 = vpack.c.bf16 %v347_v8, %v347_v8  ;;  %v348_v15 = vsel %vm232_vm1, %v174_v55, %v290_v5  ;;  %v60_v8 = vld [vmem:[%s1341_s0 + $0x170] sm:$0xff] }
  0x34   :  { %v349_v16 = vsel %vm233_vm2, %v175_v56, %v291_v6  ;;  %vm234_vm3 = vcmp.ge.f32.partialorder %v176_v7, 0.0  ;;  %v761_v18 = vpack.c.bf16 %v348_v15, %v348_v15  ;;  %v292_v20 = vmul.f32 0.2, %v176_v7  ;;  %v57_v56 = vld [vmem:[%s1341_s0 + $0x158] sm:$0xff] }
  0x35   :  { %v762_v19 = vpack.c.bf16 %v349_v16, %v349_v16  ;;  %v177_v21 = vadd.f32 %v820_v2, %v112_v9  ;;  %638 = vst.msk [vmem:[%s1344_s3 + $0x74] sm:$0xf] %vm608_vm0, %v760_v14  ;;  %v178_v22 = vadd.f32 %v820_v2, %v113_v10  ;;  %v179_v23 = vadd.f32 %v820_v2, %v114_v11 }
  0x36   :  { %v115_v24 = vmul.f32 %v815_v1, %v50_v12  ;;  %v116_v25 = vmul.f32 %v815_v1, %v51_v13  ;;  %639 = vst.msk [vmem:[%s1344_s3 + $0x78] sm:$0xf] %vm608_vm0, %v761_v18  ;;  %v350_v26 = vsel %vm234_vm3, %v176_v7, %v292_v20  ;;  %v117_v28 = vmul.f32 %v815_v1, %v52_v17 }
  0x37   :  { %640 = vst.msk [vmem:[%s1344_s3 + $0x7c] sm:$0xf] %vm608_vm0, %v762_v19  ;;  %vm235_vm4 = vcmp.ge.f32.partialorder %v177_v21, 0.0  ;;  %v293_v27 = vmul.f32 0.2, %v177_v21  ;;  %v763_v30 = vpack.c.bf16 %v350_v26, %v350_v26  ;;  %vm236_vm5 = vcmp.ge.f32.partialorder %v178_v22, 0.0 }
  0x38   :  { %v294_v31 = vmul.f32 0.2, %v178_v22  ;;  %vm237_vm6 = vcmp.ge.f32.partialorder %v179_v23, 0.0  ;;  %v295_v33 = vmul.f32 0.2, %v179_v23  ;;  %v180_v34 = vadd.f32 %v820_v2, %v115_v24 }
  0x39   :  { %v351_v32 = vsel %vm235_vm4, %v177_v21, %v293_v27  ;;  %v181_v35 = vadd.f32 %v820_v2, %v116_v25  ;;  %641 = vst.msk [vmem:[%s1344_s3 + $0x80] sm:$0xf] %vm608_vm0, %v763_v30  ;;  %v182_v38 = vadd.f32 %v820_v2, %v117_v28  ;;  %v118_v39 = vmul.f32 %v815_v1, %v53_v29  ;;  %v61_v21 = vld [vmem:[%s1341_s0 + $0x178] sm:$0xff] }
  0x3a   :  { %v764_v36 = vpack.c.bf16 %v351_v32, %v351_v32  ;;  %v352_v37 = vsel %vm236_vm5, %v178_v22, %v294_v31  ;;  %v353_v42 = vsel %vm237_vm6, %v179_v23, %v295_v33  ;;  %vm238_vm7 = vcmp.ge.f32.partialorder %v180_v34, 0.0  ;;  %v62_v22 = vld [vmem:[%s1341_s0 + $0x180] sm:$0xff]  ;;  %v63_v23 = vld [vmem:[%s1341_s0 + $0x188] sm:$0xff] }
  0x3b   :  { %v765_v41 = vpack.c.bf16 %v352_v37, %v352_v37  ;;  %v296_v43 = vmul.f32 0.2, %v180_v34  ;;  %v766_v46 = vpack.c.bf16 %v353_v42, %v353_v42  ;;  %vm239_vm8 = vcmp.ge.f32.partialorder %v181_v35, 0.0 }
  0x3c   :  { %642 = vst.msk [vmem:[%s1344_s3 + $0x84] sm:$0xf] %vm608_vm0, %v764_v36  ;;  %v297_v47 = vmul.f32 0.2, %v181_v35  ;;  %vm240_vm9 = vcmp.ge.f32.partialorder %v182_v38, 0.0  ;;  %v183_v50 = vadd.f32 %v820_v2, %v118_v39  ;;  %v119_v51 = vmul.f32 %v815_v1, %v54_v40  ;;  %v66_v39 = vld [vmem:[%s1341_s0 + $0x1a0] sm:$0xff] }
  0x3d   :  { %643 = vst.msk [vmem:[%s1344_s3 + $0x88] sm:$0xf] %vm608_vm0, %v765_v41  ;;  %v354_v48 = vsel %vm238_vm7, %v180_v34, %v296_v43  ;;  %v298_v49 = vmul.f32 0.2, %v182_v38  ;;  %644 = vst.msk [vmem:[%s1344_s3 + $0x8c] sm:$0xf] %vm608_vm0, %v766_v46  ;;  %v120_v54 = vmul.f32 %v815_v1, %v55_v44  ;;  %v121_v55 = vmul.f32 %v815_v1, %v56_v45 }
  0x3e   :  { %v767_v52 = vpack.c.bf16 %v354_v48, %v354_v48  ;;  %v355_v53 = vsel %vm239_vm8, %v181_v35, %v297_v47  ;;  %vm241_vm10 = vcmp.ge.f32.partialorder %v183_v50, 0.0  ;;  %v299_v61 = vmul.f32 0.2, %v183_v50  ;;  %v64_v34 = vld [vmem:[%s1341_s0 + $0x190] sm:$0xff]  ;;  %v65_v35 = vld [vmem:[%s1341_s0 + $0x198] sm:$0xff] }
  0x3f   :  { %v768_v59 = vpack.c.bf16 %v355_v53, %v355_v53  ;;  %v356_v60 = vsel %vm240_vm9, %v182_v38, %v298_v49  ;;  %v184_v63 = vadd.f32 %v820_v2, %v119_v51  ;;  %v185_v0 = vadd.f32 %v820_v2, %v120_v54  ;;  %v67_v51 = vld [vmem:[%s1341_s0 + $0x1a8] sm:$0xff] }
  0x40   :  { %645 = vst.msk [vmem:[%s1344_s3 + $0x90] sm:$0xf] %vm608_vm0, %v767_v52  ;;  %v769_v62 = vpack.c.bf16 %v356_v60, %v356_v60  ;;  %v186_v3 = vadd.f32 %v820_v2, %v121_v55  ;;  %v357_v4 = vsel %vm241_vm10, %v183_v50, %v299_v61  ;;  %v122_v5 = vmul.f32 %v815_v1, %v57_v56 }
  0x41   :  { %646 = vst.msk [vmem:[%s1344_s3 + $0x94] sm:$0xf] %vm608_vm0, %v768_v59  ;;  %v123_v6 = vmul.f32 %v815_v1, %v58_v57  ;;  %v124_v7 = vmul.f32 %v815_v1, %v59_v58  ;;  %v770_v9 = vpack.c.bf16 %v357_v4, %v357_v4  ;;  %vm242_vm11 = vcmp.ge.f32.partialorder %v184_v63, 0.0  ;;  %v69_v4 = vld [vmem:[%s1341_s0 + $0x1b8] sm:$0xff] }
  0x42   :  { %647 = vst.msk [vmem:[%s1344_s3 + $0x98] sm:$0xf] %vm608_vm0, %v769_v62  ;;  %v300_v10 = vmul.f32 0.2, %v184_v63  ;;  %vm243_vm12 = vcmp.ge.f32.partialorder %v185_v0, 0.0  ;;  %vm244_vm13 = vcmp.ge.f32.partialorder %v186_v3, 0.0  ;;  %v187_v13 = vadd.f32 %v820_v2, %v122_v5 }
  0x43   :  { %v301_v11 = vmul.f32 0.2, %v185_v0  ;;  %v302_v12 = vmul.f32 0.2, %v186_v3  ;;  %648 = vst.msk [vmem:[%s1344_s3 + $0x9c] sm:$0xf] %vm608_vm0, %v770_v9  ;;  %v188_v15 = vadd.f32 %v820_v2, %v123_v6  ;;  %v189_v16 = vadd.f32 %v820_v2, %v124_v7 }
  0x44   :  { %v358_v14 = vsel %vm242_vm11, %v184_v63, %v300_v10  ;;  %v125_v17 = vmul.f32 %v815_v1, %v60_v8  ;;  %vm245_vm14 = vcmp.ge.f32.partialorder %v187_v13, 0.0  ;;  %v303_v26 = vmul.f32 0.2, %v187_v13  ;;  %v68_v62 = vld [vmem:[%s1341_s0 + $0x1b0] sm:$0xff]  ;;  %v70_v5 = vld [vmem:[%s1341_s0 + $0x1c0] sm:$0xff] }
  0x45   :  { %v771_v18 = vpack.c.bf16 %v358_v14, %v358_v14  ;;  %v359_v19 = vsel %vm243_vm12, %v185_v0, %v301_v11  ;;  %v360_v20 = vsel %vm244_vm13, %v186_v3, %v302_v12  ;;  %vm246_vm15 = vcmp.ge.f32.partialorder %v188_v15, 0.0 }
  0x46   :  { %v772_v24 = vpack.c.bf16 %v359_v19, %v359_v19  ;;  %v773_v25 = vpack.c.bf16 %v360_v20, %v360_v20  ;;  %v304_v27 = vmul.f32 0.2, %v188_v15  ;;  %vm247_vm1 = vcmp.ge.f32.partialorder %v189_v16, 0.0 }
  0x47   :  { %649 = vst.msk [vmem:[%s1344_s3 + $0xa0] sm:$0xf] %vm608_vm0, %v771_v18  ;;  %v305_v28 = vmul.f32 0.2, %v189_v16  ;;  %v190_v29 = vadd.f32 %v820_v2, %v125_v17  ;;  %v361_v30 = vsel %vm245_vm14, %v187_v13, %v303_v26  ;;  %v126_v31 = vmul.f32 %v815_v1, %v61_v21 }
  0x48   :  { %650 = vst.msk [vmem:[%s1344_s3 + $0xa4] sm:$0xf] %vm608_vm0, %v772_v24  ;;  %651 = vst.msk [vmem:[%s1344_s3 + $0xa8] sm:$0xf] %vm608_vm0, %v773_v25  ;;  %v127_v32 = vmul.f32 %v815_v1, %v62_v22  ;;  %v128_v33 = vmul.f32 %v815_v1, %v63_v23  ;;  %v774_v36 = vpack.c.bf16 %v361_v30, %v361_v30 }
  0x49   :  { %v362_v37 = vsel %vm246_vm15, %v188_v15, %v304_v27  ;;  %v363_v38 = vsel %vm247_vm1, %v189_v16, %v305_v28  ;;  %vm248_vm2 = vcmp.ge.f32.partialorder %v190_v29, 0.0  ;;  %v306_v42 = vmul.f32 0.2, %v190_v29  ;;  %v71_v16 = vld [vmem:[%s1341_s0 + $0x1c8] sm:$0xff] }
  0x4a   :  { %v775_v40 = vpack.c.bf16 %v362_v37, %v362_v37  ;;  %v776_v41 = vpack.c.bf16 %v363_v38, %v363_v38  ;;  %v191_v43 = vadd.f32 %v820_v2, %v126_v31  ;;  %652 = vst.msk [vmem:[%s1344_s3 + $0xac] sm:$0xf] %vm608_vm0, %v774_v36  ;;  %v192_v44 = vadd.f32 %v820_v2, %v127_v32 }
  0x4b   :  { %v193_v45 = vadd.f32 %v820_v2, %v128_v33  ;;  %v129_v46 = vmul.f32 %v815_v1, %v64_v34  ;;  %v130_v47 = vmul.f32 %v815_v1, %v65_v35  ;;  %v364_v48 = vsel %vm248_vm2, %v190_v29, %v306_v42 }
  0x4c   :  { %653 = vst.msk [vmem:[%s1344_s3 + $0xb0] sm:$0xf] %vm608_vm0, %v775_v40  ;;  %654 = vst.msk [vmem:[%s1344_s3 + $0xb4] sm:$0xf] %vm608_vm0, %v776_v41  ;;  %vm249_vm3 = vcmp.ge.f32.partialorder %v191_v43, 0.0  ;;  %v131_v50 = vmul.f32 %v815_v1, %v66_v39  ;;  %v777_v52 = vpack.c.bf16 %v364_v48, %v364_v48  ;;  %vm250_vm4 = vcmp.ge.f32.partialorder %v192_v44, 0.0 }
  0x4d   :  { %v307_v49 = vmul.f32 0.2, %v191_v43  ;;  %v308_v53 = vmul.f32 0.2, %v192_v44  ;;  %vm251_vm5 = vcmp.ge.f32.partialorder %v193_v45, 0.0  ;;  %v194_v56 = vadd.f32 %v820_v2, %v129_v46 }
  0x4e   :  { %v309_v55 = vmul.f32 0.2, %v193_v45  ;;  %v195_v57 = vadd.f32 %v820_v2, %v130_v47  ;;  %655 = vst.msk [vmem:[%s1344_s3 + $0xb8] sm:$0xf] %vm608_vm0, %v777_v52  ;;  %v196_v60 = vadd.f32 %v820_v2, %v131_v50  ;;  %v132_v61 = vmul.f32 %v815_v1, %v67_v51 }
  0x4f   :  { %v365_v54 = vsel %vm249_vm3, %v191_v43, %v307_v49  ;;  %v366_v59 = vsel %vm250_vm4, %v192_v44, %v308_v53  ;;  %vm252_vm6 = vcmp.ge.f32.partialorder %v194_v56, 0.0  ;;  %v310_v3 = vmul.f32 0.2, %v194_v56 }
  0x50   :  { %v778_v58 = vpack.c.bf16 %v365_v54, %v365_v54  ;;  %v779_v63 = vpack.c.bf16 %v366_v59, %v366_v59  ;;  %v367_v0 = vsel %vm251_vm5, %v193_v45, %v309_v55  ;;  %vm253_vm7 = vcmp.ge.f32.partialorder %v195_v57, 0.0 }
  0x51   :  { %v780_v6 = vpack.c.bf16 %v367_v0, %v367_v0  ;;  %v311_v7 = vmul.f32 0.2, %v195_v57  ;;  %vm254_vm8 = vcmp.ge.f32.partialorder %v196_v60, 0.0  ;;  %v368_v8 = vsel %vm252_vm6, %v194_v56, %v310_v3 }
  0x52   :  { %656 = vst.msk [vmem:[%s1344_s3 + $0xbc] sm:$0xf] %vm608_vm0, %v778_v58  ;;  %657 = vst.msk [vmem:[%s1344_s3 + $0xc0] sm:$0xf] %vm608_vm0, %v779_v63  ;;  %v312_v9 = vmul.f32 0.2, %v196_v60  ;;  %v197_v10 = vadd.f32 %v820_v2, %v132_v61  ;;  %v133_v11 = vmul.f32 %v815_v1, %v68_v62  ;;  %v781_v12 = vpack.c.bf16 %v368_v8, %v368_v8 }
  0x53   :  { %658 = vst.msk [vmem:[%s1344_s3 + $0xc4] sm:$0xf] %vm608_vm0, %v780_v6  ;;  %v369_v13 = vsel %vm253_vm7, %v195_v57, %v311_v7  ;;  %v134_v14 = vmul.f32 %v815_v1, %v69_v4  ;;  %v135_v15 = vmul.f32 %v815_v1, %v70_v5  ;;  %v136_v25 = vmul.f32 %v815_v1, %v71_v16 }
  0x54   :  { %v782_v17 = vpack.c.bf16 %v369_v13, %v369_v13  ;;  %v370_v18 = vsel %vm254_vm8, %v196_v60, %v312_v9  ;;  %vm255_vm9 = vcmp.ge.f32.partialorder %v197_v10, 0.0  ;;  %v313_v19 = vmul.f32 0.2, %v197_v10  ;;  %659 = vst.msk [vmem:[%s1344_s3 + $0xc8] sm:$0xf] %vm608_vm0, %v781_v12 }
  0x55   :  { %v783_v20 = vpack.c.bf16 %v370_v18, %v370_v18  ;;  %v198_v21 = vadd.f32 %v820_v2, %v133_v11  ;;  %v199_v22 = vadd.f32 %v820_v2, %v134_v14  ;;  %v200_v23 = vadd.f32 %v820_v2, %v135_v15 }
  0x56   :  { %660 = vst.msk [vmem:[%s1344_s3 + $0xcc] sm:$0xf] %vm608_vm0, %v782_v17  ;;  %v371_v24 = vsel %vm255_vm9, %v197_v10, %v313_v19  ;;  %v201_v30 = vadd.f32 %v820_v2, %v136_v25 }
  0x57   :  { %661 = vst.msk [vmem:[%s1344_s3 + $0xd0] sm:$0xf] %vm608_vm0, %v783_v20  ;;  %v784_v26 = vpack.c.bf16 %v371_v24, %v371_v24  ;;  %vm256_vm10 = vcmp.ge.f32.partialorder %v198_v21, 0.0  ;;  %v314_v27 = vmul.f32 0.2, %v198_v21  ;;  %vm257_vm11 = vcmp.ge.f32.partialorder %v199_v22, 0.0 }
  0x58   :  { %v315_v28 = vmul.f32 0.2, %v199_v22  ;;  %vm258_vm12 = vcmp.ge.f32.partialorder %v200_v23, 0.0  ;;  %v316_v29 = vmul.f32 0.2, %v200_v23  ;;  %vm259_vm13 = vcmp.ge.f32.partialorder %v201_v30, 0.0 }
  0x59   :  { %662 = vst.msk [vmem:[%s1344_s3 + $0xd4] sm:$0xf] %vm608_vm0, %v784_v26  ;;  %v372_v1 = vsel %vm256_vm10, %v198_v21, %v314_v27  ;;  %v317_v36 = vmul.f32 0.2, %v201_v30 }
  0x5a   :  { %v785_v31 = vpack.c.bf16 %v372_v1, %v372_v1  ;;  %v373_v32 = vsel %vm257_vm11, %v199_v22, %v315_v28  ;;  %v374_v33 = vsel %vm258_vm12, %v200_v23, %v316_v29 }
  0x5b   :  { %v786_v34 = vpack.c.bf16 %v373_v32, %v373_v32  ;;  %v787_v35 = vpack.c.bf16 %v374_v33, %v374_v33  ;;  %v375_v2 = vsel %vm259_vm13, %v201_v30, %v317_v36 }
  0x5c   :  { %663 = vst.msk [vmem:[%s1344_s3 + $0xd8] sm:$0xf] %vm608_vm0, %v785_v31  ;;  %v788_v37 = vpack.c.bf16 %v375_v2, %v375_v2 }
  0x5d   :  { %664 = vst.msk [vmem:[%s1344_s3 + $0xdc] sm:$0xf] %vm608_vm0, %v786_v34  ;;  %665 = vst.msk [vmem:[%s1344_s3 + $0xe0] sm:$0xf] %vm608_vm0, %v787_v35 }
  0x5e   :  { %666 = vst.msk [vmem:[%s1344_s3 + $0xe4] sm:$0xf] %vm608_vm0, %v788_v37 }

// kernel: forward.13
= control target key start
LH: loop header
LB: loop body
LE: loop exit
PB: predicated region body
PF: predicated region fallthrough
CT: control target
= control target key end

     0   :  { %v2289_v0 = vmov 0   ;;  %vm1496_vm0 = vcmask 523264   ;;  %vm1683_vm1 = vcmask 516096   ;;  %s3151_s1 = inlined_call_operand.vmem [shape: bf16[512,64], index: 1, kind: input, shape index: {}]   ;;  %s3152_s0 = inlined_call_operand.vmem [shape: bf16[464,512], index: 0, kind: input, shape index: {}]   ;;  %s3153_s2 = inlined_call_operand.vmem [shape: f32[464,64], index: 2, kind: output, shape index: {0}]   ;;  %s3154_s3 = inlined_call_operand.vmem [shape: f32[8,64], index: 3, kind: output, shape index: {1}]  }
   0x1   :  { %966 = vmatprep.subr.bf16.mxu1 %v2289_v0  ;;  %1231 = vmatprep.subr.bf16.mxu0 %v2289_v0  ;;  %v2083_v1 = vld [vmem:[%s3151_s1] sm:$0xff]   ;;  %v2085_v3 = vld [vmem:[%s3151_s1 + $0x8] sm:$0xff]   ;;  %v2087_v5 = vld [vmem:[%s3151_s1 + $0x10] sm:$0xff]  }
   0x2   :  { %v2084_v2 = vld [vmem:[%s3151_s1 + $0x80] sm:$0xff]   ;;  %967 = vmatpush1.bf16.msra.mxu1 %v2083_v1  ;;  %v2086_v4 = vld [vmem:[%s3151_s1 + $0x88] sm:$0xff]   ;;  %v2088_v6 = vld [vmem:[%s3151_s1 + $0x90] sm:$0xff]  }
   0x3   :  { %1232 = vmatpush1.bf16.msra.mxu0 %v2084_v2  ;;  %968 = vmatprep.subr.bf16.mxu1 %v2289_v0  ;;  %v2089_v7 = vld [vmem:[%s3151_s1 + $0x18] sm:$0xff]   ;;  %v2091_v9 = vld [vmem:[%s3151_s1 + $0x20] sm:$0xff]   ;;  %v2093_v11 = vld [vmem:[%s3151_s1 + $0x28] sm:$0xff]  }
   0x4   :  { %1233 = vmatprep.subr.bf16.mxu0 %v2289_v0  ;;  %v2090_v8 = vld [vmem:[%s3151_s1 + $0x98] sm:$0xff]   ;;  %v2092_v10 = vld [vmem:[%s3151_s1 + $0xa0] sm:$0xff]   ;;  %v2094_v12 = vld [vmem:[%s3151_s1 + $0xa8] sm:$0xff]  }
   0x5   :  { %v2095_v13 = vld [vmem:[%s3151_s1 + $0x30] sm:$0xff]   ;;  %v2097_v15 = vld [vmem:[%s3151_s1 + $0x38] sm:$0xff]   ;;  %v2099_v17 = vld [vmem:[%s3151_s1 + $0x40] sm:$0xff]  }
   0x6   :  { %969 = vmatpush1.bf16.msra.mxu1 %v2085_v3  ;;  %v2096_v14 = vld [vmem:[%s3151_s1 + $0xb0] sm:$0xff]   ;;  %v2098_v16 = vld [vmem:[%s3151_s1 + $0xb8] sm:$0xff]   ;;  %v2100_v18 = vld [vmem:[%s3151_s1 + $0xc0] sm:$0xff]  }
   0x7   :  { %1234 = vmatpush1.bf16.msra.mxu0 %v2086_v4  ;;  %970 = vmatprep.subr.bf16.mxu1 %v2289_v0  ;;  %v2117_v19 = vld [vmem:[%s3152_s0 + $0x4] ss:$16 sps:$4 sm:$0xff]   ;;  %v2101_v20 = vld [vmem:[%s3151_s1 + $0x48] sm:$0xff]   ;;  %v2105_v25 = vld [vmem:[%s3151_s1 + $0x58] sm:$0xff]  }
   0x8   :  { %1235 = vmatprep.subr.bf16.mxu0 %v2289_v0  ;;  %v2120_v21 = vld [vmem:[%s3152_s0 + $0xc] ss:$16 sps:$4 sm:$0xff]   ;;  %998 = vmatprep.mubr.bf16.mxu1 %v2117_v19  ;;  %v2103_v23 = vld [vmem:[%s3151_s1 + $0x50] sm:$0xff]   ;;  %v2107_v27 = vld [vmem:[%s3151_s1 + $0x60] sm:$0xff]  }
   0x9   :  { %v2102_v22 = vld [vmem:[%s3151_s1 + $0xc8] sm:$0xff]   ;;  %1263 = vmatprep.mubr.bf16.mxu0 %v2120_v21  ;;  %v2104_v24 = vld [vmem:[%s3151_s1 + $0xd0] sm:$0xff]   ;;  %v2106_v26 = vld [vmem:[%s3151_s1 + $0xd8] sm:$0xff]  }
   0xa   :  { %971 = vmatpush1.bf16.msra.mxu1 %v2087_v5  ;;  %v2108_v28 = vld [vmem:[%s3151_s1 + $0xe0] sm:$0xff]   ;;  %v2109_v29 = vld [vmem:[%s3151_s1 + $0x68] sm:$0xff]   ;;  %v2111_v31 = vld [vmem:[%s3151_s1 + $0x70] sm:$0xff]  }
   0xb   :  { %1236 = vmatpush1.bf16.msra.mxu0 %v2088_v6  ;;  %972 = vmatprep.subr.bf16.mxu1 %v2289_v0  ;;  %v2110_v30 = vld [vmem:[%s3151_s1 + $0xe8] sm:$0xff]   ;;  %v2112_v32 = vld [vmem:[%s3151_s1 + $0xf0] sm:$0xff]   ;;  %v2113_v33 = vld [vmem:[%s3151_s1 + $0x78] sm:$0xff]  }
   0xc   :  { %1237 = vmatprep.subr.bf16.mxu0 %v2289_v0  ;;  %v2114_v34 = vld [vmem:[%s3151_s1 + $0xf8] sm:$0xff]   ;;  %v2115_v35 = vld [vmem:[%s3152_s0] ss:$16 sps:$4 sm:$0xff]   ;;  %v2121_v37 = vld [vmem:[%s3152_s0 + $0x24] ss:$16 sps:$4 sm:$0xff]  }
   0xd   :  { %v2118_v36 = vld [vmem:[%s3152_s0 + $0x8] ss:$16 sps:$4 sm:$0xff]   ;;  %v2123_v38 = vld [vmem:[%s3152_s0 + $0x2c] ss:$16 sps:$4 sm:$0xff]   ;;  %v2125_v39 = vld [vmem:[%s3152_s0 + $0x20] ss:$16 sps:$4 sm:$0xff]  }
   0xe   :  { %973 = vmatpush1.bf16.msra.mxu1 %v2089_v7  ;;  %v2126_v40 = vld [vmem:[%s3152_s0 + $0x28] ss:$16 sps:$4 sm:$0xff]   ;;  %v2127_v41 = vld [vmem:[%s3152_s0 + $0x44] ss:$16 sps:$4 sm:$0xff]   ;;  %v2129_v42 = vld [vmem:[%s3152_s0 + $0x4c] ss:$16 sps:$4 sm:$0xff]  }
   0xf   :  { %1238 = vmatpush1.bf16.msra.mxu0 %v2090_v8  ;;  %974 = vmatprep.subr.bf16.mxu1 %v2289_v0  ;;  %v2131_v43 = vld [vmem:[%s3152_s0 + $0x40] ss:$16 sps:$4 sm:$0xff]   ;;  %v2132_v44 = vld [vmem:[%s3152_s0 + $0x48] ss:$16 sps:$4 sm:$0xff]   ;;  %v2133_v45 = vld [vmem:[%s3152_s0 + $0x64] ss:$16 sps:$4 sm:$0xff]  }
  0x10   :  { %1239 = vmatprep.subr.bf16.mxu0 %v2289_v0  ;;  %v2135_v46 = vld [vmem:[%s3152_s0 + $0x6c] ss:$16 sps:$4 sm:$0xff]   ;;  %v2137_v47 = vld [vmem:[%s3152_s0 + $0x60] ss:$16 sps:$4 sm:$0xff]   ;;  %v2138_v48 = vld [vmem:[%s3152_s0 + $0x68] ss:$16 sps:$4 sm:$0xff]  }
  0x11   :  { %v2139_v49 = vld [vmem:[%s3152_s0 + $0x84] ss:$16 sps:$4 sm:$0xff]   ;;  %v2141_v50 = vld [vmem:[%s3152_s0 + $0x8c] ss:$16 sps:$4 sm:$0xff]   ;;  %v2143_v51 = vld [vmem:[%s3152_s0 + $0x80] ss:$16 sps:$4 sm:$0xff]  }
  0x12   :  { %975 = vmatpush1.bf16.msra.mxu1 %v2091_v9  ;;  %v2144_v52 = vld [vmem:[%s3152_s0 + $0x88] ss:$16 sps:$4 sm:$0xff]   ;;  %v2145_v53 = vld [vmem:[%s3152_s0 + $0xa4] ss:$16 sps:$4 sm:$0xff]   ;;  %v2147_v54 = vld [vmem:[%s3152_s0 + $0xac] ss:$16 sps:$4 sm:$0xff]  }
  0x13   :  { %1240 = vmatpush1.bf16.msra.mxu0 %v2092_v10  ;;  %976 = vmatprep.subr.bf16.mxu1 %v2289_v0  ;;  %v2149_v55 = vld [vmem:[%s3152_s0 + $0xa0] ss:$16 sps:$4 sm:$0xff]   ;;  %v2150_v56 = vld [vmem:[%s3152_s0 + $0xa8] ss:$16 sps:$4 sm:$0xff]   ;;  %v2151_v57 = vld [vmem:[%s3152_s0 + $0xc4] ss:$16 sps:$4 sm:$0xff]  }
  0x14   :  { %1241 = vmatprep.subr.bf16.mxu0 %v2289_v0  ;;  %v2153_v58 = vld [vmem:[%s3152_s0 + $0xcc] ss:$16 sps:$4 sm:$0xff]   ;;  %v2155_v59 = vld [vmem:[%s3152_s0 + $0xc0] ss:$16 sps:$4 sm:$0xff]   ;;  %v2156_v60 = vld [vmem:[%s3152_s0 + $0xc8] ss:$16 sps:$4 sm:$0xff]  }
  0x15   :  { %v2157_v61 = vld [vmem:[%s3152_s0 + $0xe4] ss:$16 sps:$4 sm:$0xff]   ;;  %v2159_v62 = vld [vmem:[%s3152_s0 + $0xec] ss:$16 sps:$4 sm:$0xff]   ;;  %v2161_v63 = vld [vmem:[%s3152_s0 + $0xe0] ss:$16 sps:$4 sm:$0xff]  }
  0x16   :  { %977 = vmatpush1.bf16.msra.mxu1 %v2093_v11  ;;  %v2163_v1 = vld [vmem:[%s3152_s0 + $0x104] ss:$16 sps:$4 sm:$0xff]   ;;  %v2165_v2 = vld [vmem:[%s3152_s0 + $0x10c] ss:$16 sps:$4 sm:$0xff]   ;;  %v2167_v3 = vld [vmem:[%s3152_s0 + $0x100] ss:$16 sps:$4 sm:$0xff]  }
  0x17   :  { %1242 = vmatpush1.bf16.msra.mxu0 %v2094_v12  ;;  %978 = vmatprep.subr.bf16.mxu1 %v2289_v0  ;;  %v2168_v4 = vld [vmem:[%s3152_s0 + $0x108] ss:$16 sps:$4 sm:$0xff]   ;;  %v2169_v5 = vld [vmem:[%s3152_s0 + $0x124] ss:$16 sps:$4 sm:$0xff]   ;;  %v2171_v6 = vld [vmem:[%s3152_s0 + $0x12c] ss:$16 sps:$4 sm:$0xff]  }
  0x18   :  { %1243 = vmatprep.subr.bf16.mxu0 %v2289_v0  ;;  %v2173_v7 = vld [vmem:[%s3152_s0 + $0x120] ss:$16 sps:$4 sm:$0xff]   ;;  %v2174_v8 = vld [vmem:[%s3152_s0 + $0x128] ss:$16 sps:$4 sm:$0xff]   ;;  %v2175_v9 = vld [vmem:[%s3152_s0 + $0x144] ss:$16 sps:$4 sm:$0xff]  }
  0x19   :  { %v2177_v10 = vld [vmem:[%s3152_s0 + $0x14c] ss:$16 sps:$4 sm:$0xff]   ;;  %v2179_v11 = vld [vmem:[%s3152_s0 + $0x140] ss:$16 sps:$4 sm:$0xff]   ;;  %v2180_v12 = vld [vmem:[%s3152_s0 + $0x148] ss:$16 sps:$4 sm:$0xff]  }
  0x1a   :  { %979 = vmatpush1.bf16.msra.mxu1 %v2095_v13  ;;  %v2181_v13 = vld [vmem:[%s3152_s0 + $0x164] ss:$16 sps:$4 sm:$0xff]   ;;  %v2191_v19 = vld [vmem:[%s3152_s0 + $0x180] ss:$16 sps:$4 sm:$0xff]  }
  0x1b   :  { %1244 = vmatpush1.bf16.msra.mxu0 %v2096_v14  ;;  %980 = vmatprep.subr.bf16.mxu1 %v2289_v0  ;;  %v2183_v14 = vld [vmem:[%s3152_s0 + $0x16c] ss:$16 sps:$4 sm:$0xff]   ;;  %v2193_v21 = vld [vmem:[%s3152_s0 + $0x1a4] ss:$16 sps:$4 sm:$0xff]  }
  0x1c   :  { %1245 = vmatprep.subr.bf16.mxu0 %v2289_v0 }
  0x1e   :  { %981 = vmatpush1.bf16.msra.mxu1 %v2097_v15  ;;  %v2185_v15 = vld [vmem:[%s3152_s0 + $0x160] ss:$16 sps:$4 sm:$0xff]  }
  0x1f   :  { %1246 = vmatpush1.bf16.msra.mxu0 %v2098_v16  ;;  %982 = vmatprep.subr.bf16.mxu1 %v2289_v0  ;;  %v2186_v16 = vld [vmem:[%s3152_s0 + $0x168] ss:$16 sps:$4 sm:$0xff]  }
  0x20   :  { %1247 = vmatprep.subr.bf16.mxu0 %v2289_v0 }
  0x22   :  { %983 = vmatpush1.bf16.msra.mxu1 %v2099_v17  ;;  %v2187_v17 = vld [vmem:[%s3152_s0 + $0x184] ss:$16 sps:$4 sm:$0xff]  }
  0x23   :  { %1248 = vmatpush1.bf16.msra.mxu0 %v2100_v18  ;;  %984 = vmatprep.subr.bf16.mxu1 %v2289_v0  ;;  %v2189_v18 = vld [vmem:[%s3152_s0 + $0x18c] ss:$16 sps:$4 sm:$0xff]  }
  0x24   :  { %1249 = vmatprep.subr.bf16.mxu0 %v2289_v0 }
  0x26   :  { %985 = vmatpush1.bf16.msra.mxu1 %v2101_v20  ;;  %v2192_v20 = vld [vmem:[%s3152_s0 + $0x188] ss:$16 sps:$4 sm:$0xff]  }
  0x27   :  { %1250 = vmatpush1.bf16.msra.mxu0 %v2102_v22  ;;  %986 = vmatprep.subr.bf16.mxu1 %v2289_v0  ;;  %v2195_v22 = vld [vmem:[%s3152_s0 + $0x1ac] ss:$16 sps:$4 sm:$0xff]  }
  0x28   :  { %1251 = vmatprep.subr.bf16.mxu0 %v2289_v0 }
  0x2a   :  { %987 = vmatpush1.bf16.msra.mxu1 %v2103_v23  ;;  %v2197_v23 = vld [vmem:[%s3152_s0 + $0x1a0] ss:$16 sps:$4 sm:$0xff]  }
  0x2b   :  { %1252 = vmatpush1.bf16.msra.mxu0 %v2104_v24  ;;  %988 = vmatprep.subr.bf16.mxu1 %v2289_v0  ;;  %v2198_v24 = vld [vmem:[%s3152_s0 + $0x1a8] ss:$16 sps:$4 sm:$0xff]  }
  0x2c   :  { %1253 = vmatprep.subr.bf16.mxu0 %v2289_v0 }
  0x2e   :  { %989 = vmatpush1.bf16.msra.mxu1 %v2105_v25  ;;  %v2199_v25 = vld [vmem:[%s3152_s0 + $0x1c4] ss:$16 sps:$4 sm:$0xff]  }
  0x2f   :  { %1254 = vmatpush1.bf16.msra.mxu0 %v2106_v26  ;;  %990 = vmatprep.subr.bf16.mxu1 %v2289_v0  ;;  %v2201_v26 = vld [vmem:[%s3152_s0 + $0x1cc] ss:$16 sps:$4 sm:$0xff]  }
  0x30   :  { %1255 = vmatprep.subr.bf16.mxu0 %v2289_v0 }
  0x32   :  { %991 = vmatpush1.bf16.msra.mxu1 %v2107_v27  ;;  %v2203_v27 = vld [vmem:[%s3152_s0 + $0x1c0] ss:$16 sps:$4 sm:$0xff]  }
  0x33   :  { %1256 = vmatpush1.bf16.msra.mxu0 %v2108_v28  ;;  %992 = vmatprep.subr.bf16.mxu1 %v2289_v0  ;;  %v2204_v28 = vld [vmem:[%s3152_s0 + $0x1c8] ss:$16 sps:$4 sm:$0xff]  }
  0x34   :  { %1257 = vmatprep.subr.bf16.mxu0 %v2289_v0 }
  0x36   :  { %993 = vmatpush1.bf16.msra.mxu1 %v2109_v29  ;;  %v2205_v29 = vld [vmem:[%s3152_s0 + $0x1e4] ss:$16 sps:$4 sm:$0xff]  }
  0x37   :  { %1258 = vmatpush1.bf16.msra.mxu0 %v2110_v30  ;;  %994 = vmatprep.subr.bf16.mxu1 %v2289_v0  ;;  %v2207_v30 = vld [vmem:[%s3152_s0 + $0x1ec] ss:$16 sps:$4 sm:$0xff]  }
  0x38   :  { %1259 = vmatprep.subr.bf16.mxu0 %v2289_v0 }
  0x3a   :  { %995 = vmatpush1.bf16.msra.mxu1 %v2111_v31  ;;  %v2209_v31 = vld [vmem:[%s3152_s0 + $0x1e0] ss:$16 sps:$4 sm:$0xff]  }
  0x3b   :  { %1260 = vmatpush1.bf16.msra.mxu0 %v2112_v32  ;;  %996 = vmatprep.subr.bf16.mxu1 %v2289_v0  ;;  %v2210_v32 = vld [vmem:[%s3152_s0 + $0x1e8] ss:$16 sps:$4 sm:$0xff]  }
  0x3c   :  { %1261 = vmatprep.subr.bf16.mxu0 %v2289_v0  ;;  %v2162_v0 = vld [vmem:[%s3152_s0 + $0xe8] ss:$16 sps:$4 sm:$0xff]  }
  0x3e   :  { %997 = vmatpush1.bf16.msra.mxu1 %v2113_v33  ;;  %v2211_v33 = vld [vmem:[%s3152_s0 + $0x204] ss:$16 sps:$4 sm:$0xff]  }
  0x3f   :  { %1262 = vmatpush1.bf16.msra.mxu0 %v2114_v34  ;;  %v2213_v34 = vld [vmem:[%s3152_s0 + $0x20c] ss:$16 sps:$4 sm:$0xff]  }
  0x41   :  { %999 = vmatmul.mubr.bf16.vlgmr.msra.gmra.mrb[0].mxu1 %v2115_v35  ;;  %v2215_v35 = vld [vmem:[%s3152_s0 + $0x200] ss:$16 sps:$4 sm:$0xff]  }
  0x42   :  { %1264 = vmatmul.mubr.bf16.vlgmr.msra.gmra.mrb[0].mxu0 %v2118_v36  ;;  %1006 = vmatprep.mubr.bf16.mxu1 %v2121_v37  ;;  %v2216_v36 = vld [vmem:[%s3152_s0 + $0x208] ss:$16 sps:$4 sm:$0xff]   ;;  %v2217_v37 = vld [vmem:[%s3152_s0 + $0x224] ss:$16 sps:$4 sm:$0xff]  }
  0x43   :  { %1271 = vmatprep.mubr.bf16.mxu0 %v2123_v38  ;;  %v2219_v38 = vld [vmem:[%s3152_s0 + $0x22c] ss:$16 sps:$4 sm:$0xff]  }
  0x49   :  { %1007 = vmatmul.mubr.bf16.gmra.mrb[4].mxu1 %v2125_v39  ;;  %v2221_v39 = vld [vmem:[%s3152_s0 + $0x220] ss:$16 sps:$4 sm:$0xff]  }
  0x4a   :  { %1272 = vmatmul.mubr.bf16.gmra.mrb[4].mxu0 %v2126_v40  ;;  %1014 = vmatprep.mubr.bf16.mxu1 %v2127_v41  ;;  %v2222_v40 = vld [vmem:[%s3152_s0 + $0x228] ss:$16 sps:$4 sm:$0xff]   ;;  %v2223_v41 = vld [vmem:[%s3152_s0 + $0x244] ss:$16 sps:$4 sm:$0xff]  }
  0x4b   :  { %1279 = vmatprep.mubr.bf16.mxu0 %v2129_v42  ;;  %v2225_v42 = vld [vmem:[%s3152_s0 + $0x24c] ss:$16 sps:$4 sm:$0xff]  }
  0x51   :  { %1015 = vmatmul.mubr.bf16.gmra.mrb[8].mxu1 %v2131_v43  ;;  %v2227_v43 = vld [vmem:[%s3152_s0 + $0x240] ss:$16 sps:$4 sm:$0xff]  }
  0x52   :  { %1280 = vmatmul.mubr.bf16.gmra.mrb[8].mxu0 %v2132_v44  ;;  %1022 = vmatprep.mubr.bf16.mxu1 %v2133_v45  ;;  %v2228_v44 = vld [vmem:[%s3152_s0 + $0x248] ss:$16 sps:$4 sm:$0xff]   ;;  %v2229_v45 = vld [vmem:[%s3152_s0 + $0x264] ss:$16 sps:$4 sm:$0xff]  }
  0x53   :  { %1287 = vmatprep.mubr.bf16.mxu0 %v2135_v46  ;;  %v2231_v46 = vld [vmem:[%s3152_s0 + $0x26c] ss:$16 sps:$4 sm:$0xff]  }
  0x59   :  { %1023 = vmatmul.mubr.bf16.gmra.mrb[12].mxu1 %v2137_v47  ;;  %v2233_v47 = vld [vmem:[%s3152_s0 + $0x260] ss:$16 sps:$4 sm:$0xff]  }
  0x5a   :  { %1288 = vmatmul.mubr.bf16.gmra.mrb[12].mxu0 %v2138_v48  ;;  %1030 = vmatprep.mubr.bf16.mxu1 %v2139_v49  ;;  %v2234_v48 = vld [vmem:[%s3152_s0 + $0x268] ss:$16 sps:$4 sm:$0xff]   ;;  %v2235_v49 = vld [vmem:[%s3152_s0 + $0x284] ss:$16 sps:$4 sm:$0xff]  }
  0x5b   :  { %1295 = vmatprep.mubr.bf16.mxu0 %v2141_v50  ;;  %v2237_v50 = vld [vmem:[%s3152_s0 + $0x28c] ss:$16 sps:$4 sm:$0xff]  }
  0x61   :  { %1031 = vmatmul.mubr.bf16.gmra.mrb[16].mxu1 %v2143_v51  ;;  %v2239_v51 = vld [vmem:[%s3152_s0 + $0x280] ss:$16 sps:$4 sm:$0xff]  }
  0x62   :  { %1296 = vmatmul.mubr.bf16.gmra.mrb[16].mxu0 %v2144_v52  ;;  %1038 = vmatprep.mubr.bf16.mxu1 %v2145_v53  ;;  %v2240_v52 = vld [vmem:[%s3152_s0 + $0x288] ss:$16 sps:$4 sm:$0xff]   ;;  %v2241_v53 = vld [vmem:[%s3152_s0 + $0x2a4] ss:$16 sps:$4 sm:$0xff]  }
  0x63   :  { %1303 = vmatprep.mubr.bf16.mxu0 %v2147_v54  ;;  %v2243_v54 = vld [vmem:[%s3152_s0 + $0x2ac] ss:$16 sps:$4 sm:$0xff]  }
  0x69   :  { %1039 = vmatmul.mubr.bf16.gmra.mrb[20].mxu1 %v2149_v55  ;;  %v2245_v55 = vld [vmem:[%s3152_s0 + $0x2a0] ss:$16 sps:$4 sm:$0xff]  }
  0x6a   :  { %1304 = vmatmul.mubr.bf16.gmra.mrb[20].mxu0 %v2150_v56  ;;  %1046 = vmatprep.mubr.bf16.mxu1 %v2151_v57  ;;  %v2246_v56 = vld [vmem:[%s3152_s0 + $0x2a8] ss:$16 sps:$4 sm:$0xff]   ;;  %v2247_v57 = vld [vmem:[%s3152_s0 + $0x2c4] ss:$16 sps:$4 sm:$0xff]  }
  0x6b   :  { %1311 = vmatprep.mubr.bf16.mxu0 %v2153_v58  ;;  %v2249_v58 = vld [vmem:[%s3152_s0 + $0x2cc] ss:$16 sps:$4 sm:$0xff]  }
  0x71   :  { %1047 = vmatmul.mubr.bf16.gmra.mrb[24].mxu1 %v2155_v59  ;;  %v2251_v59 = vld [vmem:[%s3152_s0 + $0x2c0] ss:$16 sps:$4 sm:$0xff]  }
  0x72   :  { %1312 = vmatmul.mubr.bf16.gmra.mrb[24].mxu0 %v2156_v60  ;;  %1054 = vmatprep.mubr.bf16.mxu1 %v2157_v61  ;;  %v2252_v60 = vld [vmem:[%s3152_s0 + $0x2c8] ss:$16 sps:$4 sm:$0xff]   ;;  %v2253_v61 = vld [vmem:[%s3152_s0 + $0x2e4] ss:$16 sps:$4 sm:$0xff]  }
  0x73   :  { %1319 = vmatprep.mubr.bf16.mxu0 %v2159_v62  ;;  %v2255_v62 = vld [vmem:[%s3152_s0 + $0x2ec] ss:$16 sps:$4 sm:$0xff]  }
  0x79   :  { %1055 = vmatmul.mubr.bf16.gmra.mrb[28].mxu1 %v2161_v63  ;;  %v2257_v63 = vld [vmem:[%s3152_s0 + $0x2e0] ss:$16 sps:$4 sm:$0xff]  }
  0x7a   :  { %1320 = vmatmul.mubr.bf16.gmra.mrb[28].mxu0 %v2162_v0  ;;  %1062 = vmatprep.mubr.bf16.mxu1 %v2163_v1  ;;  %v2258_v0 = vld [vmem:[%s3152_s0 + $0x2e8] ss:$16 sps:$4 sm:$0xff]   ;;  %v2259_v1 = vld [vmem:[%s3152_s0 + $0x304] ss:$16 sps:$4 sm:$0xff]  }
  0x7b   :  { %1327 = vmatprep.mubr.bf16.mxu0 %v2165_v2  ;;  %v2261_v2 = vld [vmem:[%s3152_s0 + $0x30c] ss:$16 sps:$4 sm:$0xff]  }
  0x81   :  { %1063 = vmatmul.mubr.bf16.gmra.mrb[32].mxu1 %v2167_v3  ;;  %v2263_v3 = vld [vmem:[%s3152_s0 + $0x300] ss:$16 sps:$4 sm:$0xff]  }
  0x82   :  { %1328 = vmatmul.mubr.bf16.gmra.mrb[32].mxu0 %v2168_v4  ;;  %1070 = vmatprep.mubr.bf16.mxu1 %v2169_v5  ;;  %v2264_v4 = vld [vmem:[%s3152_s0 + $0x308] ss:$16 sps:$4 sm:$0xff]   ;;  %v2265_v5 = vld [vmem:[%s3152_s0 + $0x324] ss:$16 sps:$4 sm:$0xff]  }
  0x83   :  { %1335 = vmatprep.mubr.bf16.mxu0 %v2171_v6  ;;  %v2267_v6 = vld [vmem:[%s3152_s0 + $0x32c] ss:$16 sps:$4 sm:$0xff]  }
  0x89   :  { %1071 = vmatmul.mubr.bf16.gmra.mrb[36].mxu1 %v2173_v7  ;;  %v2269_v7 = vld [vmem:[%s3152_s0 + $0x320] ss:$16 sps:$4 sm:$0xff]  }
  0x8a   :  { %1336 = vmatmul.mubr.bf16.gmra.mrb[36].mxu0 %v2174_v8  ;;  %1078 = vmatprep.mubr.bf16.mxu1 %v2175_v9  ;;  %v2270_v8 = vld [vmem:[%s3152_s0 + $0x328] ss:$16 sps:$4 sm:$0xff]   ;;  %v2271_v9 = vld [vmem:[%s3152_s0 + $0x344] ss:$16 sps:$4 sm:$0xff]  }
  0x8b   :  { %1343 = vmatprep.mubr.bf16.mxu0 %v2177_v10  ;;  %v2273_v10 = vld [vmem:[%s3152_s0 + $0x34c] ss:$16 sps:$4 sm:$0xff]  }
  0x91   :  { %1079 = vmatmul.mubr.bf16.gmra.mrb[40].mxu1 %v2179_v11  ;;  %v2275_v11 = vld [vmem:[%s3152_s0 + $0x340] ss:$16 sps:$4 sm:$0xff]  }
  0x92   :  { %1344 = vmatmul.mubr.bf16.gmra.mrb[40].mxu0 %v2180_v12  ;;  %1086 = vmatprep.mubr.bf16.mxu1 %v2181_v13  ;;  %v2276_v12 = vld [vmem:[%s3152_s0 + $0x348] ss:$16 sps:$4 sm:$0xff]   ;;  %v2277_v13 = vld [vmem:[%s3152_s0 + $0x364] ss:$16 sps:$4 sm:$0xff]  }
  0x93   :  { %1351 = vmatprep.mubr.bf16.mxu0 %v2183_v14  ;;  %v2279_v14 = vld [vmem:[%s3152_s0 + $0x36c] ss:$16 sps:$4 sm:$0xff]  }
  0x99   :  { %1087 = vmatmul.mubr.bf16.gmra.mrb[44].mxu1 %v2185_v15 }
  0x9a   :  { %1352 = vmatmul.mubr.bf16.gmra.mrb[44].mxu0 %v2186_v16  ;;  %1094 = vmatprep.mubr.bf16.mxu1 %v2187_v17 }
  0x9b   :  { %1359 = vmatprep.mubr.bf16.mxu0 %v2189_v18  ;;  %v2281_v18 = vld [vmem:[%s3152_s0 + $0x360] ss:$16 sps:$4 sm:$0xff]  }
  0xa1   :  { %1095 = vmatmul.mubr.bf16.gmra.mrb[48].mxu1 %v2191_v19 }
  0xa2   :  { %1360 = vmatmul.mubr.bf16.gmra.mrb[48].mxu0 %v2192_v20  ;;  %1102 = vmatprep.mubr.bf16.mxu1 %v2193_v21 }
  0xa3   :  { %1367 = vmatprep.mubr.bf16.mxu0 %v2195_v22  ;;  %v2282_v22 = vld [vmem:[%s3152_s0 + $0x368] ss:$16 sps:$4 sm:$0xff]  }
  0xa9   :  { %1103 = vmatmul.mubr.bf16.gmra.mrb[52].mxu1 %v2197_v23  ;;  %v2283_v23 = vld [vmem:[%s3152_s0 + $0x384] ss:$16 sps:$4 sm:$0xff]  }
  0xaa   :  { %1368 = vmatmul.mubr.bf16.gmra.mrb[52].mxu0 %v2198_v24  ;;  %1110 = vmatprep.mubr.bf16.mxu1 %v2199_v25 }
  0xab   :  { %1375 = vmatprep.mubr.bf16.mxu0 %v2201_v26  ;;  %v2285_v26 = vld [vmem:[%s3152_s0 + $0x38c] ss:$16 sps:$4 sm:$0xff]  }
  0xb1   :  { %1111 = vmatmul.mubr.bf16.gmra.mrb[56].mxu1 %v2203_v27 }
  0xb2   :  { %1376 = vmatmul.mubr.bf16.gmra.mrb[56].mxu0 %v2204_v28  ;;  %1118 = vmatprep.mubr.bf16.mxu1 %v2205_v29 }
  0xb3   :  { %1383 = vmatprep.mubr.bf16.mxu0 %v2207_v30 }
  0xb9   :  { %1119 = vmatmul.mubr.bf16.gmra.mrb[60].mxu1 %v2209_v31 }
  0xba   :  { %1384 = vmatmul.mubr.bf16.gmra.mrb[60].mxu0 %v2210_v32  ;;  %1126 = vmatprep.mubr.bf16.mxu1 %v2211_v33 }
  0xbb   :  { %1391 = vmatprep.mubr.bf16.mxu0 %v2213_v34 }
  0xc1   :  { %1127 = vmatmul.mubr.bf16.gmra.mrb[64].mxu1 %v2215_v35 }
  0xc2   :  { %1392 = vmatmul.mubr.bf16.gmra.mrb[64].mxu0 %v2216_v36  ;;  %1134 = vmatprep.mubr.bf16.mxu1 %v2217_v37 }
  0xc3   :  { %1399 = vmatprep.mubr.bf16.mxu0 %v2219_v38 }
  0xc9   :  { %1135 = vmatmul.mubr.bf16.gmra.mrb[68].mxu1 %v2221_v39 }
  0xca   :  { %1400 = vmatmul.mubr.bf16.gmra.mrb[68].mxu0 %v2222_v40  ;;  %1142 = vmatprep.mubr.bf16.mxu1 %v2223_v41  ;;  %v2287_v40 = vld [vmem:[%s3152_s0 + $0x380] ss:$16 sps:$4 sm:$0xff]  }
  0xcb   :  { %1407 = vmatprep.mubr.bf16.mxu0 %v2225_v42 }
  0xd1   :  { %1143 = vmatmul.mubr.bf16.gmra.mrb[72].mxu1 %v2227_v43 }
  0xd2   :  { %1408 = vmatmul.mubr.bf16.gmra.mrb[72].mxu0 %v2228_v44  ;;  %1150 = vmatprep.mubr.bf16.mxu1 %v2229_v45  ;;  %v2288_v44 = vld [vmem:[%s3152_s0 + $0x388] ss:$16 sps:$4 sm:$0xff]  }
  0xd3   :  { %1415 = vmatprep.mubr.bf16.mxu0 %v2231_v46 }
  0xd9   :  { %1151 = vmatmul.mubr.bf16.gmra.mrb[76].mxu1 %v2233_v47 }
  0xda   :  { %1416 = vmatmul.mubr.bf16.gmra.mrb[76].mxu0 %v2234_v48  ;;  %1158 = vmatprep.mubr.bf16.mxu1 %v2235_v49 }
  0xdb   :  { %1423 = vmatprep.mubr.bf16.mxu0 %v2237_v50 }
  0xe1   :  { %1159 = vmatmul.mubr.bf16.gmra.mrb[80].mxu1 %v2239_v51 }
  0xe2   :  { %1424 = vmatmul.mubr.bf16.gmra.mrb[80].mxu0 %v2240_v52  ;;  %1166 = vmatprep.mubr.bf16.mxu1 %v2241_v53 }
  0xe3   :  { %1431 = vmatprep.mubr.bf16.mxu0 %v2243_v54 }
  0xe9   :  { %1167 = vmatmul.mubr.bf16.gmra.mrb[84].mxu1 %v2245_v55 }
  0xea   :  { %1432 = vmatmul.mubr.bf16.gmra.mrb[84].mxu0 %v2246_v56  ;;  %1174 = vmatprep.mubr.bf16.mxu1 %v2247_v57 }
  0xeb   :  { %1439 = vmatprep.mubr.bf16.mxu0 %v2249_v58 }
  0xf1   :  { %1175 = vmatmul.mubr.bf16.gmra.mrb[88].mxu1 %v2251_v59 }
  0xf2   :  { %1440 = vmatmul.mubr.bf16.gmra.mrb[88].mxu0 %v2252_v60  ;;  %1182 = vmatprep.mubr.bf16.mxu1 %v2253_v61 }
  0xf3   :  { %1447 = vmatprep.mubr.bf16.mxu0 %v2255_v62 }
  0xf9   :  { %1183 = vmatmul.mubr.bf16.gmra.mrb[92].mxu1 %v2257_v63 }
  0xfa   :  { %1448 = vmatmul.mubr.bf16.gmra.mrb[92].mxu0 %v2258_v0  ;;  %1190 = vmatprep.mubr.bf16.mxu1 %v2259_v1 }
  0xfb   :  { %1455 = vmatprep.mubr.bf16.mxu0 %v2261_v2 }
 0x101   :  { %1191 = vmatmul.mubr.bf16.gmra.mrb[96].mxu1 %v2263_v3 }
 0x102   :  { %1456 = vmatmul.mubr.bf16.gmra.mrb[96].mxu0 %v2264_v4  ;;  %1198 = vmatprep.mubr.bf16.mxu1 %v2265_v5 }
 0x103   :  { %1463 = vmatprep.mubr.bf16.mxu0 %v2267_v6 }
 0x109   :  { %1199 = vmatmul.mubr.bf16.gmra.mrb[100].mxu1 %v2269_v7 }
 0x10a   :  { %1464 = vmatmul.mubr.bf16.gmra.mrb[100].mxu0 %v2270_v8  ;;  %1206 = vmatprep.mubr.bf16.mxu1 %v2271_v9 }
 0x10b   :  { %1471 = vmatprep.mubr.bf16.mxu0 %v2273_v10 }
 0x111   :  { %1207 = vmatmul.mubr.bf16.gmra.mrb[104].mxu1 %v2275_v11 }
 0x112   :  { %1472 = vmatmul.mubr.bf16.gmra.mrb[104].mxu0 %v2276_v12  ;;  %1214 = vmatprep.mubr.bf16.mxu1 %v2277_v13 }
 0x113   :  { %1479 = vmatprep.mubr.bf16.mxu0 %v2279_v14 }
 0x114   :  { %v1000_v15 = vpop.f32.mrb[0].mxu1 }
 0x115   :  { %v1265_v16 = vpop.f32.mrb[0].mxu0  ;;  %v1002_v17 = vpop.f32.mrb[1].mxu1 }
 0x116   :  { %v1266_v19 = vadd.f32 %v1265_v16, %v1000_v15  ;;  %v1267_v20 = vpop.f32.mrb[1].mxu0  ;;  %v1003_v21 = vpop.f32.mrb[2].mxu1 }
 0x117   :  { %v1268_v24 = vpop.f32.mrb[2].mxu0  ;;  %v1005_v25 = vpop.f32.mrb[3].mxu1 }
 0x118   :  { %1497 = vst.msk [vmem:[%s3153_s2] sm:$0xff] %vm1496_vm0, %v1266_v19  ;;  %v1686_v27 = vmul.f32 %v1266_v19, %v1266_v19  ;;  %v1269_v28 = vadd.f32 %v1268_v24, %v1003_v21  ;;  %v1270_v29 = vpop.f32.mrb[3].mxu0  ;;  %v1561_v30 = vsel %vm1496_vm0, %v1266_v19, 0.0 }
 0x119   :  { %1215 = vmatmul.mubr.bf16.gmra.mrb[108].mxu1 %v2281_v18 }
 0x11a   :  { %1498 = vst.msk [vmem:[%s3153_s2 + $0x8] sm:$0xff] %vm1496_vm0, %v1269_v28  ;;  %v1562_v31 = vsel %vm1496_vm0, %v1269_v28, 0.0  ;;  %v1687_v32 = vmul.f32 %v1269_v28, %v1269_v28  ;;  %1480 = vmatmul.mubr.bf16.gmra.mrb[108].mxu0 %v2282_v22  ;;  %1222 = vmatprep.mubr.bf16.mxu1 %v2283_v23  ;;  %v1744_v34 = vsel %vm1496_vm0, %v1686_v27, 0.0 }
 0x11b   :  { %v1563_v33 = vadd.f32 %v1562_v31, %v1561_v30  ;;  %1487 = vmatprep.mubr.bf16.mxu0 %v2285_v26 }
 0x11c   :  { %v1745_v35 = vsel %vm1496_vm0, %v1687_v32, 0.0  ;;  %v1008_v36 = vpop.f32.mrb[4].mxu1 }
 0x11d   :  { %v1746_v37 = vadd.f32 %v1745_v35, %v1744_v34  ;;  %v1273_v38 = vpop.f32.mrb[4].mxu0  ;;  %v1010_v39 = vpop.f32.mrb[5].mxu1 }
 0x11e   :  { %v1274_v41 = vadd.f32 %v1273_v38, %v1008_v36  ;;  %v1275_v42 = vpop.f32.mrb[5].mxu0  ;;  %v1011_v43 = vpop.f32.mrb[6].mxu1 }
 0x11f   :  { %v1276_v45 = vpop.f32.mrb[6].mxu0  ;;  %v1013_v46 = vpop.f32.mrb[7].mxu1 }
 0x120   :  { %1499 = vst.msk [vmem:[%s3153_s2 + $0x10] sm:$0xff] %vm1496_vm0, %v1274_v41  ;;  %v1564_v47 = vsel %vm1496_vm0, %v1274_v41, 0.0  ;;  %v1688_v48 = vmul.f32 %v1274_v41, %v1274_v41  ;;  %v1277_v49 = vadd.f32 %v1276_v45, %v1011_v43  ;;  %v1278_v50 = vpop.f32.mrb[7].mxu0 }
 0x121   :  { %v1565_v51 = vadd.f32 %v1564_v47, %v1563_v33  ;;  %1223 = vmatmul.mubr.bf16.gmra.mrb[112].mxu1 %v2287_v40 }
 0x122   :  { %v1747_v52 = vsel %vm1496_vm0, %v1688_v48, 0.0  ;;  %1500 = vst.msk [vmem:[%s3153_s2 + $0x18] sm:$0xff] %vm1496_vm0, %v1277_v49  ;;  %v1566_v53 = vsel %vm1496_vm0, %v1277_v49, 0.0  ;;  %v1689_v54 = vmul.f32 %v1277_v49, %v1277_v49  ;;  %1488 = vmatmul.mubr.bf16.gmra.mrb[112].mxu0 %v2288_v44 }
 0x123   :  { %v1748_v55 = vadd.f32 %v1747_v52, %v1746_v37  ;;  %v1567_v56 = vadd.f32 %v1566_v53, %v1565_v51 }
 0x124   :  { %v1749_v57 = vsel %vm1496_vm0, %v1689_v54, 0.0  ;;  %v1016_v58 = vpop.f32.mrb[8].mxu1 }
 0x125   :  { %v1750_v59 = vadd.f32 %v1749_v57, %v1748_v55  ;;  %v1281_v60 = vpop.f32.mrb[8].mxu0  ;;  %v1018_v61 = vpop.f32.mrb[9].mxu1 }
 0x126   :  { %v1282_v62 = vadd.f32 %v1281_v60, %v1016_v58  ;;  %v1283_v63 = vpop.f32.mrb[9].mxu0  ;;  %v1019_v0 = vpop.f32.mrb[10].mxu1 }
 0x127   :  { %v1284_v1 = vpop.f32.mrb[10].mxu0  ;;  %v1021_v2 = vpop.f32.mrb[11].mxu1 }
 0x128   :  { %1501 = vst.msk [vmem:[%s3153_s2 + $0x20] sm:$0xff] %vm1496_vm0, %v1282_v62  ;;  %v1568_v3 = vsel %vm1496_vm0, %v1282_v62, 0.0  ;;  %v1690_v4 = vmul.f32 %v1282_v62, %v1282_v62  ;;  %v1285_v5 = vadd.f32 %v1284_v1, %v1019_v0  ;;  %v1286_v6 = vpop.f32.mrb[11].mxu0 }
 0x129   :  { %v1569_v7 = vadd.f32 %v1568_v3, %v1567_v56 }
 0x12a   :  { %v1751_v8 = vsel %vm1496_vm0, %v1690_v4, 0.0  ;;  %1502 = vst.msk [vmem:[%s3153_s2 + $0x28] sm:$0xff] %vm1496_vm0, %v1285_v5  ;;  %v1570_v9 = vsel %vm1496_vm0, %v1285_v5, 0.0  ;;  %v1691_v10 = vmul.f32 %v1285_v5, %v1285_v5 }
 0x12b   :  { %v1752_v11 = vadd.f32 %v1751_v8, %v1750_v59  ;;  %v1571_v12 = vadd.f32 %v1570_v9, %v1569_v7 }
 0x12c   :  { %v1753_v13 = vsel %vm1496_vm0, %v1691_v10, 0.0  ;;  %v1024_v14 = vpop.f32.mrb[12].mxu1 }
 0x12d   :  { %v1754_v15 = vadd.f32 %v1753_v13, %v1752_v11  ;;  %v1289_v16 = vpop.f32.mrb[12].mxu0  ;;  %v1026_v17 = vpop.f32.mrb[13].mxu1 }
 0x12e   :  { %v1290_v18 = vadd.f32 %v1289_v16, %v1024_v14  ;;  %v1291_v19 = vpop.f32.mrb[13].mxu0  ;;  %v1027_v20 = vpop.f32.mrb[14].mxu1 }
 0x12f   :  { %v1292_v21 = vpop.f32.mrb[14].mxu0  ;;  %v1029_v22 = vpop.f32.mrb[15].mxu1 }
 0x130   :  { %1503 = vst.msk [vmem:[%s3153_s2 + $0x30] sm:$0xff] %vm1496_vm0, %v1290_v18  ;;  %v1572_v23 = vsel %vm1496_vm0, %v1290_v18, 0.0  ;;  %v1692_v24 = vmul.f32 %v1290_v18, %v1290_v18  ;;  %v1293_v25 = vadd.f32 %v1292_v21, %v1027_v20  ;;  %v1294_v26 = vpop.f32.mrb[15].mxu0 }
 0x131   :  { %v1573_v27 = vadd.f32 %v1572_v23, %v1571_v12 }
 0x132   :  { %v1755_v28 = vsel %vm1496_vm0, %v1692_v24, 0.0  ;;  %1504 = vst.msk [vmem:[%s3153_s2 + $0x38] sm:$0xff] %vm1496_vm0, %v1293_v25  ;;  %v1574_v29 = vsel %vm1496_vm0, %v1293_v25, 0.0  ;;  %v1693_v30 = vmul.f32 %v1293_v25, %v1293_v25 }
 0x133   :  { %v1756_v31 = vadd.f32 %v1755_v28, %v1754_v15  ;;  %v1575_v32 = vadd.f32 %v1574_v29, %v1573_v27 }
 0x134   :  { %v1757_v33 = vsel %vm1496_vm0, %v1693_v30, 0.0  ;;  %v1032_v34 = vpop.f32.mrb[16].mxu1 }
 0x135   :  { %v1758_v35 = vadd.f32 %v1757_v33, %v1756_v31  ;;  %v1297_v36 = vpop.f32.mrb[16].mxu0  ;;  %v1034_v37 = vpop.f32.mrb[17].mxu1 }
 0x136   :  { %v1298_v38 = vadd.f32 %v1297_v36, %v1032_v34  ;;  %v1299_v39 = vpop.f32.mrb[17].mxu0  ;;  %v1035_v40 = vpop.f32.mrb[18].mxu1 }
 0x137   :  { %v1300_v41 = vpop.f32.mrb[18].mxu0  ;;  %v1037_v42 = vpop.f32.mrb[19].mxu1 }
 0x138   :  { %1505 = vst.msk [vmem:[%s3153_s2 + $0x40] sm:$0xff] %vm1496_vm0, %v1298_v38  ;;  %v1576_v43 = vsel %vm1496_vm0, %v1298_v38, 0.0  ;;  %v1694_v44 = vmul.f32 %v1298_v38, %v1298_v38  ;;  %v1301_v45 = vadd.f32 %v1300_v41, %v1035_v40  ;;  %v1302_v46 = vpop.f32.mrb[19].mxu0 }
 0x139   :  { %v1577_v47 = vadd.f32 %v1576_v43, %v1575_v32 }
 0x13a   :  { %v1759_v48 = vsel %vm1496_vm0, %v1694_v44, 0.0  ;;  %1506 = vst.msk [vmem:[%s3153_s2 + $0x48] sm:$0xff] %vm1496_vm0, %v1301_v45  ;;  %v1578_v49 = vsel %vm1496_vm0, %v1301_v45, 0.0  ;;  %v1695_v50 = vmul.f32 %v1301_v45, %v1301_v45 }
 0x13b   :  { %v1760_v51 = vadd.f32 %v1759_v48, %v1758_v35  ;;  %v1579_v52 = vadd.f32 %v1578_v49, %v1577_v47 }
 0x13c   :  { %v1761_v53 = vsel %vm1496_vm0, %v1695_v50, 0.0  ;;  %v1040_v54 = vpop.f32.mrb[20].mxu1 }
 0x13d   :  { %v1762_v55 = vadd.f32 %v1761_v53, %v1760_v51  ;;  %v1305_v56 = vpop.f32.mrb[20].mxu0  ;;  %v1042_v57 = vpop.f32.mrb[21].mxu1 }
 0x13e   :  { %v1306_v58 = vadd.f32 %v1305_v56, %v1040_v54  ;;  %v1307_v59 = vpop.f32.mrb[21].mxu0  ;;  %v1043_v60 = vpop.f32.mrb[22].mxu1 }
 0x13f   :  { %v1308_v61 = vpop.f32.mrb[22].mxu0  ;;  %v1045_v62 = vpop.f32.mrb[23].mxu1 }
 0x140   :  { %1507 = vst.msk [vmem:[%s3153_s2 + $0x50] sm:$0xff] %vm1496_vm0, %v1306_v58  ;;  %v1580_v63 = vsel %vm1496_vm0, %v1306_v58, 0.0  ;;  %v1696_v0 = vmul.f32 %v1306_v58, %v1306_v58  ;;  %v1309_v1 = vadd.f32 %v1308_v61, %v1043_v60  ;;  %v1310_v2 = vpop.f32.mrb[23].mxu0 }
 0x141   :  { %v1581_v3 = vadd.f32 %v1580_v63, %v1579_v52 }
 0x142   :  { %v1763_v4 = vsel %vm1496_vm0, %v1696_v0, 0.0  ;;  %1508 = vst.msk [vmem:[%s3153_s2 + $0x58] sm:$0xff] %vm1496_vm0, %v1309_v1  ;;  %v1582_v5 = vsel %vm1496_vm0, %v1309_v1, 0.0  ;;  %v1697_v6 = vmul.f32 %v1309_v1, %v1309_v1 }
 0x143   :  { %v1764_v7 = vadd.f32 %v1763_v4, %v1762_v55  ;;  %v1583_v8 = vadd.f32 %v1582_v5, %v1581_v3 }
 0x144   :  { %v1765_v9 = vsel %vm1496_vm0, %v1697_v6, 0.0  ;;  %v1048_v10 = vpop.f32.mrb[24].mxu1 }
 0x145   :  { %v1766_v11 = vadd.f32 %v1765_v9, %v1764_v7  ;;  %v1313_v12 = vpop.f32.mrb[24].mxu0  ;;  %v1050_v13 = vpop.f32.mrb[25].mxu1 }
 0x146   :  { %v1314_v14 = vadd.f32 %v1313_v12, %v1048_v10  ;;  %v1315_v15 = vpop.f32.mrb[25].mxu0  ;;  %v1051_v16 = vpop.f32.mrb[26].mxu1 }
 0x147   :  { %v1316_v17 = vpop.f32.mrb[26].mxu0  ;;  %v1053_v18 = vpop.f32.mrb[27].mxu1 }
 0x148   :  { %1509 = vst.msk [vmem:[%s3153_s2 + $0x60] sm:$0xff] %vm1496_vm0, %v1314_v14  ;;  %v1584_v19 = vsel %vm1496_vm0, %v1314_v14, 0.0  ;;  %v1698_v20 = vmul.f32 %v1314_v14, %v1314_v14  ;;  %v1317_v21 = vadd.f32 %v1316_v17, %v1051_v16  ;;  %v1318_v22 = vpop.f32.mrb[27].mxu0 }
 0x149   :  { %v1585_v23 = vadd.f32 %v1584_v19, %v1583_v8 }
 0x14a   :  { %v1767_v24 = vsel %vm1496_vm0, %v1698_v20, 0.0  ;;  %1510 = vst.msk [vmem:[%s3153_s2 + $0x68] sm:$0xff] %vm1496_vm0, %v1317_v21  ;;  %v1586_v25 = vsel %vm1496_vm0, %v1317_v21, 0.0  ;;  %v1699_v26 = vmul.f32 %v1317_v21, %v1317_v21 }
 0x14b   :  { %v1768_v27 = vadd.f32 %v1767_v24, %v1766_v11  ;;  %v1587_v28 = vadd.f32 %v1586_v25, %v1585_v23 }
 0x14c   :  { %v1769_v29 = vsel %vm1496_vm0, %v1699_v26, 0.0  ;;  %v1056_v30 = vpop.f32.mrb[28].mxu1 }
 0x14d   :  { %v1770_v31 = vadd.f32 %v1769_v29, %v1768_v27  ;;  %v1321_v32 = vpop.f32.mrb[28].mxu0  ;;  %v1058_v33 = vpop.f32.mrb[29].mxu1 }
 0x14e   :  { %v1322_v34 = vadd.f32 %v1321_v32, %v1056_v30  ;;  %v1323_v35 = vpop.f32.mrb[29].mxu0  ;;  %v1059_v36 = vpop.f32.mrb[30].mxu1 }
 0x14f   :  { %v1324_v37 = vpop.f32.mrb[30].mxu0  ;;  %v1061_v38 = vpop.f32.mrb[31].mxu1 }
 0x150   :  { %1511 = vst.msk [vmem:[%s3153_s2 + $0x70] sm:$0xff] %vm1496_vm0, %v1322_v34  ;;  %v1588_v39 = vsel %vm1496_vm0, %v1322_v34, 0.0  ;;  %v1700_v40 = vmul.f32 %v1322_v34, %v1322_v34  ;;  %v1325_v41 = vadd.f32 %v1324_v37, %v1059_v36  ;;  %v1326_v42 = vpop.f32.mrb[31].mxu0 }
 0x151   :  { %v1589_v43 = vadd.f32 %v1588_v39, %v1587_v28 }
 0x152   :  { %v1771_v44 = vsel %vm1496_vm0, %v1700_v40, 0.0  ;;  %1512 = vst.msk [vmem:[%s3153_s2 + $0x78] sm:$0xff] %vm1496_vm0, %v1325_v41  ;;  %v1590_v45 = vsel %vm1496_vm0, %v1325_v41, 0.0  ;;  %v1701_v46 = vmul.f32 %v1325_v41, %v1325_v41 }
 0x153   :  { %v1772_v47 = vadd.f32 %v1771_v44, %v1770_v31  ;;  %v1591_v48 = vadd.f32 %v1590_v45, %v1589_v43 }
 0x154   :  { %v1773_v49 = vsel %vm1496_vm0, %v1701_v46, 0.0  ;;  %v1064_v50 = vpop.f32.mrb[32].mxu1 }
 0x155   :  { %v1774_v51 = vadd.f32 %v1773_v49, %v1772_v47  ;;  %v1329_v52 = vpop.f32.mrb[32].mxu0  ;;  %v1066_v53 = vpop.f32.mrb[33].mxu1 }
 0x156   :  { %v1330_v54 = vadd.f32 %v1329_v52, %v1064_v50  ;;  %v1331_v55 = vpop.f32.mrb[33].mxu0  ;;  %v1067_v56 = vpop.f32.mrb[34].mxu1 }
 0x157   :  { %v1332_v57 = vpop.f32.mrb[34].mxu0  ;;  %v1069_v58 = vpop.f32.mrb[35].mxu1 }
 0x158   :  { %1513 = vst.msk [vmem:[%s3153_s2 + $0x80] sm:$0xff] %vm1496_vm0, %v1330_v54  ;;  %v1592_v59 = vsel %vm1496_vm0, %v1330_v54, 0.0  ;;  %v1702_v60 = vmul.f32 %v1330_v54, %v1330_v54  ;;  %v1333_v61 = vadd.f32 %v1332_v57, %v1067_v56  ;;  %v1334_v62 = vpop.f32.mrb[35].mxu0 }
 0x159   :  { %v1593_v63 = vadd.f32 %v1592_v59, %v1591_v48 }
 0x15a   :  { %v1775_v0 = vsel %vm1496_vm0, %v1702_v60, 0.0  ;;  %1514 = vst.msk [vmem:[%s3153_s2 + $0x88] sm:$0xff] %vm1496_vm0, %v1333_v61  ;;  %v1594_v1 = vsel %vm1496_vm0, %v1333_v61, 0.0  ;;  %v1703_v2 = vmul.f32 %v1333_v61, %v1333_v61 }
 0x15b   :  { %v1776_v3 = vadd.f32 %v1775_v0, %v1774_v51  ;;  %v1595_v4 = vadd.f32 %v1594_v1, %v1593_v63 }
 0x15c   :  { %v1777_v5 = vsel %vm1496_vm0, %v1703_v2, 0.0  ;;  %v1072_v6 = vpop.f32.mrb[36].mxu1 }
 0x15d   :  { %v1778_v7 = vadd.f32 %v1777_v5, %v1776_v3  ;;  %v1337_v8 = vpop.f32.mrb[36].mxu0  ;;  %v1074_v9 = vpop.f32.mrb[37].mxu1 }
 0x15e   :  { %v1338_v10 = vadd.f32 %v1337_v8, %v1072_v6  ;;  %v1339_v11 = vpop.f32.mrb[37].mxu0  ;;  %v1075_v12 = vpop.f32.mrb[38].mxu1 }
 0x15f   :  { %v1340_v13 = vpop.f32.mrb[38].mxu0  ;;  %v1077_v14 = vpop.f32.mrb[39].mxu1 }
 0x160   :  { %1515 = vst.msk [vmem:[%s3153_s2 + $0x90] sm:$0xff] %vm1496_vm0, %v1338_v10  ;;  %v1596_v15 = vsel %vm1496_vm0, %v1338_v10, 0.0  ;;  %v1704_v16 = vmul.f32 %v1338_v10, %v1338_v10  ;;  %v1341_v17 = vadd.f32 %v1340_v13, %v1075_v12  ;;  %v1342_v18 = vpop.f32.mrb[39].mxu0 }
 0x161   :  { %v1597_v19 = vadd.f32 %v1596_v15, %v1595_v4 }
 0x162   :  { %v1779_v20 = vsel %vm1496_vm0, %v1704_v16, 0.0  ;;  %1516 = vst.msk [vmem:[%s3153_s2 + $0x98] sm:$0xff] %vm1496_vm0, %v1341_v17  ;;  %v1598_v21 = vsel %vm1496_vm0, %v1341_v17, 0.0  ;;  %v1705_v22 = vmul.f32 %v1341_v17, %v1341_v17 }
 0x163   :  { %v1780_v23 = vadd.f32 %v1779_v20, %v1778_v7  ;;  %v1599_v24 = vadd.f32 %v1598_v21, %v1597_v19 }
 0x164   :  { %v1781_v25 = vsel %vm1496_vm0, %v1705_v22, 0.0  ;;  %v1080_v26 = vpop.f32.mrb[40].mxu1 }
 0x165   :  { %v1782_v27 = vadd.f32 %v1781_v25, %v1780_v23  ;;  %v1345_v28 = vpop.f32.mrb[40].mxu0  ;;  %v1082_v29 = vpop.f32.mrb[41].mxu1  ;;  %v2290_v23 = vmov 0.0  }
 0x166   :  { %v1346_v30 = vadd.f32 %v1345_v28, %v1080_v26  ;;  %v1347_v31 = vpop.f32.mrb[41].mxu0  ;;  %v1083_v32 = vpop.f32.mrb[42].mxu1  ;;  %1559 = vst.msk [vmem:[%s3154_s3] sm:$0xff] %vm1496_vm0, %v2290_v23 }
 0x167   :  { %v1348_v33 = vpop.f32.mrb[42].mxu0  ;;  %v1085_v34 = vpop.f32.mrb[43].mxu1 }
 0x168   :  { %1517 = vst.msk [vmem:[%s3153_s2 + $0xa0] sm:$0xff] %vm1496_vm0, %v1346_v30  ;;  %v1600_v35 = vsel %vm1496_vm0, %v1346_v30, 0.0  ;;  %v1706_v36 = vmul.f32 %v1346_v30, %v1346_v30  ;;  %v1349_v37 = vadd.f32 %v1348_v33, %v1083_v32  ;;  %v1350_v38 = vpop.f32.mrb[43].mxu0 }
 0x169   :  { %v1601_v39 = vadd.f32 %v1600_v35, %v1599_v24 }
 0x16a   :  { %v1783_v40 = vsel %vm1496_vm0, %v1706_v36, 0.0  ;;  %1518 = vst.msk [vmem:[%s3153_s2 + $0xa8] sm:$0xff] %vm1496_vm0, %v1349_v37  ;;  %v1602_v41 = vsel %vm1496_vm0, %v1349_v37, 0.0  ;;  %v1707_v42 = vmul.f32 %v1349_v37, %v1349_v37 }
 0x16b   :  { %v1784_v43 = vadd.f32 %v1783_v40, %v1782_v27  ;;  %v1603_v44 = vadd.f32 %v1602_v41, %v1601_v39 }
 0x16c   :  { %v1785_v45 = vsel %vm1496_vm0, %v1707_v42, 0.0  ;;  %v1088_v46 = vpop.f32.mrb[44].mxu1 }
 0x16d   :  { %v1786_v47 = vadd.f32 %v1785_v45, %v1784_v43  ;;  %v1353_v48 = vpop.f32.mrb[44].mxu0  ;;  %v1090_v49 = vpop.f32.mrb[45].mxu1 }
 0x16e   :  { %v1354_v50 = vadd.f32 %v1353_v48, %v1088_v46  ;;  %v1355_v51 = vpop.f32.mrb[45].mxu0  ;;  %v1091_v52 = vpop.f32.mrb[46].mxu1 }
 0x16f   :  { %v1356_v53 = vpop.f32.mrb[46].mxu0  ;;  %v1093_v54 = vpop.f32.mrb[47].mxu1 }
 0x170   :  { %1519 = vst.msk [vmem:[%s3153_s2 + $0xb0] sm:$0xff] %vm1496_vm0, %v1354_v50  ;;  %v1604_v55 = vsel %vm1496_vm0, %v1354_v50, 0.0  ;;  %v1708_v56 = vmul.f32 %v1354_v50, %v1354_v50  ;;  %v1357_v57 = vadd.f32 %v1356_v53, %v1091_v52  ;;  %v1358_v58 = vpop.f32.mrb[47].mxu0 }
 0x171   :  { %v1605_v59 = vadd.f32 %v1604_v55, %v1603_v44 }
 0x172   :  { %v1787_v60 = vsel %vm1496_vm0, %v1708_v56, 0.0  ;;  %1520 = vst.msk [vmem:[%s3153_s2 + $0xb8] sm:$0xff] %vm1496_vm0, %v1357_v57  ;;  %v1606_v61 = vsel %vm1496_vm0, %v1357_v57, 0.0  ;;  %v1709_v62 = vmul.f32 %v1357_v57, %v1357_v57 }
 0x173   :  { %v1788_v63 = vadd.f32 %v1787_v60, %v1786_v47  ;;  %v1607_v0 = vadd.f32 %v1606_v61, %v1605_v59 }
 0x174   :  { %v1789_v1 = vsel %vm1496_vm0, %v1709_v62, 0.0  ;;  %v1096_v2 = vpop.f32.mrb[48].mxu1 }
 0x175   :  { %v1790_v3 = vadd.f32 %v1789_v1, %v1788_v63  ;;  %v1361_v4 = vpop.f32.mrb[48].mxu0  ;;  %v1098_v5 = vpop.f32.mrb[49].mxu1 }
 0x176   :  { %v1362_v6 = vadd.f32 %v1361_v4, %v1096_v2  ;;  %v1363_v7 = vpop.f32.mrb[49].mxu0  ;;  %v1099_v8 = vpop.f32.mrb[50].mxu1 }
 0x177   :  { %v1364_v9 = vpop.f32.mrb[50].mxu0  ;;  %v1101_v10 = vpop.f32.mrb[51].mxu1 }
 0x178   :  { %1521 = vst.msk [vmem:[%s3153_s2 + $0xc0] sm:$0xff] %vm1496_vm0, %v1362_v6  ;;  %v1608_v11 = vsel %vm1496_vm0, %v1362_v6, 0.0  ;;  %v1710_v12 = vmul.f32 %v1362_v6, %v1362_v6  ;;  %v1365_v13 = vadd.f32 %v1364_v9, %v1099_v8  ;;  %v1366_v14 = vpop.f32.mrb[51].mxu0 }
 0x179   :  { %v1609_v15 = vadd.f32 %v1608_v11, %v1607_v0 }
 0x17a   :  { %v1791_v16 = vsel %vm1496_vm0, %v1710_v12, 0.0  ;;  %1522 = vst.msk [vmem:[%s3153_s2 + $0xc8] sm:$0xff] %vm1496_vm0, %v1365_v13  ;;  %v1610_v17 = vsel %vm1496_vm0, %v1365_v13, 0.0  ;;  %v1711_v18 = vmul.f32 %v1365_v13, %v1365_v13 }
 0x17b   :  { %v1792_v19 = vadd.f32 %v1791_v16, %v1790_v3  ;;  %v1611_v20 = vadd.f32 %v1610_v17, %v1609_v15 }
 0x17c   :  { %v1793_v21 = vsel %vm1496_vm0, %v1711_v18, 0.0  ;;  %v1104_v22 = vpop.f32.mrb[52].mxu1 }
 0x17d   :  { %v1794_v24 = vadd.f32 %v1793_v21, %v1792_v19  ;;  %v1369_v25 = vpop.f32.mrb[52].mxu0  ;;  %v1106_v26 = vpop.f32.mrb[53].mxu1 }
 0x17e   :  { %v1370_v27 = vadd.f32 %v1369_v25, %v1104_v22  ;;  %v1371_v28 = vpop.f32.mrb[53].mxu0  ;;  %v1107_v29 = vpop.f32.mrb[54].mxu1 }
 0x17f   :  { %v1372_v30 = vpop.f32.mrb[54].mxu0  ;;  %v1109_v31 = vpop.f32.mrb[55].mxu1 }
 0x180   :  { %1523 = vst.msk [vmem:[%s3153_s2 + $0xd0] sm:$0xff] %vm1496_vm0, %v1370_v27  ;;  %v1612_v32 = vsel %vm1496_vm0, %v1370_v27, 0.0  ;;  %v1712_v33 = vmul.f32 %v1370_v27, %v1370_v27  ;;  %v1373_v34 = vadd.f32 %v1372_v30, %v1107_v29  ;;  %v1374_v35 = vpop.f32.mrb[55].mxu0 }
 0x181   :  { %v1613_v36 = vadd.f32 %v1612_v32, %v1611_v20 }
 0x182   :  { %v1795_v37 = vsel %vm1496_vm0, %v1712_v33, 0.0  ;;  %1524 = vst.msk [vmem:[%s3153_s2 + $0xd8] sm:$0xff] %vm1496_vm0, %v1373_v34  ;;  %v1614_v38 = vsel %vm1496_vm0, %v1373_v34, 0.0  ;;  %v1713_v39 = vmul.f32 %v1373_v34, %v1373_v34 }
 0x183   :  { %v1796_v40 = vadd.f32 %v1795_v37, %v1794_v24  ;;  %v1615_v41 = vadd.f32 %v1614_v38, %v1613_v36 }
 0x184   :  { %v1797_v42 = vsel %vm1496_vm0, %v1713_v39, 0.0  ;;  %v1112_v43 = vpop.f32.mrb[56].mxu1 }
 0x185   :  { %v1798_v44 = vadd.f32 %v1797_v42, %v1796_v40  ;;  %v1377_v45 = vpop.f32.mrb[56].mxu0  ;;  %v1114_v46 = vpop.f32.mrb[57].mxu1 }
 0x186   :  { %v1378_v47 = vadd.f32 %v1377_v45, %v1112_v43  ;;  %v1379_v48 = vpop.f32.mrb[57].mxu0  ;;  %v1115_v49 = vpop.f32.mrb[58].mxu1 }
 0x187   :  { %v1380_v50 = vpop.f32.mrb[58].mxu0  ;;  %v1117_v51 = vpop.f32.mrb[59].mxu1 }
 0x188   :  { %1525 = vst.msk [vmem:[%s3153_s2 + $0xe0] sm:$0xff] %vm1496_vm0, %v1378_v47  ;;  %v1616_v52 = vsel %vm1496_vm0, %v1378_v47, 0.0  ;;  %v1714_v53 = vmul.f32 %v1378_v47, %v1378_v47  ;;  %v1381_v54 = vadd.f32 %v1380_v50, %v1115_v49  ;;  %v1382_v55 = vpop.f32.mrb[59].mxu0 }
 0x189   :  { %v1617_v56 = vadd.f32 %v1616_v52, %v1615_v41 }
 0x18a   :  { %v1799_v57 = vsel %vm1496_vm0, %v1714_v53, 0.0  ;;  %1526 = vst.msk [vmem:[%s3153_s2 + $0xe8] sm:$0xff] %vm1496_vm0, %v1381_v54  ;;  %v1618_v58 = vsel %vm1496_vm0, %v1381_v54, 0.0  ;;  %v1715_v59 = vmul.f32 %v1381_v54, %v1381_v54 }
 0x18b   :  { %v1800_v60 = vadd.f32 %v1799_v57, %v1798_v44  ;;  %v1619_v61 = vadd.f32 %v1618_v58, %v1617_v56 }
 0x18c   :  { %v1801_v62 = vsel %vm1496_vm0, %v1715_v59, 0.0  ;;  %v1120_v63 = vpop.f32.mrb[60].mxu1 }
 0x18d   :  { %v1802_v0 = vadd.f32 %v1801_v62, %v1800_v60  ;;  %v1385_v1 = vpop.f32.mrb[60].mxu0  ;;  %v1122_v2 = vpop.f32.mrb[61].mxu1 }
 0x18e   :  { %v1386_v3 = vadd.f32 %v1385_v1, %v1120_v63  ;;  %v1387_v4 = vpop.f32.mrb[61].mxu0  ;;  %v1123_v5 = vpop.f32.mrb[62].mxu1 }
 0x18f   :  { %v1388_v6 = vpop.f32.mrb[62].mxu0  ;;  %v1125_v7 = vpop.f32.mrb[63].mxu1 }
 0x190   :  { %1527 = vst.msk [vmem:[%s3153_s2 + $0xf0] sm:$0xff] %vm1496_vm0, %v1386_v3  ;;  %v1620_v8 = vsel %vm1496_vm0, %v1386_v3, 0.0  ;;  %v1716_v9 = vmul.f32 %v1386_v3, %v1386_v3  ;;  %v1389_v10 = vadd.f32 %v1388_v6, %v1123_v5  ;;  %v1390_v11 = vpop.f32.mrb[63].mxu0 }
 0x191   :  { %v1621_v12 = vadd.f32 %v1620_v8, %v1619_v61 }
 0x192   :  { %v1803_v13 = vsel %vm1496_vm0, %v1716_v9, 0.0  ;;  %1528 = vst.msk [vmem:[%s3153_s2 + $0xf8] sm:$0xff] %vm1496_vm0, %v1389_v10  ;;  %v1622_v14 = vsel %vm1496_vm0, %v1389_v10, 0.0  ;;  %v1717_v15 = vmul.f32 %v1389_v10, %v1389_v10 }
 0x193   :  { %v1804_v16 = vadd.f32 %v1803_v13, %v1802_v0  ;;  %v1623_v17 = vadd.f32 %v1622_v14, %v1621_v12 }
 0x194   :  { %v1805_v18 = vsel %vm1496_vm0, %v1717_v15, 0.0  ;;  %v1128_v19 = vpop.f32.mrb[64].mxu1 }
 0x195   :  { %v1806_v20 = vadd.f32 %v1805_v18, %v1804_v16  ;;  %v1393_v21 = vpop.f32.mrb[64].mxu0  ;;  %v1130_v22 = vpop.f32.mrb[65].mxu1 }
 0x196   :  { %v1394_v23 = vadd.f32 %v1393_v21, %v1128_v19  ;;  %v1395_v24 = vpop.f32.mrb[65].mxu0  ;;  %v1131_v25 = vpop.f32.mrb[66].mxu1 }
 0x197   :  { %v1396_v26 = vpop.f32.mrb[66].mxu0  ;;  %v1133_v27 = vpop.f32.mrb[67].mxu1 }
 0x198   :  { %1529 = vst.msk [vmem:[%s3153_s2 + $0x100] sm:$0xff] %vm1496_vm0, %v1394_v23  ;;  %v1624_v28 = vsel %vm1496_vm0, %v1394_v23, 0.0  ;;  %v1718_v29 = vmul.f32 %v1394_v23, %v1394_v23  ;;  %v1397_v30 = vadd.f32 %v1396_v26, %v1131_v25  ;;  %v1398_v31 = vpop.f32.mrb[67].mxu0 }
 0x199   :  { %v1625_v32 = vadd.f32 %v1624_v28, %v1623_v17 }
 0x19a   :  { %v1807_v33 = vsel %vm1496_vm0, %v1718_v29, 0.0  ;;  %1530 = vst.msk [vmem:[%s3153_s2 + $0x108] sm:$0xff] %vm1496_vm0, %v1397_v30  ;;  %v1626_v34 = vsel %vm1496_vm0, %v1397_v30, 0.0  ;;  %v1719_v35 = vmul.f32 %v1397_v30, %v1397_v30 }
 0x19b   :  { %v1808_v36 = vadd.f32 %v1807_v33, %v1806_v20  ;;  %v1627_v37 = vadd.f32 %v1626_v34, %v1625_v32 }
 0x19c   :  { %v1809_v38 = vsel %vm1496_vm0, %v1719_v35, 0.0  ;;  %v1136_v39 = vpop.f32.mrb[68].mxu1 }
 0x19d   :  { %v1810_v40 = vadd.f32 %v1809_v38, %v1808_v36  ;;  %v1401_v41 = vpop.f32.mrb[68].mxu0  ;;  %v1138_v42 = vpop.f32.mrb[69].mxu1 }
 0x19e   :  { %v1402_v43 = vadd.f32 %v1401_v41, %v1136_v39  ;;  %v1403_v44 = vpop.f32.mrb[69].mxu0  ;;  %v1139_v45 = vpop.f32.mrb[70].mxu1 }
 0x19f   :  { %v1404_v46 = vpop.f32.mrb[70].mxu0  ;;  %v1141_v47 = vpop.f32.mrb[71].mxu1 }
 0x1a0   :  { %1531 = vst.msk [vmem:[%s3153_s2 + $0x110] sm:$0xff] %vm1496_vm0, %v1402_v43  ;;  %v1628_v48 = vsel %vm1496_vm0, %v1402_v43, 0.0  ;;  %v1720_v49 = vmul.f32 %v1402_v43, %v1402_v43  ;;  %v1405_v50 = vadd.f32 %v1404_v46, %v1139_v45  ;;  %v1406_v51 = vpop.f32.mrb[71].mxu0 }
 0x1a1   :  { %v1629_v52 = vadd.f32 %v1628_v48, %v1627_v37 }
 0x1a2   :  { %v1811_v53 = vsel %vm1496_vm0, %v1720_v49, 0.0  ;;  %1532 = vst.msk [vmem:[%s3153_s2 + $0x118] sm:$0xff] %vm1496_vm0, %v1405_v50  ;;  %v1630_v54 = vsel %vm1496_vm0, %v1405_v50, 0.0  ;;  %v1721_v55 = vmul.f32 %v1405_v50, %v1405_v50 }
 0x1a3   :  { %v1812_v56 = vadd.f32 %v1811_v53, %v1810_v40  ;;  %v1631_v57 = vadd.f32 %v1630_v54, %v1629_v52 }
 0x1a4   :  { %v1813_v58 = vsel %vm1496_vm0, %v1721_v55, 0.0  ;;  %v1144_v59 = vpop.f32.mrb[72].mxu1 }
 0x1a5   :  { %v1814_v60 = vadd.f32 %v1813_v58, %v1812_v56  ;;  %v1409_v61 = vpop.f32.mrb[72].mxu0  ;;  %v1146_v62 = vpop.f32.mrb[73].mxu1 }
 0x1a6   :  { %v1410_v63 = vadd.f32 %v1409_v61, %v1144_v59  ;;  %v1411_v0 = vpop.f32.mrb[73].mxu0  ;;  %v1147_v1 = vpop.f32.mrb[74].mxu1 }
 0x1a7   :  { %v1412_v2 = vpop.f32.mrb[74].mxu0  ;;  %v1149_v3 = vpop.f32.mrb[75].mxu1 }
 0x1a8   :  { %1533 = vst.msk [vmem:[%s3153_s2 + $0x120] sm:$0xff] %vm1496_vm0, %v1410_v63  ;;  %v1632_v4 = vsel %vm1496_vm0, %v1410_v63, 0.0  ;;  %v1722_v5 = vmul.f32 %v1410_v63, %v1410_v63  ;;  %v1413_v6 = vadd.f32 %v1412_v2, %v1147_v1  ;;  %v1414_v7 = vpop.f32.mrb[75].mxu0 }
 0x1a9   :  { %v1633_v8 = vadd.f32 %v1632_v4, %v1631_v57 }
 0x1aa   :  { %v1815_v9 = vsel %vm1496_vm0, %v1722_v5, 0.0  ;;  %1534 = vst.msk [vmem:[%s3153_s2 + $0x128] sm:$0xff] %vm1496_vm0, %v1413_v6  ;;  %v1634_v10 = vsel %vm1496_vm0, %v1413_v6, 0.0  ;;  %v1723_v11 = vmul.f32 %v1413_v6, %v1413_v6 }
 0x1ab   :  { %v1816_v12 = vadd.f32 %v1815_v9, %v1814_v60  ;;  %v1635_v13 = vadd.f32 %v1634_v10, %v1633_v8 }
 0x1ac   :  { %v1817_v14 = vsel %vm1496_vm0, %v1723_v11, 0.0  ;;  %v1152_v15 = vpop.f32.mrb[76].mxu1 }
 0x1ad   :  { %v1818_v16 = vadd.f32 %v1817_v14, %v1816_v12  ;;  %v1417_v17 = vpop.f32.mrb[76].mxu0  ;;  %v1154_v18 = vpop.f32.mrb[77].mxu1 }
 0x1ae   :  { %v1418_v19 = vadd.f32 %v1417_v17, %v1152_v15  ;;  %v1419_v20 = vpop.f32.mrb[77].mxu0  ;;  %v1155_v21 = vpop.f32.mrb[78].mxu1 }
 0x1af   :  { %v1420_v22 = vpop.f32.mrb[78].mxu0  ;;  %v1157_v23 = vpop.f32.mrb[79].mxu1 }
 0x1b0   :  { %1535 = vst.msk [vmem:[%s3153_s2 + $0x130] sm:$0xff] %vm1496_vm0, %v1418_v19  ;;  %v1636_v24 = vsel %vm1496_vm0, %v1418_v19, 0.0  ;;  %v1724_v25 = vmul.f32 %v1418_v19, %v1418_v19  ;;  %v1421_v26 = vadd.f32 %v1420_v22, %v1155_v21  ;;  %v1422_v27 = vpop.f32.mrb[79].mxu0 }
 0x1b1   :  { %v1637_v28 = vadd.f32 %v1636_v24, %v1635_v13 }
 0x1b2   :  { %v1819_v29 = vsel %vm1496_vm0, %v1724_v25, 0.0  ;;  %1536 = vst.msk [vmem:[%s3153_s2 + $0x138] sm:$0xff] %vm1496_vm0, %v1421_v26  ;;  %v1638_v30 = vsel %vm1496_vm0, %v1421_v26, 0.0  ;;  %v1725_v31 = vmul.f32 %v1421_v26, %v1421_v26 }
 0x1b3   :  { %v1820_v32 = vadd.f32 %v1819_v29, %v1818_v16  ;;  %v1639_v33 = vadd.f32 %v1638_v30, %v1637_v28 }
 0x1b4   :  { %v1821_v34 = vsel %vm1496_vm0, %v1725_v31, 0.0  ;;  %v1160_v35 = vpop.f32.mrb[80].mxu1 }
 0x1b5   :  { %v1822_v36 = vadd.f32 %v1821_v34, %v1820_v32  ;;  %v1425_v37 = vpop.f32.mrb[80].mxu0  ;;  %v1162_v38 = vpop.f32.mrb[81].mxu1 }
 0x1b6   :  { %v1426_v39 = vadd.f32 %v1425_v37, %v1160_v35  ;;  %v1427_v40 = vpop.f32.mrb[81].mxu0  ;;  %v1163_v41 = vpop.f32.mrb[82].mxu1 }
 0x1b7   :  { %v1428_v42 = vpop.f32.mrb[82].mxu0  ;;  %v1165_v43 = vpop.f32.mrb[83].mxu1 }
 0x1b8   :  { %1537 = vst.msk [vmem:[%s3153_s2 + $0x140] sm:$0xff] %vm1496_vm0, %v1426_v39  ;;  %v1640_v44 = vsel %vm1496_vm0, %v1426_v39, 0.0  ;;  %v1726_v45 = vmul.f32 %v1426_v39, %v1426_v39  ;;  %v1429_v46 = vadd.f32 %v1428_v42, %v1163_v41  ;;  %v1430_v47 = vpop.f32.mrb[83].mxu0 }
 0x1b9   :  { %v1641_v48 = vadd.f32 %v1640_v44, %v1639_v33 }
 0x1ba   :  { %v1823_v49 = vsel %vm1496_vm0, %v1726_v45, 0.0  ;;  %1538 = vst.msk [vmem:[%s3153_s2 + $0x148] sm:$0xff] %vm1496_vm0, %v1429_v46  ;;  %v1642_v50 = vsel %vm1496_vm0, %v1429_v46, 0.0  ;;  %v1727_v51 = vmul.f32 %v1429_v46, %v1429_v46 }
 0x1bb   :  { %v1824_v52 = vadd.f32 %v1823_v49, %v1822_v36  ;;  %v1643_v53 = vadd.f32 %v1642_v50, %v1641_v48 }
 0x1bc   :  { %v1825_v54 = vsel %vm1496_vm0, %v1727_v51, 0.0  ;;  %v1168_v55 = vpop.f32.mrb[84].mxu1 }
 0x1bd   :  { %v1826_v56 = vadd.f32 %v1825_v54, %v1824_v52  ;;  %v1433_v57 = vpop.f32.mrb[84].mxu0  ;;  %v1170_v58 = vpop.f32.mrb[85].mxu1 }
 0x1be   :  { %v1434_v59 = vadd.f32 %v1433_v57, %v1168_v55  ;;  %v1435_v60 = vpop.f32.mrb[85].mxu0  ;;  %v1171_v61 = vpop.f32.mrb[86].mxu1 }
 0x1bf   :  { %v1436_v62 = vpop.f32.mrb[86].mxu0  ;;  %v1173_v63 = vpop.f32.mrb[87].mxu1 }
 0x1c0   :  { %1539 = vst.msk [vmem:[%s3153_s2 + $0x150] sm:$0xff] %vm1496_vm0, %v1434_v59  ;;  %v1644_v0 = vsel %vm1496_vm0, %v1434_v59, 0.0  ;;  %v1728_v1 = vmul.f32 %v1434_v59, %v1434_v59  ;;  %v1437_v2 = vadd.f32 %v1436_v62, %v1171_v61  ;;  %v1438_v3 = vpop.f32.mrb[87].mxu0 }
 0x1c1   :  { %v1645_v4 = vadd.f32 %v1644_v0, %v1643_v53 }
 0x1c2   :  { %v1827_v5 = vsel %vm1496_vm0, %v1728_v1, 0.0  ;;  %1540 = vst.msk [vmem:[%s3153_s2 + $0x158] sm:$0xff] %vm1496_vm0, %v1437_v2  ;;  %v1646_v6 = vsel %vm1496_vm0, %v1437_v2, 0.0  ;;  %v1729_v7 = vmul.f32 %v1437_v2, %v1437_v2 }
 0x1c3   :  { %v1828_v8 = vadd.f32 %v1827_v5, %v1826_v56  ;;  %v1647_v9 = vadd.f32 %v1646_v6, %v1645_v4 }
 0x1c4   :  { %v1829_v10 = vsel %vm1496_vm0, %v1729_v7, 0.0  ;;  %v1176_v11 = vpop.f32.mrb[88].mxu1 }
 0x1c5   :  { %v1830_v12 = vadd.f32 %v1829_v10, %v1828_v8  ;;  %v1441_v13 = vpop.f32.mrb[88].mxu0  ;;  %v1178_v14 = vpop.f32.mrb[89].mxu1 }
 0x1c6   :  { %v1442_v15 = vadd.f32 %v1441_v13, %v1176_v11  ;;  %v1443_v16 = vpop.f32.mrb[89].mxu0  ;;  %v1179_v17 = vpop.f32.mrb[90].mxu1 }
 0x1c7   :  { %v1444_v18 = vpop.f32.mrb[90].mxu0  ;;  %v1181_v19 = vpop.f32.mrb[91].mxu1 }
 0x1c8   :  { %1541 = vst.msk [vmem:[%s3153_s2 + $0x160] sm:$0xff] %vm1496_vm0, %v1442_v15  ;;  %v1648_v20 = vsel %vm1496_vm0, %v1442_v15, 0.0  ;;  %v1730_v21 = vmul.f32 %v1442_v15, %v1442_v15  ;;  %v1445_v22 = vadd.f32 %v1444_v18, %v1179_v17  ;;  %v1446_v23 = vpop.f32.mrb[91].mxu0 }
 0x1c9   :  { %v1649_v24 = vadd.f32 %v1648_v20, %v1647_v9 }
 0x1ca   :  { %v1831_v25 = vsel %vm1496_vm0, %v1730_v21, 0.0  ;;  %1542 = vst.msk [vmem:[%s3153_s2 + $0x168] sm:$0xff] %vm1496_vm0, %v1445_v22  ;;  %v1650_v26 = vsel %vm1496_vm0, %v1445_v22, 0.0  ;;  %v1731_v27 = vmul.f32 %v1445_v22, %v1445_v22 }
 0x1cb   :  { %v1832_v28 = vadd.f32 %v1831_v25, %v1830_v12  ;;  %v1651_v29 = vadd.f32 %v1650_v26, %v1649_v24 }
 0x1cc   :  { %v1833_v30 = vsel %vm1496_vm0, %v1731_v27, 0.0  ;;  %v1184_v31 = vpop.f32.mrb[92].mxu1 }
 0x1cd   :  { %v1834_v32 = vadd.f32 %v1833_v30, %v1832_v28  ;;  %v1449_v33 = vpop.f32.mrb[92].mxu0  ;;  %v1186_v34 = vpop.f32.mrb[93].mxu1 }
 0x1ce   :  { %v1450_v35 = vadd.f32 %v1449_v33, %v1184_v31  ;;  %v1451_v36 = vpop.f32.mrb[93].mxu0  ;;  %v1187_v37 = vpop.f32.mrb[94].mxu1 }
 0x1cf   :  { %v1452_v38 = vpop.f32.mrb[94].mxu0  ;;  %v1189_v39 = vpop.f32.mrb[95].mxu1 }
 0x1d0   :  { %1543 = vst.msk [vmem:[%s3153_s2 + $0x170] sm:$0xff] %vm1496_vm0, %v1450_v35  ;;  %v1652_v40 = vsel %vm1496_vm0, %v1450_v35, 0.0  ;;  %v1732_v41 = vmul.f32 %v1450_v35, %v1450_v35  ;;  %v1453_v42 = vadd.f32 %v1452_v38, %v1187_v37  ;;  %v1454_v43 = vpop.f32.mrb[95].mxu0 }
 0x1d1   :  { %v1653_v44 = vadd.f32 %v1652_v40, %v1651_v29 }
 0x1d2   :  { %v1835_v45 = vsel %vm1496_vm0, %v1732_v41, 0.0  ;;  %1544 = vst.msk [vmem:[%s3153_s2 + $0x178] sm:$0xff] %vm1496_vm0, %v1453_v42  ;;  %v1654_v46 = vsel %vm1496_vm0, %v1453_v42, 0.0  ;;  %v1733_v47 = vmul.f32 %v1453_v42, %v1453_v42 }
 0x1d3   :  { %v1836_v48 = vadd.f32 %v1835_v45, %v1834_v32  ;;  %v1655_v49 = vadd.f32 %v1654_v46, %v1653_v44 }
 0x1d4   :  { %v1837_v50 = vsel %vm1496_vm0, %v1733_v47, 0.0  ;;  %v1192_v51 = vpop.f32.mrb[96].mxu1 }
 0x1d5   :  { %v1838_v52 = vadd.f32 %v1837_v50, %v1836_v48  ;;  %v1457_v53 = vpop.f32.mrb[96].mxu0  ;;  %v1194_v54 = vpop.f32.mrb[97].mxu1 }
 0x1d6   :  { %v1458_v55 = vadd.f32 %v1457_v53, %v1192_v51  ;;  %v1459_v56 = vpop.f32.mrb[97].mxu0  ;;  %v1195_v57 = vpop.f32.mrb[98].mxu1 }
 0x1d7   :  { %v1460_v58 = vpop.f32.mrb[98].mxu0  ;;  %v1197_v59 = vpop.f32.mrb[99].mxu1 }
 0x1d8   :  { %1545 = vst.msk [vmem:[%s3153_s2 + $0x180] sm:$0xff] %vm1496_vm0, %v1458_v55  ;;  %v1656_v60 = vsel %vm1496_vm0, %v1458_v55, 0.0  ;;  %v1734_v61 = vmul.f32 %v1458_v55, %v1458_v55  ;;  %v1461_v62 = vadd.f32 %v1460_v58, %v1195_v57  ;;  %v1462_v63 = vpop.f32.mrb[99].mxu0 }
 0x1d9   :  { %v1657_v0 = vadd.f32 %v1656_v60, %v1655_v49 }
 0x1da   :  { %v1839_v1 = vsel %vm1496_vm0, %v1734_v61, 0.0  ;;  %1546 = vst.msk [vmem:[%s3153_s2 + $0x188] sm:$0xff] %vm1496_vm0, %v1461_v62  ;;  %v1658_v2 = vsel %vm1496_vm0, %v1461_v62, 0.0  ;;  %v1735_v3 = vmul.f32 %v1461_v62, %v1461_v62 }
 0x1db   :  { %v1840_v4 = vadd.f32 %v1839_v1, %v1838_v52  ;;  %v1659_v5 = vadd.f32 %v1658_v2, %v1657_v0 }
 0x1dc   :  { %v1841_v6 = vsel %vm1496_vm0, %v1735_v3, 0.0  ;;  %v1200_v7 = vpop.f32.mrb[100].mxu1 }
 0x1dd   :  { %v1842_v8 = vadd.f32 %v1841_v6, %v1840_v4  ;;  %v1465_v9 = vpop.f32.mrb[100].mxu0  ;;  %v1202_v10 = vpop.f32.mrb[101].mxu1 }
 0x1de   :  { %v1466_v11 = vadd.f32 %v1465_v9, %v1200_v7  ;;  %v1467_v12 = vpop.f32.mrb[101].mxu0  ;;  %v1203_v13 = vpop.f32.mrb[102].mxu1 }
 0x1df   :  { %v1468_v14 = vpop.f32.mrb[102].mxu0  ;;  %v1205_v15 = vpop.f32.mrb[103].mxu1 }
 0x1e0   :  { %1547 = vst.msk [vmem:[%s3153_s2 + $0x190] sm:$0xff] %vm1496_vm0, %v1466_v11  ;;  %v1660_v16 = vsel %vm1496_vm0, %v1466_v11, 0.0  ;;  %v1736_v17 = vmul.f32 %v1466_v11, %v1466_v11  ;;  %v1469_v18 = vadd.f32 %v1468_v14, %v1203_v13  ;;  %v1470_v19 = vpop.f32.mrb[103].mxu0 }
 0x1e1   :  { %v1661_v20 = vadd.f32 %v1660_v16, %v1659_v5 }
 0x1e2   :  { %v1843_v21 = vsel %vm1496_vm0, %v1736_v17, 0.0  ;;  %1548 = vst.msk [vmem:[%s3153_s2 + $0x198] sm:$0xff] %vm1496_vm0, %v1469_v18  ;;  %v1662_v22 = vsel %vm1496_vm0, %v1469_v18, 0.0  ;;  %v1737_v23 = vmul.f32 %v1469_v18, %v1469_v18 }
 0x1e3   :  { %v1844_v24 = vadd.f32 %v1843_v21, %v1842_v8  ;;  %v1663_v25 = vadd.f32 %v1662_v22, %v1661_v20 }
 0x1e4   :  { %v1845_v26 = vsel %vm1496_vm0, %v1737_v23, 0.0  ;;  %v1208_v27 = vpop.f32.mrb[104].mxu1 }
 0x1e5   :  { %v1846_v28 = vadd.f32 %v1845_v26, %v1844_v24  ;;  %v1473_v29 = vpop.f32.mrb[104].mxu0  ;;  %v1210_v30 = vpop.f32.mrb[105].mxu1 }
 0x1e6   :  { %v1474_v31 = vadd.f32 %v1473_v29, %v1208_v27  ;;  %v1475_v32 = vpop.f32.mrb[105].mxu0  ;;  %v1211_v33 = vpop.f32.mrb[106].mxu1 }
 0x1e7   :  { %v1476_v34 = vpop.f32.mrb[106].mxu0  ;;  %v1213_v35 = vpop.f32.mrb[107].mxu1 }
 0x1e8   :  { %1549 = vst.msk [vmem:[%s3153_s2 + $0x1a0] sm:$0xff] %vm1496_vm0, %v1474_v31  ;;  %v1664_v36 = vsel %vm1496_vm0, %v1474_v31, 0.0  ;;  %v1738_v37 = vmul.f32 %v1474_v31, %v1474_v31  ;;  %v1477_v38 = vadd.f32 %v1476_v34, %v1211_v33  ;;  %v1478_v39 = vpop.f32.mrb[107].mxu0  ;;  %v1560_v33 = vld [vmem:[%s3154_s3] sm:$0x1] }
 0x1e9   :  { %v1665_v40 = vadd.f32 %v1664_v36, %v1663_v25  ;;  %v1685_v36 = vld [vmem:[%s3154_s3 + $0x1] sm:$0x1] }
 0x1ea   :  { %v1847_v41 = vsel %vm1496_vm0, %v1738_v37, 0.0  ;;  %1550 = vst.msk [vmem:[%s3153_s2 + $0x1a8] sm:$0xff] %vm1496_vm0, %v1477_v38  ;;  %v1666_v42 = vsel %vm1496_vm0, %v1477_v38, 0.0  ;;  %v1739_v43 = vmul.f32 %v1477_v38, %v1477_v38 }
 0x1eb   :  { %v1848_v44 = vadd.f32 %v1847_v41, %v1846_v28  ;;  %v1667_v45 = vadd.f32 %v1666_v42, %v1665_v40 }
 0x1ec   :  { %v1849_v46 = vsel %vm1496_vm0, %v1739_v43, 0.0  ;;  %v1216_v47 = vpop.f32.mrb[108].mxu1 }
 0x1ed   :  { %v1850_v48 = vadd.f32 %v1849_v46, %v1848_v44  ;;  %v1481_v49 = vpop.f32.mrb[108].mxu0  ;;  %v1218_v50 = vpop.f32.mrb[109].mxu1 }
 0x1ee   :  { %v1482_v51 = vadd.f32 %v1481_v49, %v1216_v47  ;;  %v1483_v52 = vpop.f32.mrb[109].mxu0  ;;  %v1219_v53 = vpop.f32.mrb[110].mxu1 }
 0x1ef   :  { %v1484_v54 = vpop.f32.mrb[110].mxu0  ;;  %v1221_v55 = vpop.f32.mrb[111].mxu1 }
 0x1f0   :  { %1551 = vst.msk [vmem:[%s3153_s2 + $0x1b0] sm:$0xff] %vm1496_vm0, %v1482_v51  ;;  %v1668_v56 = vsel %vm1496_vm0, %v1482_v51, 0.0  ;;  %v1740_v57 = vmul.f32 %v1482_v51, %v1482_v51  ;;  %v1485_v58 = vadd.f32 %v1484_v54, %v1219_v53  ;;  %v1486_v59 = vpop.f32.mrb[111].mxu0 }
 0x1f1   :  { %v1669_v60 = vadd.f32 %v1668_v56, %v1667_v45 }
 0x1f2   :  { %v1851_v61 = vsel %vm1496_vm0, %v1740_v57, 0.0  ;;  %1552 = vst.msk [vmem:[%s3153_s2 + $0x1b8] sm:$0xff] %vm1496_vm0, %v1485_v58  ;;  %v1670_v62 = vsel %vm1496_vm0, %v1485_v58, 0.0  ;;  %v1741_v63 = vmul.f32 %v1485_v58, %v1485_v58 }
 0x1f3   :  { %v1852_v0 = vadd.f32 %v1851_v61, %v1850_v48  ;;  %v1671_v1 = vadd.f32 %v1670_v62, %v1669_v60 }
 0x1f4   :  { %v1853_v2 = vsel %vm1496_vm0, %v1741_v63, 0.0  ;;  %v1224_v3 = vpop.f32.mrb[112].mxu1 }
 0x1f5   :  { %v1854_v4 = vadd.f32 %v1853_v2, %v1852_v0  ;;  %v1489_v5 = vpop.f32.mrb[112].mxu0  ;;  %v1226_v6 = vpop.f32.mrb[113].mxu1 }
 0x1f6   :  { %v1490_v7 = vadd.f32 %v1489_v5, %v1224_v3  ;;  %v1491_v8 = vpop.f32.mrb[113].mxu0  ;;  %v1227_v9 = vpop.f32.mrb[114].mxu1 }
 0x1f7   :  { %v1492_v10 = vpop.f32.mrb[114].mxu0  ;;  %v1229_v11 = vpop.f32.mrb[115].mxu1 }
 0x1f8   :  { %1553 = vst.msk [vmem:[%s3153_s2 + $0x1c0] sm:$0xff] %vm1496_vm0, %v1490_v7  ;;  %v1672_v12 = vsel %vm1496_vm0, %v1490_v7, 0.0  ;;  %v1742_v13 = vmul.f32 %v1490_v7, %v1490_v7  ;;  %v1493_v14 = vadd.f32 %v1492_v10, %v1227_v9  ;;  %v1494_v15 = vpop.f32.mrb[115].mxu0 }
 0x1f9   :  { %v1673_v16 = vadd.f32 %v1672_v12, %v1671_v1 }
 0x1fa   :  { %v1855_v17 = vsel %vm1496_vm0, %v1742_v13, 0.0  ;;  %1554 = vst.msk [vmem:[%s3153_s2 + $0x1c8] sm:$0xff] %vm1496_vm0, %v1493_v14  ;;  %v1674_v18 = vsel %vm1496_vm0, %v1493_v14, 0.0  ;;  %v1743_v19 = vmul.f32 %v1493_v14, %v1493_v14 }
 0x1fb   :  { %v1856_v20 = vadd.f32 %v1855_v17, %v1854_v4  ;;  %v1675_v21 = vadd.f32 %v1674_v18, %v1673_v16 }
 0x1fc   :  { %v1857_v22 = vsel %vm1496_vm0, %v1743_v19, 0.0 }
 0x1fd   :  { %v1676_v23 = vrot.slane %v1675_v21, 4  ;;  %v1858_v24 = vadd.f32 %v1857_v22, %v1856_v20 }
 0x1ff   :  { %v1677_v25 = vadd.f32 %v1676_v23, %v1675_v21  ;;  %v1859_v26 = vrot.slane %v1858_v24, 4 }
 0x201   :  { %v1678_v27 = vrot.slane %v1677_v25, 2  ;;  %v1860_v28 = vadd.f32 %v1859_v26, %v1858_v24 }
 0x203   :  { %v1679_v29 = vadd.f32 %v1678_v27, %v1677_v25  ;;  %v1861_v30 = vrot.slane %v1860_v28, 2 }
 0x205   :  { %v1680_v31 = vrot.slane %v1679_v29, 1  ;;  %v1862_v32 = vadd.f32 %v1861_v30, %v1860_v28 }
 0x207   :  { %v1681_v34 = vadd.f32 %v1680_v31, %v1679_v29  ;;  %v1863_v35 = vrot.slane %v1862_v32, 1 }
 0x209   :  { %v1682_v37 = vadd.f32 %v1681_v34, %v1560_v33  ;;  %v1864_v38 = vadd.f32 %v1863_v35, %v1862_v32 }
 0x20b   :  { %1684 = vst.msk [vmem:[%s3154_s3] sm:$0x1] %vm1683_vm1, %v1682_v37  ;;  %v1865_v39 = vadd.f32 %v1864_v38, %v1685_v36 }
 0x20d   :  { %1866 = vst.msk [vmem:[%s3154_s3 + $0x1] sm:$0x1] %vm1683_vm1, %v1865_v39 }

// kernel: forward.15
= control target key start
LH: loop header
LB: loop body
LE: loop exit
PB: predicated region body
PF: predicated region fallthrough
CT: control target
= control target key end

     0   :  { %v4451_v0 = vmov 0   ;;  %vm4453_vm0 = vmmov 0   ;;  %s5774_s1 = inlined_call_operand.vmem [shape: bf16[1152,128], index: 1, kind: input, shape index: {}]   ;;  %s5775_s0 = inlined_call_operand.vmem [shape: bf16[400,1152], index: 0, kind: input, shape index: {}]   ;;  %s5776_s2 = inlined_call_operand.vmem [shape: f32[400,128], index: 2, kind: output, shape index: {}]  }
   0x1   :  { %1988 = vmatprep.subr.bf16.mxu1 %v4451_v0  ;;  %2454 = vmatprep.subr.bf16.mxu0 %v4451_v0  ;;  %v4038_v1 = vld [vmem:[%s5774_s1] sm:$0xff]   ;;  %v4040_v3 = vld [vmem:[%s5774_s1 + $0x8] sm:$0xff]   ;;  %v4042_v5 = vld [vmem:[%s5774_s1 + $0x10] sm:$0xff]  }
   0x2   :  { %v4039_v2 = vld [vmem:[%s5774_s1 + $0x100] sm:$0xff]   ;;  %1989 = vmatpush1.bf16.msra.mxu1 %v4038_v1  ;;  %v4041_v4 = vld [vmem:[%s5774_s1 + $0x108] sm:$0xff]   ;;  %v4043_v6 = vld [vmem:[%s5774_s1 + $0x110] sm:$0xff]  }
   0x3   :  { %2455 = vmatpush1.bf16.msra.mxu0 %v4039_v2  ;;  %1990 = vmatprep.subr.bf16.mxu1 %v4451_v0  ;;  %v4044_v7 = vld [vmem:[%s5774_s1 + $0x18] sm:$0xff]   ;;  %v4046_v9 = vld [vmem:[%s5774_s1 + $0x20] sm:$0xff]   ;;  %v4048_v11 = vld [vmem:[%s5774_s1 + $0x28] sm:$0xff]  }
   0x4   :  { %2456 = vmatprep.subr.bf16.mxu0 %v4451_v0  ;;  %v4045_v8 = vld [vmem:[%s5774_s1 + $0x118] sm:$0xff]   ;;  %v4047_v10 = vld [vmem:[%s5774_s1 + $0x120] sm:$0xff]   ;;  %v4049_v12 = vld [vmem:[%s5774_s1 + $0x128] sm:$0xff]  }
   0x5   :  { %v4050_v13 = vld [vmem:[%s5774_s1 + $0x30] sm:$0xff]   ;;  %v4052_v15 = vld [vmem:[%s5774_s1 + $0x38] sm:$0xff]   ;;  %v4054_v17 = vld [vmem:[%s5774_s1 + $0x40] sm:$0xff]  }
   0x6   :  { %1991 = vmatpush1.bf16.msra.mxu1 %v4040_v3  ;;  %v4051_v14 = vld [vmem:[%s5774_s1 + $0x130] sm:$0xff]   ;;  %v4053_v16 = vld [vmem:[%s5774_s1 + $0x138] sm:$0xff]   ;;  %v4055_v18 = vld [vmem:[%s5774_s1 + $0x140] sm:$0xff]  }
   0x7   :  { %2457 = vmatpush1.bf16.msra.mxu0 %v4041_v4  ;;  %1992 = vmatprep.subr.bf16.mxu1 %v4451_v0  ;;  %v4072_v19 = vld [vmem:[%s5775_s0 + $0x4] ss:$36 sps:$4 sm:$0xff]   ;;  %v4075_v21 = vld [vmem:[%s5775_s0 + $0x14] ss:$36 sps:$4 sm:$0xff]   ;;  %v4077_v38 = vld [vmem:[%s5775_s0 + $0x4c] ss:$36 sps:$4 sm:$0xff]  }
   0x8   :  { %2458 = vmatprep.subr.bf16.mxu0 %v4451_v0  ;;  %v4056_v20 = vld [vmem:[%s5774_s1 + $0x48] sm:$0xff]   ;;  %2020 = vmatprep.mubr.bf16.mxu1 %v4072_v19  ;;  %v4058_v23 = vld [vmem:[%s5774_s1 + $0x50] sm:$0xff]   ;;  %v4060_v25 = vld [vmem:[%s5774_s1 + $0x58] sm:$0xff]  }
   0x9   :  { %v4057_v22 = vld [vmem:[%s5774_s1 + $0x148] sm:$0xff]   ;;  %2486 = vmatprep.mubr.bf16.mxu0 %v4075_v21  ;;  %v4059_v24 = vld [vmem:[%s5774_s1 + $0x150] sm:$0xff]   ;;  %v4061_v26 = vld [vmem:[%s5774_s1 + $0x158] sm:$0xff]  }
   0xa   :  { %1993 = vmatpush1.bf16.msra.mxu1 %v4042_v5  ;;  %v4062_v27 = vld [vmem:[%s5774_s1 + $0x60] sm:$0xff]   ;;  %v4064_v29 = vld [vmem:[%s5774_s1 + $0x68] sm:$0xff]   ;;  %v4066_v31 = vld [vmem:[%s5774_s1 + $0x70] sm:$0xff]  }
   0xb   :  { %2459 = vmatpush1.bf16.msra.mxu0 %v4043_v6  ;;  %1994 = vmatprep.subr.bf16.mxu1 %v4451_v0  ;;  %v4063_v28 = vld [vmem:[%s5774_s1 + $0x160] sm:$0xff]   ;;  %v4065_v30 = vld [vmem:[%s5774_s1 + $0x168] sm:$0xff]   ;;  %v4067_v32 = vld [vmem:[%s5774_s1 + $0x170] sm:$0xff]  }
   0xc   :  { %2460 = vmatprep.subr.bf16.mxu0 %v4451_v0  ;;  %v4068_v33 = vld [vmem:[%s5774_s1 + $0x78] sm:$0xff]   ;;  %v4070_v35 = vld [vmem:[%s5775_s0] ss:$36 sps:$4 sm:$0xff]   ;;  %v4073_v36 = vld [vmem:[%s5775_s0 + $0x10] ss:$36 sps:$4 sm:$0xff]  }
   0xd   :  { %v4069_v34 = vld [vmem:[%s5774_s1 + $0x178] sm:$0xff]   ;;  %v4076_v37 = vld [vmem:[%s5774_s1 + $0x180] sm:$0xff]   ;;  %v4083_v41 = vld [vmem:[%s5774_s1 + $0x188] sm:$0xff]  }
   0xe   :  { %1995 = vmatpush1.bf16.msra.mxu1 %v4044_v7  ;;  %v4079_v39 = vld [vmem:[%s5775_s0 + $0x5c] ss:$36 sps:$4 sm:$0xff]   ;;  %v4093_v42 = vld [vmem:[%s5774_s1 + $0x88] sm:$0xff]   ;;  %v4085_v45 = vld [vmem:[%s5774_s1 + $0x190] sm:$0xff]  }
   0xf   :  { %2461 = vmatpush1.bf16.msra.mxu0 %v4045_v8  ;;  %1996 = vmatprep.subr.bf16.mxu1 %v4451_v0  ;;  %v4084_v40 = vld [vmem:[%s5774_s1 + $0x80] sm:$0xff]   ;;  %v4081_v43 = vld [vmem:[%s5775_s0 + $0x48] ss:$36 sps:$4 sm:$0xff]   ;;  %v4082_v44 = vld [vmem:[%s5775_s0 + $0x58] ss:$36 sps:$4 sm:$0xff]  }
  0x10   :  { %2462 = vmatprep.subr.bf16.mxu0 %v4451_v0  ;;  %v4086_v46 = vld [vmem:[%s5775_s0 + $0x94] ss:$36 sps:$4 sm:$0xff]   ;;  %v4088_v47 = vld [vmem:[%s5775_s0 + $0xa4] ss:$36 sps:$4 sm:$0xff]   ;;  %v4094_v53 = vld [vmem:[%s5775_s0 + $0xdc] ss:$36 sps:$4 sm:$0xff]  }
  0x11   :  { %v4107_v48 = vld [vmem:[%s5774_s1 + $0x90] sm:$0xff]   ;;  %v4092_v50 = vld [vmem:[%s5774_s1 + $0x198] sm:$0xff]   ;;  %v4091_v52 = vld [vmem:[%s5775_s0 + $0xa0] ss:$36 sps:$4 sm:$0xff]  }
  0x12   :  { %1997 = vmatpush1.bf16.msra.mxu1 %v4046_v9  ;;  %v4090_v49 = vld [vmem:[%s5775_s0 + $0x90] ss:$36 sps:$4 sm:$0xff]   ;;  %v4118_v51 = vld [vmem:[%s5774_s1 + $0x98] sm:$0xff]   ;;  %v4100_v55 = vld [vmem:[%s5774_s1 + $0x1a0] sm:$0xff]  }
  0x13   :  { %2463 = vmatpush1.bf16.msra.mxu0 %v4047_v10  ;;  %1998 = vmatprep.subr.bf16.mxu1 %v4451_v0  ;;  %v4096_v54 = vld [vmem:[%s5775_s0 + $0xec] ss:$36 sps:$4 sm:$0xff]   ;;  %v4131_v56 = vld [vmem:[%s5774_s1 + $0xa0] sm:$0xff]   ;;  %v4098_v58 = vld [vmem:[%s5775_s0 + $0xd8] ss:$36 sps:$4 sm:$0xff]  }
  0x14   :  { %2464 = vmatprep.subr.bf16.mxu0 %v4451_v0  ;;  %v4108_v57 = vld [vmem:[%s5774_s1 + $0x1a8] sm:$0xff]   ;;  %v4103_v62 = vld [vmem:[%s5775_s0 + $0x134] ss:$36 sps:$4 sm:$0xff]   ;;  %v4105_v2 = vld [vmem:[%s5775_s0 + $0x120] ss:$36 sps:$4 sm:$0xff]  }
  0x15   :  { %v4099_v59 = vld [vmem:[%s5775_s0 + $0xe8] ss:$36 sps:$4 sm:$0xff]   ;;  %v4115_v63 = vld [vmem:[%s5774_s1 + $0x1b0] sm:$0xff]   ;;  %v4121_v3 = vld [vmem:[%s5774_s1 + $0x1b8] sm:$0xff]  }
  0x16   :  { %1999 = vmatpush1.bf16.msra.mxu1 %v4048_v11  ;;  %v4145_v60 = vld [vmem:[%s5774_s1 + $0xa8] sm:$0xff]   ;;  %v4155_v1 = vld [vmem:[%s5774_s1 + $0xb0] sm:$0xff]   ;;  %v4170_v5 = vld [vmem:[%s5774_s1 + $0xb8] sm:$0xff]  }
  0x17   :  { %2465 = vmatpush1.bf16.msra.mxu0 %v4049_v12  ;;  %2000 = vmatprep.subr.bf16.mxu1 %v4451_v0  ;;  %v4101_v61 = vld [vmem:[%s5775_s0 + $0x124] ss:$36 sps:$4 sm:$0xff]   ;;  %v4106_v4 = vld [vmem:[%s5775_s0 + $0x130] ss:$36 sps:$4 sm:$0xff]   ;;  %v4111_v7 = vld [vmem:[%s5775_s0 + $0x17c] ss:$36 sps:$4 sm:$0xff]  }
  0x18   :  { %2466 = vmatprep.subr.bf16.mxu0 %v4451_v0  ;;  %v4109_v6 = vld [vmem:[%s5775_s0 + $0x16c] ss:$36 sps:$4 sm:$0xff]   ;;  %v4124_v8 = vld [vmem:[%s5774_s1 + $0x1c0] sm:$0xff]   ;;  %v4114_v12 = vld [vmem:[%s5775_s0 + $0x178] ss:$36 sps:$4 sm:$0xff]  }
  0x19   :  { %v4179_v9 = vld [vmem:[%s5774_s1 + $0xc0] sm:$0xff]   ;;  %v4132_v10 = vld [vmem:[%s5774_s1 + $0x1c8] sm:$0xff]   ;;  %v4122_v19 = vld [vmem:[%s5775_s0 + $0x1b0] ss:$36 sps:$4 sm:$0xff]  }
  0x1a   :  { %2001 = vmatpush1.bf16.msra.mxu1 %v4050_v13  ;;  %v4113_v11 = vld [vmem:[%s5775_s0 + $0x168] ss:$36 sps:$4 sm:$0xff]   ;;  %v4125_v21 = vld [vmem:[%s5775_s0 + $0x1fc] ss:$36 sps:$4 sm:$0xff]  }
  0x1b   :  { %2467 = vmatpush1.bf16.msra.mxu0 %v4051_v14  ;;  %2002 = vmatprep.subr.bf16.mxu1 %v4451_v0  ;;  %v4192_v13 = vld [vmem:[%s5774_s1 + $0xc8] sm:$0xff]   ;;  %v4116_v14 = vld [vmem:[%s5775_s0 + $0x1b4] ss:$36 sps:$4 sm:$0xff]  }
  0x1c   :  { %2468 = vmatprep.subr.bf16.mxu0 %v4451_v0 }
  0x1e   :  { %2003 = vmatpush1.bf16.msra.mxu1 %v4052_v15  ;;  %v4119_v15 = vld [vmem:[%s5775_s0 + $0x1c4] ss:$36 sps:$4 sm:$0xff]  }
  0x1f   :  { %2469 = vmatpush1.bf16.msra.mxu0 %v4053_v16  ;;  %2004 = vmatprep.subr.bf16.mxu1 %v4451_v0  ;;  %v4139_v16 = vld [vmem:[%s5774_s1 + $0x1d0] sm:$0xff]  }
  0x20   :  { %2470 = vmatprep.subr.bf16.mxu0 %v4451_v0 }
  0x22   :  { %2005 = vmatpush1.bf16.msra.mxu1 %v4054_v17  ;;  %v4200_v17 = vld [vmem:[%s5774_s1 + $0xd0] sm:$0xff]  }
  0x23   :  { %2471 = vmatpush1.bf16.msra.mxu0 %v4055_v18  ;;  %2006 = vmatprep.subr.bf16.mxu1 %v4451_v0  ;;  %v4147_v18 = vld [vmem:[%s5774_s1 + $0x1d8] sm:$0xff]  }
  0x24   :  { %2472 = vmatprep.subr.bf16.mxu0 %v4451_v0 }
  0x26   :  { %2007 = vmatpush1.bf16.msra.mxu1 %v4056_v20  ;;  %v4123_v20 = vld [vmem:[%s5775_s0 + $0x1c0] ss:$36 sps:$4 sm:$0xff]  }
  0x27   :  { %2473 = vmatpush1.bf16.msra.mxu0 %v4057_v22  ;;  %2008 = vmatprep.subr.bf16.mxu1 %v4451_v0  ;;  %v4127_v22 = vld [vmem:[%s5775_s0 + $0x20c] ss:$36 sps:$4 sm:$0xff]  }
  0x28   :  { %2474 = vmatprep.subr.bf16.mxu0 %v4451_v0 }
  0x2a   :  { %2009 = vmatpush1.bf16.msra.mxu1 %v4058_v23  ;;  %v4152_v23 = vld [vmem:[%s5774_s1 + $0x1e0] sm:$0xff]  }
  0x2b   :  { %2475 = vmatpush1.bf16.msra.mxu0 %v4059_v24  ;;  %2010 = vmatprep.subr.bf16.mxu1 %v4451_v0  ;;  %v4213_v24 = vld [vmem:[%s5774_s1 + $0xd8] sm:$0xff]  }
  0x2c   :  { %2476 = vmatprep.subr.bf16.mxu0 %v4451_v0 }
  0x2e   :  { %2011 = vmatpush1.bf16.msra.mxu1 %v4060_v25  ;;  %v4129_v25 = vld [vmem:[%s5775_s0 + $0x1f8] ss:$36 sps:$4 sm:$0xff]  }
  0x2f   :  { %2477 = vmatpush1.bf16.msra.mxu0 %v4061_v26  ;;  %2012 = vmatprep.subr.bf16.mxu1 %v4451_v0  ;;  %v4156_v26 = vld [vmem:[%s5774_s1 + $0x1e8] sm:$0xff]  }
  0x30   :  { %2478 = vmatprep.subr.bf16.mxu0 %v4451_v0 }
  0x32   :  { %2013 = vmatpush1.bf16.msra.mxu1 %v4062_v27  ;;  %v4130_v27 = vld [vmem:[%s5775_s0 + $0x208] ss:$36 sps:$4 sm:$0xff]  }
  0x33   :  { %2479 = vmatpush1.bf16.msra.mxu0 %v4063_v28  ;;  %2014 = vmatprep.subr.bf16.mxu1 %v4451_v0  ;;  %v4133_v28 = vld [vmem:[%s5775_s0 + $0x244] ss:$36 sps:$4 sm:$0xff]  }
  0x34   :  { %2480 = vmatprep.subr.bf16.mxu0 %v4451_v0 }
  0x36   :  { %2015 = vmatpush1.bf16.msra.mxu1 %v4064_v29  ;;  %v4223_v29 = vld [vmem:[%s5774_s1 + $0xe0] sm:$0xff]  }
  0x37   :  { %2481 = vmatpush1.bf16.msra.mxu0 %v4065_v30  ;;  %2016 = vmatprep.subr.bf16.mxu1 %v4451_v0  ;;  %v4135_v30 = vld [vmem:[%s5775_s0 + $0x254] ss:$36 sps:$4 sm:$0xff]  }
  0x38   :  { %2482 = vmatprep.subr.bf16.mxu0 %v4451_v0 }
  0x3a   :  { %2017 = vmatpush1.bf16.msra.mxu1 %v4066_v31  ;;  %v4163_v31 = vld [vmem:[%s5774_s1 + $0x1f0] sm:$0xff]  }
  0x3b   :  { %2483 = vmatpush1.bf16.msra.mxu0 %v4067_v32  ;;  %2018 = vmatprep.subr.bf16.mxu1 %v4451_v0  ;;  %v4171_v32 = vld [vmem:[%s5774_s1 + $0x1f8] sm:$0xff]  }
  0x3c   :  { %2484 = vmatprep.subr.bf16.mxu0 %v4451_v0 }
  0x3e   :  { %2019 = vmatpush1.bf16.msra.mxu1 %v4068_v33  ;;  %v4234_v33 = vld [vmem:[%s5774_s1 + $0xe8] sm:$0xff]  }
  0x3f   :  { %2485 = vmatpush1.bf16.msra.mxu0 %v4069_v34  ;;  %2221 = vmatprep.subr.bf16.mxu1 %v4451_v0  ;;  %v4137_v34 = vld [vmem:[%s5775_s0 + $0x240] ss:$36 sps:$4 sm:$0xff]  }
  0x40   :  { %2687 = vmatprep.subr.bf16.mxu0 %v4451_v0 }
  0x41   :  { %2021 = vmatmul.mubr.bf16.vlgmr.msra.gmra.mrb[0].mxu1 %v4070_v35  ;;  %v4138_v35 = vld [vmem:[%s5775_s0 + $0x250] ss:$36 sps:$4 sm:$0xff]  }
  0x42   :  { %2487 = vmatmul.mubr.bf16.vlgmr.msra.gmra.mrb[0].mxu0 %v4073_v36  ;;  %2028 = vmatprep.mubr.bf16.mxu1 %v4077_v38  ;;  %v4140_v36 = vld [vmem:[%s5775_s0 + $0x28c] ss:$36 sps:$4 sm:$0xff]   ;;  %v4452_v38 = vmov 0.0  }
  0x43   :  { %2688 = vmatpush1.bf16.msra.mxu0 %v4076_v37  ;;  %2494 = vmatprep.mubr.bf16.mxu0 %v4079_v39  ;;  %v4142_v37 = vld [vmem:[%s5775_s0 + $0x29c] ss:$36 sps:$4 sm:$0xff]   ;;  %v4247_v39 = vld [vmem:[%s5774_s1 + $0xf0] sm:$0xff]  }
  0x44   :  { %2689 = vmatprep.subr.bf16.mxu0 %v4451_v0  ;;  %2222 = vmatpush1.bf16.msra.mxu1 %v4084_v40  ;;  %v4144_v40 = vld [vmem:[%s5775_s0 + $0x288] ss:$36 sps:$4 sm:$0xff]  }
  0x45   :  { %2223 = vmatprep.subr.bf16.mxu1 %v4451_v0 }
  0x47   :  { %2690 = vmatpush1.bf16.msra.mxu0 %v4083_v41  ;;  %v4146_v41 = vld [vmem:[%s5775_s0 + $0x298] ss:$36 sps:$4 sm:$0xff]  }
  0x48   :  { %2691 = vmatprep.subr.bf16.mxu0 %v4451_v0  ;;  %2224 = vmatpush1.bf16.msra.mxu1 %v4093_v42  ;;  %v4148_v42 = vld [vmem:[%s5775_s0 + $0x2d4] ss:$36 sps:$4 sm:$0xff]  }
  0x49   :  { %2029 = vmatmul.mubr.bf16.gmra.mrb[4].mxu1 %v4081_v43  ;;  %2225 = vmatprep.subr.bf16.mxu1 %v4451_v0  ;;  %v4255_v43 = vld [vmem:[%s5774_s1 + $0xf8] sm:$0xff]  }
  0x4a   :  { %2495 = vmatmul.mubr.bf16.gmra.mrb[4].mxu0 %v4082_v44  ;;  %2036 = vmatprep.mubr.bf16.mxu1 %v4086_v46  ;;  %v4150_v44 = vld [vmem:[%s5775_s0 + $0x2e4] ss:$36 sps:$4 sm:$0xff]  }
  0x4b   :  { %2692 = vmatpush1.bf16.msra.mxu0 %v4085_v45  ;;  %2502 = vmatprep.mubr.bf16.mxu0 %v4088_v47  ;;  %v4153_v45 = vld [vmem:[%s5775_s0 + $0x2d0] ss:$36 sps:$4 sm:$0xff]   ;;  %v4154_v46 = vld [vmem:[%s5775_s0 + $0x2e0] ss:$36 sps:$4 sm:$0xff]  }
  0x4c   :  { %2693 = vmatprep.subr.bf16.mxu0 %v4451_v0  ;;  %2226 = vmatpush1.bf16.msra.mxu1 %v4107_v48  ;;  %v4157_v47 = vld [vmem:[%s5775_s0 + $0x31c] ss:$36 sps:$4 sm:$0xff]   ;;  %v4159_v48 = vld [vmem:[%s5775_s0 + $0x32c] ss:$36 sps:$4 sm:$0xff]  }
  0x4d   :  { %2227 = vmatprep.subr.bf16.mxu1 %v4451_v0 }
  0x4f   :  { %2694 = vmatpush1.bf16.msra.mxu0 %v4092_v50  ;;  %v4162_v50 = vld [vmem:[%s5775_s0 + $0x328] ss:$36 sps:$4 sm:$0xff]  }
  0x50   :  { %2695 = vmatprep.subr.bf16.mxu0 %v4451_v0  ;;  %2228 = vmatpush1.bf16.msra.mxu1 %v4118_v51  ;;  %v4164_v51 = vld [vmem:[%s5775_s0 + $0x364] ss:$36 sps:$4 sm:$0xff]  }
  0x51   :  { %2037 = vmatmul.mubr.bf16.gmra.mrb[8].mxu1 %v4090_v49  ;;  %2229 = vmatprep.subr.bf16.mxu1 %v4451_v0  ;;  %v4161_v49 = vld [vmem:[%s5775_s0 + $0x318] ss:$36 sps:$4 sm:$0xff]  }
  0x52   :  { %2503 = vmatmul.mubr.bf16.gmra.mrb[8].mxu0 %v4091_v52  ;;  %2044 = vmatprep.mubr.bf16.mxu1 %v4094_v53  ;;  %v4166_v52 = vld [vmem:[%s5775_s0 + $0x374] ss:$36 sps:$4 sm:$0xff]   ;;  %v4168_v53 = vld [vmem:[%s5775_s0 + $0x360] ss:$36 sps:$4 sm:$0xff]  }
  0x53   :  { %2510 = vmatprep.mubr.bf16.mxu0 %v4096_v54  ;;  %2696 = vmatpush1.bf16.msra.mxu0 %v4100_v55  ;;  %v4169_v54 = vld [vmem:[%s5775_s0 + $0x370] ss:$36 sps:$4 sm:$0xff]  }
  0x54   :  { %2697 = vmatprep.subr.bf16.mxu0 %v4451_v0  ;;  %2230 = vmatpush1.bf16.msra.mxu1 %v4131_v56  ;;  %v4172_v55 = vld [vmem:[%s5775_s0 + $0x3ac] ss:$36 sps:$4 sm:$0xff]   ;;  %v4176_v56 = vld [vmem:[%s5775_s0 + $0x1c] ss:$36 sps:$4 sm:$0xff]  }
  0x55   :  { %2231 = vmatprep.subr.bf16.mxu1 %v4451_v0 }
  0x57   :  { %2698 = vmatpush1.bf16.msra.mxu0 %v4108_v57  ;;  %v4177_v57 = vld [vmem:[%s5775_s0 + $0x3a8] ss:$36 sps:$4 sm:$0xff]  }
  0x58   :  { %2699 = vmatprep.subr.bf16.mxu0 %v4451_v0  ;;  %2232 = vmatpush1.bf16.msra.mxu1 %v4145_v60  ;;  %v4178_v60 = vld [vmem:[%s5774_s1 + $0x200] sm:$0xff]  }
  0x59   :  { %2045 = vmatmul.mubr.bf16.gmra.mrb[12].mxu1 %v4098_v58  ;;  %2233 = vmatprep.subr.bf16.mxu1 %v4451_v0  ;;  %v4174_v58 = vld [vmem:[%s5775_s0 + $0x18] ss:$36 sps:$4 sm:$0xff]  }
  0x5a   :  { %2511 = vmatmul.mubr.bf16.gmra.mrb[12].mxu0 %v4099_v59  ;;  %2052 = vmatprep.mubr.bf16.mxu1 %v4101_v61  ;;  %v4180_v59 = vld [vmem:[%s5775_s0 + $0x3f4] ss:$36 sps:$4 sm:$0xff]   ;;  %v4182_v61 = vld [vmem:[%s5775_s0 + $0x64] ss:$36 sps:$4 sm:$0xff]  }
  0x5b   :  { %2518 = vmatprep.mubr.bf16.mxu0 %v4103_v62  ;;  %2700 = vmatpush1.bf16.msra.mxu0 %v4115_v63  ;;  %v4184_v62 = vld [vmem:[%s5775_s0 + $0x3f0] ss:$36 sps:$4 sm:$0xff]   ;;  %v4199_v63 = vld [vmem:[%s5774_s1 + $0x208] sm:$0xff]  }
  0x5c   :  { %2701 = vmatprep.subr.bf16.mxu0 %v4451_v0  ;;  %2234 = vmatpush1.bf16.msra.mxu1 %v4155_v1  ;;  %v4185_v1 = vld [vmem:[%s5775_s0 + $0x60] ss:$36 sps:$4 sm:$0xff]  }
  0x5d   :  { %2235 = vmatprep.subr.bf16.mxu1 %v4451_v0 }
  0x5f   :  { %2702 = vmatpush1.bf16.msra.mxu0 %v4121_v3  ;;  %v4188_v3 = vld [vmem:[%s5775_s0 + $0xac] ss:$36 sps:$4 sm:$0xff]  }
  0x60   :  { %2703 = vmatprep.subr.bf16.mxu0 %v4451_v0  ;;  %2236 = vmatpush1.bf16.msra.mxu1 %v4170_v5  ;;  %v4190_v5 = vld [vmem:[%s5775_s0 + $0x438] ss:$36 sps:$4 sm:$0xff]  }
  0x61   :  { %2053 = vmatmul.mubr.bf16.gmra.mrb[16].mxu1 %v4105_v2  ;;  %2237 = vmatprep.subr.bf16.mxu1 %v4451_v0  ;;  %v4186_v2 = vld [vmem:[%s5775_s0 + $0x43c] ss:$36 sps:$4 sm:$0xff]  }
  0x62   :  { %2519 = vmatmul.mubr.bf16.gmra.mrb[16].mxu0 %v4106_v4  ;;  %2060 = vmatprep.mubr.bf16.mxu1 %v4109_v6  ;;  %v4220_v4 = vld [vmem:[%s5774_s1 + $0x210] sm:$0xff]   ;;  %v4241_v6 = vld [vmem:[%s5774_s1 + $0x218] sm:$0xff]  }
  0x63   :  { %2526 = vmatprep.mubr.bf16.mxu0 %v4111_v7  ;;  %2704 = vmatpush1.bf16.msra.mxu0 %v4124_v8  ;;  %v4191_v7 = vld [vmem:[%s5775_s0 + $0xa8] ss:$36 sps:$4 sm:$0xff]  }
  0x64   :  { %2705 = vmatprep.subr.bf16.mxu0 %v4451_v0  ;;  %2238 = vmatpush1.bf16.msra.mxu1 %v4179_v9  ;;  %v4193_v8 = vld [vmem:[%s5775_s0 + $0x484] ss:$36 sps:$4 sm:$0xff]   ;;  %v4195_v9 = vld [vmem:[%s5775_s0 + $0xf4] ss:$36 sps:$4 sm:$0xff]  }
  0x65   :  { %2239 = vmatprep.subr.bf16.mxu1 %v4451_v0 }
  0x67   :  { %2706 = vmatpush1.bf16.msra.mxu0 %v4132_v10  ;;  %v4262_v10 = vld [vmem:[%s5774_s1 + $0x220] sm:$0xff]  }
  0x68   :  { %2707 = vmatprep.subr.bf16.mxu0 %v4451_v0  ;;  %2240 = vmatpush1.bf16.msra.mxu1 %v4192_v13  ;;  %v4198_v13 = vld [vmem:[%s5775_s0 + $0xf0] ss:$36 sps:$4 sm:$0xff]  }
  0x69   :  { %2061 = vmatmul.mubr.bf16.gmra.mrb[20].mxu1 %v4113_v11  ;;  %2241 = vmatprep.subr.bf16.mxu1 %v4451_v0  ;;  %v4197_v11 = vld [vmem:[%s5775_s0 + $0x480] ss:$36 sps:$4 sm:$0xff]  }
  0x6a   :  { %2527 = vmatmul.mubr.bf16.gmra.mrb[20].mxu0 %v4114_v12  ;;  %2068 = vmatprep.mubr.bf16.mxu1 %v4116_v14  ;;  %v4281_v12 = vld [vmem:[%s5774_s1 + $0x228] sm:$0xff]  }
  0x6b   :  { %2534 = vmatprep.mubr.bf16.mxu0 %v4119_v15  ;;  %2708 = vmatpush1.bf16.msra.mxu0 %v4139_v16  ;;  %v4201_v14 = vld [vmem:[%s5775_s0 + $0x4cc] ss:$36 sps:$4 sm:$0xff]   ;;  %v4203_v15 = vld [vmem:[%s5775_s0 + $0x13c] ss:$36 sps:$4 sm:$0xff]  }
  0x6c   :  { %2709 = vmatprep.subr.bf16.mxu0 %v4451_v0  ;;  %2242 = vmatpush1.bf16.msra.mxu1 %v4200_v17  ;;  %v4304_v16 = vld [vmem:[%s5774_s1 + $0x230] sm:$0xff]   ;;  %v4205_v17 = vld [vmem:[%s5775_s0 + $0x4c8] ss:$36 sps:$4 sm:$0xff]  }
  0x6d   :  { %2243 = vmatprep.subr.bf16.mxu1 %v4451_v0 }
  0x6f   :  { %2710 = vmatpush1.bf16.msra.mxu0 %v4147_v18  ;;  %v4206_v18 = vld [vmem:[%s5775_s0 + $0x138] ss:$36 sps:$4 sm:$0xff]  }
  0x70   :  { %2711 = vmatprep.subr.bf16.mxu0 %v4451_v0  ;;  %2244 = vmatpush1.bf16.msra.mxu1 %v4213_v24  ;;  %v4216_v24 = vld [vmem:[%s5775_s0 + $0x1cc] ss:$36 sps:$4 sm:$0xff]  }
  0x71   :  { %2069 = vmatmul.mubr.bf16.gmra.mrb[24].mxu1 %v4122_v19  ;;  %2245 = vmatprep.subr.bf16.mxu1 %v4451_v0  ;;  %v4207_v19 = vld [vmem:[%s5775_s0 + $0x514] ss:$36 sps:$4 sm:$0xff]  }
  0x72   :  { %2535 = vmatmul.mubr.bf16.gmra.mrb[24].mxu0 %v4123_v20  ;;  %2076 = vmatprep.mubr.bf16.mxu1 %v4125_v21  ;;  %v4209_v20 = vld [vmem:[%s5775_s0 + $0x184] ss:$36 sps:$4 sm:$0xff]   ;;  %v4211_v21 = vld [vmem:[%s5775_s0 + $0x510] ss:$36 sps:$4 sm:$0xff]  }
  0x73   :  { %2542 = vmatprep.mubr.bf16.mxu0 %v4127_v22  ;;  %2712 = vmatpush1.bf16.msra.mxu0 %v4152_v23  ;;  %v4212_v22 = vld [vmem:[%s5775_s0 + $0x180] ss:$36 sps:$4 sm:$0xff]  }
  0x74   :  { %2713 = vmatprep.subr.bf16.mxu0 %v4451_v0  ;;  %2246 = vmatpush1.bf16.msra.mxu1 %v4223_v29  ;;  %v4214_v23 = vld [vmem:[%s5775_s0 + $0x55c] ss:$36 sps:$4 sm:$0xff]  }
  0x75   :  { %2247 = vmatprep.subr.bf16.mxu1 %v4451_v0  ;;  %v4325_v29 = vld [vmem:[%s5774_s1 + $0x238] sm:$0xff]  }
  0x77   :  { %2714 = vmatpush1.bf16.msra.mxu0 %v4156_v26  ;;  %v4219_v26 = vld [vmem:[%s5775_s0 + $0x1c8] ss:$36 sps:$4 sm:$0xff]  }
  0x78   :  { %2715 = vmatprep.subr.bf16.mxu0 %v4451_v0  ;;  %2248 = vmatpush1.bf16.msra.mxu1 %v4234_v33  ;;  %v4230_v33 = vld [vmem:[%s5775_s0 + $0x25c] ss:$36 sps:$4 sm:$0xff]  }
  0x79   :  { %2077 = vmatmul.mubr.bf16.gmra.mrb[28].mxu1 %v4129_v25  ;;  %2249 = vmatprep.subr.bf16.mxu1 %v4451_v0  ;;  %v4218_v25 = vld [vmem:[%s5775_s0 + $0x558] ss:$36 sps:$4 sm:$0xff]  }
  0x7a   :  { %2543 = vmatmul.mubr.bf16.gmra.mrb[28].mxu0 %v4130_v27  ;;  %2084 = vmatprep.mubr.bf16.mxu1 %v4133_v28  ;;  %v4221_v27 = vld [vmem:[%s5775_s0 + $0x5a4] ss:$36 sps:$4 sm:$0xff]   ;;  %v4224_v28 = vld [vmem:[%s5775_s0 + $0x214] ss:$36 sps:$4 sm:$0xff]  }
  0x7b   :  { %2550 = vmatprep.mubr.bf16.mxu0 %v4135_v30  ;;  %2716 = vmatpush1.bf16.msra.mxu0 %v4163_v31  ;;  %v4226_v30 = vld [vmem:[%s5775_s0 + $0x5a0] ss:$36 sps:$4 sm:$0xff]   ;;  %v4227_v31 = vld [vmem:[%s5775_s0 + $0x210] ss:$36 sps:$4 sm:$0xff]  }
  0x7c   :  { %2717 = vmatprep.subr.bf16.mxu0 %v4451_v0  ;;  %2250 = vmatpush1.bf16.msra.mxu1 %v4247_v39  ;;  %v4239_v39 = vld [vmem:[%s5775_s0 + $0x630] ss:$36 sps:$4 sm:$0xff]  }
  0x7d   :  { %2251 = vmatprep.subr.bf16.mxu1 %v4451_v0 }
  0x7f   :  { %2718 = vmatpush1.bf16.msra.mxu0 %v4171_v32  ;;  %v4228_v32 = vld [vmem:[%s5775_s0 + $0x5ec] ss:$36 sps:$4 sm:$0xff]  }
  0x80   :  { %3537 = vmatprep.subr.bf16.mxu0 %v4452_v38  ;;  %2252 = vmatpush1.bf16.msra.mxu1 %v4255_v43  ;;  %v4246_v43 = vld [vmem:[%s5775_s0 + $0x678] ss:$36 sps:$4 sm:$0xff]  }
  0x81   :  { %2085 = vmatmul.mubr.bf16.gmra.mrb[32].mxu1 %v4137_v34  ;;  %3653 = vmatprep.subr.bf16.mxu1 %v4451_v0  ;;  %v4232_v34 = vld [vmem:[%s5775_s0 + $0x5e8] ss:$36 sps:$4 sm:$0xff]  }
  0x82   :  { %2551 = vmatmul.mubr.bf16.gmra.mrb[32].mxu0 %v4138_v35  ;;  %2092 = vmatprep.mubr.bf16.mxu1 %v4140_v36  ;;  %v4233_v35 = vld [vmem:[%s5775_s0 + $0x258] ss:$36 sps:$4 sm:$0xff]  }
  0x83   :  { %2558 = vmatprep.mubr.bf16.mxu0 %v4142_v37  ;;  %v4235_v36 = vld [vmem:[%s5775_s0 + $0x634] ss:$36 sps:$4 sm:$0xff]   ;;  %v4237_v37 = vld [vmem:[%s5775_s0 + $0x2a4] ss:$36 sps:$4 sm:$0xff]  }
  0x89   :  { %2093 = vmatmul.mubr.bf16.gmra.mrb[36].mxu1 %v4144_v40  ;;  %v4240_v40 = vld [vmem:[%s5775_s0 + $0x2a0] ss:$36 sps:$4 sm:$0xff]  }
  0x8a   :  { %2559 = vmatmul.mubr.bf16.gmra.mrb[36].mxu0 %v4146_v41  ;;  %2100 = vmatprep.mubr.bf16.mxu1 %v4148_v42  ;;  %v4242_v41 = vld [vmem:[%s5775_s0 + $0x67c] ss:$36 sps:$4 sm:$0xff]   ;;  %v4244_v42 = vld [vmem:[%s5775_s0 + $0x2ec] ss:$36 sps:$4 sm:$0xff]  }
  0x8b   :  { %2566 = vmatprep.mubr.bf16.mxu0 %v4150_v44  ;;  %v4248_v44 = vld [vmem:[%s5775_s0 + $0x2e8] ss:$36 sps:$4 sm:$0xff]  }
  0x91   :  { %2101 = vmatmul.mubr.bf16.gmra.mrb[40].mxu1 %v4153_v45  ;;  %v4249_v45 = vld [vmem:[%s5775_s0 + $0x6c4] ss:$36 sps:$4 sm:$0xff]  }
  0x92   :  { %2567 = vmatmul.mubr.bf16.gmra.mrb[40].mxu0 %v4154_v46  ;;  %2108 = vmatprep.mubr.bf16.mxu1 %v4157_v47  ;;  %v4251_v46 = vld [vmem:[%s5775_s0 + $0x334] ss:$36 sps:$4 sm:$0xff]   ;;  %v4253_v47 = vld [vmem:[%s5775_s0 + $0x6c0] ss:$36 sps:$4 sm:$0xff]  }
  0x93   :  { %2574 = vmatprep.mubr.bf16.mxu0 %v4159_v48  ;;  %v4254_v48 = vld [vmem:[%s5775_s0 + $0x330] ss:$36 sps:$4 sm:$0xff]  }
  0x99   :  { %2109 = vmatmul.mubr.bf16.gmra.mrb[44].mxu1 %v4161_v49  ;;  %v4258_v49 = vld [vmem:[%s5775_s0 + $0xc] ss:$36 sps:$4 sm:$0xff]  }
  0x9a   :  { %2575 = vmatmul.mubr.bf16.gmra.mrb[44].mxu0 %v4162_v50  ;;  %2116 = vmatprep.mubr.bf16.mxu1 %v4164_v51  ;;  %v4259_v50 = vld [vmem:[%s5775_s0 + $0x37c] ss:$36 sps:$4 sm:$0xff]   ;;  %v4256_v51 = vld [vmem:[%s5775_s0 + $0x8] ss:$36 sps:$4 sm:$0xff]  }
  0x9b   :  { %2582 = vmatprep.mubr.bf16.mxu0 %v4166_v52  ;;  %v4261_v52 = vld [vmem:[%s5775_s0 + $0x378] ss:$36 sps:$4 sm:$0xff]  }
  0xa1   :  { %2117 = vmatmul.mubr.bf16.gmra.mrb[48].mxu1 %v4168_v53  ;;  %v4263_v53 = vld [vmem:[%s5775_s0 + $0x54] ss:$36 sps:$4 sm:$0xff]  }
  0xa2   :  { %2583 = vmatmul.mubr.bf16.gmra.mrb[48].mxu0 %v4169_v54  ;;  %2124 = vmatprep.mubr.bf16.mxu1 %v4172_v55  ;;  %v4265_v54 = vld [vmem:[%s5775_s0 + $0x3c4] ss:$36 sps:$4 sm:$0xff]  }
  0xa3   :  { %2719 = vmatprep.mubr.bf16.mxu0 %v4176_v56  ;;  %v4435_v55 = vld [vmem:[%s5774_s1 + $0x100] sm:$0xff]   ;;  %v4267_v56 = vld [vmem:[%s5775_s0 + $0x50] ss:$36 sps:$4 sm:$0xff]  }
  0xa9   :  { %2125 = vmatmul.mubr.bf16.gmra.mrb[52].mxu1 %v4177_v57  ;;  %v4268_v57 = vld [vmem:[%s5775_s0 + $0x3c0] ss:$36 sps:$4 sm:$0xff]  }
  0xaa   :  { %2720 = vmatmul.mubr.bf16.vlgmr.msra.gmra.mrb[0].mxu0 %v4174_v58  ;;  %2132 = vmatprep.mubr.bf16.mxu1 %v4180_v59  ;;  %v4269_v58 = vld [vmem:[%s5775_s0 + $0x9c] ss:$36 sps:$4 sm:$0xff]   ;;  %v4271_v59 = vld [vmem:[%s5775_s0 + $0x40c] ss:$36 sps:$4 sm:$0xff]  }
  0xab   :  { %3538 = vmatpush3.bf16.msra.mxu0 %v4178_v60  ;;  %2727 = vmatprep.mubr.bf16.mxu0 %v4182_v61  ;;  %v4436_v60 = vld [vmem:[%s5774_s1 + $0x108] sm:$0xff]   ;;  %v4437_v61 = vld [vmem:[%s5774_s1 + $0x110] sm:$0xff]  }
  0xac   :  { %3539 = vmatprep.subr.bf16.mxu0 %v4452_v38 }
  0xaf   :  { %3540 = vmatpush3.bf16.msra.mxu0 %v4199_v63  ;;  %v4274_v63 = vld [vmem:[%s5775_s0 + $0x408] ss:$36 sps:$4 sm:$0xff]  }
  0xb0   :  { %3541 = vmatprep.subr.bf16.mxu0 %v4452_v38 }
  0xb1   :  { %2133 = vmatmul.mubr.bf16.gmra.mrb[56].mxu1 %v4184_v62  ;;  %v4273_v62 = vld [vmem:[%s5775_s0 + $0x98] ss:$36 sps:$4 sm:$0xff]  }
  0xb2   :  { %2728 = vmatmul.mubr.bf16.gmra.mrb[4].mxu0 %v4185_v1  ;;  %2140 = vmatprep.mubr.bf16.mxu1 %v4186_v2  ;;  %v4275_v1 = vld [vmem:[%s5775_s0 + $0xe4] ss:$36 sps:$4 sm:$0xff]   ;;  %v4277_v2 = vld [vmem:[%s5775_s0 + $0x454] ss:$36 sps:$4 sm:$0xff]  }
  0xb3   :  { %2735 = vmatprep.mubr.bf16.mxu0 %v4188_v3  ;;  %3542 = vmatpush3.bf16.msra.mxu0 %v4220_v4  ;;  %v4438_v3 = vld [vmem:[%s5774_s1 + $0x118] sm:$0xff]   ;;  %v4439_v4 = vld [vmem:[%s5774_s1 + $0x120] sm:$0xff]  }
  0xb4   :  { %3543 = vmatprep.subr.bf16.mxu0 %v4452_v38 }
  0xb7   :  { %3544 = vmatpush3.bf16.msra.mxu0 %v4241_v6  ;;  %v4280_v6 = vld [vmem:[%s5775_s0 + $0x450] ss:$36 sps:$4 sm:$0xff]  }
  0xb8   :  { %3545 = vmatprep.subr.bf16.mxu0 %v4452_v38 }
  0xb9   :  { %2141 = vmatmul.mubr.bf16.gmra.mrb[60].mxu1 %v4190_v5  ;;  %v4279_v5 = vld [vmem:[%s5775_s0 + $0xe0] ss:$36 sps:$4 sm:$0xff]  }
  0xba   :  { %2736 = vmatmul.mubr.bf16.gmra.mrb[8].mxu0 %v4191_v7  ;;  %2148 = vmatprep.mubr.bf16.mxu1 %v4193_v8  ;;  %v4282_v7 = vld [vmem:[%s5775_s0 + $0x12c] ss:$36 sps:$4 sm:$0xff]   ;;  %v4284_v8 = vld [vmem:[%s5775_s0 + $0x49c] ss:$36 sps:$4 sm:$0xff]  }
  0xbb   :  { %2743 = vmatprep.mubr.bf16.mxu0 %v4195_v9  ;;  %3546 = vmatpush3.bf16.msra.mxu0 %v4262_v10  ;;  %v4440_v9 = vld [vmem:[%s5774_s1 + $0x128] sm:$0xff]   ;;  %v4441_v10 = vld [vmem:[%s5774_s1 + $0x130] sm:$0xff]  }
  0xbc   :  { %3547 = vmatprep.subr.bf16.mxu0 %v4452_v38 }
  0xbf   :  { %3548 = vmatpush3.bf16.msra.mxu0 %v4281_v12  ;;  %v4287_v12 = vld [vmem:[%s5775_s0 + $0x498] ss:$36 sps:$4 sm:$0xff]  }
  0xc0   :  { %3549 = vmatprep.subr.bf16.mxu0 %v4452_v38 }
  0xc1   :  { %2149 = vmatmul.mubr.bf16.gmra.mrb[64].mxu1 %v4197_v11  ;;  %v4286_v11 = vld [vmem:[%s5775_s0 + $0x128] ss:$36 sps:$4 sm:$0xff]  }
  0xc2   :  { %2744 = vmatmul.mubr.bf16.gmra.mrb[12].mxu0 %v4198_v13  ;;  %2156 = vmatprep.mubr.bf16.mxu1 %v4201_v14  ;;  %v4288_v13 = vld [vmem:[%s5775_s0 + $0x174] ss:$36 sps:$4 sm:$0xff]   ;;  %v4290_v14 = vld [vmem:[%s5775_s0 + $0x4e4] ss:$36 sps:$4 sm:$0xff]  }
  0xc3   :  { %2751 = vmatprep.mubr.bf16.mxu0 %v4203_v15  ;;  %3550 = vmatpush3.bf16.msra.mxu0 %v4304_v16  ;;  %v4442_v15 = vld [vmem:[%s5774_s1 + $0x138] sm:$0xff]   ;;  %v4443_v16 = vld [vmem:[%s5774_s1 + $0x140] sm:$0xff]  }
  0xc4   :  { %3551 = vmatprep.subr.bf16.mxu0 %v4452_v38 }
  0xc7   :  { %3552 = vmatpush3.bf16.msra.mxu0 %v4325_v29  ;;  %v4305_v29 = vld [vmem:[%s5775_s0 + $0x200] ss:$36 sps:$4 sm:$0xff]  }
  0xc9   :  { %2157 = vmatmul.mubr.bf16.gmra.mrb[68].mxu1 %v4205_v17  ;;  %v4292_v17 = vld [vmem:[%s5775_s0 + $0x170] ss:$36 sps:$4 sm:$0xff]  }
  0xca   :  { %2752 = vmatmul.mubr.bf16.gmra.mrb[16].mxu0 %v4206_v18  ;;  %2164 = vmatprep.mubr.bf16.mxu1 %v4207_v19  ;;  %v4293_v18 = vld [vmem:[%s5775_s0 + $0x4e0] ss:$36 sps:$4 sm:$0xff]  }
  0xcb   :  { %2759 = vmatprep.mubr.bf16.mxu0 %v4209_v20  ;;  %v4294_v19 = vld [vmem:[%s5775_s0 + $0x1bc] ss:$36 sps:$4 sm:$0xff]   ;;  %v4296_v20 = vld [vmem:[%s5775_s0 + $0x52c] ss:$36 sps:$4 sm:$0xff]  }
  0xd1   :  { %2165 = vmatmul.mubr.bf16.gmra.mrb[72].mxu1 %v4211_v21  ;;  %v4444_v21 = vld [vmem:[%s5774_s1 + $0x148] sm:$0xff]  }
  0xd2   :  { %2760 = vmatmul.mubr.bf16.gmra.mrb[20].mxu0 %v4212_v22  ;;  %2172 = vmatprep.mubr.bf16.mxu1 %v4214_v23  ;;  %v4445_v22 = vld [vmem:[%s5774_s1 + $0x150] sm:$0xff]   ;;  %v4298_v23 = vld [vmem:[%s5775_s0 + $0x1b8] ss:$36 sps:$4 sm:$0xff]  }
  0xd3   :  { %2767 = vmatprep.mubr.bf16.mxu0 %v4216_v24  ;;  %v4299_v24 = vld [vmem:[%s5775_s0 + $0x528] ss:$36 sps:$4 sm:$0xff]  }
  0xd9   :  { %2173 = vmatmul.mubr.bf16.gmra.mrb[76].mxu1 %v4218_v25  ;;  %v4300_v25 = vld [vmem:[%s5775_s0 + $0x204] ss:$36 sps:$4 sm:$0xff]  }
  0xda   :  { %2768 = vmatmul.mubr.bf16.gmra.mrb[24].mxu0 %v4219_v26  ;;  %2180 = vmatprep.mubr.bf16.mxu1 %v4221_v27  ;;  %v4302_v26 = vld [vmem:[%s5775_s0 + $0x574] ss:$36 sps:$4 sm:$0xff]  }
  0xdb   :  { %2775 = vmatprep.mubr.bf16.mxu0 %v4224_v28  ;;  %v4446_v27 = vld [vmem:[%s5774_s1 + $0x158] sm:$0xff]   ;;  %v4447_v28 = vld [vmem:[%s5774_s1 + $0x160] sm:$0xff]  }
  0xe1   :  { %2181 = vmatmul.mubr.bf16.gmra.mrb[80].mxu1 %v4226_v30  ;;  %v4306_v30 = vld [vmem:[%s5775_s0 + $0x570] ss:$36 sps:$4 sm:$0xff]  }
  0xe2   :  { %2776 = vmatmul.mubr.bf16.gmra.mrb[28].mxu0 %v4227_v31  ;;  %2188 = vmatprep.mubr.bf16.mxu1 %v4228_v32  ;;  %v4307_v31 = vld [vmem:[%s5775_s0 + $0x24c] ss:$36 sps:$4 sm:$0xff]   ;;  %v4309_v32 = vld [vmem:[%s5775_s0 + $0x5bc] ss:$36 sps:$4 sm:$0xff]  }
  0xe3   :  { %2783 = vmatprep.mubr.bf16.mxu0 %v4230_v33  ;;  %v4448_v33 = vld [vmem:[%s5774_s1 + $0x168] sm:$0xff]  }
  0xe9   :  { %2189 = vmatmul.mubr.bf16.gmra.mrb[84].mxu1 %v4232_v34  ;;  %v4449_v34 = vld [vmem:[%s5774_s1 + $0x170] sm:$0xff]  }
  0xea   :  { %2784 = vmatmul.mubr.bf16.gmra.mrb[32].mxu0 %v4233_v35  ;;  %2196 = vmatprep.mubr.bf16.mxu1 %v4235_v36  ;;  %v4311_v35 = vld [vmem:[%s5775_s0 + $0x248] ss:$36 sps:$4 sm:$0xff]   ;;  %v4312_v36 = vld [vmem:[%s5775_s0 + $0x5b8] ss:$36 sps:$4 sm:$0xff]  }
  0xeb   :  { %2791 = vmatprep.mubr.bf16.mxu0 %v4237_v37  ;;  %v4313_v37 = vld [vmem:[%s5775_s0 + $0x294] ss:$36 sps:$4 sm:$0xff]  }
  0xf1   :  { %2197 = vmatmul.mubr.bf16.gmra.mrb[88].mxu1 %v4239_v39  ;;  %v4315_v39 = vld [vmem:[%s5775_s0 + $0x604] ss:$36 sps:$4 sm:$0xff]  }
  0xf2   :  { %2792 = vmatmul.mubr.bf16.gmra.mrb[36].mxu0 %v4240_v40  ;;  %2204 = vmatprep.mubr.bf16.mxu1 %v4242_v41  ;;  %v4317_v40 = vld [vmem:[%s5775_s0 + $0x290] ss:$36 sps:$4 sm:$0xff]   ;;  %v4318_v41 = vld [vmem:[%s5775_s0 + $0x600] ss:$36 sps:$4 sm:$0xff]  }
  0xf3   :  { %2799 = vmatprep.mubr.bf16.mxu0 %v4244_v42  ;;  %v4319_v42 = vld [vmem:[%s5775_s0 + $0x2dc] ss:$36 sps:$4 sm:$0xff]  }
  0xf9   :  { %2205 = vmatmul.mubr.bf16.gmra.mrb[92].mxu1 %v4246_v43  ;;  %v4321_v43 = vld [vmem:[%s5775_s0 + $0x64c] ss:$36 sps:$4 sm:$0xff]  }
  0xfa   :  { %2800 = vmatmul.mubr.bf16.gmra.mrb[40].mxu0 %v4248_v44  ;;  %2212 = vmatprep.mubr.bf16.mxu1 %v4249_v45  ;;  %v4323_v44 = vld [vmem:[%s5775_s0 + $0x2d8] ss:$36 sps:$4 sm:$0xff]   ;;  %v4324_v45 = vld [vmem:[%s5775_s0 + $0x648] ss:$36 sps:$4 sm:$0xff]  }
  0xfb   :  { %2807 = vmatprep.mubr.bf16.mxu0 %v4251_v46  ;;  %v4326_v46 = vld [vmem:[%s5775_s0 + $0x324] ss:$36 sps:$4 sm:$0xff]  }
 0x101   :  { %2213 = vmatmul.mubr.bf16.gmra.mrb[96].mxu1 %v4253_v47  ;;  %v4328_v47 = vld [vmem:[%s5775_s0 + $0x694] ss:$36 sps:$4 sm:$0xff]  }
 0x102   :  { %2808 = vmatmul.mubr.bf16.gmra.mrb[44].mxu0 %v4254_v48  ;;  %2253 = vmatprep.mubr.bf16.mxu1 %v4258_v49  ;;  %v4330_v48 = vld [vmem:[%s5775_s0 + $0x320] ss:$36 sps:$4 sm:$0xff]   ;;  %v4331_v49 = vld [vmem:[%s5775_s0 + $0x690] ss:$36 sps:$4 sm:$0xff]  }
 0x103   :  { %2815 = vmatprep.mubr.bf16.mxu0 %v4259_v50  ;;  %v4332_v50 = vld [vmem:[%s5775_s0 + $0x36c] ss:$36 sps:$4 sm:$0xff]  }
 0x109   :  { %2254 = vmatmul.mubr.bf16.vlgmr.msra.gmra.mrb[0].mxu1 %v4256_v51  ;;  %v4334_v51 = vld [vmem:[%s5775_s0 + $0x6dc] ss:$36 sps:$4 sm:$0xff]  }
 0x10a   :  { %2816 = vmatmul.mubr.bf16.gmra.mrb[48].mxu0 %v4261_v52  ;;  %2261 = vmatprep.mubr.bf16.mxu1 %v4263_v53  ;;  %v4336_v52 = vld [vmem:[%s5775_s0 + $0x368] ss:$36 sps:$4 sm:$0xff]   ;;  %v4337_v53 = vld [vmem:[%s5775_s0 + $0x6d8] ss:$36 sps:$4 sm:$0xff]  }
 0x10b   :  { %2823 = vmatprep.mubr.bf16.mxu0 %v4265_v54  ;;  %3669 = vmatpush1.bf16.msra.mxu1 %v4435_v55  ;;  %v4338_v54 = vld [vmem:[%s5775_s0 + $0x3b4] ss:$36 sps:$4 sm:$0xff]  }
 0x10c   :  { %3654 = vmatprep.subr.bf16.mxu1 %v4451_v0  ;;  %v4340_v55 = vld [vmem:[%s5775_s0 + $0x3b0] ss:$36 sps:$4 sm:$0xff]  }
 0x10f   :  { %3670 = vmatpush1.bf16.msra.mxu1 %v4436_v60  ;;  %v4346_v60 = vld [vmem:[%s5775_s0 + $0x444] ss:$36 sps:$4 sm:$0xff]  }
 0x110   :  { %3655 = vmatprep.subr.bf16.mxu1 %v4451_v0 }
 0x111   :  { %2262 = vmatmul.mubr.bf16.gmra.mrb[4].mxu1 %v4267_v56  ;;  %v4341_v56 = vld [vmem:[%s5775_s0 + $0x20] ss:$36 sps:$4 sm:$0xff]  }
 0x112   :  { %2824 = vmatmul.mubr.bf16.gmra.mrb[52].mxu0 %v4268_v57  ;;  %2269 = vmatprep.mubr.bf16.mxu1 %v4269_v58  ;;  %v4342_v57 = vld [vmem:[%s5775_s0 + $0x3fc] ss:$36 sps:$4 sm:$0xff]  }
 0x113   :  { %2831 = vmatprep.mubr.bf16.mxu0 %v4271_v59  ;;  %3671 = vmatpush1.bf16.msra.mxu1 %v4437_v61  ;;  %v4344_v58 = vld [vmem:[%s5775_s0 + $0x3f8] ss:$36 sps:$4 sm:$0xff]   ;;  %v4345_v59 = vld [vmem:[%s5775_s0 + $0x68] ss:$36 sps:$4 sm:$0xff]   ;;  %v4348_v61 = vld [vmem:[%s5775_s0 + $0x440] ss:$36 sps:$4 sm:$0xff]  }
 0x114   :  { %3656 = vmatprep.subr.bf16.mxu1 %v4451_v0 }
 0x117   :  { %3672 = vmatpush1.bf16.msra.mxu1 %v4438_v3  ;;  %v4354_v3 = vld [vmem:[%s5775_s0 + $0x4d4] ss:$36 sps:$4 sm:$0xff]  }
 0x118   :  { %3657 = vmatprep.subr.bf16.mxu1 %v4451_v0 }
 0x119   :  { %2270 = vmatmul.mubr.bf16.gmra.mrb[8].mxu1 %v4273_v62  ;;  %v4349_v62 = vld [vmem:[%s5775_s0 + $0xb0] ss:$36 sps:$4 sm:$0xff]  }
 0x11a   :  { %2832 = vmatmul.mubr.bf16.gmra.mrb[56].mxu0 %v4274_v63  ;;  %2277 = vmatprep.mubr.bf16.mxu1 %v4275_v1  ;;  %v4350_v63 = vld [vmem:[%s5775_s0 + $0x48c] ss:$36 sps:$4 sm:$0xff]  }
 0x11b   :  { %2839 = vmatprep.mubr.bf16.mxu0 %v4277_v2  ;;  %3673 = vmatpush1.bf16.msra.mxu1 %v4439_v4  ;;  %v4352_v1 = vld [vmem:[%s5775_s0 + $0x488] ss:$36 sps:$4 sm:$0xff]   ;;  %v4353_v2 = vld [vmem:[%s5775_s0 + $0xf8] ss:$36 sps:$4 sm:$0xff]   ;;  %v4356_v4 = vld [vmem:[%s5775_s0 + $0x4d0] ss:$36 sps:$4 sm:$0xff]  }
 0x11c   :  { %3658 = vmatprep.subr.bf16.mxu1 %v4451_v0 }
 0x11f   :  { %3674 = vmatpush1.bf16.msra.mxu1 %v4440_v9  ;;  %v4362_v9 = vld [vmem:[%s5775_s0 + $0x564] ss:$36 sps:$4 sm:$0xff]  }
 0x120   :  { %3659 = vmatprep.subr.bf16.mxu1 %v4451_v0 }
 0x121   :  { %2278 = vmatmul.mubr.bf16.gmra.mrb[12].mxu1 %v4279_v5  ;;  %v4357_v5 = vld [vmem:[%s5775_s0 + $0x140] ss:$36 sps:$4 sm:$0xff]  }
 0x122   :  { %2840 = vmatmul.mubr.bf16.gmra.mrb[60].mxu0 %v4280_v6  ;;  %2285 = vmatprep.mubr.bf16.mxu1 %v4282_v7  ;;  %v4358_v6 = vld [vmem:[%s5775_s0 + $0x51c] ss:$36 sps:$4 sm:$0xff]  }
 0x123   :  { %2847 = vmatprep.mubr.bf16.mxu0 %v4284_v8  ;;  %3675 = vmatpush1.bf16.msra.mxu1 %v4441_v10  ;;  %v4360_v7 = vld [vmem:[%s5775_s0 + $0x518] ss:$36 sps:$4 sm:$0xff]   ;;  %v4361_v8 = vld [vmem:[%s5775_s0 + $0x188] ss:$36 sps:$4 sm:$0xff]   ;;  %v4364_v10 = vld [vmem:[%s5775_s0 + $0x560] ss:$36 sps:$4 sm:$0xff]  }
 0x124   :  { %3660 = vmatprep.subr.bf16.mxu1 %v4451_v0 }
 0x127   :  { %3676 = vmatpush1.bf16.msra.mxu1 %v4442_v15  ;;  %v4370_v15 = vld [vmem:[%s5775_s0 + $0x5f4] ss:$36 sps:$4 sm:$0xff]  }
 0x128   :  { %3661 = vmatprep.subr.bf16.mxu1 %v4451_v0 }
 0x129   :  { %2286 = vmatmul.mubr.bf16.gmra.mrb[16].mxu1 %v4286_v11  ;;  %v4365_v11 = vld [vmem:[%s5775_s0 + $0x1d0] ss:$36 sps:$4 sm:$0xff]  }
 0x12a   :  { %2848 = vmatmul.mubr.bf16.gmra.mrb[64].mxu0 %v4287_v12  ;;  %2293 = vmatprep.mubr.bf16.mxu1 %v4288_v13  ;;  %v4366_v12 = vld [vmem:[%s5775_s0 + $0x5ac] ss:$36 sps:$4 sm:$0xff]  }
 0x12b   :  { %2855 = vmatprep.mubr.bf16.mxu0 %v4290_v14  ;;  %3677 = vmatpush1.bf16.msra.mxu1 %v4443_v16  ;;  %v4368_v13 = vld [vmem:[%s5775_s0 + $0x5a8] ss:$36 sps:$4 sm:$0xff]   ;;  %v4369_v14 = vld [vmem:[%s5775_s0 + $0x218] ss:$36 sps:$4 sm:$0xff]   ;;  %v4372_v16 = vld [vmem:[%s5775_s0 + $0x5f0] ss:$36 sps:$4 sm:$0xff]  }
 0x12c   :  { %3662 = vmatprep.subr.bf16.mxu1 %v4451_v0 }
 0x12f   :  { %3678 = vmatpush1.bf16.msra.mxu1 %v4444_v21  ;;  %v4378_v21 = vld [vmem:[%s5775_s0 + $0x684] ss:$36 sps:$4 sm:$0xff]  }
 0x130   :  { %3663 = vmatprep.subr.bf16.mxu1 %v4451_v0 }
 0x131   :  { %2294 = vmatmul.mubr.bf16.gmra.mrb[20].mxu1 %v4292_v17  ;;  %v4373_v17 = vld [vmem:[%s5775_s0 + $0x260] ss:$36 sps:$4 sm:$0xff]  }
 0x132   :  { %2856 = vmatmul.mubr.bf16.gmra.mrb[68].mxu0 %v4293_v18  ;;  %2301 = vmatprep.mubr.bf16.mxu1 %v4294_v19  ;;  %v4374_v18 = vld [vmem:[%s5775_s0 + $0x63c] ss:$36 sps:$4 sm:$0xff]  }
 0x133   :  { %2863 = vmatprep.mubr.bf16.mxu0 %v4296_v20  ;;  %3679 = vmatpush1.bf16.msra.mxu1 %v4445_v22  ;;  %v4376_v19 = vld [vmem:[%s5775_s0 + $0x638] ss:$36 sps:$4 sm:$0xff]   ;;  %v4377_v20 = vld [vmem:[%s5775_s0 + $0x2a8] ss:$36 sps:$4 sm:$0xff]   ;;  %v4380_v22 = vld [vmem:[%s5775_s0 + $0x680] ss:$36 sps:$4 sm:$0xff]  }
 0x134   :  { %3664 = vmatprep.subr.bf16.mxu1 %v4451_v0 }
 0x137   :  { %3680 = vmatpush1.bf16.msra.mxu1 %v4446_v27  ;;  %v4388_v27 = vld [vmem:[%s5775_s0 + $0x3bc] ss:$36 sps:$4 sm:$0xff]  }
 0x138   :  { %3665 = vmatprep.subr.bf16.mxu1 %v4451_v0 }
 0x139   :  { %2302 = vmatmul.mubr.bf16.gmra.mrb[24].mxu1 %v4298_v23  ;;  %v4381_v23 = vld [vmem:[%s5775_s0 + $0x2f0] ss:$36 sps:$4 sm:$0xff]  }
 0x13a   :  { %2864 = vmatmul.mubr.bf16.gmra.mrb[72].mxu0 %v4299_v24  ;;  %2309 = vmatprep.mubr.bf16.mxu1 %v4300_v25  ;;  %v4382_v24 = vld [vmem:[%s5775_s0 + $0x6cc] ss:$36 sps:$4 sm:$0xff]  }
 0x13b   :  { %2871 = vmatprep.mubr.bf16.mxu0 %v4302_v26  ;;  %3681 = vmatpush1.bf16.msra.mxu1 %v4447_v28  ;;  %v4384_v25 = vld [vmem:[%s5775_s0 + $0x6c8] ss:$36 sps:$4 sm:$0xff]   ;;  %v4385_v26 = vld [vmem:[%s5775_s0 + $0x338] ss:$36 sps:$4 sm:$0xff]  }
 0x13c   :  { %3666 = vmatprep.subr.bf16.mxu1 %v4451_v0  ;;  %v4386_v28 = vld [vmem:[%s5775_s0 + $0x3b8] ss:$36 sps:$4 sm:$0xff]  }
 0x13f   :  { %3682 = vmatpush1.bf16.msra.mxu1 %v4448_v33  ;;  %v4394_v33 = vld [vmem:[%s5775_s0 + $0x44c] ss:$36 sps:$4 sm:$0xff]  }
 0x140   :  { %3667 = vmatprep.subr.bf16.mxu1 %v4451_v0 }
 0x141   :  { %2310 = vmatmul.mubr.bf16.gmra.mrb[28].mxu1 %v4305_v29  ;;  %v4389_v29 = vld [vmem:[%s5775_s0 + $0x380] ss:$36 sps:$4 sm:$0xff]  }
 0x142   :  { %2872 = vmatmul.mubr.bf16.gmra.mrb[76].mxu0 %v4306_v30  ;;  %2317 = vmatprep.mubr.bf16.mxu1 %v4307_v31  ;;  %v4390_v30 = vld [vmem:[%s5775_s0 + $0x404] ss:$36 sps:$4 sm:$0xff]  }
 0x143   :  { %2879 = vmatprep.mubr.bf16.mxu0 %v4309_v32  ;;  %3683 = vmatpush1.bf16.msra.mxu1 %v4449_v34  ;;  %v4392_v31 = vld [vmem:[%s5775_s0 + $0x400] ss:$36 sps:$4 sm:$0xff]   ;;  %v4393_v32 = vld [vmem:[%s5775_s0 + $0x3c8] ss:$36 sps:$4 sm:$0xff]  }
 0x144   :  { %3668 = vmatprep.subr.bf16.mxu1 %v4451_v0  ;;  %v4450_v0 = vld [vmem:[%s5774_s1 + $0x178] sm:$0xff]  }
 0x147   :  { %3684 = vmatpush1.bf16.msra.mxu1 %v4450_v0  ;;  %v4398_v0 = vld [vmem:[%s5775_s0 + $0x494] ss:$36 sps:$4 sm:$0xff]  }
 0x149   :  { %2318 = vmatmul.mubr.bf16.gmra.mrb[32].mxu1 %v4311_v35 }
 0x14a   :  { %2880 = vmatmul.mubr.bf16.gmra.mrb[80].mxu0 %v4312_v36  ;;  %2325 = vmatprep.mubr.bf16.mxu1 %v4313_v37  ;;  %v4396_v36 = vld [vmem:[%s5775_s0 + $0x448] ss:$36 sps:$4 sm:$0xff]  }
 0x14b   :  { %2887 = vmatprep.mubr.bf16.mxu0 %v4315_v39  ;;  %v4397_v39 = vld [vmem:[%s5775_s0 + $0x410] ss:$36 sps:$4 sm:$0xff]  }
 0x151   :  { %2326 = vmatmul.mubr.bf16.gmra.mrb[36].mxu1 %v4317_v40 }
 0x152   :  { %2888 = vmatmul.mubr.bf16.gmra.mrb[84].mxu0 %v4318_v41  ;;  %2333 = vmatprep.mubr.bf16.mxu1 %v4319_v42 }
 0x153   :  { %2895 = vmatprep.mubr.bf16.mxu0 %v4321_v43  ;;  %v4400_v43 = vld [vmem:[%s5775_s0 + $0x490] ss:$36 sps:$4 sm:$0xff]  }
 0x159   :  { %2334 = vmatmul.mubr.bf16.gmra.mrb[40].mxu1 %v4323_v44 }
 0x15a   :  { %2896 = vmatmul.mubr.bf16.gmra.mrb[88].mxu0 %v4324_v45  ;;  %2341 = vmatprep.mubr.bf16.mxu1 %v4326_v46  ;;  %v4401_v45 = vld [vmem:[%s5775_s0 + $0x458] ss:$36 sps:$4 sm:$0xff]  }
 0x15b   :  { %2903 = vmatprep.mubr.bf16.mxu0 %v4328_v47  ;;  %v4402_v46 = vld [vmem:[%s5775_s0 + $0x4dc] ss:$36 sps:$4 sm:$0xff]  }
 0x161   :  { %2342 = vmatmul.mubr.bf16.gmra.mrb[44].mxu1 %v4330_v48 }
 0x162   :  { %2904 = vmatmul.mubr.bf16.gmra.mrb[92].mxu0 %v4331_v49  ;;  %2349 = vmatprep.mubr.bf16.mxu1 %v4332_v50  ;;  %v4404_v50 = vld [vmem:[%s5775_s0 + $0x4d8] ss:$36 sps:$4 sm:$0xff]  }
 0x163   :  { %2911 = vmatprep.mubr.bf16.mxu0 %v4334_v51 }
 0x169   :  { %2350 = vmatmul.mubr.bf16.gmra.mrb[48].mxu1 %v4336_v52  ;;  %v4405_v52 = vld [vmem:[%s5775_s0 + $0x4a0] ss:$36 sps:$4 sm:$0xff]  }
 0x16a   :  { %2912 = vmatmul.mubr.bf16.gmra.mrb[96].mxu0 %v4337_v53  ;;  %2357 = vmatprep.mubr.bf16.mxu1 %v4338_v54  ;;  %v4406_v53 = vld [vmem:[%s5775_s0 + $0x524] ss:$36 sps:$4 sm:$0xff]  }
 0x16b   :  { %3553 = vmatprep.mubr.msk.bf16.mxu0 %vm4453_vm0, %v4452_v38 }
 0x171   :  { %2358 = vmatmul.mubr.bf16.gmra.mrb[52].mxu1 %v4340_v55 }
 0x172   :  { %3554 = vmatmul.mubr.bf16.vlgmr.msra.gmra.mrb[0].mxu0 %v4341_v56  ;;  %2365 = vmatprep.mubr.bf16.mxu1 %v4342_v57  ;;  %v4408_v57 = vld [vmem:[%s5775_s0 + $0x520] ss:$36 sps:$4 sm:$0xff]  }
 0x173   :  { %3557 = vmatprep.mubr.msk.bf16.mxu0 %vm4453_vm0, %v4452_v38 }
 0x179   :  { %2366 = vmatmul.mubr.bf16.gmra.mrb[56].mxu1 %v4344_v58 }
 0x17a   :  { %3558 = vmatmul.mubr.bf16.gmra.mrb[4].mxu0 %v4345_v59  ;;  %2373 = vmatprep.mubr.bf16.mxu1 %v4346_v60  ;;  %v4409_v59 = vld [vmem:[%s5775_s0 + $0x4e8] ss:$36 sps:$4 sm:$0xff]  }
 0x17b   :  { %3561 = vmatprep.mubr.msk.bf16.mxu0 %vm4453_vm0, %v4452_v38  ;;  %v4410_v60 = vld [vmem:[%s5775_s0 + $0x56c] ss:$36 sps:$4 sm:$0xff]  }
 0x181   :  { %2374 = vmatmul.mubr.bf16.gmra.mrb[60].mxu1 %v4348_v61 }
 0x182   :  { %3562 = vmatmul.mubr.bf16.gmra.mrb[8].mxu0 %v4349_v62  ;;  %2381 = vmatprep.mubr.bf16.mxu1 %v4350_v63 }
 0x183   :  { %3565 = vmatprep.mubr.msk.bf16.mxu0 %vm4453_vm0, %v4452_v38 }
 0x189   :  { %2382 = vmatmul.mubr.bf16.gmra.mrb[64].mxu1 %v4352_v1  ;;  %v4412_v1 = vld [vmem:[%s5775_s0 + $0x568] ss:$36 sps:$4 sm:$0xff]  }
 0x18a   :  { %3566 = vmatmul.mubr.bf16.gmra.mrb[12].mxu0 %v4353_v2  ;;  %2389 = vmatprep.mubr.bf16.mxu1 %v4354_v3  ;;  %v4413_v3 = vld [vmem:[%s5775_s0 + $0x530] ss:$36 sps:$4 sm:$0xff]  }
 0x18b   :  { %3569 = vmatprep.mubr.msk.bf16.mxu0 %vm4453_vm0, %v4452_v38 }
 0x191   :  { %2390 = vmatmul.mubr.bf16.gmra.mrb[68].mxu1 %v4356_v4  ;;  %v4414_v4 = vld [vmem:[%s5775_s0 + $0x5b4] ss:$36 sps:$4 sm:$0xff]  }
 0x192   :  { %3570 = vmatmul.mubr.bf16.gmra.mrb[16].mxu0 %v4357_v5  ;;  %2397 = vmatprep.mubr.bf16.mxu1 %v4358_v6 }
 0x193   :  { %3573 = vmatprep.mubr.msk.bf16.mxu0 %vm4453_vm0, %v4452_v38 }
 0x199   :  { %2398 = vmatmul.mubr.bf16.gmra.mrb[72].mxu1 %v4360_v7 }
 0x19a   :  { %3574 = vmatmul.mubr.bf16.gmra.mrb[20].mxu0 %v4361_v8  ;;  %2405 = vmatprep.mubr.bf16.mxu1 %v4362_v9  ;;  %v4416_v8 = vld [vmem:[%s5775_s0 + $0x5b0] ss:$36 sps:$4 sm:$0xff]  }
 0x19b   :  { %3577 = vmatprep.mubr.msk.bf16.mxu0 %vm4453_vm0, %v4452_v38 }
 0x1a1   :  { %2406 = vmatmul.mubr.bf16.gmra.mrb[76].mxu1 %v4364_v10  ;;  %v4417_v10 = vld [vmem:[%s5775_s0 + $0x578] ss:$36 sps:$4 sm:$0xff]  }
 0x1a2   :  { %3578 = vmatmul.mubr.bf16.gmra.mrb[24].mxu0 %v4365_v11  ;;  %2413 = vmatprep.mubr.bf16.mxu1 %v4366_v12  ;;  %v4418_v11 = vld [vmem:[%s5775_s0 + $0x5fc] ss:$36 sps:$4 sm:$0xff]  }
 0x1a3   :  { %3581 = vmatprep.mubr.msk.bf16.mxu0 %vm4453_vm0, %v4452_v38 }
 0x1a9   :  { %2414 = vmatmul.mubr.bf16.gmra.mrb[80].mxu1 %v4368_v13 }
 0x1aa   :  { %3582 = vmatmul.mubr.bf16.gmra.mrb[28].mxu0 %v4369_v14  ;;  %2421 = vmatprep.mubr.bf16.mxu1 %v4370_v15  ;;  %v4420_v15 = vld [vmem:[%s5775_s0 + $0x5f8] ss:$36 sps:$4 sm:$0xff]  }
 0x1ab   :  { %3585 = vmatprep.mubr.msk.bf16.mxu0 %vm4453_vm0, %v4452_v38 }
 0x1b1   :  { %2422 = vmatmul.mubr.bf16.gmra.mrb[84].mxu1 %v4372_v16 }
 0x1b2   :  { %3586 = vmatmul.mubr.bf16.gmra.mrb[32].mxu0 %v4373_v17  ;;  %2429 = vmatprep.mubr.bf16.mxu1 %v4374_v18  ;;  %v4421_v17 = vld [vmem:[%s5775_s0 + $0x5c0] ss:$36 sps:$4 sm:$0xff]  }
 0x1b3   :  { %3589 = vmatprep.mubr.msk.bf16.mxu0 %vm4453_vm0, %v4452_v38  ;;  %v4422_v18 = vld [vmem:[%s5775_s0 + $0x644] ss:$36 sps:$4 sm:$0xff]  }
 0x1b9   :  { %2430 = vmatmul.mubr.bf16.gmra.mrb[88].mxu1 %v4376_v19 }
 0x1ba   :  { %3590 = vmatmul.mubr.bf16.gmra.mrb[36].mxu0 %v4377_v20  ;;  %2437 = vmatprep.mubr.bf16.mxu1 %v4378_v21 }
 0x1bb   :  { %3593 = vmatprep.mubr.msk.bf16.mxu0 %vm4453_vm0, %v4452_v38 }
 0x1c1   :  { %2438 = vmatmul.mubr.bf16.gmra.mrb[92].mxu1 %v4380_v22  ;;  %v4424_v22 = vld [vmem:[%s5775_s0 + $0x640] ss:$36 sps:$4 sm:$0xff]  }
 0x1c2   :  { %3594 = vmatmul.mubr.bf16.gmra.mrb[40].mxu0 %v4381_v23  ;;  %2445 = vmatprep.mubr.bf16.mxu1 %v4382_v24  ;;  %v4425_v24 = vld [vmem:[%s5775_s0 + $0x608] ss:$36 sps:$4 sm:$0xff]  }
 0x1c3   :  { %3597 = vmatprep.mubr.msk.bf16.mxu0 %vm4453_vm0, %v4452_v38 }
 0x1c9   :  { %2446 = vmatmul.mubr.bf16.gmra.mrb[96].mxu1 %v4384_v25  ;;  %v4426_v25 = vld [vmem:[%s5775_s0 + $0x68c] ss:$36 sps:$4 sm:$0xff]  }
 0x1ca   :  { %3598 = vmatmul.mubr.bf16.gmra.mrb[44].mxu0 %v4385_v26  ;;  %2590 = vmatprep.mubr.bf16.mxu1 %v4388_v27 }
 0x1cb   :  { %3601 = vmatprep.mubr.msk.bf16.mxu0 %vm4453_vm0, %v4452_v38 }
 0x1d1   :  { %2591 = vmatmul.mubr.bf16.vlgmr.msra.gmra.mrb[52].mxu1 %v4386_v28 }
 0x1d2   :  { %3602 = vmatmul.mubr.bf16.gmra.mrb[48].mxu0 %v4389_v29  ;;  %2598 = vmatprep.mubr.bf16.mxu1 %v4390_v30  ;;  %v4428_v29 = vld [vmem:[%s5775_s0 + $0x688] ss:$36 sps:$4 sm:$0xff]  }
 0x1d3   :  { %3605 = vmatprep.mubr.msk.bf16.mxu0 %vm4453_vm0, %v4452_v38 }
 0x1d9   :  { %2599 = vmatmul.mubr.bf16.gmra.mrb[56].mxu1 %v4392_v31  ;;  %v4429_v31 = vld [vmem:[%s5775_s0 + $0x650] ss:$36 sps:$4 sm:$0xff]  }
 0x1da   :  { %3606 = vmatmul.mubr.bf16.gmra.mrb[52].mxu0 %v4393_v32  ;;  %2606 = vmatprep.mubr.bf16.mxu1 %v4394_v33  ;;  %v4430_v32 = vld [vmem:[%s5775_s0 + $0x6d4] ss:$36 sps:$4 sm:$0xff]  }
 0x1db   :  { %3609 = vmatprep.mubr.msk.bf16.mxu0 %vm4453_vm0, %v4452_v38 }
 0x1dc   :  { %v5436_v34 = vpop.f32.mrb[0].mxu1 }
 0x1dd   :  { %v2257_v35 = vpop.f32.mrb[1].mxu1 }
 0x1de   :  { %v5441_v37 = vpop.f32.mrb[2].mxu1 }
 0x1df   :  { %v2260_v40 = vpop.f32.mrb[3].mxu1 }
 0x1e0   :  { %v4433_v40 = vld [vmem:[%s5775_s0 + $0x698] ss:$36 sps:$4 sm:$0xff]  }
 0x1e1   :  { %2607 = vmatmul.mubr.bf16.gmra.mrb[60].mxu1 %v4396_v36 }
 0x1e2   :  { %3610 = vmatmul.mubr.bf16.gmra.mrb[56].mxu0 %v4397_v39  ;;  %2614 = vmatprep.mubr.bf16.mxu1 %v4398_v0  ;;  %v4432_v39 = vld [vmem:[%s5775_s0 + $0x6d0] ss:$36 sps:$4 sm:$0xff]  }
 0x1e3   :  { %3613 = vmatprep.mubr.msk.bf16.mxu0 %vm4453_vm0, %v4452_v38 }
 0x1e4   :  { %v5451_v41 = vpop.f32.mrb[4].mxu1 }
 0x1e5   :  { %v2265_v42 = vpop.f32.mrb[5].mxu1 }
 0x1e6   :  { %v5456_v44 = vpop.f32.mrb[6].mxu1 }
 0x1e7   :  { %v2268_v47 = vpop.f32.mrb[7].mxu1 }
 0x1e8   :  { %v4434_v47 = vld [vmem:[%s5775_s0 + $0x6e0] ss:$36 sps:$4 sm:$0xff]  }
 0x1e9   :  { %2615 = vmatmul.mubr.bf16.gmra.mrb[64].mxu1 %v4400_v43 }
 0x1ea   :  { %3614 = vmatmul.mubr.bf16.gmra.mrb[60].mxu0 %v4401_v45  ;;  %2622 = vmatprep.mubr.bf16.mxu1 %v4402_v46 }
 0x1eb   :  { %3617 = vmatprep.mubr.msk.bf16.mxu0 %vm4453_vm0, %v4452_v38 }
 0x1ec   :  { %v5466_v48 = vpop.f32.mrb[8].mxu1 }
 0x1ed   :  { %v2273_v49 = vpop.f32.mrb[9].mxu1 }
 0x1ee   :  { %v5471_v51 = vpop.f32.mrb[10].mxu1 }
 0x1ef   :  { %v2276_v54 = vpop.f32.mrb[11].mxu1 }
 0x1f1   :  { %2623 = vmatmul.mubr.bf16.gmra.mrb[68].mxu1 %v4404_v50 }
 0x1f2   :  { %3618 = vmatmul.mubr.bf16.gmra.mrb[64].mxu0 %v4405_v52  ;;  %2630 = vmatprep.mubr.bf16.mxu1 %v4406_v53 }
 0x1f3   :  { %3621 = vmatprep.mubr.msk.bf16.mxu0 %vm4453_vm0, %v4452_v38 }
 0x1f4   :  { %v5481_v55 = vpop.f32.mrb[12].mxu1 }
 0x1f5   :  { %v2281_v56 = vpop.f32.mrb[13].mxu1 }
 0x1f6   :  { %v5486_v58 = vpop.f32.mrb[14].mxu1 }
 0x1f7   :  { %v2284_v61 = vpop.f32.mrb[15].mxu1 }
 0x1f9   :  { %2631 = vmatmul.mubr.bf16.gmra.mrb[72].mxu1 %v4408_v57 }
 0x1fa   :  { %3622 = vmatmul.mubr.bf16.gmra.mrb[68].mxu0 %v4409_v59  ;;  %2638 = vmatprep.mubr.bf16.mxu1 %v4410_v60 }
 0x1fb   :  { %3625 = vmatprep.mubr.msk.bf16.mxu0 %vm4453_vm0, %v4452_v38 }
 0x1fc   :  { %v5496_v62 = vpop.f32.mrb[16].mxu1 }
 0x1fd   :  { %v2289_v63 = vpop.f32.mrb[17].mxu1 }
 0x1fe   :  { %v5501_v2 = vpop.f32.mrb[18].mxu1 }
 0x1ff   :  { %v2292_v5 = vpop.f32.mrb[19].mxu1 }
 0x201   :  { %2639 = vmatmul.mubr.bf16.gmra.mrb[76].mxu1 %v4412_v1 }
 0x202   :  { %3626 = vmatmul.mubr.bf16.gmra.mrb[72].mxu0 %v4413_v3  ;;  %2646 = vmatprep.mubr.bf16.mxu1 %v4414_v4 }
 0x203   :  { %3629 = vmatprep.mubr.msk.bf16.mxu0 %vm4453_vm0, %v4452_v38 }
 0x204   :  { %v5511_v6 = vpop.f32.mrb[20].mxu1 }
 0x205   :  { %v2297_v7 = vpop.f32.mrb[21].mxu1 }
 0x206   :  { %v5516_v9 = vpop.f32.mrb[22].mxu1 }
 0x207   :  { %v2300_v12 = vpop.f32.mrb[23].mxu1 }
 0x209   :  { %2647 = vmatmul.mubr.bf16.gmra.mrb[80].mxu1 %v4416_v8 }
 0x20a   :  { %3630 = vmatmul.mubr.bf16.gmra.mrb[76].mxu0 %v4417_v10  ;;  %2654 = vmatprep.mubr.bf16.mxu1 %v4418_v11 }
 0x20b   :  { %3633 = vmatprep.mubr.msk.bf16.mxu0 %vm4453_vm0, %v4452_v38 }
 0x20c   :  { %v5526_v13 = vpop.f32.mrb[24].mxu1 }
 0x20d   :  { %v2305_v14 = vpop.f32.mrb[25].mxu1 }
 0x20e   :  { %v5531_v16 = vpop.f32.mrb[26].mxu1 }
 0x20f   :  { %v2308_v19 = vpop.f32.mrb[27].mxu1 }
 0x211   :  { %2655 = vmatmul.mubr.bf16.gmra.mrb[84].mxu1 %v4420_v15 }
 0x212   :  { %3634 = vmatmul.mubr.bf16.gmra.mrb[80].mxu0 %v4421_v17  ;;  %2662 = vmatprep.mubr.bf16.mxu1 %v4422_v18 }
 0x213   :  { %3637 = vmatprep.mubr.msk.bf16.mxu0 %vm4453_vm0, %v4452_v38 }
 0x214   :  { %v5541_v20 = vpop.f32.mrb[28].mxu1 }
 0x215   :  { %v2313_v21 = vpop.f32.mrb[29].mxu1 }
 0x216   :  { %v5546_v23 = vpop.f32.mrb[30].mxu1 }
 0x217   :  { %v2316_v26 = vpop.f32.mrb[31].mxu1 }
 0x219   :  { %2663 = vmatmul.mubr.bf16.gmra.mrb[88].mxu1 %v4424_v22 }
 0x21a   :  { %3638 = vmatmul.mubr.bf16.gmra.mrb[84].mxu0 %v4425_v24  ;;  %2670 = vmatprep.mubr.bf16.mxu1 %v4426_v25 }
 0x21b   :  { %3641 = vmatprep.mubr.msk.bf16.mxu0 %vm4453_vm0, %v4452_v38 }
 0x21c   :  { %v5556_v27 = vpop.f32.mrb[32].mxu1 }
 0x21d   :  { %v2321_v28 = vpop.f32.mrb[33].mxu1 }
 0x21e   :  { %v5561_v30 = vpop.f32.mrb[34].mxu1 }
 0x21f   :  { %v2324_v33 = vpop.f32.mrb[35].mxu1 }
 0x221   :  { %2671 = vmatmul.mubr.bf16.gmra.mrb[92].mxu1 %v4428_v29 }
 0x222   :  { %3642 = vmatmul.mubr.bf16.gmra.mrb[88].mxu0 %v4429_v31  ;;  %2678 = vmatprep.mubr.bf16.mxu1 %v4430_v32 }
 0x223   :  { %3645 = vmatprep.mubr.msk.bf16.mxu0 %vm4453_vm0, %v4452_v38 }
 0x224   :  { %v5571_v35 = vpop.f32.mrb[36].mxu1 }
 0x225   :  { %v2329_v36 = vpop.f32.mrb[37].mxu1 }
 0x226   :  { %v5576_v0 = vpop.f32.mrb[38].mxu1 }
 0x227   :  { %v2332_v42 = vpop.f32.mrb[39].mxu1 }
 0x229   :  { %2679 = vmatmul.mubr.bf16.gmra.mrb[96].mxu1 %v4432_v39 }
 0x22a   :  { %3646 = vmatmul.mubr.bf16.gmra.mrb[92].mxu0 %v4433_v40 }
 0x22b   :  { %3649 = vmatprep.mubr.msk.bf16.mxu0 %vm4453_vm0, %v4452_v38 }
 0x22c   :  { %v5583_v43 = vpop.f32.mrb[40].mxu1 }
 0x22d   :  { %v2337_v45 = vpop.f32.mrb[41].mxu1 }
 0x22e   :  { %v5585_v46 = vpop.f32.mrb[42].mxu1 }
 0x22f   :  { %v2340_v49 = vpop.f32.mrb[43].mxu1 }
 0x232   :  { %3650 = vmatmul.mubr.bf16.gmra.mrb[96].mxu0 %v4434_v47 }
 0x234   :  { %v5590_v50 = vpop.f32.mrb[44].mxu1 }
 0x235   :  { %v2345_v52 = vpop.f32.mrb[45].mxu1 }
 0x236   :  { %v5592_v53 = vpop.f32.mrb[46].mxu1 }
 0x237   :  { %v2348_v54 = vpop.f32.mrb[47].mxu1 }
 0x23c   :  { %v5594_v56 = vpop.f32.mrb[48].mxu1 }
 0x23d   :  { %v2353_v38 = vpop.f32.mrb[49].mxu1 }
 0x23e   :  { %v5596_v57 = vpop.f32.mrb[50].mxu1 }
 0x23f   :  { %v2356_v59 = vpop.f32.mrb[51].mxu1 }
 0x245   :  { %v2954_v60 = vpop.f32.mrb[0].mxu0 }
 0x246   :  { %v3685_v61 = vadd.f32 %v2954_v60, %v5436_v34  ;;  %v3555_v63 = vpop.f32.mrb[1].mxu0 }
 0x247   :  { %v2957_v1 = vpop.f32.mrb[2].mxu0 }
 0x248   :  { %3153 = vst [vmem:[%s5776_s2] sm:$0xff] %v3685_v61  ;;  %v3686_v3 = vadd.f32 %v2957_v1, %v5441_v37  ;;  %v3556_v4 = vpop.f32.mrb[3].mxu0 }
 0x24a   :  { %3154 = vst [vmem:[%s5776_s2 + $0x8] sm:$0xff] %v3686_v3 }
 0x24d   :  { %v2962_v5 = vpop.f32.mrb[4].mxu0 }
 0x24e   :  { %v3687_v7 = vadd.f32 %v2962_v5, %v5451_v41  ;;  %v3559_v8 = vpop.f32.mrb[5].mxu0 }
 0x24f   :  { %v2965_v10 = vpop.f32.mrb[6].mxu0 }
 0x250   :  { %3155 = vst [vmem:[%s5776_s2 + $0x10] sm:$0xff] %v3687_v7  ;;  %v3688_v34 = vadd.f32 %v2965_v10, %v5456_v44  ;;  %v3560_v11 = vpop.f32.mrb[7].mxu0 }
 0x252   :  { %3156 = vst [vmem:[%s5776_s2 + $0x18] sm:$0xff] %v3688_v34 }
 0x255   :  { %v2970_v37 = vpop.f32.mrb[8].mxu0 }
 0x256   :  { %v3689_v12 = vadd.f32 %v2970_v37, %v5466_v48  ;;  %v3563_v14 = vpop.f32.mrb[9].mxu0 }
 0x257   :  { %v2973_v15 = vpop.f32.mrb[10].mxu0 }
 0x258   :  { %3157 = vst [vmem:[%s5776_s2 + $0x20] sm:$0xff] %v3689_v12  ;;  %v3690_v41 = vadd.f32 %v2973_v15, %v5471_v51  ;;  %v3564_v17 = vpop.f32.mrb[11].mxu0 }
 0x25a   :  { %3158 = vst [vmem:[%s5776_s2 + $0x28] sm:$0xff] %v3690_v41 }
 0x25d   :  { %v2978_v44 = vpop.f32.mrb[12].mxu0 }
 0x25e   :  { %v3691_v18 = vadd.f32 %v2978_v44, %v5481_v55  ;;  %v3567_v19 = vpop.f32.mrb[13].mxu0 }
 0x25f   :  { %v2981_v21 = vpop.f32.mrb[14].mxu0 }
 0x260   :  { %3159 = vst [vmem:[%s5776_s2 + $0x30] sm:$0xff] %v3691_v18  ;;  %v3692_v48 = vadd.f32 %v2981_v21, %v5486_v58  ;;  %v3568_v22 = vpop.f32.mrb[15].mxu0 }
 0x262   :  { %3160 = vst [vmem:[%s5776_s2 + $0x38] sm:$0xff] %v3692_v48 }
 0x265   :  { %v2986_v51 = vpop.f32.mrb[16].mxu0 }
 0x266   :  { %v3693_v24 = vadd.f32 %v2986_v51, %v5496_v62  ;;  %v3571_v25 = vpop.f32.mrb[17].mxu0 }
 0x267   :  { %v2989_v26 = vpop.f32.mrb[18].mxu0 }
 0x268   :  { %3161 = vst [vmem:[%s5776_s2 + $0x40] sm:$0xff] %v3693_v24  ;;  %v3694_v55 = vadd.f32 %v2989_v26, %v5501_v2  ;;  %v3572_v28 = vpop.f32.mrb[19].mxu0 }
 0x26a   :  { %3162 = vst [vmem:[%s5776_s2 + $0x48] sm:$0xff] %v3694_v55 }
 0x26d   :  { %v2994_v58 = vpop.f32.mrb[20].mxu0 }
 0x26e   :  { %v3695_v29 = vadd.f32 %v2994_v58, %v5511_v6  ;;  %v3575_v31 = vpop.f32.mrb[21].mxu0 }
 0x26f   :  { %v2997_v32 = vpop.f32.mrb[22].mxu0 }
 0x270   :  { %3163 = vst [vmem:[%s5776_s2 + $0x50] sm:$0xff] %v3695_v29  ;;  %v3696_v62 = vadd.f32 %v2997_v32, %v5516_v9  ;;  %v3576_v33 = vpop.f32.mrb[23].mxu0 }
 0x272   :  { %3164 = vst [vmem:[%s5776_s2 + $0x58] sm:$0xff] %v3696_v62 }
 0x275   :  { %v3002_v2 = vpop.f32.mrb[24].mxu0 }
 0x276   :  { %v3697_v36 = vadd.f32 %v3002_v2, %v5526_v13  ;;  %v3579_v39 = vpop.f32.mrb[25].mxu0 }
 0x277   :  { %v3005_v40 = vpop.f32.mrb[26].mxu0 }
 0x278   :  { %3165 = vst [vmem:[%s5776_s2 + $0x60] sm:$0xff] %v3697_v36  ;;  %v3698_v6 = vadd.f32 %v3005_v40, %v5531_v16  ;;  %v3580_v42 = vpop.f32.mrb[27].mxu0 }
 0x27a   :  { %3166 = vst [vmem:[%s5776_s2 + $0x68] sm:$0xff] %v3698_v6 }
 0x27d   :  { %v3010_v9 = vpop.f32.mrb[28].mxu0 }
 0x27e   :  { %v3699_v45 = vadd.f32 %v3010_v9, %v5541_v20  ;;  %v3583_v47 = vpop.f32.mrb[29].mxu0 }
 0x27f   :  { %v3013_v49 = vpop.f32.mrb[30].mxu0 }
 0x280   :  { %3167 = vst [vmem:[%s5776_s2 + $0x70] sm:$0xff] %v3699_v45  ;;  %v3700_v13 = vadd.f32 %v3013_v49, %v5546_v23  ;;  %v3584_v52 = vpop.f32.mrb[31].mxu0 }
 0x282   :  { %3168 = vst [vmem:[%s5776_s2 + $0x78] sm:$0xff] %v3700_v13 }
 0x285   :  { %v3018_v16 = vpop.f32.mrb[32].mxu0 }
 0x286   :  { %v3701_v54 = vadd.f32 %v3018_v16, %v5556_v27  ;;  %v3587_v38 = vpop.f32.mrb[33].mxu0 }
 0x287   :  { %v3021_v59 = vpop.f32.mrb[34].mxu0 }
 0x288   :  { %3169 = vst [vmem:[%s5776_s2 + $0x80] sm:$0xff] %v3701_v54  ;;  %v3702_v20 = vadd.f32 %v3021_v59, %v5561_v30  ;;  %v3588_v60 = vpop.f32.mrb[35].mxu0 }
 0x28a   :  { %3170 = vst [vmem:[%s5776_s2 + $0x88] sm:$0xff] %v3702_v20 }
 0x28d   :  { %v3026_v23 = vpop.f32.mrb[36].mxu0 }
 0x28e   :  { %v3703_v61 = vadd.f32 %v3026_v23, %v5571_v35  ;;  %v3591_v63 = vpop.f32.mrb[37].mxu0 }
 0x28f   :  { %v3029_v1 = vpop.f32.mrb[38].mxu0 }
 0x290   :  { %3171 = vst [vmem:[%s5776_s2 + $0x90] sm:$0xff] %v3703_v61  ;;  %v3704_v27 = vadd.f32 %v3029_v1, %v5576_v0  ;;  %v3592_v3 = vpop.f32.mrb[39].mxu0 }
 0x292   :  { %3172 = vst [vmem:[%s5776_s2 + $0x98] sm:$0xff] %v3704_v27 }
 0x295   :  { %v3034_v30 = vpop.f32.mrb[40].mxu0 }
 0x296   :  { %v3705_v4 = vadd.f32 %v3034_v30, %v5583_v43  ;;  %v3595_v5 = vpop.f32.mrb[41].mxu0 }
 0x297   :  { %v3037_v7 = vpop.f32.mrb[42].mxu0 }
 0x298   :  { %3173 = vst [vmem:[%s5776_s2 + $0xa0] sm:$0xff] %v3705_v4  ;;  %v3706_v35 = vadd.f32 %v3037_v7, %v5585_v46  ;;  %v3596_v8 = vpop.f32.mrb[43].mxu0 }
 0x29a   :  { %3174 = vst [vmem:[%s5776_s2 + $0xa8] sm:$0xff] %v3706_v35 }
 0x29d   :  { %v3042_v0 = vpop.f32.mrb[44].mxu0 }
 0x29e   :  { %v3707_v10 = vadd.f32 %v3042_v0, %v5590_v50  ;;  %v3599_v34 = vpop.f32.mrb[45].mxu0 }
 0x29f   :  { %v3045_v11 = vpop.f32.mrb[46].mxu0 }
 0x2a0   :  { %3175 = vst [vmem:[%s5776_s2 + $0xb0] sm:$0xff] %v3707_v10  ;;  %v3708_v43 = vadd.f32 %v3045_v11, %v5592_v53  ;;  %v3600_v37 = vpop.f32.mrb[47].mxu0 }
 0x2a2   :  { %3176 = vst [vmem:[%s5776_s2 + $0xb8] sm:$0xff] %v3708_v43 }
 0x2a4   :  { %v2592_v46 = vpop.f32.mrb[52].mxu1 }
 0x2a5   :  { %v3050_v12 = vpop.f32.mrb[48].mxu0  ;;  %v2594_v14 = vpop.f32.mrb[53].mxu1 }
 0x2a6   :  { %v3709_v15 = vadd.f32 %v3050_v12, %v5594_v56  ;;  %v3603_v41 = vpop.f32.mrb[49].mxu0  ;;  %v2595_v50 = vpop.f32.mrb[54].mxu1 }
 0x2a7   :  { %v3053_v17 = vpop.f32.mrb[50].mxu0  ;;  %v2597_v44 = vpop.f32.mrb[55].mxu1 }
 0x2a8   :  { %3177 = vst [vmem:[%s5776_s2 + $0xc0] sm:$0xff] %v3709_v15  ;;  %v3710_v53 = vadd.f32 %v3053_v17, %v5596_v57  ;;  %v3604_v18 = vpop.f32.mrb[51].mxu0 }
 0x2aa   :  { %3178 = vst [vmem:[%s5776_s2 + $0xc8] sm:$0xff] %v3710_v53 }
 0x2ac   :  { %v2600_v19 = vpop.f32.mrb[56].mxu1 }
 0x2ad   :  { %v3058_v21 = vpop.f32.mrb[52].mxu0  ;;  %v2602_v48 = vpop.f32.mrb[57].mxu1 }
 0x2ae   :  { %v3711_v22 = vadd.f32 %v3058_v21, %v2592_v46  ;;  %v3607_v56 = vpop.f32.mrb[53].mxu0  ;;  %v2603_v51 = vpop.f32.mrb[58].mxu1 }
 0x2af   :  { %v3061_v24 = vpop.f32.mrb[54].mxu0  ;;  %v2605_v25 = vpop.f32.mrb[59].mxu1 }
 0x2b0   :  { %3179 = vst [vmem:[%s5776_s2 + $0xd0] sm:$0xff] %v3711_v22  ;;  %v3712_v26 = vadd.f32 %v3061_v24, %v2595_v50  ;;  %v3608_v55 = vpop.f32.mrb[55].mxu0 }
 0x2b2   :  { %3180 = vst [vmem:[%s5776_s2 + $0xd8] sm:$0xff] %v3712_v26 }
 0x2b4   :  { %v2608_v57 = vpop.f32.mrb[60].mxu1 }
 0x2b5   :  { %v3066_v28 = vpop.f32.mrb[56].mxu0  ;;  %v2610_v58 = vpop.f32.mrb[61].mxu1 }
 0x2b6   :  { %v3713_v29 = vadd.f32 %v3066_v28, %v2600_v19  ;;  %v3611_v31 = vpop.f32.mrb[57].mxu0  ;;  %v2611_v32 = vpop.f32.mrb[62].mxu1 }
 0x2b7   :  { %v3069_v62 = vpop.f32.mrb[58].mxu0  ;;  %v2613_v33 = vpop.f32.mrb[63].mxu1 }
 0x2b8   :  { %3181 = vst [vmem:[%s5776_s2 + $0xe0] sm:$0xff] %v3713_v29  ;;  %v3714_v2 = vadd.f32 %v3069_v62, %v2603_v51  ;;  %v3612_v36 = vpop.f32.mrb[59].mxu0 }
 0x2ba   :  { %3182 = vst [vmem:[%s5776_s2 + $0xe8] sm:$0xff] %v3714_v2 }
 0x2bc   :  { %v2616_v39 = vpop.f32.mrb[64].mxu1 }
 0x2bd   :  { %v3074_v40 = vpop.f32.mrb[60].mxu0  ;;  %v2618_v6 = vpop.f32.mrb[65].mxu1 }
 0x2be   :  { %v3715_v42 = vadd.f32 %v3074_v40, %v2608_v57  ;;  %v3615_v9 = vpop.f32.mrb[61].mxu0  ;;  %v2619_v45 = vpop.f32.mrb[66].mxu1 }
 0x2bf   :  { %v3077_v47 = vpop.f32.mrb[62].mxu0  ;;  %v2621_v49 = vpop.f32.mrb[67].mxu1 }
 0x2c0   :  { %3183 = vst [vmem:[%s5776_s2 + $0xf0] sm:$0xff] %v3715_v42  ;;  %v3716_v13 = vadd.f32 %v3077_v47, %v2611_v32  ;;  %v3616_v52 = vpop.f32.mrb[63].mxu0 }
 0x2c2   :  { %3184 = vst [vmem:[%s5776_s2 + $0xf8] sm:$0xff] %v3716_v13 }
 0x2c4   :  { %v2624_v16 = vpop.f32.mrb[68].mxu1 }
 0x2c5   :  { %v3082_v54 = vpop.f32.mrb[64].mxu0  ;;  %v2626_v38 = vpop.f32.mrb[69].mxu1 }
 0x2c6   :  { %v3717_v59 = vadd.f32 %v3082_v54, %v2616_v39  ;;  %v3619_v20 = vpop.f32.mrb[65].mxu0  ;;  %v2627_v60 = vpop.f32.mrb[70].mxu1 }
 0x2c7   :  { %v3085_v23 = vpop.f32.mrb[66].mxu0  ;;  %v2629_v61 = vpop.f32.mrb[71].mxu1 }
 0x2c8   :  { %3185 = vst [vmem:[%s5776_s2 + $0x100] sm:$0xff] %v3717_v59  ;;  %v3718_v63 = vadd.f32 %v3085_v23, %v2619_v45  ;;  %v3620_v1 = vpop.f32.mrb[67].mxu0 }
 0x2ca   :  { %3186 = vst [vmem:[%s5776_s2 + $0x108] sm:$0xff] %v3718_v63 }
 0x2cc   :  { %v2632_v27 = vpop.f32.mrb[72].mxu1 }
 0x2cd   :  { %v3090_v3 = vpop.f32.mrb[68].mxu0  ;;  %v2634_v30 = vpop.f32.mrb[73].mxu1 }
 0x2ce   :  { %v3719_v4 = vadd.f32 %v3090_v3, %v2624_v16  ;;  %v3623_v5 = vpop.f32.mrb[69].mxu0  ;;  %v2635_v7 = vpop.f32.mrb[74].mxu1 }
 0x2cf   :  { %v3093_v35 = vpop.f32.mrb[70].mxu0  ;;  %v2637_v8 = vpop.f32.mrb[75].mxu1 }
 0x2d0   :  { %3187 = vst [vmem:[%s5776_s2 + $0x110] sm:$0xff] %v3719_v4  ;;  %v3720_v0 = vadd.f32 %v3093_v35, %v2627_v60  ;;  %v3624_v10 = vpop.f32.mrb[71].mxu0 }
 0x2d2   :  { %3188 = vst [vmem:[%s5776_s2 + $0x118] sm:$0xff] %v3720_v0 }
 0x2d4   :  { %v2640_v34 = vpop.f32.mrb[76].mxu1 }
 0x2d5   :  { %v3098_v11 = vpop.f32.mrb[72].mxu0  ;;  %v2642_v43 = vpop.f32.mrb[77].mxu1 }
 0x2d6   :  { %v3721_v37 = vadd.f32 %v3098_v11, %v2632_v27  ;;  %v3627_v46 = vpop.f32.mrb[73].mxu0  ;;  %v2643_v12 = vpop.f32.mrb[78].mxu1 }
 0x2d7   :  { %v3101_v14 = vpop.f32.mrb[74].mxu0  ;;  %v2645_v15 = vpop.f32.mrb[79].mxu1 }
 0x2d8   :  { %3189 = vst [vmem:[%s5776_s2 + $0x120] sm:$0xff] %v3721_v37  ;;  %v3722_v41 = vadd.f32 %v3101_v14, %v2635_v7  ;;  %v3628_v50 = vpop.f32.mrb[75].mxu0 }
 0x2da   :  { %3190 = vst [vmem:[%s5776_s2 + $0x128] sm:$0xff] %v3722_v41 }
 0x2dc   :  { %v2648_v17 = vpop.f32.mrb[80].mxu1 }
 0x2dd   :  { %v3106_v44 = vpop.f32.mrb[76].mxu0  ;;  %v2650_v53 = vpop.f32.mrb[81].mxu1 }
 0x2de   :  { %v3723_v18 = vadd.f32 %v3106_v44, %v2640_v34  ;;  %v3631_v19 = vpop.f32.mrb[77].mxu0  ;;  %v2651_v21 = vpop.f32.mrb[82].mxu1 }
 0x2df   :  { %v3109_v48 = vpop.f32.mrb[78].mxu0  ;;  %v2653_v22 = vpop.f32.mrb[83].mxu1 }
 0x2e0   :  { %3191 = vst [vmem:[%s5776_s2 + $0x130] sm:$0xff] %v3723_v18  ;;  %v3724_v56 = vadd.f32 %v3109_v48, %v2643_v12  ;;  %v3632_v51 = vpop.f32.mrb[79].mxu0 }
 0x2e2   :  { %3192 = vst [vmem:[%s5776_s2 + $0x138] sm:$0xff] %v3724_v56 }
 0x2e4   :  { %v2656_v24 = vpop.f32.mrb[84].mxu1 }
 0x2e5   :  { %v3114_v25 = vpop.f32.mrb[80].mxu0  ;;  %v2658_v26 = vpop.f32.mrb[85].mxu1 }
 0x2e6   :  { %v3725_v55 = vadd.f32 %v3114_v25, %v2648_v17  ;;  %v3635_v57 = vpop.f32.mrb[81].mxu0  ;;  %v2659_v28 = vpop.f32.mrb[86].mxu1 }
 0x2e7   :  { %v3117_v58 = vpop.f32.mrb[82].mxu0  ;;  %v2661_v29 = vpop.f32.mrb[87].mxu1 }
 0x2e8   :  { %3193 = vst [vmem:[%s5776_s2 + $0x140] sm:$0xff] %v3725_v55  ;;  %v3726_v31 = vadd.f32 %v3117_v58, %v2651_v21  ;;  %v3636_v32 = vpop.f32.mrb[83].mxu0 }
 0x2ea   :  { %3194 = vst [vmem:[%s5776_s2 + $0x148] sm:$0xff] %v3726_v31 }
 0x2ec   :  { %v2664_v62 = vpop.f32.mrb[88].mxu1 }
 0x2ed   :  { %v3122_v33 = vpop.f32.mrb[84].mxu0  ;;  %v2666_v2 = vpop.f32.mrb[89].mxu1 }
 0x2ee   :  { %v3727_v36 = vadd.f32 %v3122_v33, %v2656_v24  ;;  %v3639_v39 = vpop.f32.mrb[85].mxu0  ;;  %v2667_v40 = vpop.f32.mrb[90].mxu1 }
 0x2ef   :  { %v3125_v6 = vpop.f32.mrb[86].mxu0  ;;  %v2669_v42 = vpop.f32.mrb[91].mxu1 }
 0x2f0   :  { %3195 = vst [vmem:[%s5776_s2 + $0x150] sm:$0xff] %v3727_v36  ;;  %v3728_v9 = vadd.f32 %v3125_v6, %v2659_v28  ;;  %v3640_v45 = vpop.f32.mrb[87].mxu0 }
 0x2f2   :  { %3196 = vst [vmem:[%s5776_s2 + $0x158] sm:$0xff] %v3728_v9 }
 0x2f4   :  { %v2672_v47 = vpop.f32.mrb[92].mxu1 }
 0x2f5   :  { %v3130_v49 = vpop.f32.mrb[88].mxu0  ;;  %v2674_v13 = vpop.f32.mrb[93].mxu1 }
 0x2f6   :  { %v3729_v52 = vadd.f32 %v3130_v49, %v2664_v62  ;;  %v3643_v16 = vpop.f32.mrb[89].mxu0  ;;  %v2675_v54 = vpop.f32.mrb[94].mxu1 }
 0x2f7   :  { %v3133_v38 = vpop.f32.mrb[90].mxu0  ;;  %v2677_v59 = vpop.f32.mrb[95].mxu1 }
 0x2f8   :  { %3197 = vst [vmem:[%s5776_s2 + $0x160] sm:$0xff] %v3729_v52  ;;  %v3730_v20 = vadd.f32 %v3133_v38, %v2667_v40  ;;  %v3644_v60 = vpop.f32.mrb[91].mxu0 }
 0x2fa   :  { %3198 = vst [vmem:[%s5776_s2 + $0x168] sm:$0xff] %v3730_v20 }
 0x2fc   :  { %v2680_v23 = vpop.f32.mrb[96].mxu1 }
 0x2fd   :  { %v3138_v61 = vpop.f32.mrb[92].mxu0  ;;  %v2682_v63 = vpop.f32.mrb[97].mxu1 }
 0x2fe   :  { %v3731_v1 = vadd.f32 %v3138_v61, %v2672_v47  ;;  %v3647_v27 = vpop.f32.mrb[93].mxu0  ;;  %v2683_v3 = vpop.f32.mrb[98].mxu1 }
 0x2ff   :  { %v3141_v30 = vpop.f32.mrb[94].mxu0  ;;  %v2685_v4 = vpop.f32.mrb[99].mxu1 }
 0x300   :  { %3199 = vst [vmem:[%s5776_s2 + $0x170] sm:$0xff] %v3731_v1  ;;  %v3732_v5 = vadd.f32 %v3141_v30, %v2675_v54  ;;  %v3648_v7 = vpop.f32.mrb[95].mxu0 }
 0x302   :  { %3200 = vst [vmem:[%s5776_s2 + $0x178] sm:$0xff] %v3732_v5 }
 0x305   :  { %v3146_v35 = vpop.f32.mrb[96].mxu0 }
 0x306   :  { %v3733_v8 = vadd.f32 %v3146_v35, %v2680_v23  ;;  %v3651_v0 = vpop.f32.mrb[97].mxu0 }
 0x307   :  { %v3149_v10 = vpop.f32.mrb[98].mxu0 }
 0x308   :  { %3201 = vst [vmem:[%s5776_s2 + $0x180] sm:$0xff] %v3733_v8  ;;  %v3734_v34 = vadd.f32 %v3149_v10, %v2683_v3  ;;  %v3652_v11 = vpop.f32.mrb[99].mxu0 }
 0x30a   :  { %3202 = vst [vmem:[%s5776_s2 + $0x188] sm:$0xff] %v3734_v34 }

</bundles_post_ra>
